<compile_context>
chip_gen: v6e
topology: v6e:2x2x1
jax: 0.10.0
libtpu: 0.0.40
codegen_flags: <defaults>
</compile_context>

<pallas_src>
import jax
import jax.numpy as jnp
from jax import lax
from jax.experimental import pallas as pl
from jax.experimental.pallas import tpu as pltpu

EPS = 1e-3  # BatchNorm2d(eps=0.001)


# ----------------------------- Pallas kernel --------------------------------

def _aux_fused_kernel(pooled_ref, w0_ref, b0_ref, w1_ref, wf_ref, bf_ref, o_ref):
    """Fused: (pool-folded) 1x1 conv + BN  ->  5x5 conv + BN  ->  fc.

    pooled_ref : (P, bt, C)     bf16   5x5 window *sums* (the /25 is folded into w0)
    w0_ref     : (C, 128)       bf16   conv0 weight * bn0_scale / 25
    b0_ref     : (1, 128)       f32    conv0 bias folded with bn0
    w1_ref     : (P, 128, 768)  bf16   conv1 weight (per position) * bn1_scale
    wf_ref     : (768, 1024)    bf16   fc weight^T, lane padded 1000 -> 1024
    bf_ref     : (1, 1024)      f32    fc bias + (conv1 bias fold) @ fc_w^T, padded
    o_ref      : (bt, 1024)     f32
    """
    P = w1_ref.shape[0]
    n_rows = pooled_ref.shape[1]
    w0 = w0_ref[...]
    b0 = b0_ref[...]

    h = jnp.zeros((n_rows, w1_ref.shape[2]), jnp.float32)
    for p in range(P):  # static unroll over the 25 pooled positions
        a_p = jnp.dot(pooled_ref[p], w0, preferred_element_type=jnp.float32) + b0
        h = h + jnp.dot(a_p.astype(jnp.bfloat16), w1_ref[p],
                        preferred_element_type=jnp.float32)

    o_ref[...] = (jnp.dot(h.astype(jnp.bfloat16), wf_ref[...],
                          preferred_element_type=jnp.float32) + bf_ref[...])


# --------------------------- parameter preparation ---------------------------

def prepare_params(params, c_in):
    """One-time host-side folding of pool /25, BatchNorms and biases into weights."""
    s0 = params["bn0_gamma"] / jnp.sqrt(params["bn0_var"] + EPS)
    t0 = params["bn0_beta"] - params["bn0_mean"] * s0
    s1 = params["bn1_gamma"] / jnp.sqrt(params["bn1_var"] + EPS)
    t1 = params["bn1_beta"] - params["bn1_mean"] * s1

    # conv0 (1x1): fold bn0 scale and the avg-pool 1/25 into the weight.
    w0 = params["conv0_w"].reshape(128, c_in).T                       # (C, 128)
    w0_eff = (w0 * s0[None, :]) / 25.0
    b0_eff = params["conv0_b"] * s0 + t0                              # (128,)

    # conv1 (5x5 valid -> 1x1): (O=768, I=128, KH, KW) -> (P=25, 128, 768),
    # fold bn1 scale into the output channels.
    w1 = jnp.transpose(params["conv1_w"], (2, 3, 1, 0)).reshape(25, 128, 768)
    w1_eff = w1 * s1[None, None, :]
    t1_eff = params["conv1_b"] * s1 + t1                              # (768,)

    # fc: fold conv1's per-channel constant (t1_eff) through fc into its bias,
    # transpose and lane-pad the output dimension 1000 -> 1024.
    wf = params["fc_w"].T                                             # (768, 1000)
    bf_eff = params["fc_b"] + t1_eff @ wf                             # (1000,)
    wf_pad = jnp.zeros((768, 1024), jnp.float32).at[:, :1000].set(wf)
    bf_pad = jnp.zeros((1024,), jnp.float32).at[:1000].set(bf_eff)

    return {
        "w0": w0_eff.astype(jnp.bfloat16),
        "b0": b0_eff.reshape(1, 128).astype(jnp.float32),
        "w1": w1_eff.astype(jnp.bfloat16),
        "wf": wf_pad.astype(jnp.bfloat16),
        "bf": bf_pad.reshape(1, 1024).astype(jnp.float32),
    }


# ------------------------------- forward ------------------------------------

def block_aux_forward(x, prep):
    """x: (N, C, H, W) float32 (NCHW, same as PyTorch). prep: prepare_params output."""
    N, C, H, W = x.shape
    K, S = 5, 3
    PH, PW = (H - K) // S + 1, (W - K) // S + 1
    P = PH * PW
    assert PH == 5 and PW == 5, "BlockAux requires pooled spatial == 5x5 (e.g. 17x17 input)"

    # avg-pool window *sums*; the 1/25 is folded into the conv0 weight.
    summed = lax.reduce_window(x, 0.0, lax.add, (1, 1, K, K), (1, 1, S, S), "VALID")
    pooled = jnp.transpose(summed, (2, 3, 0, 1)).reshape(P, N, C).astype(jnp.bfloat16)

    # Batch tile: largest "nice" divisor of N (weights stay VMEM-resident across
    # the grid via constant index maps; batch axis shards across cores on v7x).
    bt = N
    for cand in (128, 64, 32, 16, 8):
        if N % cand == 0:
            bt = cand
            break
    grid = (N // bt,)

    out = pl.pallas_call(
        _aux_fused_kernel,
        out_shape=jax.ShapeDtypeStruct((N, 1024), jnp.float32),
        grid=grid,
        in_specs=[
            pl.BlockSpec((P, bt, C), lambda i: (0, i, 0)),       # pooled window sums
            pl.BlockSpec((C, 128), lambda i: (0, 0)),            # w0 (folded)
            pl.BlockSpec((1, 128), lambda i: (0, 0)),            # b0 (folded)
            pl.BlockSpec((P, 128, 768), lambda i: (0, 0, 0)),    # w1 (folded)
            pl.BlockSpec((768, 1024), lambda i: (0, 0)),         # fc weight^T (padded)
            pl.BlockSpec((1, 1024), lambda i: (0, 0)),           # fc bias (folded, padded)
        ],
        out_specs=pl.BlockSpec((bt, 1024), lambda i: (i, 0)),
        compiler_params=pltpu.CompilerParams(
            dimension_semantics=("parallel",),
            vmem_limit_bytes=32 * 1024 * 1024,
        ),
    )(pooled, prep["w0"], prep["b0"], prep["w1"], prep["wf"], prep["bf"])

    return out[:, :1000]


# --------------------------- pure-JAX reference ------------------------------

def block_aux_reference(x, params):
    dn = ("NCHW", "OIHW", "NCHW")

    def bn(v, g, b, m, var):
        sh = (1, -1, 1, 1)
        return (v - m.reshape(sh)) / jnp.sqrt(var.reshape(sh) + EPS) * g.reshape(sh) + b.reshape(sh)

    p = lax.reduce_window(x, 0.0, lax.add, (1, 1, 5, 5), (1, 1, 3, 3), "VALID") / 25.0
    a = lax.conv_general_dilated(p, params["conv0_w"], (1, 1), "VALID", dimension_numbers=dn)
    a = a + params["conv0_b"][None, :, None, None]
    a = bn(a, params["bn0_gamma"], params["bn0_beta"], params["bn0_mean"], params["bn0_var"])
    b = lax.conv_general_dilated(a, params["conv1_w"], (1, 1), "VALID", dimension_numbers=dn)
    b = b + params["conv1_b"][None, :, None, None]
    b = bn(b, params["bn1_gamma"], params["bn1_beta"], params["bn1_mean"], params["bn1_var"])
    b = b.reshape(b.shape[0], -1)                                   # (N, 768)
    return b @ params["fc_w"].T + params["fc_b"]


# ------------------------------ params init ----------------------------------

def init_params(key, c_in):
    ks = jax.random.split(key, 14)
    f32 = jnp.float32
    return {
        "conv0_w": 0.1 * jax.random.normal(ks[0], (128, c_in, 1, 1), f32),
        "conv0_b": 0.05 * jax.random.normal(ks[1], (128,), f32),
        "bn0_gamma": 1.0 + 0.1 * jax.random.normal(ks[2], (128,), f32),
        "bn0_beta": 0.1 * jax.random.normal(ks[3], (128,), f32),
        "bn0_mean": 0.05 * jax.random.normal(ks[4], (128,), f32),
        "bn0_var": jax.random.uniform(ks[5], (128,), f32, 0.5, 1.5),
        "conv1_w": 0.01 * jax.random.normal(ks[6], (768, 128, 5, 5), f32),  # conv1.stddev = 0.01
        "conv1_b": 0.05 * jax.random.normal(ks[7], (768,), f32),
        "bn1_gamma": 1.0 + 0.1 * jax.random.normal(ks[8], (768,), f32),
        "bn1_beta": 0.1 * jax.random.normal(ks[9], (768,), f32),
        "bn1_mean": 0.05 * jax.random.normal(ks[10], (768,), f32),
        "bn1_var": jax.random.uniform(ks[11], (768,), f32, 0.5, 1.5),
        "fc_w": 0.001 * jax.random.normal(ks[12], (1000, 768), f32),        # fc.stddev = 0.001
        "fc_b": 0.05 * jax.random.normal(ks[13], (1000,), f32),
    }


if __name__ == "__main__":
    key = jax.random.PRNGKey(0)
    kx, kp = jax.random.split(key)
    C_IN = 4
    # 17x17 spatial: avg_pool(5,3) -> 5x5, conv1 (5x5 valid) -> 1x1, so view(N,-1) == 768.
    x = jax.random.normal(kx, (2, C_IN, 17, 17), jnp.float32)
    params = init_params(kp, C_IN)

    prep = jax.block_until_ready(prepare_params(params, C_IN))     # one-time weight folding
    fwd = jax.jit(block_aux_forward)

    out = jax.block_until_ready(fwd(x, prep))
    ref = jax.block_until_ready(block_aux_reference(x, params))

    assert out.shape == (2, 1000), out.shape
    if not jnp.allclose(out, ref, atol=1e-2, rtol=1e-2):
        raise AssertionError(
            f"mismatch vs reference, max abs diff = {float(jnp.max(jnp.abs(out - ref)))}"
        )
    print("KERNEL_OK")
</pallas_src>

<mosaic_0001>
module attributes {stable_mosaic.version = 11 : i64} {
  func.func @_aux_fused_kernel(%arg0: i32, %arg1: memref<25x2x4xbf16, #tpu.memory_space<vmem>>, %arg2: memref<4x128xbf16, #tpu.memory_space<vmem>>, %arg3: memref<1x128xf32, #tpu.memory_space<vmem>>, %arg4: memref<25x128x768xbf16, #tpu.memory_space<vmem>>, %arg5: memref<768x1024xbf16, #tpu.memory_space<vmem>>, %arg6: memref<1x1024xf32, #tpu.memory_space<vmem>>, %arg7: memref<2x1024xf32, #tpu.memory_space<vmem>>) attributes {dimension_semantics = [#tpu.dimension_semantics<parallel>], iteration_bounds = array<i64: 1>, scalar_prefetch = 0 : i64, scratch_operands = 0 : i64, tpu.core_type = #tpu.core_type<tc>, window_params = [{transform_indices = @transform_0, window_bounds = array<i64: 25, 2, 4>}, {pipeline_mode = #tpu.pipeline_mode<synchronous>, transform_indices = @transform_1, window_bounds = array<i64: 4, 128>}, {pipeline_mode = #tpu.pipeline_mode<synchronous>, transform_indices = @transform_2, window_bounds = array<i64: 1, 128>}, {pipeline_mode = #tpu.pipeline_mode<synchronous>, transform_indices = @transform_3, window_bounds = array<i64: 25, 128, 768>}, {pipeline_mode = #tpu.pipeline_mode<synchronous>, transform_indices = @transform_4, window_bounds = array<i64: 768, 1024>}, {pipeline_mode = #tpu.pipeline_mode<synchronous>, transform_indices = @transform_5, window_bounds = array<i64: 1, 1024>}, {transform_indices = @transform_6, window_bounds = array<i64: 2, 1024>}]} {
    %c0 = arith.constant 0 : index
    %c0_0 = arith.constant 0 : index
    %0 = vector.load %arg2[%c0, %c0_0] : memref<4x128xbf16, #tpu.memory_space<vmem>>, vector<4x128xbf16>
    %c0_1 = arith.constant 0 : index
    %c0_2 = arith.constant 0 : index
    %1 = vector.load %arg3[%c0_1, %c0_2] : memref<1x128xf32, #tpu.memory_space<vmem>>, vector<1x128xf32>
    %cst = arith.constant 0.000000e+00 : f32
    %2 = vector.broadcast %cst : f32 to vector<2x768xf32>
    %c0_3 = arith.constant 0 : index
    %c0_4 = arith.constant 0 : index
    %c0_5 = arith.constant 0 : index
    %3 = vector.load %arg1[%c0_3, %c0_4, %c0_5] : memref<25x2x4xbf16, #tpu.memory_space<vmem>>, vector<1x2x4xbf16>
    %4 = vector.shape_cast %3 : vector<1x2x4xbf16> to vector<2x4xbf16>
    %cst_6 = arith.constant dense<0.000000e+00> : vector<2x128xf32>
    %5 = tpu.matmul %4, %0, %cst_6 {dimension_numbers = #tpu.dot_dimension_numbers<[1], [0], [0], [1], [0, 0, 1, 1], [], []>} : vector<2x4xbf16>, vector<4x128xbf16>, vector<2x128xf32> -> vector<2x128xf32>
    %6 = vector.broadcast %1 : vector<1x128xf32> to vector<2x128xf32>
    %7 = arith.addf %5, %6 : vector<2x128xf32>
    %8 = arith.truncf %7 : vector<2x128xf32> to vector<2x128xbf16>
    %c0_7 = arith.constant 0 : index
    %c0_8 = arith.constant 0 : index
    %c0_9 = arith.constant 0 : index
    %9 = vector.load %arg4[%c0_7, %c0_8, %c0_9] : memref<25x128x768xbf16, #tpu.memory_space<vmem>>, vector<1x128x768xbf16>
    %10 = vector.shape_cast %9 : vector<1x128x768xbf16> to vector<128x768xbf16>
    %cst_10 = arith.constant dense<0.000000e+00> : vector<2x768xf32>
    %11 = tpu.matmul %8, %10, %cst_10 {dimension_numbers = #tpu.dot_dimension_numbers<[1], [0], [0], [1], [0, 0, 1, 1], [], []>} : vector<2x128xbf16>, vector<128x768xbf16>, vector<2x768xf32> -> vector<2x768xf32>
    %12 = arith.addf %2, %11 : vector<2x768xf32>
    %c1 = arith.constant 1 : index
    %c0_11 = arith.constant 0 : index
    %c0_12 = arith.constant 0 : index
    %13 = vector.load %arg1[%c1, %c0_11, %c0_12] : memref<25x2x4xbf16, #tpu.memory_space<vmem>>, vector<1x2x4xbf16>
    %14 = vector.shape_cast %13 : vector<1x2x4xbf16> to vector<2x4xbf16>
    %cst_13 = arith.constant dense<0.000000e+00> : vector<2x128xf32>
    %15 = tpu.matmul %14, %0, %cst_13 {dimension_numbers = #tpu.dot_dimension_numbers<[1], [0], [0], [1], [0, 0, 1, 1], [], []>} : vector<2x4xbf16>, vector<4x128xbf16>, vector<2x128xf32> -> vector<2x128xf32>
    %16 = vector.broadcast %1 : vector<1x128xf32> to vector<2x128xf32>
    %17 = arith.addf %15, %16 : vector<2x128xf32>
    %18 = arith.truncf %17 : vector<2x128xf32> to vector<2x128xbf16>
    %c1_14 = arith.constant 1 : index
    %c0_15 = arith.constant 0 : index
    %c0_16 = arith.constant 0 : index
    %19 = vector.load %arg4[%c1_14, %c0_15, %c0_16] : memref<25x128x768xbf16, #tpu.memory_space<vmem>>, vector<1x128x768xbf16>
    %20 = vector.shape_cast %19 : vector<1x128x768xbf16> to vector<128x768xbf16>
    %cst_17 = arith.constant dense<0.000000e+00> : vector<2x768xf32>
    %21 = tpu.matmul %18, %20, %cst_17 {dimension_numbers = #tpu.dot_dimension_numbers<[1], [0], [0], [1], [0, 0, 1, 1], [], []>} : vector<2x128xbf16>, vector<128x768xbf16>, vector<2x768xf32> -> vector<2x768xf32>
    %22 = arith.addf %12, %21 : vector<2x768xf32>
    %c2 = arith.constant 2 : index
    %c0_18 = arith.constant 0 : index
    %c0_19 = arith.constant 0 : index
    %23 = vector.load %arg1[%c2, %c0_18, %c0_19] : memref<25x2x4xbf16, #tpu.memory_space<vmem>>, vector<1x2x4xbf16>
    %24 = vector.shape_cast %23 : vector<1x2x4xbf16> to vector<2x4xbf16>
    %cst_20 = arith.constant dense<0.000000e+00> : vector<2x128xf32>
    %25 = tpu.matmul %24, %0, %cst_20 {dimension_numbers = #tpu.dot_dimension_numbers<[1], [0], [0], [1], [0, 0, 1, 1], [], []>} : vector<2x4xbf16>, vector<4x128xbf16>, vector<2x128xf32> -> vector<2x128xf32>
    %26 = vector.broadcast %1 : vector<1x128xf32> to vector<2x128xf32>
    %27 = arith.addf %25, %26 : vector<2x128xf32>
    %28 = arith.truncf %27 : vector<2x128xf32> to vector<2x128xbf16>
    %c2_21 = arith.constant 2 : index
    %c0_22 = arith.constant 0 : index
    %c0_23 = arith.constant 0 : index
    %29 = vector.load %arg4[%c2_21, %c0_22, %c0_23] : memref<25x128x768xbf16, #tpu.memory_space<vmem>>, vector<1x128x768xbf16>
    %30 = vector.shape_cast %29 : vector<1x128x768xbf16> to vector<128x768xbf16>
    %cst_24 = arith.constant dense<0.000000e+00> : vector<2x768xf32>
    %31 = tpu.matmul %28, %30, %cst_24 {dimension_numbers = #tpu.dot_dimension_numbers<[1], [0], [0], [1], [0, 0, 1, 1], [], []>} : vector<2x128xbf16>, vector<128x768xbf16>, vector<2x768xf32> -> vector<2x768xf32>
    %32 = arith.addf %22, %31 : vector<2x768xf32>
    %c3 = arith.constant 3 : index
    %c0_25 = arith.constant 0 : index
    %c0_26 = arith.constant 0 : index
    %33 = vector.load %arg1[%c3, %c0_25, %c0_26] : memref<25x2x4xbf16, #tpu.memory_space<vmem>>, vector<1x2x4xbf16>
    %34 = vector.shape_cast %33 : vector<1x2x4xbf16> to vector<2x4xbf16>
    %cst_27 = arith.constant dense<0.000000e+00> : vector<2x128xf32>
    %35 = tpu.matmul %34, %0, %cst_27 {dimension_numbers = #tpu.dot_dimension_numbers<[1], [0], [0], [1], [0, 0, 1, 1], [], []>} : vector<2x4xbf16>, vector<4x128xbf16>, vector<2x128xf32> -> vector<2x128xf32>
    %36 = vector.broadcast %1 : vector<1x128xf32> to vector<2x128xf32>
    %37 = arith.addf %35, %36 : vector<2x128xf32>
    %38 = arith.truncf %37 : vector<2x128xf32> to vector<2x128xbf16>
    %c3_28 = arith.constant 3 : index
    %c0_29 = arith.constant 0 : index
    %c0_30 = arith.constant 0 : index
    %39 = vector.load %arg4[%c3_28, %c0_29, %c0_30] : memref<25x128x768xbf16, #tpu.memory_space<vmem>>, vector<1x128x768xbf16>
    %40 = vector.shape_cast %39 : vector<1x128x768xbf16> to vector<128x768xbf16>
    %cst_31 = arith.constant dense<0.000000e+00> : vector<2x768xf32>
    %41 = tpu.matmul %38, %40, %cst_31 {dimension_numbers = #tpu.dot_dimension_numbers<[1], [0], [0], [1], [0, 0, 1, 1], [], []>} : vector<2x128xbf16>, vector<128x768xbf16>, vector<2x768xf32> -> vector<2x768xf32>
    %42 = arith.addf %32, %41 : vector<2x768xf32>
    %c4 = arith.constant 4 : index
    %c0_32 = arith.constant 0 : index
    %c0_33 = arith.constant 0 : index
    %43 = vector.load %arg1[%c4, %c0_32, %c0_33] : memref<25x2x4xbf16, #tpu.memory_space<vmem>>, vector<1x2x4xbf16>
    %44 = vector.shape_cast %43 : vector<1x2x4xbf16> to vector<2x4xbf16>
    %cst_34 = arith.constant dense<0.000000e+00> : vector<2x128xf32>
    %45 = tpu.matmul %44, %0, %cst_34 {dimension_numbers = #tpu.dot_dimension_numbers<[1], [0], [0], [1], [0, 0, 1, 1], [], []>} : vector<2x4xbf16>, vector<4x128xbf16>, vector<2x128xf32> -> vector<2x128xf32>
    %46 = vector.broadcast %1 : vector<1x128xf32> to vector<2x128xf32>
    %47 = arith.addf %45, %46 : vector<2x128xf32>
    %48 = arith.truncf %47 : vector<2x128xf32> to vector<2x128xbf16>
    %c4_35 = arith.constant 4 : index
    %c0_36 = arith.constant 0 : index
    %c0_37 = arith.constant 0 : index
    %49 = vector.load %arg4[%c4_35, %c0_36, %c0_37] : memref<25x128x768xbf16, #tpu.memory_space<vmem>>, vector<1x128x768xbf16>
    %50 = vector.shape_cast %49 : vector<1x128x768xbf16> to vector<128x768xbf16>
    %cst_38 = arith.constant dense<0.000000e+00> : vector<2x768xf32>
    %51 = tpu.matmul %48, %50, %cst_38 {dimension_numbers = #tpu.dot_dimension_numbers<[1], [0], [0], [1], [0, 0, 1, 1], [], []>} : vector<2x128xbf16>, vector<128x768xbf16>, vector<2x768xf32> -> vector<2x768xf32>
    %52 = arith.addf %42, %51 : vector<2x768xf32>
    %c5 = arith.constant 5 : index
    %c0_39 = arith.constant 0 : index
    %c0_40 = arith.constant 0 : index
    %53 = vector.load %arg1[%c5, %c0_39, %c0_40] : memref<25x2x4xbf16, #tpu.memory_space<vmem>>, vector<1x2x4xbf16>
    %54 = vector.shape_cast %53 : vector<1x2x4xbf16> to vector<2x4xbf16>
    %cst_41 = arith.constant dense<0.000000e+00> : vector<2x128xf32>
    %55 = tpu.matmul %54, %0, %cst_41 {dimension_numbers = #tpu.dot_dimension_numbers<[1], [0], [0], [1], [0, 0, 1, 1], [], []>} : vector<2x4xbf16>, vector<4x128xbf16>, vector<2x128xf32> -> vector<2x128xf32>
    %56 = vector.broadcast %1 : vector<1x128xf32> to vector<2x128xf32>
    %57 = arith.addf %55, %56 : vector<2x128xf32>
    %58 = arith.truncf %57 : vector<2x128xf32> to vector<2x128xbf16>
    %c5_42 = arith.constant 5 : index
    %c0_43 = arith.constant 0 : index
    %c0_44 = arith.constant 0 : index
    %59 = vector.load %arg4[%c5_42, %c0_43, %c0_44] : memref<25x128x768xbf16, #tpu.memory_space<vmem>>, vector<1x128x768xbf16>
    %60 = vector.shape_cast %59 : vector<1x128x768xbf16> to vector<128x768xbf16>
    %cst_45 = arith.constant dense<0.000000e+00> : vector<2x768xf32>
    %61 = tpu.matmul %58, %60, %cst_45 {dimension_numbers = #tpu.dot_dimension_numbers<[1], [0], [0], [1], [0, 0, 1, 1], [], []>} : vector<2x128xbf16>, vector<128x768xbf16>, vector<2x768xf32> -> vector<2x768xf32>
    %62 = arith.addf %52, %61 : vector<2x768xf32>
    %c6 = arith.constant 6 : index
    %c0_46 = arith.constant 0 : index
    %c0_47 = arith.constant 0 : index
    %63 = vector.load %arg1[%c6, %c0_46, %c0_47] : memref<25x2x4xbf16, #tpu.memory_space<vmem>>, vector<1x2x4xbf16>
    %64 = vector.shape_cast %63 : vector<1x2x4xbf16> to vector<2x4xbf16>
    %cst_48 = arith.constant dense<0.000000e+00> : vector<2x128xf32>
    %65 = tpu.matmul %64, %0, %cst_48 {dimension_numbers = #tpu.dot_dimension_numbers<[1], [0], [0], [1], [0, 0, 1, 1], [], []>} : vector<2x4xbf16>, vector<4x128xbf16>, vector<2x128xf32> -> vector<2x128xf32>
    %66 = vector.broadcast %1 : vector<1x128xf32> to vector<2x128xf32>
    %67 = arith.addf %65, %66 : vector<2x128xf32>
    %68 = arith.truncf %67 : vector<2x128xf32> to vector<2x128xbf16>
    %c6_49 = arith.constant 6 : index
    %c0_50 = arith.constant 0 : index
    %c0_51 = arith.constant 0 : index
    %69 = vector.load %arg4[%c6_49, %c0_50, %c0_51] : memref<25x128x768xbf16, #tpu.memory_space<vmem>>, vector<1x128x768xbf16>
    %70 = vector.shape_cast %69 : vector<1x128x768xbf16> to vector<128x768xbf16>
    %cst_52 = arith.constant dense<0.000000e+00> : vector<2x768xf32>
    %71 = tpu.matmul %68, %70, %cst_52 {dimension_numbers = #tpu.dot_dimension_numbers<[1], [0], [0], [1], [0, 0, 1, 1], [], []>} : vector<2x128xbf16>, vector<128x768xbf16>, vector<2x768xf32> -> vector<2x768xf32>
    %72 = arith.addf %62, %71 : vector<2x768xf32>
    %c7 = arith.constant 7 : index
    %c0_53 = arith.constant 0 : index
    %c0_54 = arith.constant 0 : index
    %73 = vector.load %arg1[%c7, %c0_53, %c0_54] : memref<25x2x4xbf16, #tpu.memory_space<vmem>>, vector<1x2x4xbf16>
    %74 = vector.shape_cast %73 : vector<1x2x4xbf16> to vector<2x4xbf16>
    %cst_55 = arith.constant dense<0.000000e+00> : vector<2x128xf32>
    %75 = tpu.matmul %74, %0, %cst_55 {dimension_numbers = #tpu.dot_dimension_numbers<[1], [0], [0], [1], [0, 0, 1, 1], [], []>} : vector<2x4xbf16>, vector<4x128xbf16>, vector<2x128xf32> -> vector<2x128xf32>
    %76 = vector.broadcast %1 : vector<1x128xf32> to vector<2x128xf32>
    %77 = arith.addf %75, %76 : vector<2x128xf32>
    %78 = arith.truncf %77 : vector<2x128xf32> to vector<2x128xbf16>
    %c7_56 = arith.constant 7 : index
    %c0_57 = arith.constant 0 : index
    %c0_58 = arith.constant 0 : index
    %79 = vector.load %arg4[%c7_56, %c0_57, %c0_58] : memref<25x128x768xbf16, #tpu.memory_space<vmem>>, vector<1x128x768xbf16>
    %80 = vector.shape_cast %79 : vector<1x128x768xbf16> to vector<128x768xbf16>
    %cst_59 = arith.constant dense<0.000000e+00> : vector<2x768xf32>
    %81 = tpu.matmul %78, %80, %cst_59 {dimension_numbers = #tpu.dot_dimension_numbers<[1], [0], [0], [1], [0, 0, 1, 1], [], []>} : vector<2x128xbf16>, vector<128x768xbf16>, vector<2x768xf32> -> vector<2x768xf32>
    %82 = arith.addf %72, %81 : vector<2x768xf32>
    %c8 = arith.constant 8 : index
    %c0_60 = arith.constant 0 : index
    %c0_61 = arith.constant 0 : index
    %83 = vector.load %arg1[%c8, %c0_60, %c0_61] : memref<25x2x4xbf16, #tpu.memory_space<vmem>>, vector<1x2x4xbf16>
    %84 = vector.shape_cast %83 : vector<1x2x4xbf16> to vector<2x4xbf16>
    %cst_62 = arith.constant dense<0.000000e+00> : vector<2x128xf32>
    %85 = tpu.matmul %84, %0, %cst_62 {dimension_numbers = #tpu.dot_dimension_numbers<[1], [0], [0], [1], [0, 0, 1, 1], [], []>} : vector<2x4xbf16>, vector<4x128xbf16>, vector<2x128xf32> -> vector<2x128xf32>
    %86 = vector.broadcast %1 : vector<1x128xf32> to vector<2x128xf32>
    %87 = arith.addf %85, %86 : vector<2x128xf32>
    %88 = arith.truncf %87 : vector<2x128xf32> to vector<2x128xbf16>
    %c8_63 = arith.constant 8 : index
    %c0_64 = arith.constant 0 : index
    %c0_65 = arith.constant 0 : index
    %89 = vector.load %arg4[%c8_63, %c0_64, %c0_65] : memref<25x128x768xbf16, #tpu.memory_space<vmem>>, vector<1x128x768xbf16>
    %90 = vector.shape_cast %89 : vector<1x128x768xbf16> to vector<128x768xbf16>
    %cst_66 = arith.constant dense<0.000000e+00> : vector<2x768xf32>
    %91 = tpu.matmul %88, %90, %cst_66 {dimension_numbers = #tpu.dot_dimension_numbers<[1], [0], [0], [1], [0, 0, 1, 1], [], []>} : vector<2x128xbf16>, vector<128x768xbf16>, vector<2x768xf32> -> vector<2x768xf32>
    %92 = arith.addf %82, %91 : vector<2x768xf32>
    %c9 = arith.constant 9 : index
    %c0_67 = arith.constant 0 : index
    %c0_68 = arith.constant 0 : index
    %93 = vector.load %arg1[%c9, %c0_67, %c0_68] : memref<25x2x4xbf16, #tpu.memory_space<vmem>>, vector<1x2x4xbf16>
    %94 = vector.shape_cast %93 : vector<1x2x4xbf16> to vector<2x4xbf16>
    %cst_69 = arith.constant dense<0.000000e+00> : vector<2x128xf32>
    %95 = tpu.matmul %94, %0, %cst_69 {dimension_numbers = #tpu.dot_dimension_numbers<[1], [0], [0], [1], [0, 0, 1, 1], [], []>} : vector<2x4xbf16>, vector<4x128xbf16>, vector<2x128xf32> -> vector<2x128xf32>
    %96 = vector.broadcast %1 : vector<1x128xf32> to vector<2x128xf32>
    %97 = arith.addf %95, %96 : vector<2x128xf32>
    %98 = arith.truncf %97 : vector<2x128xf32> to vector<2x128xbf16>
    %c9_70 = arith.constant 9 : index
    %c0_71 = arith.constant 0 : index
    %c0_72 = arith.constant 0 : index
    %99 = vector.load %arg4[%c9_70, %c0_71, %c0_72] : memref<25x128x768xbf16, #tpu.memory_space<vmem>>, vector<1x128x768xbf16>
    %100 = vector.shape_cast %99 : vector<1x128x768xbf16> to vector<128x768xbf16>
    %cst_73 = arith.constant dense<0.000000e+00> : vector<2x768xf32>
    %101 = tpu.matmul %98, %100, %cst_73 {dimension_numbers = #tpu.dot_dimension_numbers<[1], [0], [0], [1], [0, 0, 1, 1], [], []>} : vector<2x128xbf16>, vector<128x768xbf16>, vector<2x768xf32> -> vector<2x768xf32>
    %102 = arith.addf %92, %101 : vector<2x768xf32>
    %c10 = arith.constant 10 : index
    %c0_74 = arith.constant 0 : index
    %c0_75 = arith.constant 0 : index
    %103 = vector.load %arg1[%c10, %c0_74, %c0_75] : memref<25x2x4xbf16, #tpu.memory_space<vmem>>, vector<1x2x4xbf16>
    %104 = vector.shape_cast %103 : vector<1x2x4xbf16> to vector<2x4xbf16>
    %cst_76 = arith.constant dense<0.000000e+00> : vector<2x128xf32>
    %105 = tpu.matmul %104, %0, %cst_76 {dimension_numbers = #tpu.dot_dimension_numbers<[1], [0], [0], [1], [0, 0, 1, 1], [], []>} : vector<2x4xbf16>, vector<4x128xbf16>, vector<2x128xf32> -> vector<2x128xf32>
    %106 = vector.broadcast %1 : vector<1x128xf32> to vector<2x128xf32>
    %107 = arith.addf %105, %106 : vector<2x128xf32>
    %108 = arith.truncf %107 : vector<2x128xf32> to vector<2x128xbf16>
    %c10_77 = arith.constant 10 : index
    %c0_78 = arith.constant 0 : index
    %c0_79 = arith.constant 0 : index
    %109 = vector.load %arg4[%c10_77, %c0_78, %c0_79] : memref<25x128x768xbf16, #tpu.memory_space<vmem>>, vector<1x128x768xbf16>
    %110 = vector.shape_cast %109 : vector<1x128x768xbf16> to vector<128x768xbf16>
    %cst_80 = arith.constant dense<0.000000e+00> : vector<2x768xf32>
    %111 = tpu.matmul %108, %110, %cst_80 {dimension_numbers = #tpu.dot_dimension_numbers<[1], [0], [0], [1], [0, 0, 1, 1], [], []>} : vector<2x128xbf16>, vector<128x768xbf16>, vector<2x768xf32> -> vector<2x768xf32>
    %112 = arith.addf %102, %111 : vector<2x768xf32>
    %c11 = arith.constant 11 : index
    %c0_81 = arith.constant 0 : index
    %c0_82 = arith.constant 0 : index
    %113 = vector.load %arg1[%c11, %c0_81, %c0_82] : memref<25x2x4xbf16, #tpu.memory_space<vmem>>, vector<1x2x4xbf16>
    %114 = vector.shape_cast %113 : vector<1x2x4xbf16> to vector<2x4xbf16>
    %cst_83 = arith.constant dense<0.000000e+00> : vector<2x128xf32>
    %115 = tpu.matmul %114, %0, %cst_83 {dimension_numbers = #tpu.dot_dimension_numbers<[1], [0], [0], [1], [0, 0, 1, 1], [], []>} : vector<2x4xbf16>, vector<4x128xbf16>, vector<2x128xf32> -> vector<2x128xf32>
    %116 = vector.broadcast %1 : vector<1x128xf32> to vector<2x128xf32>
    %117 = arith.addf %115, %116 : vector<2x128xf32>
    %118 = arith.truncf %117 : vector<2x128xf32> to vector<2x128xbf16>
    %c11_84 = arith.constant 11 : index
    %c0_85 = arith.constant 0 : index
    %c0_86 = arith.constant 0 : index
    %119 = vector.load %arg4[%c11_84, %c0_85, %c0_86] : memref<25x128x768xbf16, #tpu.memory_space<vmem>>, vector<1x128x768xbf16>
    %120 = vector.shape_cast %119 : vector<1x128x768xbf16> to vector<128x768xbf16>
    %cst_87 = arith.constant dense<0.000000e+00> : vector<2x768xf32>
    %121 = tpu.matmul %118, %120, %cst_87 {dimension_numbers = #tpu.dot_dimension_numbers<[1], [0], [0], [1], [0, 0, 1, 1], [], []>} : vector<2x128xbf16>, vector<128x768xbf16>, vector<2x768xf32> -> vector<2x768xf32>
    %122 = arith.addf %112, %121 : vector<2x768xf32>
    %c12 = arith.constant 12 : index
    %c0_88 = arith.constant 0 : index
    %c0_89 = arith.constant 0 : index
    %123 = vector.load %arg1[%c12, %c0_88, %c0_89] : memref<25x2x4xbf16, #tpu.memory_space<vmem>>, vector<1x2x4xbf16>
    %124 = vector.shape_cast %123 : vector<1x2x4xbf16> to vector<2x4xbf16>
    %cst_90 = arith.constant dense<0.000000e+00> : vector<2x128xf32>
    %125 = tpu.matmul %124, %0, %cst_90 {dimension_numbers = #tpu.dot_dimension_numbers<[1], [0], [0], [1], [0, 0, 1, 1], [], []>} : vector<2x4xbf16>, vector<4x128xbf16>, vector<2x128xf32> -> vector<2x128xf32>
    %126 = vector.broadcast %1 : vector<1x128xf32> to vector<2x128xf32>
    %127 = arith.addf %125, %126 : vector<2x128xf32>
    %128 = arith.truncf %127 : vector<2x128xf32> to vector<2x128xbf16>
    %c12_91 = arith.constant 12 : index
    %c0_92 = arith.constant 0 : index
    %c0_93 = arith.constant 0 : index
    %129 = vector.load %arg4[%c12_91, %c0_92, %c0_93] : memref<25x128x768xbf16, #tpu.memory_space<vmem>>, vector<1x128x768xbf16>
    %130 = vector.shape_cast %129 : vector<1x128x768xbf16> to vector<128x768xbf16>
    %cst_94 = arith.constant dense<0.000000e+00> : vector<2x768xf32>
    %131 = tpu.matmul %128, %130, %cst_94 {dimension_numbers = #tpu.dot_dimension_numbers<[1], [0], [0], [1], [0, 0, 1, 1], [], []>} : vector<2x128xbf16>, vector<128x768xbf16>, vector<2x768xf32> -> vector<2x768xf32>
    %132 = arith.addf %122, %131 : vector<2x768xf32>
    %c13 = arith.constant 13 : index
    %c0_95 = arith.constant 0 : index
    %c0_96 = arith.constant 0 : index
    %133 = vector.load %arg1[%c13, %c0_95, %c0_96] : memref<25x2x4xbf16, #tpu.memory_space<vmem>>, vector<1x2x4xbf16>
    %134 = vector.shape_cast %133 : vector<1x2x4xbf16> to vector<2x4xbf16>
    %cst_97 = arith.constant dense<0.000000e+00> : vector<2x128xf32>
    %135 = tpu.matmul %134, %0, %cst_97 {dimension_numbers = #tpu.dot_dimension_numbers<[1], [0], [0], [1], [0, 0, 1, 1], [], []>} : vector<2x4xbf16>, vector<4x128xbf16>, vector<2x128xf32> -> vector<2x128xf32>
    %136 = vector.broadcast %1 : vector<1x128xf32> to vector<2x128xf32>
    %137 = arith.addf %135, %136 : vector<2x128xf32>
    %138 = arith.truncf %137 : vector<2x128xf32> to vector<2x128xbf16>
    %c13_98 = arith.constant 13 : index
    %c0_99 = arith.constant 0 : index
    %c0_100 = arith.constant 0 : index
    %139 = vector.load %arg4[%c13_98, %c0_99, %c0_100] : memref<25x128x768xbf16, #tpu.memory_space<vmem>>, vector<1x128x768xbf16>
    %140 = vector.shape_cast %139 : vector<1x128x768xbf16> to vector<128x768xbf16>
    %cst_101 = arith.constant dense<0.000000e+00> : vector<2x768xf32>
    %141 = tpu.matmul %138, %140, %cst_101 {dimension_numbers = #tpu.dot_dimension_numbers<[1], [0], [0], [1], [0, 0, 1, 1], [], []>} : vector<2x128xbf16>, vector<128x768xbf16>, vector<2x768xf32> -> vector<2x768xf32>
    %142 = arith.addf %132, %141 : vector<2x768xf32>
    %c14 = arith.constant 14 : index
    %c0_102 = arith.constant 0 : index
    %c0_103 = arith.constant 0 : index
    %143 = vector.load %arg1[%c14, %c0_102, %c0_103] : memref<25x2x4xbf16, #tpu.memory_space<vmem>>, vector<1x2x4xbf16>
    %144 = vector.shape_cast %143 : vector<1x2x4xbf16> to vector<2x4xbf16>
    %cst_104 = arith.constant dense<0.000000e+00> : vector<2x128xf32>
    %145 = tpu.matmul %144, %0, %cst_104 {dimension_numbers = #tpu.dot_dimension_numbers<[1], [0], [0], [1], [0, 0, 1, 1], [], []>} : vector<2x4xbf16>, vector<4x128xbf16>, vector<2x128xf32> -> vector<2x128xf32>
    %146 = vector.broadcast %1 : vector<1x128xf32> to vector<2x128xf32>
    %147 = arith.addf %145, %146 : vector<2x128xf32>
    %148 = arith.truncf %147 : vector<2x128xf32> to vector<2x128xbf16>
    %c14_105 = arith.constant 14 : index
    %c0_106 = arith.constant 0 : index
    %c0_107 = arith.constant 0 : index
    %149 = vector.load %arg4[%c14_105, %c0_106, %c0_107] : memref<25x128x768xbf16, #tpu.memory_space<vmem>>, vector<1x128x768xbf16>
    %150 = vector.shape_cast %149 : vector<1x128x768xbf16> to vector<128x768xbf16>
    %cst_108 = arith.constant dense<0.000000e+00> : vector<2x768xf32>
    %151 = tpu.matmul %148, %150, %cst_108 {dimension_numbers = #tpu.dot_dimension_numbers<[1], [0], [0], [1], [0, 0, 1, 1], [], []>} : vector<2x128xbf16>, vector<128x768xbf16>, vector<2x768xf32> -> vector<2x768xf32>
    %152 = arith.addf %142, %151 : vector<2x768xf32>
    %c15 = arith.constant 15 : index
    %c0_109 = arith.constant 0 : index
    %c0_110 = arith.constant 0 : index
    %153 = vector.load %arg1[%c15, %c0_109, %c0_110] : memref<25x2x4xbf16, #tpu.memory_space<vmem>>, vector<1x2x4xbf16>
    %154 = vector.shape_cast %153 : vector<1x2x4xbf16> to vector<2x4xbf16>
    %cst_111 = arith.constant dense<0.000000e+00> : vector<2x128xf32>
    %155 = tpu.matmul %154, %0, %cst_111 {dimension_numbers = #tpu.dot_dimension_numbers<[1], [0], [0], [1], [0, 0, 1, 1], [], []>} : vector<2x4xbf16>, vector<4x128xbf16>, vector<2x128xf32> -> vector<2x128xf32>
    %156 = vector.broadcast %1 : vector<1x128xf32> to vector<2x128xf32>
    %157 = arith.addf %155, %156 : vector<2x128xf32>
    %158 = arith.truncf %157 : vector<2x128xf32> to vector<2x128xbf16>
    %c15_112 = arith.constant 15 : index
    %c0_113 = arith.constant 0 : index
    %c0_114 = arith.constant 0 : index
    %159 = vector.load %arg4[%c15_112, %c0_113, %c0_114] : memref<25x128x768xbf16, #tpu.memory_space<vmem>>, vector<1x128x768xbf16>
    %160 = vector.shape_cast %159 : vector<1x128x768xbf16> to vector<128x768xbf16>
    %cst_115 = arith.constant dense<0.000000e+00> : vector<2x768xf32>
    %161 = tpu.matmul %158, %160, %cst_115 {dimension_numbers = #tpu.dot_dimension_numbers<[1], [0], [0], [1], [0, 0, 1, 1], [], []>} : vector<2x128xbf16>, vector<128x768xbf16>, vector<2x768xf32> -> vector<2x768xf32>
    %162 = arith.addf %152, %161 : vector<2x768xf32>
    %c16 = arith.constant 16 : index
    %c0_116 = arith.constant 0 : index
    %c0_117 = arith.constant 0 : index
    %163 = vector.load %arg1[%c16, %c0_116, %c0_117] : memref<25x2x4xbf16, #tpu.memory_space<vmem>>, vector<1x2x4xbf16>
    %164 = vector.shape_cast %163 : vector<1x2x4xbf16> to vector<2x4xbf16>
    %cst_118 = arith.constant dense<0.000000e+00> : vector<2x128xf32>
    %165 = tpu.matmul %164, %0, %cst_118 {dimension_numbers = #tpu.dot_dimension_numbers<[1], [0], [0], [1], [0, 0, 1, 1], [], []>} : vector<2x4xbf16>, vector<4x128xbf16>, vector<2x128xf32> -> vector<2x128xf32>
    %166 = vector.broadcast %1 : vector<1x128xf32> to vector<2x128xf32>
    %167 = arith.addf %165, %166 : vector<2x128xf32>
    %168 = arith.truncf %167 : vector<2x128xf32> to vector<2x128xbf16>
    %c16_119 = arith.constant 16 : index
    %c0_120 = arith.constant 0 : index
    %c0_121 = arith.constant 0 : index
    %169 = vector.load %arg4[%c16_119, %c0_120, %c0_121] : memref<25x128x768xbf16, #tpu.memory_space<vmem>>, vector<1x128x768xbf16>
    %170 = vector.shape_cast %169 : vector<1x128x768xbf16> to vector<128x768xbf16>
    %cst_122 = arith.constant dense<0.000000e+00> : vector<2x768xf32>
    %171 = tpu.matmul %168, %170, %cst_122 {dimension_numbers = #tpu.dot_dimension_numbers<[1], [0], [0], [1], [0, 0, 1, 1], [], []>} : vector<2x128xbf16>, vector<128x768xbf16>, vector<2x768xf32> -> vector<2x768xf32>
    %172 = arith.addf %162, %171 : vector<2x768xf32>
    %c17 = arith.constant 17 : index
    %c0_123 = arith.constant 0 : index
    %c0_124 = arith.constant 0 : index
    %173 = vector.load %arg1[%c17, %c0_123, %c0_124] : memref<25x2x4xbf16, #tpu.memory_space<vmem>>, vector<1x2x4xbf16>
    %174 = vector.shape_cast %173 : vector<1x2x4xbf16> to vector<2x4xbf16>
    %cst_125 = arith.constant dense<0.000000e+00> : vector<2x128xf32>
    %175 = tpu.matmul %174, %0, %cst_125 {dimension_numbers = #tpu.dot_dimension_numbers<[1], [0], [0], [1], [0, 0, 1, 1], [], []>} : vector<2x4xbf16>, vector<4x128xbf16>, vector<2x128xf32> -> vector<2x128xf32>
    %176 = vector.broadcast %1 : vector<1x128xf32> to vector<2x128xf32>
    %177 = arith.addf %175, %176 : vector<2x128xf32>
    %178 = arith.truncf %177 : vector<2x128xf32> to vector<2x128xbf16>
    %c17_126 = arith.constant 17 : index
    %c0_127 = arith.constant 0 : index
    %c0_128 = arith.constant 0 : index
    %179 = vector.load %arg4[%c17_126, %c0_127, %c0_128] : memref<25x128x768xbf16, #tpu.memory_space<vmem>>, vector<1x128x768xbf16>
    %180 = vector.shape_cast %179 : vector<1x128x768xbf16> to vector<128x768xbf16>
    %cst_129 = arith.constant dense<0.000000e+00> : vector<2x768xf32>
    %181 = tpu.matmul %178, %180, %cst_129 {dimension_numbers = #tpu.dot_dimension_numbers<[1], [0], [0], [1], [0, 0, 1, 1], [], []>} : vector<2x128xbf16>, vector<128x768xbf16>, vector<2x768xf32> -> vector<2x768xf32>
    %182 = arith.addf %172, %181 : vector<2x768xf32>
    %c18 = arith.constant 18 : index
    %c0_130 = arith.constant 0 : index
    %c0_131 = arith.constant 0 : index
    %183 = vector.load %arg1[%c18, %c0_130, %c0_131] : memref<25x2x4xbf16, #tpu.memory_space<vmem>>, vector<1x2x4xbf16>
    %184 = vector.shape_cast %183 : vector<1x2x4xbf16> to vector<2x4xbf16>
    %cst_132 = arith.constant dense<0.000000e+00> : vector<2x128xf32>
    %185 = tpu.matmul %184, %0, %cst_132 {dimension_numbers = #tpu.dot_dimension_numbers<[1], [0], [0], [1], [0, 0, 1, 1], [], []>} : vector<2x4xbf16>, vector<4x128xbf16>, vector<2x128xf32> -> vector<2x128xf32>
    %186 = vector.broadcast %1 : vector<1x128xf32> to vector<2x128xf32>
    %187 = arith.addf %185, %186 : vector<2x128xf32>
    %188 = arith.truncf %187 : vector<2x128xf32> to vector<2x128xbf16>
    %c18_133 = arith.constant 18 : index
    %c0_134 = arith.constant 0 : index
    %c0_135 = arith.constant 0 : index
    %189 = vector.load %arg4[%c18_133, %c0_134, %c0_135] : memref<25x128x768xbf16, #tpu.memory_space<vmem>>, vector<1x128x768xbf16>
    %190 = vector.shape_cast %189 : vector<1x128x768xbf16> to vector<128x768xbf16>
    %cst_136 = arith.constant dense<0.000000e+00> : vector<2x768xf32>
    %191 = tpu.matmul %188, %190, %cst_136 {dimension_numbers = #tpu.dot_dimension_numbers<[1], [0], [0], [1], [0, 0, 1, 1], [], []>} : vector<2x128xbf16>, vector<128x768xbf16>, vector<2x768xf32> -> vector<2x768xf32>
    %192 = arith.addf %182, %191 : vector<2x768xf32>
    %c19 = arith.constant 19 : index
    %c0_137 = arith.constant 0 : index
    %c0_138 = arith.constant 0 : index
    %193 = vector.load %arg1[%c19, %c0_137, %c0_138] : memref<25x2x4xbf16, #tpu.memory_space<vmem>>, vector<1x2x4xbf16>
    %194 = vector.shape_cast %193 : vector<1x2x4xbf16> to vector<2x4xbf16>
    %cst_139 = arith.constant dense<0.000000e+00> : vector<2x128xf32>
    %195 = tpu.matmul %194, %0, %cst_139 {dimension_numbers = #tpu.dot_dimension_numbers<[1], [0], [0], [1], [0, 0, 1, 1], [], []>} : vector<2x4xbf16>, vector<4x128xbf16>, vector<2x128xf32> -> vector<2x128xf32>
    %196 = vector.broadcast %1 : vector<1x128xf32> to vector<2x128xf32>
    %197 = arith.addf %195, %196 : vector<2x128xf32>
    %198 = arith.truncf %197 : vector<2x128xf32> to vector<2x128xbf16>
    %c19_140 = arith.constant 19 : index
    %c0_141 = arith.constant 0 : index
    %c0_142 = arith.constant 0 : index
    %199 = vector.load %arg4[%c19_140, %c0_141, %c0_142] : memref<25x128x768xbf16, #tpu.memory_space<vmem>>, vector<1x128x768xbf16>
    %200 = vector.shape_cast %199 : vector<1x128x768xbf16> to vector<128x768xbf16>
    %cst_143 = arith.constant dense<0.000000e+00> : vector<2x768xf32>
    %201 = tpu.matmul %198, %200, %cst_143 {dimension_numbers = #tpu.dot_dimension_numbers<[1], [0], [0], [1], [0, 0, 1, 1], [], []>} : vector<2x128xbf16>, vector<128x768xbf16>, vector<2x768xf32> -> vector<2x768xf32>
    %202 = arith.addf %192, %201 : vector<2x768xf32>
    %c20 = arith.constant 20 : index
    %c0_144 = arith.constant 0 : index
    %c0_145 = arith.constant 0 : index
    %203 = vector.load %arg1[%c20, %c0_144, %c0_145] : memref<25x2x4xbf16, #tpu.memory_space<vmem>>, vector<1x2x4xbf16>
    %204 = vector.shape_cast %203 : vector<1x2x4xbf16> to vector<2x4xbf16>
    %cst_146 = arith.constant dense<0.000000e+00> : vector<2x128xf32>
    %205 = tpu.matmul %204, %0, %cst_146 {dimension_numbers = #tpu.dot_dimension_numbers<[1], [0], [0], [1], [0, 0, 1, 1], [], []>} : vector<2x4xbf16>, vector<4x128xbf16>, vector<2x128xf32> -> vector<2x128xf32>
    %206 = vector.broadcast %1 : vector<1x128xf32> to vector<2x128xf32>
    %207 = arith.addf %205, %206 : vector<2x128xf32>
    %208 = arith.truncf %207 : vector<2x128xf32> to vector<2x128xbf16>
    %c20_147 = arith.constant 20 : index
    %c0_148 = arith.constant 0 : index
    %c0_149 = arith.constant 0 : index
    %209 = vector.load %arg4[%c20_147, %c0_148, %c0_149] : memref<25x128x768xbf16, #tpu.memory_space<vmem>>, vector<1x128x768xbf16>
    %210 = vector.shape_cast %209 : vector<1x128x768xbf16> to vector<128x768xbf16>
    %cst_150 = arith.constant dense<0.000000e+00> : vector<2x768xf32>
    %211 = tpu.matmul %208, %210, %cst_150 {dimension_numbers = #tpu.dot_dimension_numbers<[1], [0], [0], [1], [0, 0, 1, 1], [], []>} : vector<2x128xbf16>, vector<128x768xbf16>, vector<2x768xf32> -> vector<2x768xf32>
    %212 = arith.addf %202, %211 : vector<2x768xf32>
    %c21 = arith.constant 21 : index
    %c0_151 = arith.constant 0 : index
    %c0_152 = arith.constant 0 : index
    %213 = vector.load %arg1[%c21, %c0_151, %c0_152] : memref<25x2x4xbf16, #tpu.memory_space<vmem>>, vector<1x2x4xbf16>
    %214 = vector.shape_cast %213 : vector<1x2x4xbf16> to vector<2x4xbf16>
    %cst_153 = arith.constant dense<0.000000e+00> : vector<2x128xf32>
    %215 = tpu.matmul %214, %0, %cst_153 {dimension_numbers = #tpu.dot_dimension_numbers<[1], [0], [0], [1], [0, 0, 1, 1], [], []>} : vector<2x4xbf16>, vector<4x128xbf16>, vector<2x128xf32> -> vector<2x128xf32>
    %216 = vector.broadcast %1 : vector<1x128xf32> to vector<2x128xf32>
    %217 = arith.addf %215, %216 : vector<2x128xf32>
    %218 = arith.truncf %217 : vector<2x128xf32> to vector<2x128xbf16>
    %c21_154 = arith.constant 21 : index
    %c0_155 = arith.constant 0 : index
    %c0_156 = arith.constant 0 : index
    %219 = vector.load %arg4[%c21_154, %c0_155, %c0_156] : memref<25x128x768xbf16, #tpu.memory_space<vmem>>, vector<1x128x768xbf16>
    %220 = vector.shape_cast %219 : vector<1x128x768xbf16> to vector<128x768xbf16>
    %cst_157 = arith.constant dense<0.000000e+00> : vector<2x768xf32>
    %221 = tpu.matmul %218, %220, %cst_157 {dimension_numbers = #tpu.dot_dimension_numbers<[1], [0], [0], [1], [0, 0, 1, 1], [], []>} : vector<2x128xbf16>, vector<128x768xbf16>, vector<2x768xf32> -> vector<2x768xf32>
    %222 = arith.addf %212, %221 : vector<2x768xf32>
    %c22 = arith.constant 22 : index
    %c0_158 = arith.constant 0 : index
    %c0_159 = arith.constant 0 : index
    %223 = vector.load %arg1[%c22, %c0_158, %c0_159] : memref<25x2x4xbf16, #tpu.memory_space<vmem>>, vector<1x2x4xbf16>
    %224 = vector.shape_cast %223 : vector<1x2x4xbf16> to vector<2x4xbf16>
    %cst_160 = arith.constant dense<0.000000e+00> : vector<2x128xf32>
    %225 = tpu.matmul %224, %0, %cst_160 {dimension_numbers = #tpu.dot_dimension_numbers<[1], [0], [0], [1], [0, 0, 1, 1], [], []>} : vector<2x4xbf16>, vector<4x128xbf16>, vector<2x128xf32> -> vector<2x128xf32>
    %226 = vector.broadcast %1 : vector<1x128xf32> to vector<2x128xf32>
    %227 = arith.addf %225, %226 : vector<2x128xf32>
    %228 = arith.truncf %227 : vector<2x128xf32> to vector<2x128xbf16>
    %c22_161 = arith.constant 22 : index
    %c0_162 = arith.constant 0 : index
    %c0_163 = arith.constant 0 : index
    %229 = vector.load %arg4[%c22_161, %c0_162, %c0_163] : memref<25x128x768xbf16, #tpu.memory_space<vmem>>, vector<1x128x768xbf16>
    %230 = vector.shape_cast %229 : vector<1x128x768xbf16> to vector<128x768xbf16>
    %cst_164 = arith.constant dense<0.000000e+00> : vector<2x768xf32>
    %231 = tpu.matmul %228, %230, %cst_164 {dimension_numbers = #tpu.dot_dimension_numbers<[1], [0], [0], [1], [0, 0, 1, 1], [], []>} : vector<2x128xbf16>, vector<128x768xbf16>, vector<2x768xf32> -> vector<2x768xf32>
    %232 = arith.addf %222, %231 : vector<2x768xf32>
    %c23 = arith.constant 23 : index
    %c0_165 = arith.constant 0 : index
    %c0_166 = arith.constant 0 : index
    %233 = vector.load %arg1[%c23, %c0_165, %c0_166] : memref<25x2x4xbf16, #tpu.memory_space<vmem>>, vector<1x2x4xbf16>
    %234 = vector.shape_cast %233 : vector<1x2x4xbf16> to vector<2x4xbf16>
    %cst_167 = arith.constant dense<0.000000e+00> : vector<2x128xf32>
    %235 = tpu.matmul %234, %0, %cst_167 {dimension_numbers = #tpu.dot_dimension_numbers<[1], [0], [0], [1], [0, 0, 1, 1], [], []>} : vector<2x4xbf16>, vector<4x128xbf16>, vector<2x128xf32> -> vector<2x128xf32>
    %236 = vector.broadcast %1 : vector<1x128xf32> to vector<2x128xf32>
    %237 = arith.addf %235, %236 : vector<2x128xf32>
    %238 = arith.truncf %237 : vector<2x128xf32> to vector<2x128xbf16>
    %c23_168 = arith.constant 23 : index
    %c0_169 = arith.constant 0 : index
    %c0_170 = arith.constant 0 : index
    %239 = vector.load %arg4[%c23_168, %c0_169, %c0_170] : memref<25x128x768xbf16, #tpu.memory_space<vmem>>, vector<1x128x768xbf16>
    %240 = vector.shape_cast %239 : vector<1x128x768xbf16> to vector<128x768xbf16>
    %cst_171 = arith.constant dense<0.000000e+00> : vector<2x768xf32>
    %241 = tpu.matmul %238, %240, %cst_171 {dimension_numbers = #tpu.dot_dimension_numbers<[1], [0], [0], [1], [0, 0, 1, 1], [], []>} : vector<2x128xbf16>, vector<128x768xbf16>, vector<2x768xf32> -> vector<2x768xf32>
    %242 = arith.addf %232, %241 : vector<2x768xf32>
    %c24 = arith.constant 24 : index
    %c0_172 = arith.constant 0 : index
    %c0_173 = arith.constant 0 : index
    %243 = vector.load %arg1[%c24, %c0_172, %c0_173] : memref<25x2x4xbf16, #tpu.memory_space<vmem>>, vector<1x2x4xbf16>
    %244 = vector.shape_cast %243 : vector<1x2x4xbf16> to vector<2x4xbf16>
    %cst_174 = arith.constant dense<0.000000e+00> : vector<2x128xf32>
    %245 = tpu.matmul %244, %0, %cst_174 {dimension_numbers = #tpu.dot_dimension_numbers<[1], [0], [0], [1], [0, 0, 1, 1], [], []>} : vector<2x4xbf16>, vector<4x128xbf16>, vector<2x128xf32> -> vector<2x128xf32>
    %246 = vector.broadcast %1 : vector<1x128xf32> to vector<2x128xf32>
    %247 = arith.addf %245, %246 : vector<2x128xf32>
    %248 = arith.truncf %247 : vector<2x128xf32> to vector<2x128xbf16>
    %c24_175 = arith.constant 24 : index
    %c0_176 = arith.constant 0 : index
    %c0_177 = arith.constant 0 : index
    %249 = vector.load %arg4[%c24_175, %c0_176, %c0_177] : memref<25x128x768xbf16, #tpu.memory_space<vmem>>, vector<1x128x768xbf16>
    %250 = vector.shape_cast %249 : vector<1x128x768xbf16> to vector<128x768xbf16>
    %cst_178 = arith.constant dense<0.000000e+00> : vector<2x768xf32>
    %251 = tpu.matmul %248, %250, %cst_178 {dimension_numbers = #tpu.dot_dimension_numbers<[1], [0], [0], [1], [0, 0, 1, 1], [], []>} : vector<2x128xbf16>, vector<128x768xbf16>, vector<2x768xf32> -> vector<2x768xf32>
    %252 = arith.addf %242, %251 : vector<2x768xf32>
    %253 = arith.truncf %252 : vector<2x768xf32> to vector<2x768xbf16>
    %c0_179 = arith.constant 0 : index
    %c0_180 = arith.constant 0 : index
    %254 = vector.load %arg5[%c0_179, %c0_180] : memref<768x1024xbf16, #tpu.memory_space<vmem>>, vector<768x1024xbf16>
    %cst_181 = arith.constant dense<0.000000e+00> : vector<2x1024xf32>
    %255 = tpu.matmul %253, %254, %cst_181 {dimension_numbers = #tpu.dot_dimension_numbers<[1], [0], [0], [1], [0, 0, 1, 1], [], []>} : vector<2x768xbf16>, vector<768x1024xbf16>, vector<2x1024xf32> -> vector<2x1024xf32>
    %c0_182 = arith.constant 0 : index
    %c0_183 = arith.constant 0 : index
    %256 = vector.load %arg6[%c0_182, %c0_183] : memref<1x1024xf32, #tpu.memory_space<vmem>>, vector<1x1024xf32>
    %257 = vector.broadcast %256 : vector<1x1024xf32> to vector<2x1024xf32>
    %258 = arith.addf %255, %257 : vector<2x1024xf32>
    %c0_184 = arith.constant 0 : index
    %c0_185 = arith.constant 0 : index
    %259 = vector.load %arg7[%c0_184, %c0_185] : memref<2x1024xf32, #tpu.memory_space<vmem>>, vector<2x1024xf32>
    tpu.vector_store %arg7[%c0_184, %c0_185], %258 {strides = array<i32>} : memref<2x1024xf32, #tpu.memory_space<vmem>>, vector<2x1024xf32>,
    return
  }
  func.func @transform_0(%arg0: i32) -> (i32, i32, i32) {
    %c0_i32 = arith.constant 0 : i32
    %c0_i32_0 = arith.constant 0 : i32
    %c0_i32_1 = arith.constant 0 : i32
    return %c0_i32, %arg0, %c0_i32_0 : i32, i32, i32
  }
  func.func @transform_1(%arg0: i32) -> (i32, i32) {
    %c0_i32 = arith.constant 0 : i32
    %c0_i32_0 = arith.constant 0 : i32
    %c0_i32_1 = arith.constant 0 : i32
    return %c0_i32, %c0_i32_0 : i32, i32
  }
  func.func @transform_2(%arg0: i32) -> (i32, i32) {
    %c0_i32 = arith.constant 0 : i32
    %c0_i32_0 = arith.constant 0 : i32
    %c0_i32_1 = arith.constant 0 : i32
    return %c0_i32, %c0_i32_0 : i32, i32
  }
  func.func @transform_3(%arg0: i32) -> (i32, i32, i32) {
    %c0_i32 = arith.constant 0 : i32
    %c0_i32_0 = arith.constant 0 : i32
    %c0_i32_1 = arith.constant 0 : i32
    %c0_i32_2 = arith.constant 0 : i32
    return %c0_i32, %c0_i32_0, %c0_i32_1 : i32, i32, i32
  }
  func.func @transform_4(%arg0: i32) -> (i32, i32) {
    %c0_i32 = arith.constant 0 : i32
    %c0_i32_0 = arith.constant 0 : i32
    %c0_i32_1 = arith.constant 0 : i32
    return %c0_i32, %c0_i32_0 : i32, i32
  }
  func.func @transform_5(%arg0: i32) -> (i32, i32) {
    %c0_i32 = arith.constant 0 : i32
    %c0_i32_0 = arith.constant 0 : i32
    %c0_i32_1 = arith.constant 0 : i32
    return %c0_i32, %c0_i32_0 : i32, i32
  }
  func.func @transform_6(%arg0: i32) -> (i32, i32) {
    %c0_i32 = arith.constant 0 : i32
    %c0_i32_0 = arith.constant 0 : i32
    return %arg0, %c0_i32 : i32, i32
  }
}

</mosaic_0001>

<bundles_post_ra>
// kernel: block_aux_forward.1
= control target key start
LH: loop header
LB: loop body
LE: loop exit
PB: predicated region body
PF: predicated region fallthrough
CT: control target
= control target key end

     0   :  { %11 = vsyncpa [#allocation3], 0  ;;  %s19392_s0 = inlined_call_operand.vmem [shape: bf16[25,2,4], index: 0, kind: input, shape index: {}]   ;;  %s19393_s1 = inlined_call_operand.hbm [shape: bf16[4,128], index: 1, kind: input, shape index: {}]   ;;  %s19394_s2 = inlined_call_operand.hbm [shape: f32[1,128], index: 2, kind: input, shape index: {}]   ;;  %s19395_s3 = inlined_call_operand.hbm [shape: bf16[25,128,768], index: 3, kind: input, shape index: {}]   ;;  %s19396_s4 = inlined_call_operand.hbm [shape: bf16[768,1024], index: 4, kind: input, shape index: {}]   ;;  %s19397_s5 = inlined_call_operand.hbm [shape: f32[1,1024], index: 5, kind: input, shape index: {}]   ;;  %s19398_s6 = inlined_call_operand.hbm [shape: f32[2,1024], index: 6, kind: output, shape index: {}]  }
   0x1   :  { %12 = vsyncpa [#allocation6], 0 }
   0x2   :  { %13 = vsyncpa [#allocation9], 0 }
   0x3   :  { %14 = vsyncpa [#allocation4], 0  ;;  %s18375_s21 = smov [#allocation5]   ;;  %s18376_s23 = smov [#allocation8]  }
   0x4   :  { %s33_s22 = sshll.u32 %s18375_s21, 4  ;;  %s54_s24 = sshll.u32 %s18376_s23, 4  ;;  %s34_s22 = int_to_ptr.vmem [resolvable:$true] %s33_s22  ;;  %s55_s24 = int_to_ptr.vmem [resolvable:$true] %s54_s24 }
   0x5   :  { %s18255_s25 = scalar_lea.vmem %s34_s22, 16  ;;  %s18259_s26 = scalar_lea.vmem %s34_s22, 32 }
   0x6   :  { %p18256_p0 = scmp.ne.s32.totalorder %s34_s22, %s18255_s25  ;;  %p18260_p1 = scmp.lt.s32.totalorder %s34_s22, %s34_s22 }
   0x7   :  { %p18261_p2 = scmp.lt.s32.totalorder %s18259_s26, %s18255_s25 }
   0x9   :  { %p18262_p3 = por %p18261_p2, %p18260_p1 }
   0xb   :  { %p18263_p4 = pnand %p18262_p3, %p18256_p0 }
   0xd   :  { %18266 = shalt.err (!%p18263_p4)
}
   0xe   :  { %36 = dma.hbm_to_vmem [thread:$0]  %s19394_s2, 16, %s34_s22, [#allocation6]  }
   0xf   :  { %s18275_s29 = scalar_lea.vmem %s55_s24, 49152  ;;  %p18280_p6 = scmp.lt.s32.totalorder %s55_s24, %s55_s24 }
  0x10   :  { %p18276_p5 = scmp.ne.s32.totalorder %s55_s24, %s18275_s29  ;;  %p18281_p7 = scmp.lt.s32.totalorder %s18275_s29, %s18275_s29 }
  0x12   :  { %p18282_p8 = por %p18281_p7, %p18280_p6 }
  0x14   :  { %p18283_p9 = pnand %p18282_p8, %p18276_p5 }
  0x16   :  { %18286 = shalt.err (!%p18283_p9)
}
  0x17   :  { %s18377_s30 = smov 512   ;;  %s18378_s7 = smov 32  }
  0x18   :  { %60 = dma.hbm_to_vmem [thread:$0]  %s19396_s4, 49152, %s55_s24, [#allocation9], %s18377_s30, %s18377_s30, %s18378_s7  }
  0x19   :  { %s18379_s10 = smov [#allocation2]   ;;  %s18380_s12 = smov [#allocation7]  }
  0x1a   :  { %s23_s11 = sshll.u32 %s18379_s10, 4  ;;  %s42_s13 = sshll.u32 %s18380_s12, 4  ;;  %s24_s11 = int_to_ptr.vmem [resolvable:$true] %s23_s11  ;;  %s43_s13 = int_to_ptr.vmem [resolvable:$true] %s42_s13 }
  0x1b   :  { %s18295_s2 = scalar_lea.vmem %s24_s11, 32  ;;  %p18300_p11 = scmp.lt.s32.totalorder %s24_s11, %s24_s11 }
  0x1c   :  { %p18296_p10 = scmp.ne.s32.totalorder %s24_s11, %s18295_s2  ;;  %p18301_p12 = scmp.lt.s32.totalorder %s18295_s2, %s18295_s2 }
  0x1e   :  { %p18302_p13 = por %p18301_p12, %p18300_p11 }
  0x20   :  { %p18303_p0 = pnand %p18302_p13, %p18296_p10 }
  0x22   :  { %18306 = shalt.err (!%p18303_p0)
}
  0x23   :  { %26 = dma.hbm_to_vmem [thread:$0]  %s19393_s1, 32, %s24_s11, [#allocation3]  }
  0x24   :  { %s18315_s16 = scalar_lea.vmem %s43_s13, 153600  ;;  %p18320_p2 = scmp.lt.s32.totalorder %s43_s13, %s43_s13 }
  0x25   :  { %p18316_p1 = scmp.ne.s32.totalorder %s43_s13, %s18315_s16  ;;  %p18321_p3 = scmp.lt.s32.totalorder %s18315_s16, %s18315_s16 }
  0x27   :  { %p18322_p4 = por %p18321_p3, %p18320_p2 }
  0x29   :  { %p18323_p5 = pnand %p18322_p4, %p18316_p1 }
  0x2b   :  { %18326 = shalt.err (!%p18323_p5)
}
  0x2c   :  { %s18381_s4 = smov 384   ;;  %s18382_s17 = smov 24  }
  0x2d   :  { %48 = dma.hbm_to_vmem [thread:$0]  %s19395_s3, 153600, %s43_s13, [#allocation6], %s18381_s4, %s18381_s4, %s18382_s17  }
  0x2e   :  { %s18383_s20 = smov [#allocation10]  }
  0x2f   :  { %s67_s21 = sshll.u32 %s18383_s20, 4  ;;  %s68_s21 = int_to_ptr.vmem [resolvable:$true] %s67_s21 }
  0x30   :  { %s18335_s22 = scalar_lea.vmem %s68_s21, 128  ;;  %p18340_p7 = scmp.lt.s32.totalorder %s68_s21, %s68_s21 }
  0x31   :  { %p18336_p6 = scmp.ne.s32.totalorder %s68_s21, %s18335_s22  ;;  %p18341_p8 = scmp.lt.s32.totalorder %s18335_s22, %s18335_s22 }
  0x33   :  { %p18342_p9 = por %p18341_p8, %p18340_p7 }
  0x35   :  { %p18343_p10 = pnand %p18342_p9, %p18336_p6 }
  0x37   :  { %18346 = shalt.err (!%p18343_p10)
}
  0x38   :  { %70 = dma.hbm_to_vmem [thread:$0]  %s19397_s5, 128, %s68_s21, [#allocation9]  }
  0x39   :  { %18367 = dma.done.wait [#allocation3], 32  }
  0x3a   :  { %18368 = vsyncadd [#allocation3], 4294967264 }
  0x3b   :  { %18369 = dma.done.wait [#allocation6], 153616  }
  0x3c   :  { %18370 = vsyncadd [#allocation6], 4294813680 }
  0x3d   :  { %18371 = dma.done.wait [#allocation9], 49280  }
  0x3e   :  { %18372 = vsyncadd [#allocation9], 4294918016  ;;  %v18384_v0 = vmov 0.0   ;;  %vm18385_vm0 = vmmov 0   ;;  %vm100_vm1 = vcmask 1041408   ;;  %vm96_vm2 = vcmask 31744  }
  0x3f   :  { %16283 = vmatprep.subr.bf16.mxu1 %v18384_v0  ;;  %16285 = vmatprep.mubr.msk.bf16.mxu1 %vm18385_vm0, %v18384_v0  ;;  %v87_v1 = vld [vmem:[#allocation2] sm:$0x3]  ;;  %v16441_v5 = vld [vmem:[#allocation7 + $0x2d0] ss:$24 sps:$4 sm:$0xff]   ;;  %v16443_v6 = vld [vmem:[#allocation7 + $0x2d4] ss:$24 sps:$4 sm:$0xff]  }
  0x40   :  { %16277 = vmatprep.subr.bf16.mxu0 %v18384_v0  ;;  %16279 = vmatprep.mubr.msk.bf16.mxu0 %vm18385_vm0, %v18384_v0  ;;  %v14595_v2 = vld [vmem:[%s19392_s0 + $0x1] sm:$0x1]  ;;  %v89_v3 = vld [vmem:[%s19392_s0] sm:$0x1]  ;;  %v18451_v4 = vsel %vm100_vm1, %v87_v1, 0  ;;  %v18386_v39 = vmov 0  }
  0x41   :  { %16284 = vmatpush3.bf16.msra.mxu1 %v18451_v4  ;;  %16278 = vmatpush3.bf16.msra.mxu0 %v18451_v4  ;;  %v16444_v7 = vld [vmem:[#allocation7 + $0x2d8] ss:$24 sps:$4 sm:$0xff]   ;;  %v16446_v8 = vld [vmem:[#allocation7 + $0x2dc] ss:$24 sps:$4 sm:$0xff]   ;;  %v16452_v11 = vld [vmem:[#allocation7 + $0x2ac] ss:$24 sps:$4 sm:$0xff]  }
  0x42   :  { %528 = vmatprep.subr.bf16.mxu0 %v16443_v6  ;;  %v16449_v9 = vld [vmem:[#allocation7 + $0x2a4] ss:$24 sps:$4 sm:$0xff]   ;;  %v16447_v10 = vld [vmem:[#allocation7 + $0x2a0] ss:$24 sps:$4 sm:$0xff]   ;;  %569 = vmatprep.subr.bf16.mxu1 %v16446_v8  ;;  %v16455_v13 = vld [vmem:[#allocation7 + $0x274] ss:$24 sps:$4 sm:$0xff]  }
  0x43   :  { %v16450_v12 = vld [vmem:[#allocation7 + $0x2a8] ss:$24 sps:$4 sm:$0xff]   ;;  %v16458_v14 = vld [vmem:[#allocation7 + $0x27c] ss:$24 sps:$4 sm:$0xff]   ;;  %v16456_v16 = vld [vmem:[#allocation7 + $0x278] ss:$24 sps:$4 sm:$0xff]  }
  0x44   :  { %16286 = vmatmul.mubr.msk.bf16.vlgmr.msra.gmra.mxu1 %vm96_vm2, %v14595_v2  ;;  %16280 = vmatmul.mubr.msk.bf16.vlgmr.msra.gmra.mxu0 %vm96_vm2, %v89_v3  ;;  %v16453_v15 = vld [vmem:[#allocation7 + $0x270] ss:$24 sps:$4 sm:$0xff]   ;;  %v16461_v17 = vld [vmem:[#allocation7 + $0x244] ss:$24 sps:$4 sm:$0xff]   ;;  %v16459_v19 = vld [vmem:[#allocation7 + $0x240] ss:$24 sps:$4 sm:$0xff]  }
  0x45   :  { %529 = vmatpush1.bf16.msra.mxu0 %v16441_v5  ;;  %570 = vmatpush1.bf16.msra.mxu1 %v16444_v7  ;;  %v16464_v18 = vld [vmem:[#allocation7 + $0x24c] ss:$24 sps:$4 sm:$0xff]   ;;  %v16462_v20 = vld [vmem:[#allocation7 + $0x248] ss:$24 sps:$4 sm:$0xff]   ;;  %v16470_v22 = vld [vmem:[#allocation7 + $0x21c] ss:$24 sps:$4 sm:$0xff]  }
  0x46   :  { %530 = vmatprep.subr.bf16.mxu0 %v16449_v9  ;;  %571 = vmatprep.subr.bf16.mxu1 %v16452_v11  ;;  %v16467_v21 = vld [vmem:[#allocation7 + $0x214] ss:$24 sps:$4 sm:$0xff]   ;;  %v16465_v23 = vld [vmem:[#allocation7 + $0x210] ss:$24 sps:$4 sm:$0xff]   ;;  %v16473_v25 = vld [vmem:[#allocation7 + $0x1e4] ss:$24 sps:$4 sm:$0xff]  }
  0x47   :  { %v16468_v24 = vld [vmem:[#allocation7 + $0x218] ss:$24 sps:$4 sm:$0xff]   ;;  %v16476_v26 = vld [vmem:[#allocation7 + $0x1ec] ss:$24 sps:$4 sm:$0xff]   ;;  %v16474_v28 = vld [vmem:[#allocation7 + $0x1e8] ss:$24 sps:$4 sm:$0xff]   ;;  %560 = vmatprep.mubr.bf16.mxu0 %v18386_v39  ;;  %601 = vmatprep.mubr.bf16.mxu1 %v18386_v39 }
  0x48   :  { %v16471_v27 = vld [vmem:[#allocation7 + $0x1e0] ss:$24 sps:$4 sm:$0xff]   ;;  %v16479_v29 = vld [vmem:[#allocation7 + $0x1b4] ss:$24 sps:$4 sm:$0xff]   ;;  %v16477_v31 = vld [vmem:[#allocation7 + $0x1b0] ss:$24 sps:$4 sm:$0xff]  }
  0x49   :  { %531 = vmatpush1.bf16.msra.mxu0 %v16447_v10  ;;  %572 = vmatpush1.bf16.msra.mxu1 %v16450_v12  ;;  %v16482_v30 = vld [vmem:[#allocation7 + $0x1bc] ss:$24 sps:$4 sm:$0xff]   ;;  %v16480_v32 = vld [vmem:[#allocation7 + $0x1b8] ss:$24 sps:$4 sm:$0xff]   ;;  %v16488_v34 = vld [vmem:[#allocation7 + $0x18c] ss:$24 sps:$4 sm:$0xff]  }
  0x4a   :  { %532 = vmatprep.subr.bf16.mxu0 %v16455_v13  ;;  %573 = vmatprep.subr.bf16.mxu1 %v16458_v14  ;;  %v16485_v33 = vld [vmem:[#allocation7 + $0x184] ss:$24 sps:$4 sm:$0xff]   ;;  %v16483_v35 = vld [vmem:[#allocation7 + $0x180] ss:$24 sps:$4 sm:$0xff]   ;;  %v16494_v38 = vld [vmem:[#allocation7 + $0x154] ss:$24 sps:$4 sm:$0xff]  }
  0x4b   :  { %v16486_v36 = vld [vmem:[#allocation7 + $0x188] ss:$24 sps:$4 sm:$0xff]   ;;  %v16491_v37 = vld [vmem:[#allocation7 + $0x2e4] ss:$24 sps:$4 sm:$0xff]   ;;  %v16497_v46 = vld [vmem:[#allocation7 + $0x2b4] ss:$24 sps:$4 sm:$0xff]  }
  0x4c   :  { %v18459_v40 = vld [vmem:[#allocation5] ss:$0 sm:$0xff]  ;;  %v16489_v42 = vld [vmem:[#allocation7 + $0x2e0] ss:$24 sps:$4 sm:$0xff]   ;;  %v16492_v43 = vld [vmem:[#allocation7 + $0x150] ss:$24 sps:$4 sm:$0xff]  }
  0x4d   :  { %533 = vmatpush1.bf16.msra.mxu0 %v16453_v15  ;;  %574 = vmatpush1.bf16.msra.mxu1 %v16456_v16  ;;  %v16500_v47 = vld [vmem:[#allocation7 + $0x124] ss:$24 sps:$4 sm:$0xff]   ;;  %v16495_v52 = vld [vmem:[#allocation7 + $0x2b0] ss:$24 sps:$4 sm:$0xff]   ;;  %v16498_v53 = vld [vmem:[#allocation7 + $0x120] ss:$24 sps:$4 sm:$0xff]  }
  0x4e   :  { %534 = vmatprep.subr.bf16.mxu0 %v16461_v17  ;;  %575 = vmatprep.subr.bf16.mxu1 %v16464_v18  ;;  %v16503_v55 = vld [vmem:[#allocation7 + $0x284] ss:$24 sps:$4 sm:$0xff]   ;;  %v16506_v56 = vld [vmem:[#allocation7 + $0xf4] ss:$24 sps:$4 sm:$0xff]   ;;  %v16501_v59 = vld [vmem:[#allocation7 + $0x280] ss:$24 sps:$4 sm:$0xff]  }
  0x4f   :  { %v16504_v60 = vld [vmem:[#allocation7 + $0xf0] ss:$24 sps:$4 sm:$0xff]   ;;  %v16509_v61 = vld [vmem:[#allocation7 + $0x254] ss:$24 sps:$4 sm:$0xff]   ;;  %v16512_v62 = vld [vmem:[#allocation7 + $0xc4] ss:$24 sps:$4 sm:$0xff]  }
  0x50   :  { %v16507_v63 = vld [vmem:[#allocation7 + $0x250] ss:$24 sps:$4 sm:$0xff]   ;;  %v16510_v1 = vld [vmem:[#allocation7 + $0xc0] ss:$24 sps:$4 sm:$0xff]   ;;  %v16515_v2 = vld [vmem:[#allocation7 + $0x224] ss:$24 sps:$4 sm:$0xff]  }
  0x51   :  { %535 = vmatpush1.bf16.msra.mxu0 %v16459_v19  ;;  %576 = vmatpush1.bf16.msra.mxu1 %v16462_v20  ;;  %v16518_v3 = vld [vmem:[#allocation7 + $0x94] ss:$24 sps:$4 sm:$0xff]   ;;  %v16513_v5 = vld [vmem:[#allocation7 + $0x220] ss:$24 sps:$4 sm:$0xff]   ;;  %v16516_v6 = vld [vmem:[#allocation7 + $0x90] ss:$24 sps:$4 sm:$0xff]  }
  0x52   :  { %536 = vmatprep.subr.bf16.mxu0 %v16467_v21  ;;  %577 = vmatprep.subr.bf16.mxu1 %v16470_v22  ;;  %v16521_v7 = vld [vmem:[#allocation7 + $0x1f4] ss:$24 sps:$4 sm:$0xff]   ;;  %v16524_v8 = vld [vmem:[#allocation7 + $0x64] ss:$24 sps:$4 sm:$0xff]   ;;  %v16519_v9 = vld [vmem:[#allocation7 + $0x1f0] ss:$24 sps:$4 sm:$0xff]  }
  0x53   :  { %v16522_v10 = vld [vmem:[#allocation7 + $0x60] ss:$24 sps:$4 sm:$0xff]   ;;  %v16527_v11 = vld [vmem:[#allocation7 + $0x1c4] ss:$24 sps:$4 sm:$0xff]   ;;  %v16530_v12 = vld [vmem:[#allocation7 + $0x34] ss:$24 sps:$4 sm:$0xff]  }
  0x54   :  { %v16525_v13 = vld [vmem:[#allocation7 + $0x1c0] ss:$24 sps:$4 sm:$0xff]   ;;  %v16528_v14 = vld [vmem:[#allocation7 + $0x30] ss:$24 sps:$4 sm:$0xff]   ;;  %v16533_v15 = vld [vmem:[#allocation7 + $0x194] ss:$24 sps:$4 sm:$0xff]  }
  0x55   :  { %537 = vmatpush1.bf16.msra.mxu0 %v16465_v23  ;;  %578 = vmatpush1.bf16.msra.mxu1 %v16468_v24  ;;  %v16536_v16 = vld [vmem:[#allocation7 + $0x4] ss:$24 sps:$4 sm:$0xff]   ;;  %v16531_v17 = vld [vmem:[#allocation7 + $0x190] ss:$24 sps:$4 sm:$0xff]   ;;  %v16534_v18 = vld [vmem:[#allocation7] ss:$24 sps:$4 sm:$0xff]  }
  0x56   :  { %538 = vmatprep.subr.bf16.mxu0 %v16473_v25  ;;  %579 = vmatprep.subr.bf16.mxu1 %v16476_v26  ;;  %v16539_v20 = vld [vmem:[#allocation7 + $0x15c] ss:$24 sps:$4 sm:$0xff]   ;;  %v16537_v22 = vld [vmem:[#allocation7 + $0x158] ss:$24 sps:$4 sm:$0xff]   ;;  %v16545_v25 = vld [vmem:[#allocation7 + $0x12c] ss:$24 sps:$4 sm:$0xff]  }
  0x57   :  { %v16542_v21 = vld [vmem:[#allocation7 + $0x164] ss:$24 sps:$4 sm:$0xff]   ;;  %v16540_v23 = vld [vmem:[#allocation7 + $0x160] ss:$24 sps:$4 sm:$0xff]   ;;  %v16548_v26 = vld [vmem:[#allocation7 + $0x134] ss:$24 sps:$4 sm:$0xff]  }
  0x59   :  { %539 = vmatpush1.bf16.msra.mxu0 %v16471_v27  ;;  %580 = vmatpush1.bf16.msra.mxu1 %v16474_v28  ;;  %v16543_v27 = vld [vmem:[#allocation7 + $0x128] ss:$24 sps:$4 sm:$0xff]  }
  0x5a   :  { %540 = vmatprep.subr.bf16.mxu0 %v16479_v29  ;;  %581 = vmatprep.subr.bf16.mxu1 %v16482_v30  ;;  %v16546_v28 = vld [vmem:[#allocation7 + $0x130] ss:$24 sps:$4 sm:$0xff]   ;;  %v16551_v29 = vld [vmem:[#allocation7 + $0xfc] ss:$24 sps:$4 sm:$0xff]  }
  0x5b   :  { %v16554_v30 = vld [vmem:[#allocation7 + $0x104] ss:$24 sps:$4 sm:$0xff]  }
  0x5d   :  { %541 = vmatpush1.bf16.msra.mxu0 %v16477_v31  ;;  %582 = vmatpush1.bf16.msra.mxu1 %v16480_v32  ;;  %v16549_v31 = vld [vmem:[#allocation7 + $0xf8] ss:$24 sps:$4 sm:$0xff]  }
  0x5e   :  { %542 = vmatprep.subr.bf16.mxu0 %v16485_v33  ;;  %583 = vmatprep.subr.bf16.mxu1 %v16488_v34  ;;  %v16552_v32 = vld [vmem:[#allocation7 + $0x100] ss:$24 sps:$4 sm:$0xff]   ;;  %v16557_v33 = vld [vmem:[#allocation7 + $0xcc] ss:$24 sps:$4 sm:$0xff]  }
  0x5f   :  { %v16560_v34 = vld [vmem:[#allocation7 + $0xd4] ss:$24 sps:$4 sm:$0xff]  }
  0x61   :  { %543 = vmatpush1.bf16.msra.mxu0 %v16483_v35  ;;  %584 = vmatpush1.bf16.msra.mxu1 %v16486_v36  ;;  %v16555_v35 = vld [vmem:[#allocation7 + $0xc8] ss:$24 sps:$4 sm:$0xff]  }
  0x62   :  { %610 = vmatprep.subr.bf16.mxu0 %v16491_v37  ;;  %891 = vmatprep.subr.bf16.mxu1 %v16494_v38  ;;  %v16558_v36 = vld [vmem:[#allocation7 + $0xd0] ss:$24 sps:$4 sm:$0xff]   ;;  %v16563_v37 = vld [vmem:[#allocation7 + $0x9c] ss:$24 sps:$4 sm:$0xff]  }
  0x63   :  { %v16566_v38 = vld [vmem:[#allocation7 + $0xa4] ss:$24 sps:$4 sm:$0xff]  }
 0x104   :  { %v232_v41 = vpop.f32.mrf.mxu1  ;;  %v18461_v44 = vpop.f32.mrf.mxu0 }
 0x105   :  { %v233_v45 = vadd.f32 %v18459_v40, %v232_v41  ;;  %v139_v19 = vadd.f32 %v18459_v40, %v18461_v44  ;;  %v16561_v40 = vld [vmem:[#allocation7 + $0x98] ss:$24 sps:$4 sm:$0xff]   ;;  %v16567_v44 = vld [vmem:[#allocation7 + $0x68] ss:$24 sps:$4 sm:$0xff]  }
 0x106   :  { %v16287_v48 = vpop.f32.mrf.mxu1  ;;  %v16281_v49 = vpop.f32.mrf.mxu0  ;;  %v16564_v41 = vld [vmem:[#allocation7 + $0xa0] ss:$24 sps:$4 sm:$0xff]  }
 0x107   :  { %v18464_v50 = vpack.c.bf16 %v233_v45, %v233_v45  ;;  %v18472_v24 = vpack.c.bf16 %v139_v19, %v139_v19  ;;  %v16570_v45 = vld [vmem:[#allocation7 + $0x70] ss:$24 sps:$4 sm:$0xff]   ;;  %v16576_v49 = vld [vmem:[#allocation7 + $0x40] ss:$24 sps:$4 sm:$0xff]   ;;  %v16626_v19 = vld [vmem:[#allocation7 + $0x33c] ss:$24 sps:$4 sm:$0xff]  }
 0x108   :  { %v235_v51 = vpop.f32.mrf.mxu1  ;;  %v141_v54 = vpop.f32.mrf.mxu0  ;;  %v16573_v48 = vld [vmem:[#allocation7 + $0x38] ss:$24 sps:$4 sm:$0xff]  }
 0x109   :  { %561 = vmatmul.mubr.bf16.vlgmr.msra.gmra.mxu0 %v18464_v50  ;;  %602 = vmatmul.mubr.bf16.vlgmr.msra.gmra.mxu1 %v18464_v50  ;;  %v16584_v51 = vld [vmem:[#allocation7 + $0x14] ss:$24 sps:$4 sm:$0xff]   ;;  %v14693_v54 = vld [vmem:[%s19392_s0 + $0x2] sm:$0x1] }
 0x10a   :  { %611 = vmatpush1.bf16.msra.mxu0 %v16489_v42  ;;  %892 = vmatpush1.bf16.msra.mxu1 %v16492_v43  ;;  %v16288_v57 = vpop.f32.mrf.mxu1  ;;  %v16282_v58 = vpop.f32.mrf.mxu0  ;;  %v16569_v42 = vld [vmem:[#allocation7 + $0x6c] ss:$24 sps:$4 sm:$0xff]  }
 0x10b   :  { %612 = vmatprep.subr.bf16.mxu0 %v16497_v46  ;;  %893 = vmatprep.subr.bf16.mxu1 %v16500_v47  ;;  %v16572_v43 = vld [vmem:[#allocation7 + $0x74] ss:$24 sps:$4 sm:$0xff]   ;;  %v16578_v47 = vld [vmem:[#allocation7 + $0x44] ss:$24 sps:$4 sm:$0xff]   ;;  %v16588_v57 = vld [vmem:[#allocation7 + $0x458] ss:$24 sps:$4 sm:$0xff]  }
 0x10c   :  { %642 = vmatprep.mubr.bf16.mxu0 %v18386_v39  ;;  %923 = vmatprep.mubr.bf16.mxu1 %v18386_v39  ;;  %v16575_v46 = vld [vmem:[#allocation7 + $0x3c] ss:$24 sps:$4 sm:$0xff]  }
 0x10d   :  { %v16590_v58 = vld [vmem:[#allocation7 + $0x45c] ss:$24 sps:$4 sm:$0xff]  }
 0x10e   :  { %613 = vmatpush1.bf16.msra.mxu0 %v16495_v52  ;;  %894 = vmatpush1.bf16.msra.mxu1 %v16498_v53  ;;  %v16579_v52 = vld [vmem:[#allocation7 + $0x8] ss:$24 sps:$4 sm:$0xff]  }
 0x10f   :  { %614 = vmatprep.subr.bf16.mxu0 %v16503_v55  ;;  %895 = vmatprep.subr.bf16.mxu1 %v16506_v56  ;;  %v16582_v53 = vld [vmem:[#allocation7 + $0x10] ss:$24 sps:$4 sm:$0xff]   ;;  %v16587_v56 = vld [vmem:[#allocation7 + $0x454] ss:$24 sps:$4 sm:$0xff]  }
 0x110   :  { %v16585_v55 = vld [vmem:[#allocation7 + $0x450] ss:$24 sps:$4 sm:$0xff]  }
 0x112   :  { %615 = vmatpush1.bf16.msra.mxu0 %v16501_v59  ;;  %896 = vmatpush1.bf16.msra.mxu1 %v16504_v60  ;;  %v16593_v59 = vld [vmem:[#allocation7 + $0x424] ss:$24 sps:$4 sm:$0xff]  }
 0x113   :  { %616 = vmatprep.subr.bf16.mxu0 %v16509_v61  ;;  %897 = vmatprep.subr.bf16.mxu1 %v16512_v62  ;;  %v16596_v60 = vld [vmem:[#allocation7 + $0x42c] ss:$24 sps:$4 sm:$0xff]   ;;  %v16591_v61 = vld [vmem:[#allocation7 + $0x420] ss:$24 sps:$4 sm:$0xff]  }
 0x114   :  { %v16594_v62 = vld [vmem:[#allocation7 + $0x428] ss:$24 sps:$4 sm:$0xff]  }
 0x116   :  { %617 = vmatpush1.bf16.msra.mxu0 %v16507_v63  ;;  %898 = vmatpush1.bf16.msra.mxu1 %v16510_v1  ;;  %v16599_v63 = vld [vmem:[#allocation7 + $0x3f4] ss:$24 sps:$4 sm:$0xff]   ;;  %v16597_v1 = vld [vmem:[#allocation7 + $0x3f0] ss:$24 sps:$4 sm:$0xff]  }
 0x117   :  { %618 = vmatprep.subr.bf16.mxu0 %v16515_v2  ;;  %899 = vmatprep.subr.bf16.mxu1 %v16518_v3  ;;  %v16602_v2 = vld [vmem:[#allocation7 + $0x3fc] ss:$24 sps:$4 sm:$0xff]   ;;  %v16600_v3 = vld [vmem:[#allocation7 + $0x3f8] ss:$24 sps:$4 sm:$0xff]  }
 0x11a   :  { %619 = vmatpush1.bf16.msra.mxu0 %v16513_v5  ;;  %900 = vmatpush1.bf16.msra.mxu1 %v16516_v6  ;;  %v16605_v5 = vld [vmem:[#allocation7 + $0x3c4] ss:$24 sps:$4 sm:$0xff]  }
 0x11b   :  { %620 = vmatprep.subr.bf16.mxu0 %v16521_v7  ;;  %901 = vmatprep.subr.bf16.mxu1 %v16524_v8  ;;  %v16608_v6 = vld [vmem:[#allocation7 + $0x3cc] ss:$24 sps:$4 sm:$0xff]   ;;  %v16603_v7 = vld [vmem:[#allocation7 + $0x3c0] ss:$24 sps:$4 sm:$0xff]  }
 0x11c   :  { %v16606_v8 = vld [vmem:[#allocation7 + $0x3c8] ss:$24 sps:$4 sm:$0xff]  }
 0x11e   :  { %621 = vmatpush1.bf16.msra.mxu0 %v16519_v9  ;;  %902 = vmatpush1.bf16.msra.mxu1 %v16522_v10  ;;  %v16611_v9 = vld [vmem:[#allocation7 + $0x394] ss:$24 sps:$4 sm:$0xff]  }
 0x11f   :  { %622 = vmatprep.subr.bf16.mxu0 %v16527_v11  ;;  %903 = vmatprep.subr.bf16.mxu1 %v16530_v12  ;;  %v16614_v10 = vld [vmem:[#allocation7 + $0x39c] ss:$24 sps:$4 sm:$0xff]   ;;  %v16609_v11 = vld [vmem:[#allocation7 + $0x390] ss:$24 sps:$4 sm:$0xff]  }
 0x120   :  { %v16612_v12 = vld [vmem:[#allocation7 + $0x398] ss:$24 sps:$4 sm:$0xff]  }
 0x122   :  { %623 = vmatpush1.bf16.msra.mxu0 %v16525_v13  ;;  %904 = vmatpush1.bf16.msra.mxu1 %v16528_v14  ;;  %v16617_v13 = vld [vmem:[#allocation7 + $0x364] ss:$24 sps:$4 sm:$0xff]   ;;  %v16615_v14 = vld [vmem:[#allocation7 + $0x360] ss:$24 sps:$4 sm:$0xff]  }
 0x123   :  { %624 = vmatprep.subr.bf16.mxu0 %v16533_v15  ;;  %905 = vmatprep.subr.bf16.mxu1 %v16536_v16  ;;  %v16620_v15 = vld [vmem:[#allocation7 + $0x36c] ss:$24 sps:$4 sm:$0xff]   ;;  %v16618_v16 = vld [vmem:[#allocation7 + $0x368] ss:$24 sps:$4 sm:$0xff]  }
 0x126   :  { %625 = vmatpush1.bf16.msra.mxu0 %v16531_v17  ;;  %906 = vmatpush1.bf16.msra.mxu1 %v16534_v18  ;;  %v16623_v17 = vld [vmem:[#allocation7 + $0x334] ss:$24 sps:$4 sm:$0xff]   ;;  %v16621_v18 = vld [vmem:[#allocation7 + $0x330] ss:$24 sps:$4 sm:$0xff]  }
 0x127   :  { %932 = vmatprep.subr.bf16.mxu0 %v16539_v20  ;;  %973 = vmatprep.subr.bf16.mxu1 %v16542_v21  ;;  %v16624_v20 = vld [vmem:[#allocation7 + $0x338] ss:$24 sps:$4 sm:$0xff]   ;;  %v16629_v21 = vld [vmem:[#allocation7 + $0x304] ss:$24 sps:$4 sm:$0xff]  }
 0x129   :  { %643 = vmatmul.mubr.bf16.vlgmr.msra.gmra.mxu0 %v18464_v50  ;;  %924 = vmatmul.mubr.bf16.vlgmr.msra.gmra.mxu1 %v18472_v24  ;;  %v16581_v50 = vld [vmem:[#allocation7 + $0xc] ss:$24 sps:$4 sm:$0xff]  }
 0x12a   :  { %933 = vmatpush1.bf16.msra.mxu0 %v16537_v22  ;;  %974 = vmatpush1.bf16.msra.mxu1 %v16540_v23  ;;  %v16627_v22 = vld [vmem:[#allocation7 + $0x300] ss:$24 sps:$4 sm:$0xff]   ;;  %v16632_v23 = vld [vmem:[#allocation7 + $0x30c] ss:$24 sps:$4 sm:$0xff]  }
 0x12b   :  { %934 = vmatprep.subr.bf16.mxu0 %v16545_v25  ;;  %975 = vmatprep.subr.bf16.mxu1 %v16548_v26  ;;  %v16635_v25 = vld [vmem:[#allocation7 + $0x464] ss:$24 sps:$4 sm:$0xff]  }
 0x12c   :  { %964 = vmatprep.mubr.bf16.mxu0 %v18386_v39  ;;  %1005 = vmatprep.mubr.bf16.mxu1 %v18386_v39 }
 0x12e   :  { %935 = vmatpush1.bf16.msra.mxu0 %v16543_v27  ;;  %976 = vmatpush1.bf16.msra.mxu1 %v16546_v28 }
 0x12f   :  { %936 = vmatprep.subr.bf16.mxu0 %v16551_v29  ;;  %977 = vmatprep.subr.bf16.mxu1 %v16554_v30 }
 0x132   :  { %937 = vmatpush1.bf16.msra.mxu0 %v16549_v31  ;;  %978 = vmatpush1.bf16.msra.mxu1 %v16552_v32 }
 0x133   :  { %938 = vmatprep.subr.bf16.mxu0 %v16557_v33  ;;  %979 = vmatprep.subr.bf16.mxu1 %v16560_v34 }
 0x136   :  { %939 = vmatpush1.bf16.msra.mxu0 %v16555_v35  ;;  %980 = vmatpush1.bf16.msra.mxu1 %v16558_v36 }
 0x137   :  { %940 = vmatprep.subr.bf16.mxu0 %v16563_v37  ;;  %981 = vmatprep.subr.bf16.mxu1 %v16566_v38 }
 0x13a   :  { %941 = vmatpush1.bf16.msra.mxu0 %v16561_v40  ;;  %982 = vmatpush1.bf16.msra.mxu1 %v16564_v41 }
 0x13b   :  { %942 = vmatprep.subr.bf16.mxu0 %v16569_v42  ;;  %983 = vmatprep.subr.bf16.mxu1 %v16572_v43 }
 0x13e   :  { %943 = vmatpush1.bf16.msra.mxu0 %v16567_v44  ;;  %984 = vmatpush1.bf16.msra.mxu1 %v16570_v45 }
 0x13f   :  { %944 = vmatprep.subr.bf16.mxu0 %v16575_v46  ;;  %985 = vmatprep.subr.bf16.mxu1 %v16578_v47 }
 0x142   :  { %945 = vmatpush1.bf16.msra.mxu0 %v16573_v48  ;;  %986 = vmatpush1.bf16.msra.mxu1 %v16576_v49 }
 0x143   :  { %946 = vmatprep.subr.bf16.mxu0 %v16581_v50  ;;  %987 = vmatprep.subr.bf16.mxu1 %v16584_v51 }
 0x146   :  { %947 = vmatpush1.bf16.msra.mxu0 %v16579_v52  ;;  %988 = vmatpush1.bf16.msra.mxu1 %v16582_v53 }
 0x147   :  { %16289 = vmatprep.subr.bf16.mxu0 %v18384_v0  ;;  %1349 = vmatprep.subr.bf16.mxu1 %v16587_v56 }
 0x149   :  { %965 = vmatmul.mubr.bf16.vlgmr.msra.gmra.mxu0 %v18472_v24  ;;  %1006 = vmatmul.mubr.bf16.vlgmr.msra.gmra.mxu1 %v18472_v24  ;;  %v16630_v24 = vld [vmem:[#allocation7 + $0x308] ss:$24 sps:$4 sm:$0xff]  }
 0x14a   :  { %16290 = vmatpush3.bf16.msra.mxu0 %v18451_v4  ;;  %16291 = vmatprep.mubr.msk.bf16.mxu0 %vm18385_vm0, %v18384_v0 }
 0x14b   :  { %1381 = vmatprep.mubr.bf16.mxu1 %v18386_v39  ;;  %1350 = vmatpush1.bf16.msra.mxu1 %v16585_v55 }
 0x14c   :  { %1390 = vmatprep.subr.bf16.mxu0 %v16590_v58  ;;  %1351 = vmatprep.subr.bf16.mxu1 %v16593_v59  ;;  %v18503_v58 = vld [vmem:[#allocation5] ss:$0 sm:$0xff] }
 0x14f   :  { %1352 = vmatpush1.bf16.msra.mxu1 %v16591_v61  ;;  %v16633_v61 = vld [vmem:[#allocation7 + $0x460] ss:$24 sps:$4 sm:$0xff]  }
 0x150   :  { %1353 = vmatprep.subr.bf16.mxu1 %v16599_v63  ;;  %v16638_v63 = vld [vmem:[#allocation7 + $0x434] ss:$24 sps:$4 sm:$0xff]  }
 0x151   :  { %16292 = vmatmul.mubr.msk.bf16.vlgmr.msra.gmra.mxu0 %vm96_vm2, %v14693_v54 }
 0x152   :  { %1422 = vmatprep.mubr.bf16.mxu0 %v18386_v39  ;;  %1391 = vmatpush1.bf16.msra.mxu0 %v16588_v57 }
 0x153   :  { %1392 = vmatprep.subr.bf16.mxu0 %v16596_v60  ;;  %1354 = vmatpush1.bf16.msra.mxu1 %v16597_v1 }
 0x154   :  { %1355 = vmatprep.subr.bf16.mxu1 %v16605_v5  ;;  %v16636_v5 = vld [vmem:[#allocation7 + $0x430] ss:$24 sps:$4 sm:$0xff]  }
 0x156   :  { %1393 = vmatpush1.bf16.msra.mxu0 %v16594_v62 }
 0x157   :  { %1394 = vmatprep.subr.bf16.mxu0 %v16602_v2  ;;  %1356 = vmatpush1.bf16.msra.mxu1 %v16603_v7  ;;  %v16659_v2 = vld [vmem:[#allocation7 + $0x5d4] ss:$24 sps:$4 sm:$0xff]   ;;  %v16639_v7 = vld [vmem:[#allocation7 + $0x400] ss:$24 sps:$4 sm:$0xff]  }
 0x158   :  { %1357 = vmatprep.subr.bf16.mxu1 %v16611_v9  ;;  %v16657_v9 = vld [vmem:[#allocation7 + $0x5d0] ss:$24 sps:$4 sm:$0xff]  }
 0x15a   :  { %1395 = vmatpush1.bf16.msra.mxu0 %v16600_v3 }
 0x15b   :  { %1396 = vmatprep.subr.bf16.mxu0 %v16608_v6  ;;  %1358 = vmatpush1.bf16.msra.mxu1 %v16609_v11  ;;  %v16641_v6 = vld [vmem:[#allocation7 + $0x404] ss:$24 sps:$4 sm:$0xff]  }
 0x15c   :  { %1359 = vmatprep.subr.bf16.mxu1 %v16617_v13  ;;  %v16665_v11 = vld [vmem:[#allocation7 + $0x5a4] ss:$24 sps:$4 sm:$0xff]   ;;  %v16663_v13 = vld [vmem:[#allocation7 + $0x5a0] ss:$24 sps:$4 sm:$0xff]  }
 0x15e   :  { %1397 = vmatpush1.bf16.msra.mxu0 %v16606_v8  ;;  %v14743_v8 = vld [vmem:[%s19392_s0 + $0x3] sm:$0x1] }
 0x15f   :  { %1398 = vmatprep.subr.bf16.mxu0 %v16614_v10  ;;  %1360 = vmatpush1.bf16.msra.mxu1 %v16615_v14  ;;  %v16644_v10 = vld [vmem:[#allocation7 + $0x3d4] ss:$24 sps:$4 sm:$0xff]   ;;  %v16647_v14 = vld [vmem:[#allocation7 + $0x3a4] ss:$24 sps:$4 sm:$0xff]  }
 0x160   :  { %1361 = vmatprep.subr.bf16.mxu1 %v16623_v17  ;;  %v16669_v17 = vld [vmem:[#allocation7 + $0x570] ss:$24 sps:$4 sm:$0xff]  }
 0x162   :  { %1399 = vmatpush1.bf16.msra.mxu0 %v16612_v12  ;;  %v16642_v12 = vld [vmem:[#allocation7 + $0x3d0] ss:$24 sps:$4 sm:$0xff]  }
 0x163   :  { %1400 = vmatprep.subr.bf16.mxu0 %v16620_v15  ;;  %1362 = vmatpush1.bf16.msra.mxu1 %v16621_v18  ;;  %v16671_v15 = vld [vmem:[#allocation7 + $0x574] ss:$24 sps:$4 sm:$0xff]  }
 0x164   :  { %1363 = vmatprep.subr.bf16.mxu1 %v16629_v21  ;;  %v16650_v18 = vld [vmem:[#allocation7 + $0x374] ss:$24 sps:$4 sm:$0xff]   ;;  %v16675_v21 = vld [vmem:[#allocation7 + $0x540] ss:$24 sps:$4 sm:$0xff]  }
 0x166   :  { %1401 = vmatpush1.bf16.msra.mxu0 %v16618_v16  ;;  %v16645_v16 = vld [vmem:[#allocation7 + $0x3a0] ss:$24 sps:$4 sm:$0xff]  }
 0x167   :  { %1402 = vmatprep.subr.bf16.mxu0 %v16626_v19  ;;  %1364 = vmatpush1.bf16.msra.mxu1 %v16627_v22  ;;  %v16677_v19 = vld [vmem:[#allocation7 + $0x544] ss:$24 sps:$4 sm:$0xff]  }
 0x168   :  { %1431 = vmatprep.subr.bf16.mxu1 %v16635_v25  ;;  %v16653_v22 = vld [vmem:[#allocation7 + $0x344] ss:$24 sps:$4 sm:$0xff]   ;;  %v16681_v25 = vld [vmem:[#allocation7 + $0x510] ss:$24 sps:$4 sm:$0xff]  }
 0x16a   :  { %1403 = vmatpush1.bf16.msra.mxu0 %v16624_v20  ;;  %v16648_v20 = vld [vmem:[#allocation7 + $0x370] ss:$24 sps:$4 sm:$0xff]  }
 0x16b   :  { %1404 = vmatprep.subr.bf16.mxu0 %v16632_v23  ;;  %v16683_v23 = vld [vmem:[#allocation7 + $0x514] ss:$24 sps:$4 sm:$0xff]  }
 0x16e   :  { %1405 = vmatpush1.bf16.msra.mxu0 %v16630_v24  ;;  %v16651_v24 = vld [vmem:[#allocation7 + $0x340] ss:$24 sps:$4 sm:$0xff]  }
 0x16f   :  { %16295 = vmatprep.subr.bf16.mxu0 %v18384_v0 }
 0x1c9   :  { %v562_v26 = vpop.f32.mrf.mxu0  ;;  %v603_v27 = vpop.f32.mrf.mxu1 }
 0x1cb   :  { %v564_v28 = vpop.f32.mrf.mxu0  ;;  %v605_v29 = vpop.f32.mrf.mxu1 }
 0x1cd   :  { %v566_v30 = vpop.f32.mrf.mxu0  ;;  %v607_v31 = vpop.f32.mrf.mxu1 }
 0x1ce   :  { %v16668_v30 = vld [vmem:[#allocation7 + $0x5ac] ss:$24 sps:$4 sm:$0xff]   ;;  %v16666_v31 = vld [vmem:[#allocation7 + $0x5a8] ss:$24 sps:$4 sm:$0xff]  }
 0x1cf   :  { %v567_v32 = vpop.f32.mrf.mxu0  ;;  %v608_v33 = vpop.f32.mrf.mxu1 }
 0x1d0   :  { %v16674_v32 = vld [vmem:[#allocation7 + $0x57c] ss:$24 sps:$4 sm:$0xff]   ;;  %v16672_v33 = vld [vmem:[#allocation7 + $0x578] ss:$24 sps:$4 sm:$0xff]  }
 0x1e9   :  { %v644_v34 = vpop.f32.mrf.mxu0  ;;  %v925_v35 = vpop.f32.mrf.mxu1 }
 0x1ea   :  { %v18491_v36 = vadd.f32 %v925_v35, %v562_v26  ;;  %v16656_v26 = vld [vmem:[#allocation7 + $0x314] ss:$24 sps:$4 sm:$0xff]   ;;  %v16678_v35 = vld [vmem:[#allocation7 + $0x548] ss:$24 sps:$4 sm:$0xff]  }
 0x1eb   :  { %v646_v37 = vpop.f32.mrf.mxu0  ;;  %v927_v38 = vpop.f32.mrf.mxu1 }
 0x1ec   :  { %v18493_v40 = vadd.f32 %v927_v38, %v564_v28  ;;  %v16662_v28 = vld [vmem:[#allocation7 + $0x5dc] ss:$24 sps:$4 sm:$0xff]   ;;  %v16684_v38 = vld [vmem:[#allocation7 + $0x518] ss:$24 sps:$4 sm:$0xff]  }
 0x1ed   :  { %v648_v41 = vpop.f32.mrf.mxu0  ;;  %v929_v42 = vpop.f32.mrf.mxu1 }
 0x1ee   :  { %v16689_v41 = vld [vmem:[#allocation7 + $0x4e4] ss:$24 sps:$4 sm:$0xff]   ;;  %v16687_v42 = vld [vmem:[#allocation7 + $0x4e0] ss:$24 sps:$4 sm:$0xff]  }
 0x1ef   :  { %v649_v43 = vpop.f32.mrf.mxu0  ;;  %v930_v44 = vpop.f32.mrf.mxu1 }
 0x1f0   :  { %v16692_v43 = vld [vmem:[#allocation7 + $0x4ec] ss:$24 sps:$4 sm:$0xff]   ;;  %v16690_v44 = vld [vmem:[#allocation7 + $0x4e8] ss:$24 sps:$4 sm:$0xff]  }
 0x209   :  { %v966_v45 = vpop.f32.mrf.mxu0  ;;  %v1007_v46 = vpop.f32.mrf.mxu1 }
 0x20a   :  { %v18495_v47 = vadd.f32 %v966_v45, %v603_v27  ;;  %v18497_v48 = vadd.f32 %v1007_v46, %v644_v34  ;;  %v16654_v27 = vld [vmem:[#allocation7 + $0x310] ss:$24 sps:$4 sm:$0xff]   ;;  %v16680_v34 = vld [vmem:[#allocation7 + $0x54c] ss:$24 sps:$4 sm:$0xff]  }
 0x20b   :  { %v968_v49 = vpop.f32.mrf.mxu0  ;;  %v1009_v50 = vpop.f32.mrf.mxu1  ;;  %v16695_v45 = vld [vmem:[#allocation7 + $0x4b4] ss:$24 sps:$4 sm:$0xff]   ;;  %v16693_v46 = vld [vmem:[#allocation7 + $0x4b0] ss:$24 sps:$4 sm:$0xff]  }
 0x20c   :  { %v18499_v51 = vadd.f32 %v968_v49, %v605_v29  ;;  %v18501_v52 = vadd.f32 %v1009_v50, %v646_v37  ;;  %v16660_v29 = vld [vmem:[#allocation7 + $0x5d8] ss:$24 sps:$4 sm:$0xff]   ;;  %v16686_v37 = vld [vmem:[#allocation7 + $0x51c] ss:$24 sps:$4 sm:$0xff]  }
 0x20d   :  { %v970_v53 = vpop.f32.mrf.mxu0  ;;  %v1011_v54 = vpop.f32.mrf.mxu1  ;;  %v16696_v49 = vld [vmem:[#allocation7 + $0x4b8] ss:$24 sps:$4 sm:$0xff]   ;;  %v16698_v50 = vld [vmem:[#allocation7 + $0x4bc] ss:$24 sps:$4 sm:$0xff]  }
 0x20e   :  { %v16701_v53 = vld [vmem:[#allocation7 + $0x484] ss:$24 sps:$4 sm:$0xff]   ;;  %v16699_v54 = vld [vmem:[#allocation7 + $0x480] ss:$24 sps:$4 sm:$0xff]  }
 0x20f   :  { %v971_v55 = vpop.f32.mrf.mxu0  ;;  %v1012_v56 = vpop.f32.mrf.mxu1 }
 0x210   :  { %v16704_v55 = vld [vmem:[#allocation7 + $0x48c] ss:$24 sps:$4 sm:$0xff]   ;;  %v16702_v56 = vld [vmem:[#allocation7 + $0x488] ss:$24 sps:$4 sm:$0xff]  }
 0x211   :  { %v1053_v57 = vpop.f32.mrf.mxu0 }
 0x212   :  { %v1054_v59 = vadd.f32 %v18503_v58, %v1053_v57  ;;  %v16707_v57 = vld [vmem:[#allocation7 + $0x5e4] ss:$24 sps:$4 sm:$0xff]  }
 0x213   :  { %v16293_v60 = vpop.f32.mrf.mxu0 }
 0x214   :  { %v18506_v62 = vpack.c.bf16 %v1054_v59, %v1054_v59 }
 0x215   :  { %v1056_v1 = vpop.f32.mrf.mxu0 }
 0x216   :  { %1382 = vmatmul.mubr.bf16.vlgmr.msra.gmra.mxu1 %v18506_v62  ;;  %1423 = vmatmul.mubr.bf16.vlgmr.msra.gmra.mxu0 %v18506_v62 }
 0x217   :  { %1432 = vmatpush1.bf16.msra.mxu1 %v16633_v61  ;;  %v16294_v3 = vpop.f32.mrf.mxu0  ;;  %16296 = vmatpush3.bf16.msra.mxu0 %v18451_v4 }
 0x218   :  { %1433 = vmatprep.subr.bf16.mxu1 %v16638_v63  ;;  %16297 = vmatprep.mubr.msk.bf16.mxu0 %vm18385_vm0, %v18384_v0 }
 0x219   :  { %1463 = vmatprep.mubr.bf16.mxu1 %v18386_v39  ;;  %1813 = vmatprep.subr.bf16.mxu0 %v16659_v2 }
 0x21b   :  { %1434 = vmatpush1.bf16.msra.mxu1 %v16636_v5 }
 0x21c   :  { %1435 = vmatprep.subr.bf16.mxu1 %v16641_v6 }
 0x21e   :  { %16298 = vmatmul.mubr.msk.bf16.vlgmr.msra.gmra.mxu0 %vm96_vm2, %v14743_v8 }
 0x21f   :  { %1436 = vmatpush1.bf16.msra.mxu1 %v16639_v7  ;;  %1814 = vmatpush1.bf16.msra.mxu0 %v16657_v9 }
 0x220   :  { %1437 = vmatprep.subr.bf16.mxu1 %v16644_v10  ;;  %1815 = vmatprep.subr.bf16.mxu0 %v16665_v11  ;;  %v16705_v11 = vld [vmem:[#allocation7 + $0x5e0] ss:$24 sps:$4 sm:$0xff]  }
 0x221   :  { %1845 = vmatprep.mubr.bf16.mxu0 %v18386_v39 }
 0x223   :  { %1438 = vmatpush1.bf16.msra.mxu1 %v16642_v12  ;;  %1816 = vmatpush1.bf16.msra.mxu0 %v16663_v13 }
 0x224   :  { %1439 = vmatprep.subr.bf16.mxu1 %v16647_v14  ;;  %1817 = vmatprep.subr.bf16.mxu0 %v16671_v15  ;;  %v16708_v14 = vld [vmem:[#allocation7 + $0x5b0] ss:$24 sps:$4 sm:$0xff]   ;;  %v16711_v15 = vld [vmem:[#allocation7 + $0x580] ss:$24 sps:$4 sm:$0xff]  }
 0x227   :  { %1440 = vmatpush1.bf16.msra.mxu1 %v16645_v16  ;;  %1818 = vmatpush1.bf16.msra.mxu0 %v16669_v17  ;;  %v16716_v16 = vld [vmem:[#allocation7 + $0x554] ss:$24 sps:$4 sm:$0xff]   ;;  %v16714_v17 = vld [vmem:[#allocation7 + $0x550] ss:$24 sps:$4 sm:$0xff]  }
 0x228   :  { %1441 = vmatprep.subr.bf16.mxu1 %v16650_v18  ;;  %1819 = vmatprep.subr.bf16.mxu0 %v16677_v19  ;;  %v16719_v18 = vld [vmem:[#allocation7 + $0x524] ss:$24 sps:$4 sm:$0xff]   ;;  %v16717_v19 = vld [vmem:[#allocation7 + $0x520] ss:$24 sps:$4 sm:$0xff]  }
 0x22b   :  { %1442 = vmatpush1.bf16.msra.mxu1 %v16648_v20  ;;  %1820 = vmatpush1.bf16.msra.mxu0 %v16675_v21  ;;  %v16722_v20 = vld [vmem:[#allocation7 + $0x4f4] ss:$24 sps:$4 sm:$0xff]   ;;  %v16720_v21 = vld [vmem:[#allocation7 + $0x4f0] ss:$24 sps:$4 sm:$0xff]  }
 0x22c   :  { %1443 = vmatprep.subr.bf16.mxu1 %v16653_v22  ;;  %1821 = vmatprep.subr.bf16.mxu0 %v16683_v23  ;;  %v16725_v22 = vld [vmem:[#allocation7 + $0x4c4] ss:$24 sps:$4 sm:$0xff]  }
 0x22f   :  { %1444 = vmatpush1.bf16.msra.mxu1 %v16651_v24  ;;  %1822 = vmatpush1.bf16.msra.mxu0 %v16681_v25 }
 0x230   :  { %1445 = vmatprep.subr.bf16.mxu1 %v16656_v26  ;;  %1823 = vmatprep.subr.bf16.mxu0 %v16689_v41  ;;  %v16723_v26 = vld [vmem:[#allocation7 + $0x4c0] ss:$24 sps:$4 sm:$0xff]  }
 0x231   :  { %v16738_v41 = vld [vmem:[#allocation7 + $0x728] ss:$24 sps:$4 sm:$0xff]  }
 0x233   :  { %1446 = vmatpush1.bf16.msra.mxu1 %v16654_v27  ;;  %1824 = vmatpush1.bf16.msra.mxu0 %v16687_v42  ;;  %v16743_v42 = vld [vmem:[#allocation7 + $0x6f4] ss:$24 sps:$4 sm:$0xff]  }
 0x234   :  { %1854 = vmatprep.subr.bf16.mxu1 %v16662_v28  ;;  %1825 = vmatprep.subr.bf16.mxu0 %v16695_v45  ;;  %v16728_v28 = vld [vmem:[#allocation7 + $0x494] ss:$24 sps:$4 sm:$0xff]   ;;  %v16744_v45 = vld [vmem:[#allocation7 + $0x6f8] ss:$24 sps:$4 sm:$0xff]  }
 0x236   :  { %1464 = vmatmul.mubr.bf16.vlgmr.msra.gmra.mxu1 %v18506_v62 }
 0x237   :  { %1855 = vmatpush1.bf16.msra.mxu1 %v16660_v29  ;;  %1886 = vmatprep.mubr.bf16.mxu1 %v18386_v39 }
 0x238   :  { %1856 = vmatprep.subr.bf16.mxu1 %v16668_v30  ;;  %1826 = vmatpush1.bf16.msra.mxu0 %v16693_v46  ;;  %v16749_v46 = vld [vmem:[#allocation7 + $0x6c4] ss:$24 sps:$4 sm:$0xff]  }
 0x239   :  { %1827 = vmatprep.subr.bf16.mxu0 %v16701_v53  ;;  %v16750_v53 = vld [vmem:[#allocation7 + $0x6c8] ss:$24 sps:$4 sm:$0xff]  }
 0x23b   :  { %1857 = vmatpush1.bf16.msra.mxu1 %v16666_v31  ;;  %v16726_v31 = vld [vmem:[#allocation7 + $0x490] ss:$24 sps:$4 sm:$0xff]  }
 0x23c   :  { %1858 = vmatprep.subr.bf16.mxu1 %v16674_v32  ;;  %1828 = vmatpush1.bf16.msra.mxu0 %v16699_v54  ;;  %v16731_v32 = vld [vmem:[#allocation7 + $0x754] ss:$24 sps:$4 sm:$0xff]  }
 0x23d   :  { %1895 = vmatprep.subr.bf16.mxu0 %v16707_v57  ;;  %v16755_v54 = vld [vmem:[#allocation7 + $0x694] ss:$24 sps:$4 sm:$0xff]   ;;  %v16756_v57 = vld [vmem:[#allocation7 + $0x698] ss:$24 sps:$4 sm:$0xff]  }
 0x23f   :  { %1859 = vmatpush1.bf16.msra.mxu1 %v16672_v33  ;;  %v16732_v33 = vld [vmem:[#allocation7 + $0x758] ss:$24 sps:$4 sm:$0xff]  }
 0x240   :  { %1860 = vmatprep.subr.bf16.mxu1 %v16680_v34  ;;  %v16734_v34 = vld [vmem:[#allocation7 + $0x75c] ss:$24 sps:$4 sm:$0xff]  }
 0x243   :  { %1861 = vmatpush1.bf16.msra.mxu1 %v16678_v35  ;;  %v16737_v35 = vld [vmem:[#allocation7 + $0x724] ss:$24 sps:$4 sm:$0xff]  }
 0x244   :  { %1862 = vmatprep.subr.bf16.mxu1 %v16686_v37  ;;  %v16740_v37 = vld [vmem:[#allocation7 + $0x72c] ss:$24 sps:$4 sm:$0xff]  }
 0x247   :  { %1863 = vmatpush1.bf16.msra.mxu1 %v16684_v38  ;;  %v16735_v38 = vld [vmem:[#allocation7 + $0x720] ss:$24 sps:$4 sm:$0xff]  }
 0x248   :  { %1864 = vmatprep.subr.bf16.mxu1 %v16692_v43  ;;  %v16746_v43 = vld [vmem:[#allocation7 + $0x6fc] ss:$24 sps:$4 sm:$0xff]  }
 0x24b   :  { %1865 = vmatpush1.bf16.msra.mxu1 %v16690_v44  ;;  %v16741_v44 = vld [vmem:[#allocation7 + $0x6f0] ss:$24 sps:$4 sm:$0xff]  }
 0x24c   :  { %1866 = vmatprep.subr.bf16.mxu1 %v16698_v50  ;;  %v16747_v50 = vld [vmem:[#allocation7 + $0x6c0] ss:$24 sps:$4 sm:$0xff]  }
 0x24f   :  { %1867 = vmatpush1.bf16.msra.mxu1 %v16696_v49  ;;  %v16752_v49 = vld [vmem:[#allocation7 + $0x6cc] ss:$24 sps:$4 sm:$0xff]  }
 0x250   :  { %1868 = vmatprep.subr.bf16.mxu1 %v16704_v55  ;;  %v16758_v55 = vld [vmem:[#allocation7 + $0x69c] ss:$24 sps:$4 sm:$0xff]  }
 0x253   :  { %1869 = vmatpush1.bf16.msra.mxu1 %v16702_v56  ;;  %v16753_v56 = vld [vmem:[#allocation7 + $0x690] ss:$24 sps:$4 sm:$0xff]  }
 0x254   :  { %2277 = vmatprep.subr.bf16.mxu1 %v16731_v32  ;;  %v16785_v32 = vld [vmem:[#allocation7 + $0x704] ss:$24 sps:$4 sm:$0xff]  }
 0x2d6   :  { %v1383_v59 = vpop.f32.mrf.mxu1  ;;  %v1424_v60 = vpop.f32.mrf.mxu0 }
 0x2d7   :  { %v18522_v61 = vadd.f32 %v1383_v59, %v18491_v36  ;;  %v18525_v62 = vadd.f32 %v1424_v60, %v18495_v47  ;;  %v16710_v47 = vld [vmem:[#allocation7 + $0x5b4] ss:$24 sps:$4 sm:$0xff]   ;;  %v16761_v59 = vld [vmem:[#allocation7 + $0x664] ss:$24 sps:$4 sm:$0xff]   ;;  %v16759_v60 = vld [vmem:[#allocation7 + $0x660] ss:$24 sps:$4 sm:$0xff]  }
 0x2d8   :  { %v1385_v63 = vpop.f32.mrf.mxu1  ;;  %v1426_v1 = vpop.f32.mrf.mxu0 }
 0x2d9   :  { %v18528_v2 = vadd.f32 %v1385_v63, %v18493_v40  ;;  %v18531_v3 = vadd.f32 %v1426_v1, %v18499_v51  ;;  %v16713_v51 = vld [vmem:[#allocation7 + $0x584] ss:$24 sps:$4 sm:$0xff]   ;;  %v16762_v1 = vld [vmem:[#allocation7 + $0x668] ss:$24 sps:$4 sm:$0xff]  }
 0x2da   :  { %v1387_v5 = vpop.f32.mrf.mxu1  ;;  %v1428_v6 = vpop.f32.mrf.mxu0  ;;  %v16764_v63 = vld [vmem:[#allocation7 + $0x66c] ss:$24 sps:$4 sm:$0xff]  }
 0x2db   :  { %v16767_v5 = vld [vmem:[#allocation7 + $0x634] ss:$24 sps:$4 sm:$0xff]   ;;  %v16765_v6 = vld [vmem:[#allocation7 + $0x630] ss:$24 sps:$4 sm:$0xff]  }
 0x2dc   :  { %v1388_v7 = vpop.f32.mrf.mxu1  ;;  %v1429_v8 = vpop.f32.mrf.mxu0 }
 0x2dd   :  { %v16770_v7 = vld [vmem:[#allocation7 + $0x63c] ss:$24 sps:$4 sm:$0xff]   ;;  %v16768_v8 = vld [vmem:[#allocation7 + $0x638] ss:$24 sps:$4 sm:$0xff]  }
 0x2de   :  { %v1517_v9 = vpop.f32.mrf.mxu0 }
 0x2df   :  { %v1518_v10 = vadd.f32 %v18503_v58, %v1517_v9  ;;  %v16773_v9 = vld [vmem:[#allocation7 + $0x604] ss:$24 sps:$4 sm:$0xff]  }
 0x2e0   :  { %v16299_v36 = vpop.f32.mrf.mxu0 }
 0x2e1   :  { %v1523_v12 = vpack.c.bf16 %v1518_v10, %v1518_v10  ;;  %v16771_v10 = vld [vmem:[#allocation7 + $0x600] ss:$24 sps:$4 sm:$0xff]   ;;  %v16776_v36 = vld [vmem:[#allocation7 + $0x60c] ss:$24 sps:$4 sm:$0xff]  }
 0x2e2   :  { %v1520_v13 = vpop.f32.mrf.mxu0 }
 0x2e3   :  { %1846 = vmatmul.mubr.bf16.vlgmr.msra.gmra.mxu0 %v1523_v12  ;;  %1887 = vmatmul.mubr.bf16.vlgmr.msra.gmra.mxu1 %v1523_v12 }
 0x2e4   :  { %1896 = vmatpush1.bf16.msra.mxu0 %v16705_v11  ;;  %v16300_v40 = vpop.f32.mrf.mxu0  ;;  %1927 = vmatprep.mubr.bf16.mxu0 %v18386_v39  ;;  %v16774_v11 = vld [vmem:[#allocation7 + $0x608] ss:$24 sps:$4 sm:$0xff]  }
 0x2e5   :  { %1897 = vmatprep.subr.bf16.mxu0 %v16710_v47  ;;  %2309 = vmatprep.mubr.bf16.mxu1 %v18386_v39 }
 0x2e8   :  { %1898 = vmatpush1.bf16.msra.mxu0 %v16708_v14 }
 0x2e9   :  { %1899 = vmatprep.subr.bf16.mxu0 %v16713_v51 }
 0x2ec   :  { %1900 = vmatpush1.bf16.msra.mxu0 %v16711_v15 }
 0x2ed   :  { %1901 = vmatprep.subr.bf16.mxu0 %v16716_v16 }
 0x2f0   :  { %1902 = vmatpush1.bf16.msra.mxu0 %v16714_v17 }
 0x2f1   :  { %1903 = vmatprep.subr.bf16.mxu0 %v16719_v18 }
 0x2f4   :  { %1904 = vmatpush1.bf16.msra.mxu0 %v16717_v19 }
 0x2f5   :  { %1905 = vmatprep.subr.bf16.mxu0 %v16722_v20 }
 0x2f6   :  { %v1465_v23 = vpop.f32.mrf.mxu1 }
 0x2f7   :  { %v18537_v24 = vadd.f32 %v1465_v23, %v18497_v48  ;;  %v14793_v48 = vld [vmem:[%s19392_s0 + $0x4] sm:$0x1] }
 0x2f8   :  { %v1467_v25 = vpop.f32.mrf.mxu1  ;;  %1906 = vmatpush1.bf16.msra.mxu0 %v16720_v21 }
 0x2f9   :  { %v18540_v27 = vadd.f32 %v1467_v25, %v18501_v52  ;;  %1907 = vmatprep.subr.bf16.mxu0 %v16725_v22  ;;  %v16729_v52 = vld [vmem:[#allocation7 + $0x750] ss:$24 sps:$4 sm:$0xff]  }
 0x2fa   :  { %v1469_v29 = vpop.f32.mrf.mxu1  ;;  %2278 = vmatpush1.bf16.msra.mxu1 %v16729_v52  ;;  %v16803_v52 = vld [vmem:[#allocation7 + $0x8d4] ss:$24 sps:$4 sm:$0xff]  }
 0x2fb   :  { %2279 = vmatprep.subr.bf16.mxu1 %v16737_v35  ;;  %v16801_v35 = vld [vmem:[#allocation7 + $0x8d0] ss:$24 sps:$4 sm:$0xff]  }
 0x2fc   :  { %v1470_v30 = vpop.f32.mrf.mxu1  ;;  %1908 = vmatpush1.bf16.msra.mxu0 %v16723_v26 }
 0x2fd   :  { %1909 = vmatprep.subr.bf16.mxu0 %v16728_v28 }
 0x2fe   :  { %2280 = vmatpush1.bf16.msra.mxu1 %v16735_v38  ;;  %v16809_v38 = vld [vmem:[#allocation7 + $0x8a4] ss:$24 sps:$4 sm:$0xff]  }
 0x2ff   :  { %2281 = vmatprep.subr.bf16.mxu1 %v16743_v42  ;;  %v16807_v42 = vld [vmem:[#allocation7 + $0x8a0] ss:$24 sps:$4 sm:$0xff]  }
 0x300   :  { %1910 = vmatpush1.bf16.msra.mxu0 %v16726_v31  ;;  %v16782_v31 = vld [vmem:[#allocation7 + $0x734] ss:$24 sps:$4 sm:$0xff]  }
 0x301   :  { %16301 = vmatprep.subr.bf16.mxu0 %v18384_v0 }
 0x302   :  { %2282 = vmatpush1.bf16.msra.mxu1 %v16741_v44  ;;  %v16815_v44 = vld [vmem:[#allocation7 + $0x874] ss:$24 sps:$4 sm:$0xff]  }
 0x303   :  { %1928 = vmatmul.mubr.bf16.vlgmr.msra.gmra.mxu0 %v1523_v12  ;;  %2283 = vmatprep.subr.bf16.mxu1 %v16749_v46  ;;  %v16779_v12 = vld [vmem:[#allocation7 + $0x764] ss:$24 sps:$4 sm:$0xff]   ;;  %v16813_v46 = vld [vmem:[#allocation7 + $0x870] ss:$24 sps:$4 sm:$0xff]  }
 0x304   :  { %16302 = vmatpush3.bf16.msra.mxu0 %v18451_v4  ;;  %16303 = vmatprep.mubr.msk.bf16.mxu0 %vm18385_vm0, %v18384_v0 }
 0x305   :  { %2318 = vmatprep.subr.bf16.mxu0 %v16734_v34  ;;  %v14843_v34 = vld [vmem:[%s19392_s0 + $0x5] sm:$0x1] }
 0x306   :  { %2284 = vmatpush1.bf16.msra.mxu1 %v16747_v50  ;;  %v16821_v50 = vld [vmem:[#allocation7 + $0x844] ss:$24 sps:$4 sm:$0xff]  }
 0x307   :  { %2285 = vmatprep.subr.bf16.mxu1 %v16755_v54  ;;  %v16819_v54 = vld [vmem:[#allocation7 + $0x840] ss:$24 sps:$4 sm:$0xff]  }
 0x30a   :  { %2286 = vmatpush1.bf16.msra.mxu1 %v16753_v56  ;;  %v16827_v56 = vld [vmem:[#allocation7 + $0x814] ss:$24 sps:$4 sm:$0xff]  }
 0x30b   :  { %16304 = vmatmul.mubr.msk.bf16.vlgmr.msra.gmra.mxu0 %vm96_vm2, %v14793_v48  ;;  %2287 = vmatprep.subr.bf16.mxu1 %v16761_v59  ;;  %v16825_v59 = vld [vmem:[#allocation7 + $0x810] ss:$24 sps:$4 sm:$0xff]  }
 0x30c   :  { %2350 = vmatprep.mubr.bf16.mxu0 %v18386_v39  ;;  %2319 = vmatpush1.bf16.msra.mxu0 %v16732_v33  ;;  %v16783_v33 = vld [vmem:[#allocation7 + $0x700] ss:$24 sps:$4 sm:$0xff]  }
 0x30d   :  { %2320 = vmatprep.subr.bf16.mxu0 %v16740_v37  ;;  %v16788_v37 = vld [vmem:[#allocation7 + $0x6d4] ss:$24 sps:$4 sm:$0xff]  }
 0x30e   :  { %2288 = vmatpush1.bf16.msra.mxu1 %v16759_v60  ;;  %v16800_v60 = vld [vmem:[#allocation7 + $0x614] ss:$24 sps:$4 sm:$0xff]  }
 0x30f   :  { %2289 = vmatprep.subr.bf16.mxu1 %v16767_v5  ;;  %v16804_v5 = vld [vmem:[#allocation7 + $0x8d8] ss:$24 sps:$4 sm:$0xff]  }
 0x310   :  { %2321 = vmatpush1.bf16.msra.mxu0 %v16738_v41  ;;  %v16786_v41 = vld [vmem:[#allocation7 + $0x6d0] ss:$24 sps:$4 sm:$0xff]  }
 0x311   :  { %2322 = vmatprep.subr.bf16.mxu0 %v16746_v43  ;;  %v16791_v43 = vld [vmem:[#allocation7 + $0x6a4] ss:$24 sps:$4 sm:$0xff]  }
 0x312   :  { %2290 = vmatpush1.bf16.msra.mxu1 %v16765_v6  ;;  %v16812_v6 = vld [vmem:[#allocation7 + $0x8ac] ss:$24 sps:$4 sm:$0xff]  }
 0x313   :  { %2291 = vmatprep.subr.bf16.mxu1 %v16773_v9  ;;  %v16816_v9 = vld [vmem:[#allocation7 + $0x878] ss:$24 sps:$4 sm:$0xff]  }
 0x314   :  { %2323 = vmatpush1.bf16.msra.mxu0 %v16744_v45  ;;  %v16789_v45 = vld [vmem:[#allocation7 + $0x6a0] ss:$24 sps:$4 sm:$0xff]  }
 0x315   :  { %2324 = vmatprep.subr.bf16.mxu0 %v16752_v49  ;;  %v16794_v49 = vld [vmem:[#allocation7 + $0x674] ss:$24 sps:$4 sm:$0xff]  }
 0x316   :  { %2292 = vmatpush1.bf16.msra.mxu1 %v16771_v10  ;;  %v16824_v10 = vld [vmem:[#allocation7 + $0x84c] ss:$24 sps:$4 sm:$0xff]  }
 0x317   :  { %2359 = vmatprep.subr.bf16.mxu1 %v16779_v12  ;;  %v16828_v12 = vld [vmem:[#allocation7 + $0x818] ss:$24 sps:$4 sm:$0xff]  }
 0x318   :  { %2325 = vmatpush1.bf16.msra.mxu0 %v16750_v53  ;;  %v16792_v53 = vld [vmem:[#allocation7 + $0x670] ss:$24 sps:$4 sm:$0xff]  }
 0x319   :  { %2326 = vmatprep.subr.bf16.mxu0 %v16758_v55  ;;  %v16797_v55 = vld [vmem:[#allocation7 + $0x644] ss:$24 sps:$4 sm:$0xff]  }
 0x31c   :  { %2327 = vmatpush1.bf16.msra.mxu0 %v16756_v57  ;;  %v16795_v57 = vld [vmem:[#allocation7 + $0x640] ss:$24 sps:$4 sm:$0xff]  }
 0x31d   :  { %2328 = vmatprep.subr.bf16.mxu0 %v16764_v63  ;;  %v16798_v63 = vld [vmem:[#allocation7 + $0x610] ss:$24 sps:$4 sm:$0xff]  }
 0x320   :  { %2329 = vmatpush1.bf16.msra.mxu0 %v16762_v1  ;;  %v16806_v1 = vld [vmem:[#allocation7 + $0x8dc] ss:$24 sps:$4 sm:$0xff]  }
 0x321   :  { %2330 = vmatprep.subr.bf16.mxu0 %v16770_v7  ;;  %v16810_v7 = vld [vmem:[#allocation7 + $0x8a8] ss:$24 sps:$4 sm:$0xff]  }
 0x324   :  { %2331 = vmatpush1.bf16.msra.mxu0 %v16768_v8  ;;  %v16818_v8 = vld [vmem:[#allocation7 + $0x87c] ss:$24 sps:$4 sm:$0xff]  }
 0x325   :  { %2332 = vmatprep.subr.bf16.mxu0 %v16776_v36  ;;  %v16822_v36 = vld [vmem:[#allocation7 + $0x848] ss:$24 sps:$4 sm:$0xff]  }
 0x328   :  { %2333 = vmatpush1.bf16.msra.mxu0 %v16774_v11  ;;  %v16830_v11 = vld [vmem:[#allocation7 + $0x81c] ss:$24 sps:$4 sm:$0xff]  }
 0x329   :  { %16307 = vmatprep.subr.bf16.mxu0 %v18384_v0 }
 0x3a3   :  { %v1847_v47 = vpop.f32.mrf.mxu0  ;;  %v1888_v13 = vpop.f32.mrf.mxu1 }
 0x3a4   :  { %v18553_v40 = vadd.f32 %v1847_v47, %v18522_v61  ;;  %v18556_v14 = vadd.f32 %v1888_v13, %v18525_v62  ;;  %v16833_v47 = vld [vmem:[#allocation7 + $0x7e4] ss:$24 sps:$4 sm:$0xff]   ;;  %v16831_v13 = vld [vmem:[#allocation7 + $0x7e0] ss:$24 sps:$4 sm:$0xff]  }
 0x3a5   :  { %v1849_v51 = vpop.f32.mrf.mxu0  ;;  %v1890_v15 = vpop.f32.mrf.mxu1 }
 0x3a6   :  { %v18559_v16 = vadd.f32 %v1849_v51, %v18528_v2  ;;  %v18562_v17 = vadd.f32 %v1890_v15, %v18531_v3  ;;  %v16777_v3 = vld [vmem:[#allocation7 + $0x760] ss:$24 sps:$4 sm:$0xff]   ;;  %v16836_v51 = vld [vmem:[#allocation7 + $0x7ec] ss:$24 sps:$4 sm:$0xff]  }
 0x3a7   :  { %v1851_v18 = vpop.f32.mrf.mxu0  ;;  %v1892_v19 = vpop.f32.mrf.mxu1  ;;  %v16834_v15 = vld [vmem:[#allocation7 + $0x7e8] ss:$24 sps:$4 sm:$0xff]  }
 0x3a8   :  { %v16839_v18 = vld [vmem:[#allocation7 + $0x7b4] ss:$24 sps:$4 sm:$0xff]   ;;  %v16837_v19 = vld [vmem:[#allocation7 + $0x7b0] ss:$24 sps:$4 sm:$0xff]  }
 0x3a9   :  { %v1852_v20 = vpop.f32.mrf.mxu0  ;;  %v1893_v21 = vpop.f32.mrf.mxu1 }
 0x3aa   :  { %v16840_v20 = vld [vmem:[#allocation7 + $0x7b8] ss:$24 sps:$4 sm:$0xff]   ;;  %v16842_v21 = vld [vmem:[#allocation7 + $0x7bc] ss:$24 sps:$4 sm:$0xff]  }
 0x3c3   :  { %v1929_v22 = vpop.f32.mrf.mxu0 }
 0x3c4   :  { %v18565_v23 = vadd.f32 %v1929_v22, %v18537_v24  ;;  %v16845_v22 = vld [vmem:[#allocation7 + $0x784] ss:$24 sps:$4 sm:$0xff]  }
 0x3c5   :  { %v1931_v61 = vpop.f32.mrf.mxu0 }
 0x3c6   :  { %v18568_v62 = vadd.f32 %v1931_v61, %v18540_v27  ;;  %v16780_v27 = vld [vmem:[#allocation7 + $0x730] ss:$24 sps:$4 sm:$0xff]   ;;  %v16843_v61 = vld [vmem:[#allocation7 + $0x780] ss:$24 sps:$4 sm:$0xff]  }
 0x3c7   :  { %v1933_v25 = vpop.f32.mrf.mxu0 }
 0x3c8   :  { %v16848_v25 = vld [vmem:[#allocation7 + $0x78c] ss:$24 sps:$4 sm:$0xff]  }
 0x3c9   :  { %v1934_v26 = vpop.f32.mrf.mxu0 }
 0x3ca   :  { %v16846_v26 = vld [vmem:[#allocation7 + $0x788] ss:$24 sps:$4 sm:$0xff]  }
 0x3cb   :  { %v1981_v28 = vpop.f32.mrf.mxu0 }
 0x3cc   :  { %v1982_v2 = vadd.f32 %v18503_v58, %v1981_v28  ;;  %v16851_v28 = vld [vmem:[#allocation7 + $0x8e4] ss:$24 sps:$4 sm:$0xff]  }
 0x3cd   :  { %v16305_v29 = vpop.f32.mrf.mxu0 }
 0x3ce   :  { %v18571_v30 = vpack.c.bf16 %v1982_v2, %v1982_v2 }
 0x3cf   :  { %v1984_v48 = vpop.f32.mrf.mxu0 }
 0x3d0   :  { %2310 = vmatmul.mubr.bf16.vlgmr.msra.gmra.mxu1 %v18571_v30  ;;  %2351 = vmatmul.mubr.bf16.vlgmr.msra.gmra.mxu0 %v18571_v30 }
 0x3d1   :  { %2360 = vmatpush1.bf16.msra.mxu1 %v16777_v3  ;;  %v16306_v24 = vpop.f32.mrf.mxu0  ;;  %16308 = vmatpush3.bf16.msra.mxu0 %v18451_v4 }
 0x3d2   :  { %2361 = vmatprep.subr.bf16.mxu1 %v16782_v31  ;;  %16309 = vmatprep.mubr.msk.bf16.mxu0 %vm18385_vm0, %v18384_v0 }
 0x3d3   :  { %2391 = vmatprep.mubr.bf16.mxu1 %v18386_v39  ;;  %2741 = vmatprep.subr.bf16.mxu0 %v16803_v52 }
 0x3d5   :  { %2362 = vmatpush1.bf16.msra.mxu1 %v16780_v27 }
 0x3d6   :  { %2363 = vmatprep.subr.bf16.mxu1 %v16785_v32 }
 0x3d8   :  { %16310 = vmatmul.mubr.msk.bf16.vlgmr.msra.gmra.mxu0 %vm96_vm2, %v14843_v34 }
 0x3d9   :  { %2364 = vmatpush1.bf16.msra.mxu1 %v16783_v33  ;;  %2742 = vmatpush1.bf16.msra.mxu0 %v16801_v35 }
 0x3da   :  { %2365 = vmatprep.subr.bf16.mxu1 %v16788_v37  ;;  %2743 = vmatprep.subr.bf16.mxu0 %v16809_v38  ;;  %v16849_v38 = vld [vmem:[#allocation7 + $0x8e0] ss:$24 sps:$4 sm:$0xff]  }
 0x3db   :  { %2773 = vmatprep.mubr.bf16.mxu0 %v18386_v39 }
 0x3dd   :  { %2366 = vmatpush1.bf16.msra.mxu1 %v16786_v41  ;;  %2744 = vmatpush1.bf16.msra.mxu0 %v16807_v42 }
 0x3de   :  { %2367 = vmatprep.subr.bf16.mxu1 %v16791_v43  ;;  %2745 = vmatprep.subr.bf16.mxu0 %v16815_v44  ;;  %v16875_v43 = vld [vmem:[#allocation7 + $0xa54] ss:$24 sps:$4 sm:$0xff]   ;;  %v16857_v44 = vld [vmem:[#allocation7 + $0x884] ss:$24 sps:$4 sm:$0xff]  }
 0x3e1   :  { %2368 = vmatpush1.bf16.msra.mxu1 %v16789_v45  ;;  %2746 = vmatpush1.bf16.msra.mxu0 %v16813_v46  ;;  %v14893_v45 = vld [vmem:[%s19392_s0 + $0x6] sm:$0x1]  ;;  %v16873_v46 = vld [vmem:[#allocation7 + $0xa50] ss:$24 sps:$4 sm:$0xff]  }
 0x3e2   :  { %2369 = vmatprep.subr.bf16.mxu1 %v16794_v49  ;;  %2747 = vmatprep.subr.bf16.mxu0 %v16821_v50  ;;  %v16860_v49 = vld [vmem:[#allocation7 + $0x854] ss:$24 sps:$4 sm:$0xff]   ;;  %v16881_v50 = vld [vmem:[#allocation7 + $0xa24] ss:$24 sps:$4 sm:$0xff]  }
 0x3e5   :  { %2370 = vmatpush1.bf16.msra.mxu1 %v16792_v53  ;;  %2748 = vmatpush1.bf16.msra.mxu0 %v16819_v54  ;;  %v16858_v53 = vld [vmem:[#allocation7 + $0x850] ss:$24 sps:$4 sm:$0xff]   ;;  %v16879_v54 = vld [vmem:[#allocation7 + $0xa20] ss:$24 sps:$4 sm:$0xff]  }
 0x3e6   :  { %2371 = vmatprep.subr.bf16.mxu1 %v16797_v55  ;;  %2749 = vmatprep.subr.bf16.mxu0 %v16827_v56  ;;  %v16863_v55 = vld [vmem:[#allocation7 + $0x824] ss:$24 sps:$4 sm:$0xff]   ;;  %v16887_v56 = vld [vmem:[#allocation7 + $0x9f4] ss:$24 sps:$4 sm:$0xff]  }
 0x3e9   :  { %2372 = vmatpush1.bf16.msra.mxu1 %v16795_v57  ;;  %2750 = vmatpush1.bf16.msra.mxu0 %v16825_v59  ;;  %v16861_v57 = vld [vmem:[#allocation7 + $0x820] ss:$24 sps:$4 sm:$0xff]   ;;  %v16885_v59 = vld [vmem:[#allocation7 + $0x9f0] ss:$24 sps:$4 sm:$0xff]  }
 0x3ea   :  { %2373 = vmatprep.subr.bf16.mxu1 %v16800_v60  ;;  %2751 = vmatprep.subr.bf16.mxu0 %v16833_v47  ;;  %v16866_v60 = vld [vmem:[#allocation7 + $0x7f4] ss:$24 sps:$4 sm:$0xff]  }
 0x3eb   :  { %v16872_v47 = vld [vmem:[#allocation7 + $0x794] ss:$24 sps:$4 sm:$0xff]  }
 0x3ed   :  { %2374 = vmatpush1.bf16.msra.mxu1 %v16798_v63  ;;  %2752 = vmatpush1.bf16.msra.mxu0 %v16831_v13  ;;  %v16893_v63 = vld [vmem:[#allocation7 + $0x9c4] ss:$24 sps:$4 sm:$0xff]  }
 0x3ee   :  { %2782 = vmatprep.subr.bf16.mxu1 %v16806_v1  ;;  %2753 = vmatprep.subr.bf16.mxu0 %v16839_v18  ;;  %v16864_v1 = vld [vmem:[#allocation7 + $0x7f0] ss:$24 sps:$4 sm:$0xff]   ;;  %v16878_v18 = vld [vmem:[#allocation7 + $0xa5c] ss:$24 sps:$4 sm:$0xff]  }
 0x3f0   :  { %2392 = vmatmul.mubr.bf16.vlgmr.msra.gmra.mxu1 %v18571_v30 }
 0x3f1   :  { %2783 = vmatpush1.bf16.msra.mxu1 %v16804_v5  ;;  %2814 = vmatprep.mubr.bf16.mxu1 %v18386_v39  ;;  %v16891_v5 = vld [vmem:[#allocation7 + $0x9c0] ss:$24 sps:$4 sm:$0xff]  }
 0x3f2   :  { %2784 = vmatprep.subr.bf16.mxu1 %v16812_v6  ;;  %2754 = vmatpush1.bf16.msra.mxu0 %v16837_v19  ;;  %v16869_v6 = vld [vmem:[#allocation7 + $0x7c4] ss:$24 sps:$4 sm:$0xff]  }
 0x3f3   :  { %2755 = vmatprep.subr.bf16.mxu0 %v16845_v22  ;;  %v16884_v19 = vld [vmem:[#allocation7 + $0xa2c] ss:$24 sps:$4 sm:$0xff]  }
 0x3f4   :  { %v16896_v22 = vld [vmem:[#allocation7 + $0x9cc] ss:$24 sps:$4 sm:$0xff]  }
 0x3f5   :  { %2785 = vmatpush1.bf16.msra.mxu1 %v16810_v7  ;;  %v16899_v7 = vld [vmem:[#allocation7 + $0x994] ss:$24 sps:$4 sm:$0xff]  }
 0x3f6   :  { %2786 = vmatprep.subr.bf16.mxu1 %v16818_v8  ;;  %2756 = vmatpush1.bf16.msra.mxu0 %v16843_v61  ;;  %v16894_v61 = vld [vmem:[#allocation7 + $0x9c8] ss:$24 sps:$4 sm:$0xff]  }
 0x3f7   :  { %2823 = vmatprep.subr.bf16.mxu0 %v16851_v28  ;;  %v16905_v28 = vld [vmem:[#allocation7 + $0x964] ss:$24 sps:$4 sm:$0xff]  }
 0x3f9   :  { %2787 = vmatpush1.bf16.msra.mxu1 %v16816_v9 }
 0x3fa   :  { %2788 = vmatprep.subr.bf16.mxu1 %v16824_v10 }
 0x3fd   :  { %2789 = vmatpush1.bf16.msra.mxu1 %v16822_v36  ;;  %v16867_v36 = vld [vmem:[#allocation7 + $0x7c0] ss:$24 sps:$4 sm:$0xff]  }
 0x3fe   :  { %2790 = vmatprep.subr.bf16.mxu1 %v16830_v11  ;;  %v16897_v11 = vld [vmem:[#allocation7 + $0x990] ss:$24 sps:$4 sm:$0xff]  }
 0x401   :  { %2791 = vmatpush1.bf16.msra.mxu1 %v16828_v12 }
 0x402   :  { %2792 = vmatprep.subr.bf16.mxu1 %v16836_v51 }
 0x405   :  { %2793 = vmatpush1.bf16.msra.mxu1 %v16834_v15  ;;  %v16870_v15 = vld [vmem:[#allocation7 + $0x790] ss:$24 sps:$4 sm:$0xff]  }
 0x406   :  { %2794 = vmatprep.subr.bf16.mxu1 %v16842_v21  ;;  %v16888_v21 = vld [vmem:[#allocation7 + $0x9f8] ss:$24 sps:$4 sm:$0xff]  }
 0x409   :  { %2795 = vmatpush1.bf16.msra.mxu1 %v16840_v20  ;;  %v16882_v20 = vld [vmem:[#allocation7 + $0xa28] ss:$24 sps:$4 sm:$0xff]  }
 0x40a   :  { %2796 = vmatprep.subr.bf16.mxu1 %v16848_v25  ;;  %v16902_v25 = vld [vmem:[#allocation7 + $0x99c] ss:$24 sps:$4 sm:$0xff]  }
 0x40d   :  { %2797 = vmatpush1.bf16.msra.mxu1 %v16846_v26  ;;  %v16900_v26 = vld [vmem:[#allocation7 + $0x998] ss:$24 sps:$4 sm:$0xff]  }
 0x40e   :  { %16313 = vmatprep.subr.bf16.mxu1 %v18384_v0 }
 0x490   :  { %v2311_v2 = vpop.f32.mrf.mxu1  ;;  %v2352_v29 = vpop.f32.mrf.mxu0 }
 0x491   :  { %v18588_v3 = vadd.f32 %v2311_v2, %v18553_v40  ;;  %v18591_v30 = vadd.f32 %v2352_v29, %v18556_v14  ;;  %v16854_v14 = vld [vmem:[#allocation7 + $0x8b4] ss:$24 sps:$4 sm:$0xff]   ;;  %v16903_v2 = vld [vmem:[#allocation7 + $0x960] ss:$24 sps:$4 sm:$0xff]  }
 0x492   :  { %v2313_v31 = vpop.f32.mrf.mxu1  ;;  %v2354_v48 = vpop.f32.mrf.mxu0  ;;  %v16908_v29 = vld [vmem:[#allocation7 + $0x96c] ss:$24 sps:$4 sm:$0xff]  }
 0x493   :  { %v18594_v52 = vadd.f32 %v2313_v31, %v18559_v16  ;;  %v18597_v24 = vadd.f32 %v2354_v48, %v18562_v17  ;;  %v16852_v17 = vld [vmem:[#allocation7 + $0x8b0] ss:$24 sps:$4 sm:$0xff]   ;;  %v16911_v48 = vld [vmem:[#allocation7 + $0x934] ss:$24 sps:$4 sm:$0xff]  }
 0x494   :  { %v2315_v27 = vpop.f32.mrf.mxu1  ;;  %v2356_v32 = vpop.f32.mrf.mxu0  ;;  %v16906_v31 = vld [vmem:[#allocation7 + $0x968] ss:$24 sps:$4 sm:$0xff]  }
 0x495   :  { %v16909_v27 = vld [vmem:[#allocation7 + $0x930] ss:$24 sps:$4 sm:$0xff]  }
 0x496   :  { %v2316_v33 = vpop.f32.mrf.mxu1  ;;  %v2357_v34 = vpop.f32.mrf.mxu0  ;;  %v16912_v32 = vld [vmem:[#allocation7 + $0x938] ss:$24 sps:$4 sm:$0xff]  }
 0x497   :  { %v16914_v33 = vld [vmem:[#allocation7 + $0x93c] ss:$24 sps:$4 sm:$0xff]  }
 0x498   :  { %v2445_v35 = vpop.f32.mrf.mxu0  ;;  %v16917_v34 = vld [vmem:[#allocation7 + $0x904] ss:$24 sps:$4 sm:$0xff]  }
 0x499   :  { %v2446_v37 = vadd.f32 %v18503_v58, %v2445_v35  ;;  %v16855_v58 = vld [vmem:[#allocation7 + $0x880] ss:$24 sps:$4 sm:$0xff]  }
 0x49a   :  { %v16311_v40 = vpop.f32.mrf.mxu0  ;;  %v16915_v35 = vld [vmem:[#allocation7 + $0x900] ss:$24 sps:$4 sm:$0xff]  }
 0x49b   :  { %v18600_v41 = vpack.c.bf16 %v2446_v37, %v2446_v37  ;;  %v16920_v37 = vld [vmem:[#allocation7 + $0x90c] ss:$24 sps:$4 sm:$0xff]   ;;  %v16918_v40 = vld [vmem:[#allocation7 + $0x908] ss:$24 sps:$4 sm:$0xff]  }
 0x49c   :  { %v2448_v42 = vpop.f32.mrf.mxu0 }
 0x49d   :  { %2774 = vmatmul.mubr.bf16.vlgmr.msra.gmra.mxu0 %v18600_v41  ;;  %2815 = vmatmul.mubr.bf16.vlgmr.msra.gmra.mxu1 %v18600_v41 }
 0x49e   :  { %2824 = vmatpush1.bf16.msra.mxu0 %v16849_v38  ;;  %v16312_v16 = vpop.f32.mrf.mxu0  ;;  %16314 = vmatpush3.bf16.msra.mxu1 %v18451_v4  ;;  %v16923_v38 = vld [vmem:[#allocation7 + $0xa64] ss:$24 sps:$4 sm:$0xff]  }
 0x49f   :  { %2825 = vmatprep.subr.bf16.mxu0 %v16854_v14  ;;  %16315 = vmatprep.mubr.msk.bf16.mxu1 %vm18385_vm0, %v18384_v0 }
 0x4a0   :  { %2855 = vmatprep.mubr.bf16.mxu0 %v18386_v39  ;;  %3205 = vmatprep.subr.bf16.mxu1 %v16875_v43 }
 0x4a2   :  { %2826 = vmatpush1.bf16.msra.mxu0 %v16852_v17 }
 0x4a3   :  { %2827 = vmatprep.subr.bf16.mxu0 %v16857_v44 }
 0x4a5   :  { %16316 = vmatmul.mubr.msk.bf16.vlgmr.msra.gmra.mxu1 %vm96_vm2, %v14893_v45 }
 0x4a6   :  { %2828 = vmatpush1.bf16.msra.mxu0 %v16855_v58  ;;  %3206 = vmatpush1.bf16.msra.mxu1 %v16873_v46 }
 0x4a7   :  { %2829 = vmatprep.subr.bf16.mxu0 %v16860_v49  ;;  %3207 = vmatprep.subr.bf16.mxu1 %v16881_v50 }
 0x4a8   :  { %3237 = vmatprep.mubr.bf16.mxu1 %v18386_v39 }
 0x4aa   :  { %2830 = vmatpush1.bf16.msra.mxu0 %v16858_v53  ;;  %3208 = vmatpush1.bf16.msra.mxu1 %v16879_v54  ;;  %v18634_v54 = vld [vmem:[#allocation5] ss:$0 sm:$0xff] }
 0x4ab   :  { %2831 = vmatprep.subr.bf16.mxu0 %v16863_v55  ;;  %3209 = vmatprep.subr.bf16.mxu1 %v16887_v56 }
 0x4ae   :  { %2832 = vmatpush1.bf16.msra.mxu0 %v16861_v57  ;;  %3210 = vmatpush1.bf16.msra.mxu1 %v16885_v59  ;;  %v16926_v57 = vld [vmem:[#allocation7 + $0xa34] ss:$24 sps:$4 sm:$0xff]  }
 0x4af   :  { %2833 = vmatprep.subr.bf16.mxu0 %v16866_v60  ;;  %3211 = vmatprep.subr.bf16.mxu1 %v16893_v63  ;;  %v16924_v60 = vld [vmem:[#allocation7 + $0xa30] ss:$24 sps:$4 sm:$0xff]   ;;  %v16929_v63 = vld [vmem:[#allocation7 + $0xa04] ss:$24 sps:$4 sm:$0xff]  }
 0x4b0   :  { %v2393_v8 = vpop.f32.mrf.mxu1 }
 0x4b1   :  { %v18614_v9 = vadd.f32 %v2393_v8, %v18565_v23  ;;  %v16876_v23 = vld [vmem:[#allocation7 + $0xa58] ss:$24 sps:$4 sm:$0xff]   ;;  %v16953_v8 = vld [vmem:[#allocation7 + $0xba4] ss:$24 sps:$4 sm:$0xff]  }
 0x4b2   :  { %v2395_v10 = vpop.f32.mrf.mxu1  ;;  %2834 = vmatpush1.bf16.msra.mxu0 %v16864_v1  ;;  %3212 = vmatpush1.bf16.msra.mxu1 %v16891_v5  ;;  %v16927_v1 = vld [vmem:[#allocation7 + $0xa00] ss:$24 sps:$4 sm:$0xff]  }
 0x4b3   :  { %v18617_v12 = vadd.f32 %v2395_v10, %v18568_v62  ;;  %2835 = vmatprep.subr.bf16.mxu0 %v16869_v6  ;;  %3213 = vmatprep.subr.bf16.mxu1 %v16899_v7  ;;  %v16890_v62 = vld [vmem:[#allocation7 + $0x9fc] ss:$24 sps:$4 sm:$0xff]   ;;  %v14943_v5 = vld [vmem:[%s19392_s0 + $0x7] sm:$0x1]  ;;  %v16945_v6 = vld [vmem:[#allocation7 + $0xbd0] ss:$24 sps:$4 sm:$0xff]  }
 0x4b4   :  { %v2397_v13 = vpop.f32.mrf.mxu1  ;;  %v16932_v7 = vld [vmem:[#allocation7 + $0x9d4] ss:$24 sps:$4 sm:$0xff]   ;;  %v16930_v10 = vld [vmem:[#allocation7 + $0x9d0] ss:$24 sps:$4 sm:$0xff]  }
 0x4b5   :  { %v16933_v13 = vld [vmem:[#allocation7 + $0x9a0] ss:$24 sps:$4 sm:$0xff]  }
 0x4b6   :  { %v2398_v51 = vpop.f32.mrf.mxu1  ;;  %2836 = vmatpush1.bf16.msra.mxu0 %v16867_v36  ;;  %3214 = vmatpush1.bf16.msra.mxu1 %v16897_v11  ;;  %v16951_v36 = vld [vmem:[#allocation7 + $0xba0] ss:$24 sps:$4 sm:$0xff]   ;;  %v16935_v11 = vld [vmem:[#allocation7 + $0x9a4] ss:$24 sps:$4 sm:$0xff]  }
 0x4b7   :  { %2837 = vmatprep.subr.bf16.mxu0 %v16872_v47  ;;  %3215 = vmatprep.subr.bf16.mxu1 %v16905_v28  ;;  %v16959_v47 = vld [vmem:[#allocation7 + $0xb74] ss:$24 sps:$4 sm:$0xff]   ;;  %v16957_v51 = vld [vmem:[#allocation7 + $0xb70] ss:$24 sps:$4 sm:$0xff]  }
 0x4ba   :  { %2838 = vmatpush1.bf16.msra.mxu0 %v16870_v15  ;;  %3216 = vmatpush1.bf16.msra.mxu1 %v16903_v2  ;;  %v16938_v15 = vld [vmem:[#allocation7 + $0x974] ss:$24 sps:$4 sm:$0xff]  }
 0x4bb   :  { %3246 = vmatprep.subr.bf16.mxu0 %v16878_v18  ;;  %3217 = vmatprep.subr.bf16.mxu1 %v16911_v48  ;;  %v16965_v18 = vld [vmem:[#allocation7 + $0xb44] ss:$24 sps:$4 sm:$0xff]   ;;  %v16944_v2 = vld [vmem:[#allocation7 + $0x914] ss:$24 sps:$4 sm:$0xff]   ;;  %v16942_v48 = vld [vmem:[#allocation7 + $0x910] ss:$24 sps:$4 sm:$0xff]  }
 0x4bd   :  { %2856 = vmatmul.mubr.bf16.vlgmr.msra.gmra.mxu0 %v18600_v41 }
 0x4be   :  { %3247 = vmatpush1.bf16.msra.mxu0 %v16876_v23  ;;  %3278 = vmatprep.mubr.bf16.mxu0 %v18386_v39  ;;  %v16936_v23 = vld [vmem:[#allocation7 + $0x970] ss:$24 sps:$4 sm:$0xff]  }
 0x4bf   :  { %3248 = vmatprep.subr.bf16.mxu0 %v16884_v19  ;;  %3218 = vmatpush1.bf16.msra.mxu1 %v16909_v27  ;;  %v16963_v19 = vld [vmem:[#allocation7 + $0xb40] ss:$24 sps:$4 sm:$0xff]   ;;  %v16950_v27 = vld [vmem:[#allocation7 + $0xbdc] ss:$24 sps:$4 sm:$0xff]  }
 0x4c0   :  { %3219 = vmatprep.subr.bf16.mxu1 %v16917_v34  ;;  %v16960_v34 = vld [vmem:[#allocation7 + $0xb78] ss:$24 sps:$4 sm:$0xff]  }
 0x4c2   :  { %3249 = vmatpush1.bf16.msra.mxu0 %v16882_v20  ;;  %v16941_v20 = vld [vmem:[#allocation7 + $0x944] ss:$24 sps:$4 sm:$0xff]  }
 0x4c3   :  { %3250 = vmatprep.subr.bf16.mxu0 %v16890_v62  ;;  %3220 = vmatpush1.bf16.msra.mxu1 %v16915_v35  ;;  %v16971_v62 = vld [vmem:[#allocation7 + $0xb14] ss:$24 sps:$4 sm:$0xff]  }
 0x4c4   :  { %3287 = vmatprep.subr.bf16.mxu1 %v16923_v38  ;;  %v16968_v35 = vld [vmem:[#allocation7 + $0xb4c] ss:$24 sps:$4 sm:$0xff]   ;;  %v16972_v38 = vld [vmem:[#allocation7 + $0xb18] ss:$24 sps:$4 sm:$0xff]  }
 0x4c6   :  { %3251 = vmatpush1.bf16.msra.mxu0 %v16888_v21 }
 0x4c7   :  { %3252 = vmatprep.subr.bf16.mxu0 %v16896_v22 }
 0x4ca   :  { %3253 = vmatpush1.bf16.msra.mxu0 %v16894_v61 }
 0x4cb   :  { %3254 = vmatprep.subr.bf16.mxu0 %v16902_v25  ;;  %v16939_v25 = vld [vmem:[#allocation7 + $0x940] ss:$24 sps:$4 sm:$0xff]  }
 0x4ce   :  { %3255 = vmatpush1.bf16.msra.mxu0 %v16900_v26  ;;  %v16969_v26 = vld [vmem:[#allocation7 + $0xb10] ss:$24 sps:$4 sm:$0xff]  }
 0x4cf   :  { %3256 = vmatprep.subr.bf16.mxu0 %v16908_v29 }
 0x4d2   :  { %3257 = vmatpush1.bf16.msra.mxu0 %v16906_v31 }
 0x4d3   :  { %3258 = vmatprep.subr.bf16.mxu0 %v16914_v33  ;;  %v16954_v33 = vld [vmem:[#allocation7 + $0xba8] ss:$24 sps:$4 sm:$0xff]  }
 0x4d6   :  { %3259 = vmatpush1.bf16.msra.mxu0 %v16912_v32  ;;  %v16956_v32 = vld [vmem:[#allocation7 + $0xbac] ss:$24 sps:$4 sm:$0xff]  }
 0x4d7   :  { %3260 = vmatprep.subr.bf16.mxu0 %v16920_v37  ;;  %v16966_v37 = vld [vmem:[#allocation7 + $0xb48] ss:$24 sps:$4 sm:$0xff]  }
 0x4da   :  { %3261 = vmatpush1.bf16.msra.mxu0 %v16918_v40  ;;  %v16974_v40 = vld [vmem:[#allocation7 + $0xb1c] ss:$24 sps:$4 sm:$0xff]  }
 0x4db   :  { %16319 = vmatprep.subr.bf16.mxu0 %v18384_v0 }
 0x55d   :  { %v2775_v41 = vpop.f32.mrf.mxu0  ;;  %v2816_v14 = vpop.f32.mrf.mxu1 }
 0x55e   :  { %v18623_v42 = vadd.f32 %v2775_v41, %v18588_v3  ;;  %v18626_v43 = vadd.f32 %v2816_v14, %v18591_v30  ;;  %v16921_v30 = vld [vmem:[#allocation7 + $0xa60] ss:$24 sps:$4 sm:$0xff]   ;;  %v16977_v41 = vld [vmem:[#allocation7 + $0xae4] ss:$24 sps:$4 sm:$0xff]  }
 0x55f   :  { %v2777_v16 = vpop.f32.mrf.mxu0  ;;  %v2818_v17 = vpop.f32.mrf.mxu1  ;;  %v16975_v14 = vld [vmem:[#allocation7 + $0xae0] ss:$24 sps:$4 sm:$0xff]  }
 0x560   :  { %v18629_v44 = vadd.f32 %v2777_v16, %v18594_v52  ;;  %v18632_v58 = vadd.f32 %v2818_v17, %v18597_v24  ;;  %v16947_v52 = vld [vmem:[#allocation7 + $0xbd4] ss:$24 sps:$4 sm:$0xff]   ;;  %v16978_v17 = vld [vmem:[#allocation7 + $0xae8] ss:$24 sps:$4 sm:$0xff]  }
 0x561   :  { %v2779_v45 = vpop.f32.mrf.mxu0  ;;  %v2820_v46 = vpop.f32.mrf.mxu1  ;;  %v16980_v16 = vld [vmem:[#allocation7 + $0xaec] ss:$24 sps:$4 sm:$0xff]  }
 0x562   :  { %v16983_v45 = vld [vmem:[#allocation7 + $0xab4] ss:$24 sps:$4 sm:$0xff]   ;;  %v16981_v46 = vld [vmem:[#allocation7 + $0xab0] ss:$24 sps:$4 sm:$0xff]  }
 0x563   :  { %v2780_v49 = vpop.f32.mrf.mxu0  ;;  %v2821_v50 = vpop.f32.mrf.mxu1 }
 0x564   :  { %v16984_v49 = vld [vmem:[#allocation7 + $0xab8] ss:$24 sps:$4 sm:$0xff]   ;;  %v16986_v50 = vld [vmem:[#allocation7 + $0xabc] ss:$24 sps:$4 sm:$0xff]  }
 0x565   :  { %v2909_v53 = vpop.f32.mrf.mxu1 }
 0x566   :  { %v2910_v3 = vadd.f32 %v18634_v54, %v2909_v53  ;;  %v16989_v53 = vld [vmem:[#allocation7 + $0xa84] ss:$24 sps:$4 sm:$0xff]  }
 0x567   :  { %v16317_v55 = vpop.f32.mrf.mxu1 }
 0x568   :  { %v18637_v56 = vpack.c.bf16 %v2910_v3, %v2910_v3  ;;  %v16987_v3 = vld [vmem:[#allocation7 + $0xa80] ss:$24 sps:$4 sm:$0xff]   ;;  %v16992_v55 = vld [vmem:[#allocation7 + $0xa8c] ss:$24 sps:$4 sm:$0xff]  }
 0x569   :  { %v2912_v59 = vpop.f32.mrf.mxu1 }
 0x56a   :  { %3238 = vmatmul.mubr.bf16.vlgmr.msra.gmra.mxu1 %v18637_v56  ;;  %3279 = vmatmul.mubr.bf16.vlgmr.msra.gmra.mxu0 %v18637_v56 }
 0x56b   :  { %3288 = vmatpush1.bf16.msra.mxu1 %v16921_v30  ;;  %v16318_v24 = vpop.f32.mrf.mxu1  ;;  %16320 = vmatpush3.bf16.msra.mxu0 %v18451_v4  ;;  %v16990_v30 = vld [vmem:[#allocation7 + $0xa88] ss:$24 sps:$4 sm:$0xff]  }
 0x56c   :  { %3289 = vmatprep.subr.bf16.mxu1 %v16926_v57  ;;  %16321 = vmatprep.mubr.msk.bf16.mxu0 %vm18385_vm0, %v18384_v0 }
 0x56d   :  { %3319 = vmatprep.mubr.bf16.mxu1 %v18386_v39  ;;  %3669 = vmatprep.subr.bf16.mxu0 %v16947_v52 }
 0x56f   :  { %3290 = vmatpush1.bf16.msra.mxu1 %v16924_v60 }
 0x570   :  { %3291 = vmatprep.subr.bf16.mxu1 %v16929_v63 }
 0x572   :  { %16322 = vmatmul.mubr.msk.bf16.vlgmr.msra.gmra.mxu0 %vm96_vm2, %v14943_v5 }
 0x573   :  { %3292 = vmatpush1.bf16.msra.mxu1 %v16927_v1  ;;  %3670 = vmatpush1.bf16.msra.mxu0 %v16945_v6 }
 0x574   :  { %3293 = vmatprep.subr.bf16.mxu1 %v16932_v7  ;;  %3671 = vmatprep.subr.bf16.mxu0 %v16953_v8 }
 0x575   :  { %3701 = vmatprep.mubr.bf16.mxu0 %v18386_v39 }
 0x577   :  { %3294 = vmatpush1.bf16.msra.mxu1 %v16930_v10  ;;  %3672 = vmatpush1.bf16.msra.mxu0 %v16951_v36 }
 0x578   :  { %3295 = vmatprep.subr.bf16.mxu1 %v16935_v11  ;;  %3673 = vmatprep.subr.bf16.mxu0 %v16959_v47  ;;  %v16993_v47 = vld [vmem:[#allocation7 + $0xbe0] ss:$24 sps:$4 sm:$0xff]  }
 0x57b   :  { %3296 = vmatpush1.bf16.msra.mxu1 %v16933_v13  ;;  %3674 = vmatpush1.bf16.msra.mxu0 %v16957_v51 }
 0x57c   :  { %3297 = vmatprep.subr.bf16.mxu1 %v16938_v15  ;;  %3675 = vmatprep.subr.bf16.mxu0 %v16965_v18  ;;  %v17019_v15 = vld [vmem:[#allocation7 + $0xd54] ss:$24 sps:$4 sm:$0xff]   ;;  %v17001_v18 = vld [vmem:[#allocation7 + $0xb84] ss:$24 sps:$4 sm:$0xff]  }
 0x57d   :  { %v2857_v21 = vpop.f32.mrf.mxu0 }
 0x57e   :  { %v18651_v22 = vadd.f32 %v2857_v21, %v18614_v9  ;;  %v16948_v9 = vld [vmem:[#allocation7 + $0xbd8] ss:$24 sps:$4 sm:$0xff]   ;;  %v17025_v21 = vld [vmem:[#allocation7 + $0xd24] ss:$24 sps:$4 sm:$0xff]  }
 0x57f   :  { %v2859_v61 = vpop.f32.mrf.mxu0  ;;  %3298 = vmatpush1.bf16.msra.mxu1 %v16936_v23  ;;  %3676 = vmatpush1.bf16.msra.mxu0 %v16963_v19  ;;  %v16999_v23 = vld [vmem:[#allocation7 + $0xb80] ss:$24 sps:$4 sm:$0xff]   ;;  %v14993_v19 = vld [vmem:[%s19392_s0 + $0x8] sm:$0x1] }
 0x580   :  { %v18654_v28 = vadd.f32 %v2859_v61, %v18617_v12  ;;  %3299 = vmatprep.subr.bf16.mxu1 %v16941_v20  ;;  %3677 = vmatprep.subr.bf16.mxu0 %v16971_v62  ;;  %v16962_v12 = vld [vmem:[#allocation7 + $0xb7c] ss:$24 sps:$4 sm:$0xff]   ;;  %v17017_v20 = vld [vmem:[#allocation7 + $0xd50] ss:$24 sps:$4 sm:$0xff]  }
 0x581   :  { %v2861_v29 = vpop.f32.mrf.mxu0  ;;  %v17004_v62 = vld [vmem:[#allocation7 + $0xb54] ss:$24 sps:$4 sm:$0xff]   ;;  %v17002_v61 = vld [vmem:[#allocation7 + $0xb50] ss:$24 sps:$4 sm:$0xff]  }
 0x582   :  { %v17005_v29 = vld [vmem:[#allocation7 + $0xb20] ss:$24 sps:$4 sm:$0xff]  }
 0x583   :  { %v2862_v31 = vpop.f32.mrf.mxu0  ;;  %3300 = vmatpush1.bf16.msra.mxu1 %v16939_v25  ;;  %3678 = vmatpush1.bf16.msra.mxu0 %v16969_v26  ;;  %v17023_v25 = vld [vmem:[#allocation7 + $0xd20] ss:$24 sps:$4 sm:$0xff]   ;;  %v17007_v26 = vld [vmem:[#allocation7 + $0xb24] ss:$24 sps:$4 sm:$0xff]  }
 0x584   :  { %3301 = vmatprep.subr.bf16.mxu1 %v16944_v2  ;;  %3679 = vmatprep.subr.bf16.mxu0 %v16977_v41  ;;  %v17031_v2 = vld [vmem:[#allocation7 + $0xcf4] ss:$24 sps:$4 sm:$0xff]   ;;  %v17029_v31 = vld [vmem:[#allocation7 + $0xcf0] ss:$24 sps:$4 sm:$0xff]  }
 0x587   :  { %3302 = vmatpush1.bf16.msra.mxu1 %v16942_v48  ;;  %3680 = vmatpush1.bf16.msra.mxu0 %v16975_v14  ;;  %v17010_v48 = vld [vmem:[#allocation7 + $0xaf4] ss:$24 sps:$4 sm:$0xff]  }
 0x588   :  { %3710 = vmatprep.subr.bf16.mxu1 %v16950_v27  ;;  %3681 = vmatprep.subr.bf16.mxu0 %v16983_v45  ;;  %v17037_v27 = vld [vmem:[#allocation7 + $0xcc4] ss:$24 sps:$4 sm:$0xff]   ;;  %v17016_v14 = vld [vmem:[#allocation7 + $0xa94] ss:$24 sps:$4 sm:$0xff]   ;;  %v17014_v45 = vld [vmem:[#allocation7 + $0xa90] ss:$24 sps:$4 sm:$0xff]  }
 0x58a   :  { %3320 = vmatmul.mubr.bf16.vlgmr.msra.gmra.mxu1 %v18637_v56  ;;  %v16995_v56 = vld [vmem:[#allocation7 + $0xbe4] ss:$24 sps:$4 sm:$0xff]  }
 0x58b   :  { %3711 = vmatpush1.bf16.msra.mxu1 %v16948_v9  ;;  %3742 = vmatprep.mubr.bf16.mxu1 %v18386_v39  ;;  %v17008_v9 = vld [vmem:[#allocation7 + $0xaf0] ss:$24 sps:$4 sm:$0xff]  }
 0x58c   :  { %3712 = vmatprep.subr.bf16.mxu1 %v16956_v32  ;;  %3682 = vmatpush1.bf16.msra.mxu0 %v16981_v46  ;;  %v17035_v32 = vld [vmem:[#allocation7 + $0xcc0] ss:$24 sps:$4 sm:$0xff]   ;;  %v17022_v46 = vld [vmem:[#allocation7 + $0xd5c] ss:$24 sps:$4 sm:$0xff]  }
 0x58d   :  { %3683 = vmatprep.subr.bf16.mxu0 %v16989_v53  ;;  %v17032_v53 = vld [vmem:[#allocation7 + $0xcf8] ss:$24 sps:$4 sm:$0xff]  }
 0x58f   :  { %3713 = vmatpush1.bf16.msra.mxu1 %v16954_v33  ;;  %v17013_v33 = vld [vmem:[#allocation7 + $0xac4] ss:$24 sps:$4 sm:$0xff]  }
 0x590   :  { %3714 = vmatprep.subr.bf16.mxu1 %v16962_v12  ;;  %3684 = vmatpush1.bf16.msra.mxu0 %v16987_v3  ;;  %v17043_v12 = vld [vmem:[#allocation7 + $0xc94] ss:$24 sps:$4 sm:$0xff]  }
 0x591   :  { %3751 = vmatprep.subr.bf16.mxu0 %v16995_v56  ;;  %v17040_v3 = vld [vmem:[#allocation7 + $0xccc] ss:$24 sps:$4 sm:$0xff]   ;;  %v17044_v56 = vld [vmem:[#allocation7 + $0xc98] ss:$24 sps:$4 sm:$0xff]  }
 0x593   :  { %3715 = vmatpush1.bf16.msra.mxu1 %v16960_v34 }
 0x594   :  { %3716 = vmatprep.subr.bf16.mxu1 %v16968_v35 }
 0x597   :  { %3717 = vmatpush1.bf16.msra.mxu1 %v16966_v37 }
 0x598   :  { %3718 = vmatprep.subr.bf16.mxu1 %v16974_v40  ;;  %v17011_v40 = vld [vmem:[#allocation7 + $0xac0] ss:$24 sps:$4 sm:$0xff]  }
 0x59b   :  { %3719 = vmatpush1.bf16.msra.mxu1 %v16972_v38  ;;  %v17041_v38 = vld [vmem:[#allocation7 + $0xc90] ss:$24 sps:$4 sm:$0xff]  }
 0x59c   :  { %3720 = vmatprep.subr.bf16.mxu1 %v16980_v16 }
 0x59f   :  { %3721 = vmatpush1.bf16.msra.mxu1 %v16978_v17 }
 0x5a0   :  { %3722 = vmatprep.subr.bf16.mxu1 %v16986_v50  ;;  %v17026_v50 = vld [vmem:[#allocation7 + $0xd28] ss:$24 sps:$4 sm:$0xff]  }
 0x5a3   :  { %3723 = vmatpush1.bf16.msra.mxu1 %v16984_v49  ;;  %v17028_v49 = vld [vmem:[#allocation7 + $0xd2c] ss:$24 sps:$4 sm:$0xff]  }
 0x5a4   :  { %3724 = vmatprep.subr.bf16.mxu1 %v16992_v55  ;;  %v17038_v55 = vld [vmem:[#allocation7 + $0xcc8] ss:$24 sps:$4 sm:$0xff]  }
 0x5a7   :  { %3725 = vmatpush1.bf16.msra.mxu1 %v16990_v30  ;;  %v17046_v30 = vld [vmem:[#allocation7 + $0xc9c] ss:$24 sps:$4 sm:$0xff]  }
 0x5a8   :  { %16325 = vmatprep.subr.bf16.mxu1 %v18384_v0 }
 0x62a   :  { %v3239_v57 = vpop.f32.mrf.mxu1  ;;  %v3280_v59 = vpop.f32.mrf.mxu0 }
 0x62b   :  { %v18660_v52 = vadd.f32 %v3239_v57, %v18623_v42  ;;  %v18663_v24 = vadd.f32 %v3280_v59, %v18626_v43  ;;  %v16998_v43 = vld [vmem:[#allocation7 + $0xbb4] ss:$24 sps:$4 sm:$0xff]   ;;  %v17049_v57 = vld [vmem:[#allocation7 + $0xc64] ss:$24 sps:$4 sm:$0xff]   ;;  %v17047_v59 = vld [vmem:[#allocation7 + $0xc60] ss:$24 sps:$4 sm:$0xff]  }
 0x62c   :  { %v3241_v60 = vpop.f32.mrf.mxu1  ;;  %v3282_v63 = vpop.f32.mrf.mxu0 }
 0x62d   :  { %v18666_v1 = vadd.f32 %v3241_v60, %v18629_v44  ;;  %v18669_v5 = vadd.f32 %v3282_v63, %v18632_v58  ;;  %v16996_v58 = vld [vmem:[#allocation7 + $0xbb0] ss:$24 sps:$4 sm:$0xff]   ;;  %v17052_v60 = vld [vmem:[#allocation7 + $0xc6c] ss:$24 sps:$4 sm:$0xff]  }
 0x62e   :  { %v3243_v6 = vpop.f32.mrf.mxu1  ;;  %v3284_v7 = vpop.f32.mrf.mxu0  ;;  %v17050_v63 = vld [vmem:[#allocation7 + $0xc68] ss:$24 sps:$4 sm:$0xff]  }
 0x62f   :  { %v17055_v6 = vld [vmem:[#allocation7 + $0xc34] ss:$24 sps:$4 sm:$0xff]   ;;  %v17053_v7 = vld [vmem:[#allocation7 + $0xc30] ss:$24 sps:$4 sm:$0xff]  }
 0x630   :  { %v3244_v8 = vpop.f32.mrf.mxu1  ;;  %v3285_v10 = vpop.f32.mrf.mxu0 }
 0x631   :  { %v17056_v8 = vld [vmem:[#allocation7 + $0xc38] ss:$24 sps:$4 sm:$0xff]   ;;  %v17058_v10 = vld [vmem:[#allocation7 + $0xc3c] ss:$24 sps:$4 sm:$0xff]  }
 0x632   :  { %v3373_v36 = vpop.f32.mrf.mxu0 }
 0x633   :  { %v3374_v11 = vadd.f32 %v18634_v54, %v3373_v36  ;;  %v17061_v36 = vld [vmem:[#allocation7 + $0xc04] ss:$24 sps:$4 sm:$0xff]  }
 0x634   :  { %v16323_v42 = vpop.f32.mrf.mxu0 }
 0x635   :  { %v18672_v13 = vpack.c.bf16 %v3374_v11, %v3374_v11  ;;  %v17059_v11 = vld [vmem:[#allocation7 + $0xc00] ss:$24 sps:$4 sm:$0xff]   ;;  %v17064_v42 = vld [vmem:[#allocation7 + $0xc0c] ss:$24 sps:$4 sm:$0xff]  }
 0x636   :  { %v3376_v51 = vpop.f32.mrf.mxu0 }
 0x637   :  { %3702 = vmatmul.mubr.bf16.vlgmr.msra.gmra.mxu0 %v18672_v13  ;;  %3743 = vmatmul.mubr.bf16.vlgmr.msra.gmra.mxu1 %v18672_v13 }
 0x638   :  { %3752 = vmatpush1.bf16.msra.mxu0 %v16993_v47  ;;  %v16324_v44 = vpop.f32.mrf.mxu0  ;;  %16326 = vmatpush3.bf16.msra.mxu1 %v18451_v4  ;;  %v17062_v47 = vld [vmem:[#allocation7 + $0xc08] ss:$24 sps:$4 sm:$0xff]  }
 0x639   :  { %3753 = vmatprep.subr.bf16.mxu0 %v16998_v43  ;;  %16327 = vmatprep.mubr.msk.bf16.mxu1 %vm18385_vm0, %v18384_v0 }
 0x63a   :  { %3783 = vmatprep.mubr.bf16.mxu0 %v18386_v39  ;;  %4133 = vmatprep.subr.bf16.mxu1 %v17019_v15 }
 0x63c   :  { %3754 = vmatpush1.bf16.msra.mxu0 %v16996_v58 }
 0x63d   :  { %3755 = vmatprep.subr.bf16.mxu0 %v17001_v18 }
 0x63f   :  { %16328 = vmatmul.mubr.msk.bf16.vlgmr.msra.gmra.mxu1 %vm96_vm2, %v14993_v19 }
 0x640   :  { %3756 = vmatpush1.bf16.msra.mxu0 %v16999_v23  ;;  %4134 = vmatpush1.bf16.msra.mxu1 %v17017_v20 }
 0x641   :  { %3757 = vmatprep.subr.bf16.mxu0 %v17004_v62  ;;  %4135 = vmatprep.subr.bf16.mxu1 %v17025_v21 }
 0x642   :  { %4165 = vmatprep.mubr.bf16.mxu1 %v18386_v39 }
 0x644   :  { %3758 = vmatpush1.bf16.msra.mxu0 %v17002_v61  ;;  %4136 = vmatpush1.bf16.msra.mxu1 %v17023_v25 }
 0x645   :  { %3759 = vmatprep.subr.bf16.mxu0 %v17007_v26  ;;  %4137 = vmatprep.subr.bf16.mxu1 %v17031_v2  ;;  %v17065_v2 = vld [vmem:[#allocation7 + $0xd60] ss:$24 sps:$4 sm:$0xff]  }
 0x648   :  { %3760 = vmatpush1.bf16.msra.mxu0 %v17005_v29  ;;  %4138 = vmatpush1.bf16.msra.mxu1 %v17029_v31 }
 0x649   :  { %3761 = vmatprep.subr.bf16.mxu0 %v17010_v48  ;;  %4139 = vmatprep.subr.bf16.mxu1 %v17037_v27  ;;  %v17091_v48 = vld [vmem:[#allocation7 + $0xed4] ss:$24 sps:$4 sm:$0xff]   ;;  %v17073_v27 = vld [vmem:[#allocation7 + $0xd04] ss:$24 sps:$4 sm:$0xff]  }
 0x64a   :  { %v3321_v34 = vpop.f32.mrf.mxu1 }
 0x64b   :  { %v18686_v35 = vadd.f32 %v3321_v34, %v18651_v22  ;;  %v17020_v22 = vld [vmem:[#allocation7 + $0xd58] ss:$24 sps:$4 sm:$0xff]   ;;  %v17097_v34 = vld [vmem:[#allocation7 + $0xea4] ss:$24 sps:$4 sm:$0xff]  }
 0x64c   :  { %v3323_v37 = vpop.f32.mrf.mxu1  ;;  %3762 = vmatpush1.bf16.msra.mxu0 %v17008_v9  ;;  %4140 = vmatpush1.bf16.msra.mxu1 %v17035_v32  ;;  %v17071_v9 = vld [vmem:[#allocation7 + $0xd00] ss:$24 sps:$4 sm:$0xff]   ;;  %v15043_v32 = vld [vmem:[%s19392_s0 + $0x9] sm:$0x1] }
 0x64d   :  { %v18689_v41 = vadd.f32 %v3323_v37, %v18654_v28  ;;  %3763 = vmatprep.subr.bf16.mxu0 %v17013_v33  ;;  %4141 = vmatprep.subr.bf16.mxu1 %v17043_v12  ;;  %v17034_v28 = vld [vmem:[#allocation7 + $0xcfc] ss:$24 sps:$4 sm:$0xff]   ;;  %v17089_v33 = vld [vmem:[#allocation7 + $0xed0] ss:$24 sps:$4 sm:$0xff]  }
 0x64e   :  { %v3325_v16 = vpop.f32.mrf.mxu1  ;;  %v17076_v12 = vld [vmem:[#allocation7 + $0xcd4] ss:$24 sps:$4 sm:$0xff]   ;;  %v17074_v37 = vld [vmem:[#allocation7 + $0xcd0] ss:$24 sps:$4 sm:$0xff]  }
 0x64f   :  { %v17077_v16 = vld [vmem:[#allocation7 + $0xca0] ss:$24 sps:$4 sm:$0xff]  }
 0x650   :  { %v3326_v17 = vpop.f32.mrf.mxu1  ;;  %3764 = vmatpush1.bf16.msra.mxu0 %v17011_v40  ;;  %4142 = vmatpush1.bf16.msra.mxu1 %v17041_v38  ;;  %v17095_v40 = vld [vmem:[#allocation7 + $0xea0] ss:$24 sps:$4 sm:$0xff]   ;;  %v17079_v38 = vld [vmem:[#allocation7 + $0xca4] ss:$24 sps:$4 sm:$0xff]  }
 0x651   :  { %3765 = vmatprep.subr.bf16.mxu0 %v17016_v14  ;;  %4143 = vmatprep.subr.bf16.mxu1 %v17049_v57  ;;  %v17103_v14 = vld [vmem:[#allocation7 + $0xe74] ss:$24 sps:$4 sm:$0xff]   ;;  %v17101_v17 = vld [vmem:[#allocation7 + $0xe70] ss:$24 sps:$4 sm:$0xff]  }
 0x654   :  { %3766 = vmatpush1.bf16.msra.mxu0 %v17014_v45  ;;  %4144 = vmatpush1.bf16.msra.mxu1 %v17047_v59  ;;  %v17082_v45 = vld [vmem:[#allocation7 + $0xc74] ss:$24 sps:$4 sm:$0xff]  }
 0x655   :  { %4174 = vmatprep.subr.bf16.mxu0 %v17022_v46  ;;  %4145 = vmatprep.subr.bf16.mxu1 %v17055_v6  ;;  %v17109_v46 = vld [vmem:[#allocation7 + $0xe44] ss:$24 sps:$4 sm:$0xff]   ;;  %v17088_v59 = vld [vmem:[#allocation7 + $0xc14] ss:$24 sps:$4 sm:$0xff]   ;;  %v17086_v6 = vld [vmem:[#allocation7 + $0xc10] ss:$24 sps:$4 sm:$0xff]  }
 0x657   :  { %3784 = vmatmul.mubr.bf16.vlgmr.msra.gmra.mxu0 %v18672_v13  ;;  %v17067_v13 = vld [vmem:[#allocation7 + $0xd64] ss:$24 sps:$4 sm:$0xff]  }
 0x658   :  { %4175 = vmatpush1.bf16.msra.mxu0 %v17020_v22  ;;  %4206 = vmatprep.mubr.bf16.mxu0 %v18386_v39  ;;  %v17080_v22 = vld [vmem:[#allocation7 + $0xc70] ss:$24 sps:$4 sm:$0xff]  }
 0x659   :  { %4176 = vmatprep.subr.bf16.mxu0 %v17028_v49  ;;  %4146 = vmatpush1.bf16.msra.mxu1 %v17053_v7  ;;  %v17107_v49 = vld [vmem:[#allocation7 + $0xe40] ss:$24 sps:$4 sm:$0xff]   ;;  %v17094_v7 = vld [vmem:[#allocation7 + $0xedc] ss:$24 sps:$4 sm:$0xff]  }
 0x65a   :  { %4147 = vmatprep.subr.bf16.mxu1 %v17061_v36  ;;  %v17104_v36 = vld [vmem:[#allocation7 + $0xe78] ss:$24 sps:$4 sm:$0xff]  }
 0x65c   :  { %4177 = vmatpush1.bf16.msra.mxu0 %v17026_v50  ;;  %v17085_v50 = vld [vmem:[#allocation7 + $0xc44] ss:$24 sps:$4 sm:$0xff]  }
 0x65d   :  { %4178 = vmatprep.subr.bf16.mxu0 %v17034_v28  ;;  %4148 = vmatpush1.bf16.msra.mxu1 %v17059_v11  ;;  %v17115_v28 = vld [vmem:[#allocation7 + $0xe14] ss:$24 sps:$4 sm:$0xff]  }
 0x65e   :  { %4215 = vmatprep.subr.bf16.mxu1 %v17067_v13  ;;  %v17112_v11 = vld [vmem:[#allocation7 + $0xe4c] ss:$24 sps:$4 sm:$0xff]   ;;  %v17116_v13 = vld [vmem:[#allocation7 + $0xe18] ss:$24 sps:$4 sm:$0xff]  }
 0x660   :  { %4179 = vmatpush1.bf16.msra.mxu0 %v17032_v53 }
 0x661   :  { %4180 = vmatprep.subr.bf16.mxu0 %v17040_v3 }
 0x664   :  { %4181 = vmatpush1.bf16.msra.mxu0 %v17038_v55 }
 0x665   :  { %4182 = vmatprep.subr.bf16.mxu0 %v17046_v30  ;;  %v17083_v30 = vld [vmem:[#allocation7 + $0xc40] ss:$24 sps:$4 sm:$0xff]  }
 0x668   :  { %4183 = vmatpush1.bf16.msra.mxu0 %v17044_v56  ;;  %v17113_v56 = vld [vmem:[#allocation7 + $0xe10] ss:$24 sps:$4 sm:$0xff]  }
 0x669   :  { %4184 = vmatprep.subr.bf16.mxu0 %v17052_v60 }
 0x66c   :  { %4185 = vmatpush1.bf16.msra.mxu0 %v17050_v63 }
 0x66d   :  { %4186 = vmatprep.subr.bf16.mxu0 %v17058_v10  ;;  %v17098_v10 = vld [vmem:[#allocation7 + $0xea8] ss:$24 sps:$4 sm:$0xff]  }
 0x670   :  { %4187 = vmatpush1.bf16.msra.mxu0 %v17056_v8  ;;  %v17100_v8 = vld [vmem:[#allocation7 + $0xeac] ss:$24 sps:$4 sm:$0xff]  }
 0x671   :  { %4188 = vmatprep.subr.bf16.mxu0 %v17064_v42  ;;  %v17110_v42 = vld [vmem:[#allocation7 + $0xe48] ss:$24 sps:$4 sm:$0xff]  }
 0x674   :  { %4189 = vmatpush1.bf16.msra.mxu0 %v17062_v47  ;;  %v17118_v47 = vld [vmem:[#allocation7 + $0xe1c] ss:$24 sps:$4 sm:$0xff]  }
 0x675   :  { %16331 = vmatprep.subr.bf16.mxu0 %v18384_v0 }
 0x6f7   :  { %v3703_v43 = vpop.f32.mrf.mxu0  ;;  %v3744_v51 = vpop.f32.mrf.mxu1 }
 0x6f8   :  { %v18695_v15 = vadd.f32 %v3703_v43, %v18660_v52  ;;  %v18698_v44 = vadd.f32 %v3744_v51, %v18663_v24  ;;  %v17070_v24 = vld [vmem:[#allocation7 + $0xd34] ss:$24 sps:$4 sm:$0xff]   ;;  %v17121_v43 = vld [vmem:[#allocation7 + $0xde4] ss:$24 sps:$4 sm:$0xff]   ;;  %v17119_v51 = vld [vmem:[#allocation7 + $0xde0] ss:$24 sps:$4 sm:$0xff]  }
 0x6f9   :  { %v3705_v58 = vpop.f32.mrf.mxu0  ;;  %v3746_v18 = vpop.f32.mrf.mxu1 }
 0x6fa   :  { %v18701_v23 = vadd.f32 %v3705_v58, %v18666_v1  ;;  %v18704_v19 = vadd.f32 %v3746_v18, %v18669_v5  ;;  %v17068_v5 = vld [vmem:[#allocation7 + $0xd30] ss:$24 sps:$4 sm:$0xff]   ;;  %v17124_v58 = vld [vmem:[#allocation7 + $0xdec] ss:$24 sps:$4 sm:$0xff]  }
 0x6fb   :  { %v3707_v20 = vpop.f32.mrf.mxu0  ;;  %v3748_v62 = vpop.f32.mrf.mxu1  ;;  %v17122_v18 = vld [vmem:[#allocation7 + $0xde8] ss:$24 sps:$4 sm:$0xff]  }
 0x6fc   :  { %v17127_v20 = vld [vmem:[#allocation7 + $0xdb4] ss:$24 sps:$4 sm:$0xff]   ;;  %v17125_v62 = vld [vmem:[#allocation7 + $0xdb0] ss:$24 sps:$4 sm:$0xff]  }
 0x6fd   :  { %v3708_v21 = vpop.f32.mrf.mxu0  ;;  %v3749_v61 = vpop.f32.mrf.mxu1 }
 0x6fe   :  { %v17128_v21 = vld [vmem:[#allocation7 + $0xdb8] ss:$24 sps:$4 sm:$0xff]   ;;  %v17130_v61 = vld [vmem:[#allocation7 + $0xdbc] ss:$24 sps:$4 sm:$0xff]  }
 0x6ff   :  { %v3837_v25 = vpop.f32.mrf.mxu1 }
 0x700   :  { %v3838_v26 = vadd.f32 %v18634_v54, %v3837_v25  ;;  %v17133_v25 = vld [vmem:[#allocation7 + $0xd84] ss:$24 sps:$4 sm:$0xff]  }
 0x701   :  { %v16329_v52 = vpop.f32.mrf.mxu1 }
 0x702   :  { %v18707_v29 = vpack.c.bf16 %v3838_v26, %v3838_v26  ;;  %v17131_v26 = vld [vmem:[#allocation7 + $0xd80] ss:$24 sps:$4 sm:$0xff]   ;;  %v17136_v52 = vld [vmem:[#allocation7 + $0xd8c] ss:$24 sps:$4 sm:$0xff]  }
 0x703   :  { %v3840_v31 = vpop.f32.mrf.mxu1 }
 0x704   :  { %4166 = vmatmul.mubr.bf16.vlgmr.msra.gmra.mxu1 %v18707_v29  ;;  %4207 = vmatmul.mubr.bf16.vlgmr.msra.gmra.mxu0 %v18707_v29 }
 0x705   :  { %4216 = vmatpush1.bf16.msra.mxu1 %v17065_v2  ;;  %v16330_v1 = vpop.f32.mrf.mxu1  ;;  %16332 = vmatpush3.bf16.msra.mxu0 %v18451_v4  ;;  %v17134_v2 = vld [vmem:[#allocation7 + $0xd88] ss:$24 sps:$4 sm:$0xff]  }
 0x706   :  { %4217 = vmatprep.subr.bf16.mxu1 %v17070_v24  ;;  %16333 = vmatprep.mubr.msk.bf16.mxu0 %vm18385_vm0, %v18384_v0 }
 0x707   :  { %4247 = vmatprep.mubr.bf16.mxu1 %v18386_v39  ;;  %4597 = vmatprep.subr.bf16.mxu0 %v17091_v48 }
 0x709   :  { %4218 = vmatpush1.bf16.msra.mxu1 %v17068_v5 }
 0x70a   :  { %4219 = vmatprep.subr.bf16.mxu1 %v17073_v27 }
 0x70c   :  { %16334 = vmatmul.mubr.msk.bf16.vlgmr.msra.gmra.mxu0 %vm96_vm2, %v15043_v32 }
 0x70d   :  { %4220 = vmatpush1.bf16.msra.mxu1 %v17071_v9  ;;  %4598 = vmatpush1.bf16.msra.mxu0 %v17089_v33 }
 0x70e   :  { %4221 = vmatprep.subr.bf16.mxu1 %v17076_v12  ;;  %4599 = vmatprep.subr.bf16.mxu0 %v17097_v34 }
 0x70f   :  { %4629 = vmatprep.mubr.bf16.mxu0 %v18386_v39 }
 0x711   :  { %4222 = vmatpush1.bf16.msra.mxu1 %v17074_v37  ;;  %4600 = vmatpush1.bf16.msra.mxu0 %v17095_v40 }
 0x712   :  { %4223 = vmatprep.subr.bf16.mxu1 %v17079_v38  ;;  %4601 = vmatprep.subr.bf16.mxu0 %v17103_v14  ;;  %v17137_v14 = vld [vmem:[#allocation7 + $0xee0] ss:$24 sps:$4 sm:$0xff]  }
 0x715   :  { %4224 = vmatpush1.bf16.msra.mxu1 %v17077_v16  ;;  %4602 = vmatpush1.bf16.msra.mxu0 %v17101_v17 }
 0x716   :  { %4225 = vmatprep.subr.bf16.mxu1 %v17082_v45  ;;  %4603 = vmatprep.subr.bf16.mxu0 %v17109_v46  ;;  %v17163_v45 = vld [vmem:[#allocation7 + $0x1054] ss:$24 sps:$4 sm:$0xff]   ;;  %v17145_v46 = vld [vmem:[#allocation7 + $0xe84] ss:$24 sps:$4 sm:$0xff]  }
 0x717   :  { %v3785_v53 = vpop.f32.mrf.mxu0 }
 0x718   :  { %v18721_v3 = vadd.f32 %v3785_v53, %v18686_v35  ;;  %v17092_v35 = vld [vmem:[#allocation7 + $0xed8] ss:$24 sps:$4 sm:$0xff]  }
 0x719   :  { %v3787_v55 = vpop.f32.mrf.mxu0  ;;  %4226 = vmatpush1.bf16.msra.mxu1 %v17080_v22  ;;  %4604 = vmatpush1.bf16.msra.mxu0 %v17107_v49  ;;  %v15093_v22 = vld [vmem:[%s19392_s0 + $0xa] sm:$0x1]  ;;  %v17161_v49 = vld [vmem:[#allocation7 + $0x1050] ss:$24 sps:$4 sm:$0xff]  }
 0x71a   :  { %v18724_v57 = vadd.f32 %v3787_v55, %v18689_v41  ;;  %4227 = vmatprep.subr.bf16.mxu1 %v17085_v50  ;;  %4605 = vmatprep.subr.bf16.mxu0 %v17115_v28  ;;  %v17106_v41 = vld [vmem:[#allocation7 + $0xe7c] ss:$24 sps:$4 sm:$0xff]   ;;  %v17146_v53 = vld [vmem:[#allocation7 + $0xe50] ss:$24 sps:$4 sm:$0xff]   ;;  %v17167_v55 = vld [vmem:[#allocation7 + $0x1020] ss:$24 sps:$4 sm:$0xff]  }
 0x71b   :  { %v3789_v60 = vpop.f32.mrf.mxu0  ;;  %v17148_v50 = vld [vmem:[#allocation7 + $0xe54] ss:$24 sps:$4 sm:$0xff]   ;;  %v17169_v28 = vld [vmem:[#allocation7 + $0x1024] ss:$24 sps:$4 sm:$0xff]  }
 0x71c   :  { %v17173_v60 = vld [vmem:[#allocation7 + $0xff0] ss:$24 sps:$4 sm:$0xff]  }
 0x71d   :  { %v3790_v63 = vpop.f32.mrf.mxu0  ;;  %4228 = vmatpush1.bf16.msra.mxu1 %v17083_v30  ;;  %4606 = vmatpush1.bf16.msra.mxu0 %v17113_v56  ;;  %v17151_v30 = vld [vmem:[#allocation7 + $0xe24] ss:$24 sps:$4 sm:$0xff]   ;;  %v17175_v56 = vld [vmem:[#allocation7 + $0xff4] ss:$24 sps:$4 sm:$0xff]  }
 0x71e   :  { %4229 = vmatprep.subr.bf16.mxu1 %v17088_v59  ;;  %4607 = vmatprep.subr.bf16.mxu0 %v17121_v43  ;;  %v17149_v59 = vld [vmem:[#allocation7 + $0xe20] ss:$24 sps:$4 sm:$0xff]   ;;  %v17154_v63 = vld [vmem:[#allocation7 + $0xdf4] ss:$24 sps:$4 sm:$0xff]  }
 0x71f   :  { %v17160_v43 = vld [vmem:[#allocation7 + $0xd94] ss:$24 sps:$4 sm:$0xff]  }
 0x721   :  { %4230 = vmatpush1.bf16.msra.mxu1 %v17086_v6  ;;  %4608 = vmatpush1.bf16.msra.mxu0 %v17119_v51  ;;  %v17181_v6 = vld [vmem:[#allocation7 + $0xfc4] ss:$24 sps:$4 sm:$0xff]  }
 0x722   :  { %4638 = vmatprep.subr.bf16.mxu1 %v17094_v7  ;;  %4609 = vmatprep.subr.bf16.mxu0 %v17127_v20  ;;  %v17152_v7 = vld [vmem:[#allocation7 + $0xdf0] ss:$24 sps:$4 sm:$0xff]   ;;  %v17166_v20 = vld [vmem:[#allocation7 + $0x105c] ss:$24 sps:$4 sm:$0xff]  }
 0x724   :  { %4248 = vmatmul.mubr.bf16.vlgmr.msra.gmra.mxu1 %v18707_v29  ;;  %v17139_v29 = vld [vmem:[#allocation7 + $0xee4] ss:$24 sps:$4 sm:$0xff]  }
 0x725   :  { %4639 = vmatpush1.bf16.msra.mxu1 %v17092_v35  ;;  %4670 = vmatprep.mubr.bf16.mxu1 %v18386_v39  ;;  %v17179_v35 = vld [vmem:[#allocation7 + $0xfc0] ss:$24 sps:$4 sm:$0xff]  }
 0x726   :  { %4640 = vmatprep.subr.bf16.mxu1 %v17100_v8  ;;  %4610 = vmatpush1.bf16.msra.mxu0 %v17125_v62  ;;  %v17157_v8 = vld [vmem:[#allocation7 + $0xdc4] ss:$24 sps:$4 sm:$0xff]  }
 0x727   :  { %4611 = vmatprep.subr.bf16.mxu0 %v17133_v25  ;;  %v17172_v62 = vld [vmem:[#allocation7 + $0x102c] ss:$24 sps:$4 sm:$0xff]  }
 0x728   :  { %v17184_v25 = vld [vmem:[#allocation7 + $0xfcc] ss:$24 sps:$4 sm:$0xff]  }
 0x729   :  { %4641 = vmatpush1.bf16.msra.mxu1 %v17098_v10  ;;  %v17187_v10 = vld [vmem:[#allocation7 + $0xf94] ss:$24 sps:$4 sm:$0xff]  }
 0x72a   :  { %4642 = vmatprep.subr.bf16.mxu1 %v17106_v41  ;;  %4612 = vmatpush1.bf16.msra.mxu0 %v17131_v26  ;;  %v17182_v26 = vld [vmem:[#allocation7 + $0xfc8] ss:$24 sps:$4 sm:$0xff]  }
 0x72b   :  { %4679 = vmatprep.subr.bf16.mxu0 %v17139_v29  ;;  %v17193_v29 = vld [vmem:[#allocation7 + $0xf64] ss:$24 sps:$4 sm:$0xff]  }
 0x72d   :  { %4643 = vmatpush1.bf16.msra.mxu1 %v17104_v36 }
 0x72e   :  { %4644 = vmatprep.subr.bf16.mxu1 %v17112_v11 }
 0x731   :  { %4645 = vmatpush1.bf16.msra.mxu1 %v17110_v42  ;;  %v17155_v42 = vld [vmem:[#allocation7 + $0xdc0] ss:$24 sps:$4 sm:$0xff]  }
 0x732   :  { %4646 = vmatprep.subr.bf16.mxu1 %v17118_v47  ;;  %v17185_v47 = vld [vmem:[#allocation7 + $0xf90] ss:$24 sps:$4 sm:$0xff]  }
 0x735   :  { %4647 = vmatpush1.bf16.msra.mxu1 %v17116_v13 }
 0x736   :  { %4648 = vmatprep.subr.bf16.mxu1 %v17124_v58 }
 0x739   :  { %4649 = vmatpush1.bf16.msra.mxu1 %v17122_v18  ;;  %v17158_v18 = vld [vmem:[#allocation7 + $0xd90] ss:$24 sps:$4 sm:$0xff]  }
 0x73a   :  { %4650 = vmatprep.subr.bf16.mxu1 %v17130_v61  ;;  %v17176_v61 = vld [vmem:[#allocation7 + $0xff8] ss:$24 sps:$4 sm:$0xff]  }
 0x73d   :  { %4651 = vmatpush1.bf16.msra.mxu1 %v17128_v21  ;;  %v17170_v21 = vld [vmem:[#allocation7 + $0x1028] ss:$24 sps:$4 sm:$0xff]  }
 0x73e   :  { %4652 = vmatprep.subr.bf16.mxu1 %v17136_v52  ;;  %v17190_v52 = vld [vmem:[#allocation7 + $0xf9c] ss:$24 sps:$4 sm:$0xff]  }
 0x741   :  { %4653 = vmatpush1.bf16.msra.mxu1 %v17134_v2  ;;  %v17188_v2 = vld [vmem:[#allocation7 + $0xf98] ss:$24 sps:$4 sm:$0xff]  }
 0x742   :  { %16337 = vmatprep.subr.bf16.mxu1 %v18384_v0 }
 0x7c4   :  { %v4167_v24 = vpop.f32.mrf.mxu1  ;;  %v4208_v31 = vpop.f32.mrf.mxu0 }
 0x7c5   :  { %v18730_v48 = vadd.f32 %v4167_v24, %v18695_v15  ;;  %v18733_v1 = vadd.f32 %v4208_v31, %v18698_v44  ;;  %v17142_v44 = vld [vmem:[#allocation7 + $0xeb4] ss:$24 sps:$4 sm:$0xff]   ;;  %v17191_v24 = vld [vmem:[#allocation7 + $0xf60] ss:$24 sps:$4 sm:$0xff]  }
 0x7c6   :  { %v4169_v5 = vpop.f32.mrf.mxu1  ;;  %v4210_v27 = vpop.f32.mrf.mxu0  ;;  %v17196_v31 = vld [vmem:[#allocation7 + $0xf6c] ss:$24 sps:$4 sm:$0xff]  }
 0x7c7   :  { %v18736_v9 = vadd.f32 %v4169_v5, %v18701_v23  ;;  %v18739_v32 = vadd.f32 %v4210_v27, %v18704_v19  ;;  %v17140_v19 = vld [vmem:[#allocation7 + $0xeb0] ss:$24 sps:$4 sm:$0xff]   ;;  %v17199_v27 = vld [vmem:[#allocation7 + $0xf34] ss:$24 sps:$4 sm:$0xff]  }
 0x7c8   :  { %v4171_v33 = vpop.f32.mrf.mxu1  ;;  %v4212_v12 = vpop.f32.mrf.mxu0  ;;  %v17194_v5 = vld [vmem:[#allocation7 + $0xf68] ss:$24 sps:$4 sm:$0xff]  }
 0x7c9   :  { %v17197_v33 = vld [vmem:[#allocation7 + $0xf30] ss:$24 sps:$4 sm:$0xff]  }
 0x7ca   :  { %v4172_v34 = vpop.f32.mrf.mxu1  ;;  %v4213_v37 = vpop.f32.mrf.mxu0  ;;  %v17200_v12 = vld [vmem:[#allocation7 + $0xf38] ss:$24 sps:$4 sm:$0xff]  }
 0x7cb   :  { %v17202_v34 = vld [vmem:[#allocation7 + $0xf3c] ss:$24 sps:$4 sm:$0xff]  }
 0x7cc   :  { %v4301_v40 = vpop.f32.mrf.mxu0  ;;  %v17205_v37 = vld [vmem:[#allocation7 + $0xf04] ss:$24 sps:$4 sm:$0xff]  }
 0x7cd   :  { %v4302_v38 = vadd.f32 %v18634_v54, %v4301_v40  ;;  %v17143_v54 = vld [vmem:[#allocation7 + $0xe80] ss:$24 sps:$4 sm:$0xff]  }
 0x7ce   :  { %v16335_v15 = vpop.f32.mrf.mxu0  ;;  %v17203_v40 = vld [vmem:[#allocation7 + $0xf00] ss:$24 sps:$4 sm:$0xff]  }
 0x7cf   :  { %v18742_v16 = vpack.c.bf16 %v4302_v38, %v4302_v38  ;;  %v17208_v38 = vld [vmem:[#allocation7 + $0xf0c] ss:$24 sps:$4 sm:$0xff]   ;;  %v17206_v15 = vld [vmem:[#allocation7 + $0xf08] ss:$24 sps:$4 sm:$0xff]  }
 0x7d0   :  { %v4304_v17 = vpop.f32.mrf.mxu0 }
 0x7d1   :  { %4630 = vmatmul.mubr.bf16.vlgmr.msra.gmra.mxu0 %v18742_v16  ;;  %4671 = vmatmul.mubr.bf16.vlgmr.msra.gmra.mxu1 %v18742_v16 }
 0x7d2   :  { %4680 = vmatpush1.bf16.msra.mxu0 %v17137_v14  ;;  %v16336_v23 = vpop.f32.mrf.mxu0  ;;  %16338 = vmatpush3.bf16.msra.mxu1 %v18451_v4  ;;  %v17211_v14 = vld [vmem:[#allocation7 + $0x1064] ss:$24 sps:$4 sm:$0xff]  }
 0x7d3   :  { %4681 = vmatprep.subr.bf16.mxu0 %v17142_v44  ;;  %16339 = vmatprep.mubr.msk.bf16.mxu1 %vm18385_vm0, %v18384_v0 }
 0x7d4   :  { %4711 = vmatprep.mubr.bf16.mxu0 %v18386_v39  ;;  %5061 = vmatprep.subr.bf16.mxu1 %v17163_v45 }
 0x7d6   :  { %4682 = vmatpush1.bf16.msra.mxu0 %v17140_v19 }
 0x7d7   :  { %4683 = vmatprep.subr.bf16.mxu0 %v17145_v46 }
 0x7d9   :  { %16340 = vmatmul.mubr.msk.bf16.vlgmr.msra.gmra.mxu1 %vm96_vm2, %v15093_v22 }
 0x7da   :  { %4684 = vmatpush1.bf16.msra.mxu0 %v17143_v54  ;;  %5062 = vmatpush1.bf16.msra.mxu1 %v17161_v49 }
 0x7db   :  { %4685 = vmatprep.subr.bf16.mxu0 %v17148_v50  ;;  %5063 = vmatprep.subr.bf16.mxu1 %v17169_v28 }
 0x7dc   :  { %5093 = vmatprep.mubr.bf16.mxu1 %v18386_v39 }
 0x7de   :  { %4686 = vmatpush1.bf16.msra.mxu0 %v17146_v53  ;;  %5064 = vmatpush1.bf16.msra.mxu1 %v17167_v55  ;;  %v18776_v55 = vld [vmem:[#allocation5] ss:$0 sm:$0xff] }
 0x7df   :  { %4687 = vmatprep.subr.bf16.mxu0 %v17151_v30  ;;  %5065 = vmatprep.subr.bf16.mxu1 %v17175_v56 }
 0x7e2   :  { %4688 = vmatpush1.bf16.msra.mxu0 %v17149_v59  ;;  %5066 = vmatpush1.bf16.msra.mxu1 %v17173_v60  ;;  %v17214_v59 = vld [vmem:[#allocation7 + $0x1034] ss:$24 sps:$4 sm:$0xff]  }
 0x7e3   :  { %4689 = vmatprep.subr.bf16.mxu0 %v17154_v63  ;;  %5067 = vmatprep.subr.bf16.mxu1 %v17181_v6  ;;  %v17212_v63 = vld [vmem:[#allocation7 + $0x1030] ss:$24 sps:$4 sm:$0xff]   ;;  %v17217_v6 = vld [vmem:[#allocation7 + $0x1004] ss:$24 sps:$4 sm:$0xff]  }
 0x7e4   :  { %v4249_v41 = vpop.f32.mrf.mxu1 }
 0x7e5   :  { %v18756_v36 = vadd.f32 %v4249_v41, %v18721_v3  ;;  %v17164_v3 = vld [vmem:[#allocation7 + $0x1058] ss:$24 sps:$4 sm:$0xff]   ;;  %v17241_v41 = vld [vmem:[#allocation7 + $0x11a4] ss:$24 sps:$4 sm:$0xff]  }
 0x7e6   :  { %v4251_v11 = vpop.f32.mrf.mxu1  ;;  %4690 = vmatpush1.bf16.msra.mxu0 %v17152_v7  ;;  %5068 = vmatpush1.bf16.msra.mxu1 %v17179_v35  ;;  %v17215_v7 = vld [vmem:[#allocation7 + $0x1000] ss:$24 sps:$4 sm:$0xff]   ;;  %v15143_v35 = vld [vmem:[%s19392_s0 + $0xb] sm:$0x1] }
 0x7e7   :  { %v18759_v13 = vadd.f32 %v4251_v11, %v18724_v57  ;;  %4691 = vmatprep.subr.bf16.mxu0 %v17157_v8  ;;  %5069 = vmatprep.subr.bf16.mxu1 %v17187_v10  ;;  %v17178_v57 = vld [vmem:[#allocation7 + $0xffc] ss:$24 sps:$4 sm:$0xff]   ;;  %v17233_v8 = vld [vmem:[#allocation7 + $0x11d0] ss:$24 sps:$4 sm:$0xff]  }
 0x7e8   :  { %v4253_v51 = vpop.f32.mrf.mxu1  ;;  %v17220_v10 = vld [vmem:[#allocation7 + $0xfd4] ss:$24 sps:$4 sm:$0xff]   ;;  %v17218_v11 = vld [vmem:[#allocation7 + $0xfd0] ss:$24 sps:$4 sm:$0xff]  }
 0x7e9   :  { %v17221_v51 = vld [vmem:[#allocation7 + $0xfa0] ss:$24 sps:$4 sm:$0xff]  }
 0x7ea   :  { %v4254_v58 = vpop.f32.mrf.mxu1  ;;  %4692 = vmatpush1.bf16.msra.mxu0 %v17155_v42  ;;  %5070 = vmatpush1.bf16.msra.mxu1 %v17185_v47  ;;  %v17239_v42 = vld [vmem:[#allocation7 + $0x11a0] ss:$24 sps:$4 sm:$0xff]   ;;  %v17223_v47 = vld [vmem:[#allocation7 + $0xfa4] ss:$24 sps:$4 sm:$0xff]  }
 0x7eb   :  { %4693 = vmatprep.subr.bf16.mxu0 %v17160_v43  ;;  %5071 = vmatprep.subr.bf16.mxu1 %v17193_v29  ;;  %v17247_v43 = vld [vmem:[#allocation7 + $0x1174] ss:$24 sps:$4 sm:$0xff]   ;;  %v17245_v58 = vld [vmem:[#allocation7 + $0x1170] ss:$24 sps:$4 sm:$0xff]  }
 0x7ee   :  { %4694 = vmatpush1.bf16.msra.mxu0 %v17158_v18  ;;  %5072 = vmatpush1.bf16.msra.mxu1 %v17191_v24  ;;  %v17226_v18 = vld [vmem:[#allocation7 + $0xf74] ss:$24 sps:$4 sm:$0xff]  }
 0x7ef   :  { %5102 = vmatprep.subr.bf16.mxu0 %v17166_v20  ;;  %5073 = vmatprep.subr.bf16.mxu1 %v17199_v27  ;;  %v17253_v20 = vld [vmem:[#allocation7 + $0x1144] ss:$24 sps:$4 sm:$0xff]   ;;  %v17232_v24 = vld [vmem:[#allocation7 + $0xf14] ss:$24 sps:$4 sm:$0xff]   ;;  %v17230_v27 = vld [vmem:[#allocation7 + $0xf10] ss:$24 sps:$4 sm:$0xff]  }
 0x7f1   :  { %4712 = vmatmul.mubr.bf16.vlgmr.msra.gmra.mxu0 %v18742_v16 }
 0x7f2   :  { %5103 = vmatpush1.bf16.msra.mxu0 %v17164_v3  ;;  %5134 = vmatprep.mubr.bf16.mxu0 %v18386_v39  ;;  %v17224_v3 = vld [vmem:[#allocation7 + $0xf70] ss:$24 sps:$4 sm:$0xff]  }
 0x7f3   :  { %5104 = vmatprep.subr.bf16.mxu0 %v17172_v62  ;;  %5074 = vmatpush1.bf16.msra.mxu1 %v17197_v33  ;;  %v17251_v62 = vld [vmem:[#allocation7 + $0x1140] ss:$24 sps:$4 sm:$0xff]   ;;  %v17238_v33 = vld [vmem:[#allocation7 + $0x11dc] ss:$24 sps:$4 sm:$0xff]  }
 0x7f4   :  { %5075 = vmatprep.subr.bf16.mxu1 %v17205_v37  ;;  %v17248_v37 = vld [vmem:[#allocation7 + $0x1178] ss:$24 sps:$4 sm:$0xff]  }
 0x7f6   :  { %5105 = vmatpush1.bf16.msra.mxu0 %v17170_v21  ;;  %v17229_v21 = vld [vmem:[#allocation7 + $0xf44] ss:$24 sps:$4 sm:$0xff]  }
 0x7f7   :  { %5106 = vmatprep.subr.bf16.mxu0 %v17178_v57  ;;  %5076 = vmatpush1.bf16.msra.mxu1 %v17203_v40  ;;  %v17259_v57 = vld [vmem:[#allocation7 + $0x1114] ss:$24 sps:$4 sm:$0xff]  }
 0x7f8   :  { %5143 = vmatprep.subr.bf16.mxu1 %v17211_v14  ;;  %v17256_v40 = vld [vmem:[#allocation7 + $0x114c] ss:$24 sps:$4 sm:$0xff]   ;;  %v17260_v14 = vld [vmem:[#allocation7 + $0x1118] ss:$24 sps:$4 sm:$0xff]  }
 0x7fa   :  { %5107 = vmatpush1.bf16.msra.mxu0 %v17176_v61 }
 0x7fb   :  { %5108 = vmatprep.subr.bf16.mxu0 %v17184_v25 }
 0x7fe   :  { %5109 = vmatpush1.bf16.msra.mxu0 %v17182_v26 }
 0x7ff   :  { %5110 = vmatprep.subr.bf16.mxu0 %v17190_v52  ;;  %v17227_v52 = vld [vmem:[#allocation7 + $0xf40] ss:$24 sps:$4 sm:$0xff]  }
 0x802   :  { %5111 = vmatpush1.bf16.msra.mxu0 %v17188_v2  ;;  %v17257_v2 = vld [vmem:[#allocation7 + $0x1110] ss:$24 sps:$4 sm:$0xff]  }
 0x803   :  { %5112 = vmatprep.subr.bf16.mxu0 %v17196_v31 }
 0x806   :  { %5113 = vmatpush1.bf16.msra.mxu0 %v17194_v5 }
 0x807   :  { %5114 = vmatprep.subr.bf16.mxu0 %v17202_v34  ;;  %v17242_v34 = vld [vmem:[#allocation7 + $0x11a8] ss:$24 sps:$4 sm:$0xff]  }
 0x80a   :  { %5115 = vmatpush1.bf16.msra.mxu0 %v17200_v12  ;;  %v17244_v12 = vld [vmem:[#allocation7 + $0x11ac] ss:$24 sps:$4 sm:$0xff]  }
 0x80b   :  { %5116 = vmatprep.subr.bf16.mxu0 %v17208_v38  ;;  %v17254_v38 = vld [vmem:[#allocation7 + $0x1148] ss:$24 sps:$4 sm:$0xff]  }
 0x80e   :  { %5117 = vmatpush1.bf16.msra.mxu0 %v17206_v15  ;;  %v17262_v15 = vld [vmem:[#allocation7 + $0x111c] ss:$24 sps:$4 sm:$0xff]  }
 0x80f   :  { %16343 = vmatprep.subr.bf16.mxu0 %v18384_v0 }
 0x891   :  { %v4631_v16 = vpop.f32.mrf.mxu0  ;;  %v4672_v44 = vpop.f32.mrf.mxu1 }
 0x892   :  { %v18765_v17 = vadd.f32 %v4631_v16, %v18730_v48  ;;  %v18768_v45 = vadd.f32 %v4672_v44, %v18733_v1  ;;  %v17209_v1 = vld [vmem:[#allocation7 + $0x1060] ss:$24 sps:$4 sm:$0xff]   ;;  %v17265_v16 = vld [vmem:[#allocation7 + $0x10e4] ss:$24 sps:$4 sm:$0xff]  }
 0x893   :  { %v4633_v23 = vpop.f32.mrf.mxu0  ;;  %v4674_v19 = vpop.f32.mrf.mxu1  ;;  %v17263_v44 = vld [vmem:[#allocation7 + $0x10e0] ss:$24 sps:$4 sm:$0xff]  }
 0x894   :  { %v18771_v46 = vadd.f32 %v4633_v23, %v18736_v9  ;;  %v18774_v54 = vadd.f32 %v4674_v19, %v18739_v32  ;;  %v17235_v9 = vld [vmem:[#allocation7 + $0x11d4] ss:$24 sps:$4 sm:$0xff]   ;;  %v17266_v19 = vld [vmem:[#allocation7 + $0x10e8] ss:$24 sps:$4 sm:$0xff]  }
 0x895   :  { %v4635_v22 = vpop.f32.mrf.mxu0  ;;  %v4676_v49 = vpop.f32.mrf.mxu1  ;;  %v17268_v23 = vld [vmem:[#allocation7 + $0x10ec] ss:$24 sps:$4 sm:$0xff]  }
 0x896   :  { %v17271_v22 = vld [vmem:[#allocation7 + $0x10b4] ss:$24 sps:$4 sm:$0xff]   ;;  %v17269_v49 = vld [vmem:[#allocation7 + $0x10b0] ss:$24 sps:$4 sm:$0xff]  }
 0x897   :  { %v4636_v50 = vpop.f32.mrf.mxu0  ;;  %v4677_v28 = vpop.f32.mrf.mxu1 }
 0x898   :  { %v17272_v50 = vld [vmem:[#allocation7 + $0x10b8] ss:$24 sps:$4 sm:$0xff]   ;;  %v17274_v28 = vld [vmem:[#allocation7 + $0x10bc] ss:$24 sps:$4 sm:$0xff]  }
 0x899   :  { %v4765_v53 = vpop.f32.mrf.mxu1 }
 0x89a   :  { %v4766_v48 = vadd.f32 %v18776_v55, %v4765_v53  ;;  %v17277_v53 = vld [vmem:[#allocation7 + $0x1084] ss:$24 sps:$4 sm:$0xff]  }
 0x89b   :  { %v16341_v30 = vpop.f32.mrf.mxu1 }
 0x89c   :  { %v18779_v56 = vpack.c.bf16 %v4766_v48, %v4766_v48  ;;  %v17275_v48 = vld [vmem:[#allocation7 + $0x1080] ss:$24 sps:$4 sm:$0xff]   ;;  %v17280_v30 = vld [vmem:[#allocation7 + $0x108c] ss:$24 sps:$4 sm:$0xff]  }
 0x89d   :  { %v4768_v60 = vpop.f32.mrf.mxu1 }
 0x89e   :  { %5094 = vmatmul.mubr.bf16.vlgmr.msra.gmra.mxu1 %v18779_v56  ;;  %5135 = vmatmul.mubr.bf16.vlgmr.msra.gmra.mxu0 %v18779_v56 }
 0x89f   :  { %5144 = vmatpush1.bf16.msra.mxu1 %v17209_v1  ;;  %v16342_v32 = vpop.f32.mrf.mxu1  ;;  %16344 = vmatpush3.bf16.msra.mxu0 %v18451_v4  ;;  %v17278_v1 = vld [vmem:[#allocation7 + $0x1088] ss:$24 sps:$4 sm:$0xff]  }
 0x8a0   :  { %5145 = vmatprep.subr.bf16.mxu1 %v17214_v59  ;;  %16345 = vmatprep.mubr.msk.bf16.mxu0 %vm18385_vm0, %v18384_v0 }
 0x8a1   :  { %5175 = vmatprep.mubr.bf16.mxu1 %v18386_v39  ;;  %5525 = vmatprep.subr.bf16.mxu0 %v17235_v9 }
 0x8a3   :  { %5146 = vmatpush1.bf16.msra.mxu1 %v17212_v63 }
 0x8a4   :  { %5147 = vmatprep.subr.bf16.mxu1 %v17217_v6 }
 0x8a6   :  { %16346 = vmatmul.mubr.msk.bf16.vlgmr.msra.gmra.mxu0 %vm96_vm2, %v15143_v35 }
 0x8a7   :  { %5148 = vmatpush1.bf16.msra.mxu1 %v17215_v7  ;;  %5526 = vmatpush1.bf16.msra.mxu0 %v17233_v8 }
 0x8a8   :  { %5149 = vmatprep.subr.bf16.mxu1 %v17220_v10  ;;  %5527 = vmatprep.subr.bf16.mxu0 %v17241_v41 }
 0x8a9   :  { %5557 = vmatprep.mubr.bf16.mxu0 %v18386_v39 }
 0x8ab   :  { %5150 = vmatpush1.bf16.msra.mxu1 %v17218_v11  ;;  %5528 = vmatpush1.bf16.msra.mxu0 %v17239_v42 }
 0x8ac   :  { %5151 = vmatprep.subr.bf16.mxu1 %v17223_v47  ;;  %5529 = vmatprep.subr.bf16.mxu0 %v17247_v43  ;;  %v17281_v43 = vld [vmem:[#allocation7 + $0x11e0] ss:$24 sps:$4 sm:$0xff]  }
 0x8af   :  { %5152 = vmatpush1.bf16.msra.mxu1 %v17221_v51  ;;  %5530 = vmatpush1.bf16.msra.mxu0 %v17245_v58 }
 0x8b0   :  { %5153 = vmatprep.subr.bf16.mxu1 %v17226_v18  ;;  %5531 = vmatprep.subr.bf16.mxu0 %v17253_v20  ;;  %v17307_v18 = vld [vmem:[#allocation7 + $0x1354] ss:$24 sps:$4 sm:$0xff]   ;;  %v17289_v20 = vld [vmem:[#allocation7 + $0x1184] ss:$24 sps:$4 sm:$0xff]  }
 0x8b1   :  { %v4713_v61 = vpop.f32.mrf.mxu0 }
 0x8b2   :  { %v18793_v25 = vadd.f32 %v4713_v61, %v18756_v36  ;;  %v17236_v36 = vld [vmem:[#allocation7 + $0x11d8] ss:$24 sps:$4 sm:$0xff]   ;;  %v17313_v61 = vld [vmem:[#allocation7 + $0x1324] ss:$24 sps:$4 sm:$0xff]  }
 0x8b3   :  { %v4715_v26 = vpop.f32.mrf.mxu0  ;;  %5154 = vmatpush1.bf16.msra.mxu1 %v17224_v3  ;;  %5532 = vmatpush1.bf16.msra.mxu0 %v17251_v62  ;;  %v17287_v3 = vld [vmem:[#allocation7 + $0x1180] ss:$24 sps:$4 sm:$0xff]   ;;  %v15193_v62 = vld [vmem:[%s19392_s0 + $0xc] sm:$0x1] }
 0x8b4   :  { %v18796_v29 = vadd.f32 %v4715_v26, %v18759_v13  ;;  %5155 = vmatprep.subr.bf16.mxu1 %v17229_v21  ;;  %5533 = vmatprep.subr.bf16.mxu0 %v17259_v57  ;;  %v17250_v13 = vld [vmem:[#allocation7 + $0x117c] ss:$24 sps:$4 sm:$0xff]   ;;  %v17305_v21 = vld [vmem:[#allocation7 + $0x1350] ss:$24 sps:$4 sm:$0xff]  }
 0x8b5   :  { %v4717_v31 = vpop.f32.mrf.mxu0  ;;  %v17292_v57 = vld [vmem:[#allocation7 + $0x1154] ss:$24 sps:$4 sm:$0xff]   ;;  %v17290_v26 = vld [vmem:[#allocation7 + $0x1150] ss:$24 sps:$4 sm:$0xff]  }
 0x8b6   :  { %v17293_v31 = vld [vmem:[#allocation7 + $0x1120] ss:$24 sps:$4 sm:$0xff]  }
 0x8b7   :  { %v4718_v5 = vpop.f32.mrf.mxu0  ;;  %5156 = vmatpush1.bf16.msra.mxu1 %v17227_v52  ;;  %5534 = vmatpush1.bf16.msra.mxu0 %v17257_v2  ;;  %v17311_v52 = vld [vmem:[#allocation7 + $0x1320] ss:$24 sps:$4 sm:$0xff]   ;;  %v17295_v2 = vld [vmem:[#allocation7 + $0x1124] ss:$24 sps:$4 sm:$0xff]  }
 0x8b8   :  { %5157 = vmatprep.subr.bf16.mxu1 %v17232_v24  ;;  %5535 = vmatprep.subr.bf16.mxu0 %v17265_v16  ;;  %v17319_v24 = vld [vmem:[#allocation7 + $0x12f4] ss:$24 sps:$4 sm:$0xff]   ;;  %v17317_v5 = vld [vmem:[#allocation7 + $0x12f0] ss:$24 sps:$4 sm:$0xff]  }
 0x8bb   :  { %5158 = vmatpush1.bf16.msra.mxu1 %v17230_v27  ;;  %5536 = vmatpush1.bf16.msra.mxu0 %v17263_v44  ;;  %v17298_v27 = vld [vmem:[#allocation7 + $0x10f4] ss:$24 sps:$4 sm:$0xff]  }
 0x8bc   :  { %5566 = vmatprep.subr.bf16.mxu1 %v17238_v33  ;;  %5537 = vmatprep.subr.bf16.mxu0 %v17271_v22  ;;  %v17325_v33 = vld [vmem:[#allocation7 + $0x12c4] ss:$24 sps:$4 sm:$0xff]   ;;  %v17304_v44 = vld [vmem:[#allocation7 + $0x1094] ss:$24 sps:$4 sm:$0xff]   ;;  %v17302_v22 = vld [vmem:[#allocation7 + $0x1090] ss:$24 sps:$4 sm:$0xff]  }
 0x8be   :  { %5176 = vmatmul.mubr.bf16.vlgmr.msra.gmra.mxu1 %v18779_v56  ;;  %v17283_v56 = vld [vmem:[#allocation7 + $0x11e4] ss:$24 sps:$4 sm:$0xff]  }
 0x8bf   :  { %5567 = vmatpush1.bf16.msra.mxu1 %v17236_v36  ;;  %5598 = vmatprep.mubr.bf16.mxu1 %v18386_v39  ;;  %v17296_v36 = vld [vmem:[#allocation7 + $0x10f0] ss:$24 sps:$4 sm:$0xff]  }
 0x8c0   :  { %5568 = vmatprep.subr.bf16.mxu1 %v17244_v12  ;;  %5538 = vmatpush1.bf16.msra.mxu0 %v17269_v49  ;;  %v17323_v12 = vld [vmem:[#allocation7 + $0x12c0] ss:$24 sps:$4 sm:$0xff]   ;;  %v17310_v49 = vld [vmem:[#allocation7 + $0x135c] ss:$24 sps:$4 sm:$0xff]  }
 0x8c1   :  { %5539 = vmatprep.subr.bf16.mxu0 %v17277_v53  ;;  %v17320_v53 = vld [vmem:[#allocation7 + $0x12f8] ss:$24 sps:$4 sm:$0xff]  }
 0x8c3   :  { %5569 = vmatpush1.bf16.msra.mxu1 %v17242_v34  ;;  %v17301_v34 = vld [vmem:[#allocation7 + $0x10c4] ss:$24 sps:$4 sm:$0xff]  }
 0x8c4   :  { %5570 = vmatprep.subr.bf16.mxu1 %v17250_v13  ;;  %5540 = vmatpush1.bf16.msra.mxu0 %v17275_v48  ;;  %v17331_v13 = vld [vmem:[#allocation7 + $0x1294] ss:$24 sps:$4 sm:$0xff]  }
 0x8c5   :  { %5607 = vmatprep.subr.bf16.mxu0 %v17283_v56  ;;  %v17328_v48 = vld [vmem:[#allocation7 + $0x12cc] ss:$24 sps:$4 sm:$0xff]   ;;  %v17332_v56 = vld [vmem:[#allocation7 + $0x1298] ss:$24 sps:$4 sm:$0xff]  }
 0x8c7   :  { %5571 = vmatpush1.bf16.msra.mxu1 %v17248_v37 }
 0x8c8   :  { %5572 = vmatprep.subr.bf16.mxu1 %v17256_v40 }
 0x8cb   :  { %5573 = vmatpush1.bf16.msra.mxu1 %v17254_v38 }
 0x8cc   :  { %5574 = vmatprep.subr.bf16.mxu1 %v17262_v15  ;;  %v17299_v15 = vld [vmem:[#allocation7 + $0x10c0] ss:$24 sps:$4 sm:$0xff]  }
 0x8cf   :  { %5575 = vmatpush1.bf16.msra.mxu1 %v17260_v14  ;;  %v17329_v14 = vld [vmem:[#allocation7 + $0x1290] ss:$24 sps:$4 sm:$0xff]  }
 0x8d0   :  { %5576 = vmatprep.subr.bf16.mxu1 %v17268_v23 }
 0x8d3   :  { %5577 = vmatpush1.bf16.msra.mxu1 %v17266_v19 }
 0x8d4   :  { %5578 = vmatprep.subr.bf16.mxu1 %v17274_v28  ;;  %v17314_v28 = vld [vmem:[#allocation7 + $0x1328] ss:$24 sps:$4 sm:$0xff]  }
 0x8d7   :  { %5579 = vmatpush1.bf16.msra.mxu1 %v17272_v50  ;;  %v17316_v50 = vld [vmem:[#allocation7 + $0x132c] ss:$24 sps:$4 sm:$0xff]  }
 0x8d8   :  { %5580 = vmatprep.subr.bf16.mxu1 %v17280_v30  ;;  %v17326_v30 = vld [vmem:[#allocation7 + $0x12c8] ss:$24 sps:$4 sm:$0xff]  }
 0x8db   :  { %5581 = vmatpush1.bf16.msra.mxu1 %v17278_v1  ;;  %v17334_v1 = vld [vmem:[#allocation7 + $0x129c] ss:$24 sps:$4 sm:$0xff]  }
 0x8dc   :  { %16349 = vmatprep.subr.bf16.mxu1 %v18384_v0 }
 0x95e   :  { %v5095_v59 = vpop.f32.mrf.mxu1  ;;  %v5136_v60 = vpop.f32.mrf.mxu0 }
 0x95f   :  { %v18802_v9 = vadd.f32 %v5095_v59, %v18765_v17  ;;  %v18805_v32 = vadd.f32 %v5136_v60, %v18768_v45  ;;  %v17286_v45 = vld [vmem:[#allocation7 + $0x11b4] ss:$24 sps:$4 sm:$0xff]   ;;  %v17337_v59 = vld [vmem:[#allocation7 + $0x1264] ss:$24 sps:$4 sm:$0xff]   ;;  %v17335_v60 = vld [vmem:[#allocation7 + $0x1260] ss:$24 sps:$4 sm:$0xff]  }
 0x960   :  { %v5097_v63 = vpop.f32.mrf.mxu1  ;;  %v5138_v6 = vpop.f32.mrf.mxu0 }
 0x961   :  { %v18808_v7 = vadd.f32 %v5097_v63, %v18771_v46  ;;  %v18811_v35 = vadd.f32 %v5138_v6, %v18774_v54  ;;  %v17284_v54 = vld [vmem:[#allocation7 + $0x11b0] ss:$24 sps:$4 sm:$0xff]   ;;  %v17340_v63 = vld [vmem:[#allocation7 + $0x126c] ss:$24 sps:$4 sm:$0xff]  }
 0x962   :  { %v5099_v8 = vpop.f32.mrf.mxu1  ;;  %v5140_v10 = vpop.f32.mrf.mxu0  ;;  %v17338_v6 = vld [vmem:[#allocation7 + $0x1268] ss:$24 sps:$4 sm:$0xff]  }
 0x963   :  { %v17343_v8 = vld [vmem:[#allocation7 + $0x1234] ss:$24 sps:$4 sm:$0xff]   ;;  %v17341_v10 = vld [vmem:[#allocation7 + $0x1230] ss:$24 sps:$4 sm:$0xff]  }
 0x964   :  { %v5100_v41 = vpop.f32.mrf.mxu1  ;;  %v5141_v11 = vpop.f32.mrf.mxu0 }
 0x965   :  { %v17344_v41 = vld [vmem:[#allocation7 + $0x1238] ss:$24 sps:$4 sm:$0xff]   ;;  %v17346_v11 = vld [vmem:[#allocation7 + $0x123c] ss:$24 sps:$4 sm:$0xff]  }
 0x966   :  { %v5229_v42 = vpop.f32.mrf.mxu0 }
 0x967   :  { %v5230_v47 = vadd.f32 %v18776_v55, %v5229_v42  ;;  %v17349_v42 = vld [vmem:[#allocation7 + $0x1204] ss:$24 sps:$4 sm:$0xff]  }
 0x968   :  { %v16347_v17 = vpop.f32.mrf.mxu0 }
 0x969   :  { %v18814_v51 = vpack.c.bf16 %v5230_v47, %v5230_v47  ;;  %v17347_v47 = vld [vmem:[#allocation7 + $0x1200] ss:$24 sps:$4 sm:$0xff]   ;;  %v17352_v17 = vld [vmem:[#allocation7 + $0x120c] ss:$24 sps:$4 sm:$0xff]  }
 0x96a   :  { %v5232_v58 = vpop.f32.mrf.mxu0 }
 0x96b   :  { %5558 = vmatmul.mubr.bf16.vlgmr.msra.gmra.mxu0 %v18814_v51  ;;  %5599 = vmatmul.mubr.bf16.vlgmr.msra.gmra.mxu1 %v18814_v51 }
 0x96c   :  { %5608 = vmatpush1.bf16.msra.mxu0 %v17281_v43  ;;  %v16348_v46 = vpop.f32.mrf.mxu0  ;;  %16350 = vmatpush3.bf16.msra.mxu1 %v18451_v4  ;;  %v17350_v43 = vld [vmem:[#allocation7 + $0x1208] ss:$24 sps:$4 sm:$0xff]  }
 0x96d   :  { %5609 = vmatprep.subr.bf16.mxu0 %v17286_v45  ;;  %16351 = vmatprep.mubr.msk.bf16.mxu1 %vm18385_vm0, %v18384_v0 }
 0x96e   :  { %5639 = vmatprep.mubr.bf16.mxu0 %v18386_v39  ;;  %5989 = vmatprep.subr.bf16.mxu1 %v17307_v18 }
 0x970   :  { %5610 = vmatpush1.bf16.msra.mxu0 %v17284_v54 }
 0x971   :  { %5611 = vmatprep.subr.bf16.mxu0 %v17289_v20 }
 0x973   :  { %16352 = vmatmul.mubr.msk.bf16.vlgmr.msra.gmra.mxu1 %vm96_vm2, %v15193_v62 }
 0x974   :  { %5612 = vmatpush1.bf16.msra.mxu0 %v17287_v3  ;;  %5990 = vmatpush1.bf16.msra.mxu1 %v17305_v21 }
 0x975   :  { %5613 = vmatprep.subr.bf16.mxu0 %v17292_v57  ;;  %5991 = vmatprep.subr.bf16.mxu1 %v17313_v61 }
 0x976   :  { %6021 = vmatprep.mubr.bf16.mxu1 %v18386_v39 }
 0x978   :  { %5614 = vmatpush1.bf16.msra.mxu0 %v17290_v26  ;;  %5992 = vmatpush1.bf16.msra.mxu1 %v17311_v52 }
 0x979   :  { %5615 = vmatprep.subr.bf16.mxu0 %v17295_v2  ;;  %5993 = vmatprep.subr.bf16.mxu1 %v17319_v24  ;;  %v17353_v24 = vld [vmem:[#allocation7 + $0x1360] ss:$24 sps:$4 sm:$0xff]  }
 0x97c   :  { %5616 = vmatpush1.bf16.msra.mxu0 %v17293_v31  ;;  %5994 = vmatpush1.bf16.msra.mxu1 %v17317_v5 }
 0x97d   :  { %5617 = vmatprep.subr.bf16.mxu0 %v17298_v27  ;;  %5995 = vmatprep.subr.bf16.mxu1 %v17325_v33  ;;  %v17379_v27 = vld [vmem:[#allocation7 + $0x14d4] ss:$24 sps:$4 sm:$0xff]   ;;  %v17361_v33 = vld [vmem:[#allocation7 + $0x1304] ss:$24 sps:$4 sm:$0xff]  }
 0x97e   :  { %v5177_v37 = vpop.f32.mrf.mxu1 }
 0x97f   :  { %v18828_v40 = vadd.f32 %v5177_v37, %v18793_v25  ;;  %v17308_v25 = vld [vmem:[#allocation7 + $0x1358] ss:$24 sps:$4 sm:$0xff]   ;;  %v17385_v37 = vld [vmem:[#allocation7 + $0x14a4] ss:$24 sps:$4 sm:$0xff]  }
 0x980   :  { %v5179_v38 = vpop.f32.mrf.mxu1  ;;  %5618 = vmatpush1.bf16.msra.mxu0 %v17296_v36  ;;  %5996 = vmatpush1.bf16.msra.mxu1 %v17323_v12  ;;  %v17359_v36 = vld [vmem:[#allocation7 + $0x1300] ss:$24 sps:$4 sm:$0xff]   ;;  %v15243_v12 = vld [vmem:[%s19392_s0 + $0xd] sm:$0x1] }
 0x981   :  { %v18831_v16 = vadd.f32 %v5179_v38, %v18796_v29  ;;  %5619 = vmatprep.subr.bf16.mxu0 %v17301_v34  ;;  %5997 = vmatprep.subr.bf16.mxu1 %v17331_v13  ;;  %v17322_v29 = vld [vmem:[#allocation7 + $0x12fc] ss:$24 sps:$4 sm:$0xff]   ;;  %v17377_v34 = vld [vmem:[#allocation7 + $0x14d0] ss:$24 sps:$4 sm:$0xff]  }
 0x982   :  { %v5181_v23 = vpop.f32.mrf.mxu1  ;;  %v17364_v13 = vld [vmem:[#allocation7 + $0x12d4] ss:$24 sps:$4 sm:$0xff]   ;;  %v17362_v38 = vld [vmem:[#allocation7 + $0x12d0] ss:$24 sps:$4 sm:$0xff]  }
 0x983   :  { %v17365_v23 = vld [vmem:[#allocation7 + $0x12a0] ss:$24 sps:$4 sm:$0xff]  }
 0x984   :  { %v5182_v19 = vpop.f32.mrf.mxu1  ;;  %5620 = vmatpush1.bf16.msra.mxu0 %v17299_v15  ;;  %5998 = vmatpush1.bf16.msra.mxu1 %v17329_v14  ;;  %v17383_v15 = vld [vmem:[#allocation7 + $0x14a0] ss:$24 sps:$4 sm:$0xff]   ;;  %v17367_v14 = vld [vmem:[#allocation7 + $0x12a4] ss:$24 sps:$4 sm:$0xff]  }
 0x985   :  { %5621 = vmatprep.subr.bf16.mxu0 %v17304_v44  ;;  %5999 = vmatprep.subr.bf16.mxu1 %v17337_v59  ;;  %v17391_v44 = vld [vmem:[#allocation7 + $0x1474] ss:$24 sps:$4 sm:$0xff]   ;;  %v17389_v19 = vld [vmem:[#allocation7 + $0x1470] ss:$24 sps:$4 sm:$0xff]  }
 0x988   :  { %5622 = vmatpush1.bf16.msra.mxu0 %v17302_v22  ;;  %6000 = vmatpush1.bf16.msra.mxu1 %v17335_v60  ;;  %v17370_v22 = vld [vmem:[#allocation7 + $0x1274] ss:$24 sps:$4 sm:$0xff]  }
 0x989   :  { %6030 = vmatprep.subr.bf16.mxu0 %v17310_v49  ;;  %6001 = vmatprep.subr.bf16.mxu1 %v17343_v8  ;;  %v17397_v49 = vld [vmem:[#allocation7 + $0x1444] ss:$24 sps:$4 sm:$0xff]   ;;  %v17376_v60 = vld [vmem:[#allocation7 + $0x1214] ss:$24 sps:$4 sm:$0xff]   ;;  %v17374_v8 = vld [vmem:[#allocation7 + $0x1210] ss:$24 sps:$4 sm:$0xff]  }
 0x98b   :  { %5640 = vmatmul.mubr.bf16.vlgmr.msra.gmra.mxu0 %v18814_v51  ;;  %v17355_v51 = vld [vmem:[#allocation7 + $0x1364] ss:$24 sps:$4 sm:$0xff]  }
 0x98c   :  { %6031 = vmatpush1.bf16.msra.mxu0 %v17308_v25  ;;  %6062 = vmatprep.mubr.bf16.mxu0 %v18386_v39  ;;  %v17368_v25 = vld [vmem:[#allocation7 + $0x1270] ss:$24 sps:$4 sm:$0xff]  }
 0x98d   :  { %6032 = vmatprep.subr.bf16.mxu0 %v17316_v50  ;;  %6002 = vmatpush1.bf16.msra.mxu1 %v17341_v10  ;;  %v17395_v50 = vld [vmem:[#allocation7 + $0x1440] ss:$24 sps:$4 sm:$0xff]   ;;  %v17382_v10 = vld [vmem:[#allocation7 + $0x14dc] ss:$24 sps:$4 sm:$0xff]  }
 0x98e   :  { %6003 = vmatprep.subr.bf16.mxu1 %v17349_v42  ;;  %v17392_v42 = vld [vmem:[#allocation7 + $0x1478] ss:$24 sps:$4 sm:$0xff]  }
 0x990   :  { %6033 = vmatpush1.bf16.msra.mxu0 %v17314_v28  ;;  %v17373_v28 = vld [vmem:[#allocation7 + $0x1244] ss:$24 sps:$4 sm:$0xff]  }
 0x991   :  { %6034 = vmatprep.subr.bf16.mxu0 %v17322_v29  ;;  %6004 = vmatpush1.bf16.msra.mxu1 %v17347_v47  ;;  %v17403_v29 = vld [vmem:[#allocation7 + $0x1414] ss:$24 sps:$4 sm:$0xff]  }
 0x992   :  { %6071 = vmatprep.subr.bf16.mxu1 %v17355_v51  ;;  %v17400_v47 = vld [vmem:[#allocation7 + $0x144c] ss:$24 sps:$4 sm:$0xff]   ;;  %v17404_v51 = vld [vmem:[#allocation7 + $0x1418] ss:$24 sps:$4 sm:$0xff]  }
 0x994   :  { %6035 = vmatpush1.bf16.msra.mxu0 %v17320_v53 }
 0x995   :  { %6036 = vmatprep.subr.bf16.mxu0 %v17328_v48 }
 0x998   :  { %6037 = vmatpush1.bf16.msra.mxu0 %v17326_v30 }
 0x999   :  { %6038 = vmatprep.subr.bf16.mxu0 %v17334_v1  ;;  %v17371_v1 = vld [vmem:[#allocation7 + $0x1240] ss:$24 sps:$4 sm:$0xff]  }
 0x99c   :  { %6039 = vmatpush1.bf16.msra.mxu0 %v17332_v56  ;;  %v17401_v56 = vld [vmem:[#allocation7 + $0x1410] ss:$24 sps:$4 sm:$0xff]  }
 0x99d   :  { %6040 = vmatprep.subr.bf16.mxu0 %v17340_v63 }
 0x9a0   :  { %6041 = vmatpush1.bf16.msra.mxu0 %v17338_v6 }
 0x9a1   :  { %6042 = vmatprep.subr.bf16.mxu0 %v17346_v11  ;;  %v17386_v11 = vld [vmem:[#allocation7 + $0x14a8] ss:$24 sps:$4 sm:$0xff]  }
 0x9a4   :  { %6043 = vmatpush1.bf16.msra.mxu0 %v17344_v41  ;;  %v17388_v41 = vld [vmem:[#allocation7 + $0x14ac] ss:$24 sps:$4 sm:$0xff]  }
 0x9a5   :  { %6044 = vmatprep.subr.bf16.mxu0 %v17352_v17  ;;  %v17398_v17 = vld [vmem:[#allocation7 + $0x1448] ss:$24 sps:$4 sm:$0xff]  }
 0x9a8   :  { %6045 = vmatpush1.bf16.msra.mxu0 %v17350_v43  ;;  %v17406_v43 = vld [vmem:[#allocation7 + $0x141c] ss:$24 sps:$4 sm:$0xff]  }
 0x9a9   :  { %16355 = vmatprep.subr.bf16.mxu0 %v18384_v0 }
 0xa2b   :  { %v5559_v45 = vpop.f32.mrf.mxu0  ;;  %v5600_v58 = vpop.f32.mrf.mxu1 }
 0xa2c   :  { %v18837_v18 = vadd.f32 %v5559_v45, %v18802_v9  ;;  %v18840_v46 = vadd.f32 %v5600_v58, %v18805_v32  ;;  %v17358_v32 = vld [vmem:[#allocation7 + $0x1334] ss:$24 sps:$4 sm:$0xff]   ;;  %v17409_v45 = vld [vmem:[#allocation7 + $0x13e4] ss:$24 sps:$4 sm:$0xff]   ;;  %v17407_v58 = vld [vmem:[#allocation7 + $0x13e0] ss:$24 sps:$4 sm:$0xff]  }
 0xa2d   :  { %v5561_v54 = vpop.f32.mrf.mxu0  ;;  %v5602_v20 = vpop.f32.mrf.mxu1 }
 0xa2e   :  { %v18843_v3 = vadd.f32 %v5561_v54, %v18808_v7  ;;  %v18846_v62 = vadd.f32 %v5602_v20, %v18811_v35  ;;  %v17356_v35 = vld [vmem:[#allocation7 + $0x1330] ss:$24 sps:$4 sm:$0xff]   ;;  %v17412_v54 = vld [vmem:[#allocation7 + $0x13ec] ss:$24 sps:$4 sm:$0xff]  }
 0xa2f   :  { %v5563_v21 = vpop.f32.mrf.mxu0  ;;  %v5604_v57 = vpop.f32.mrf.mxu1  ;;  %v17410_v20 = vld [vmem:[#allocation7 + $0x13e8] ss:$24 sps:$4 sm:$0xff]  }
 0xa30   :  { %v17415_v21 = vld [vmem:[#allocation7 + $0x13b4] ss:$24 sps:$4 sm:$0xff]   ;;  %v17413_v57 = vld [vmem:[#allocation7 + $0x13b0] ss:$24 sps:$4 sm:$0xff]  }
 0xa31   :  { %v5564_v61 = vpop.f32.mrf.mxu0  ;;  %v5605_v26 = vpop.f32.mrf.mxu1 }
 0xa32   :  { %v17416_v61 = vld [vmem:[#allocation7 + $0x13b8] ss:$24 sps:$4 sm:$0xff]   ;;  %v17418_v26 = vld [vmem:[#allocation7 + $0x13bc] ss:$24 sps:$4 sm:$0xff]  }
 0xa33   :  { %v5693_v52 = vpop.f32.mrf.mxu1 }
 0xa34   :  { %v5694_v2 = vadd.f32 %v18776_v55, %v5693_v52  ;;  %v17421_v52 = vld [vmem:[#allocation7 + $0x1384] ss:$24 sps:$4 sm:$0xff]  }
 0xa35   :  { %v16353_v9 = vpop.f32.mrf.mxu1 }
 0xa36   :  { %v18849_v31 = vpack.c.bf16 %v5694_v2, %v5694_v2  ;;  %v17419_v2 = vld [vmem:[#allocation7 + $0x1380] ss:$24 sps:$4 sm:$0xff]   ;;  %v17424_v9 = vld [vmem:[#allocation7 + $0x138c] ss:$24 sps:$4 sm:$0xff]  }
 0xa37   :  { %v5696_v5 = vpop.f32.mrf.mxu1 }
 0xa38   :  { %6022 = vmatmul.mubr.bf16.vlgmr.msra.gmra.mxu1 %v18849_v31  ;;  %6063 = vmatmul.mubr.bf16.vlgmr.msra.gmra.mxu0 %v18849_v31 }
 0xa39   :  { %6072 = vmatpush1.bf16.msra.mxu1 %v17353_v24  ;;  %v16354_v7 = vpop.f32.mrf.mxu1  ;;  %16356 = vmatpush3.bf16.msra.mxu0 %v18451_v4  ;;  %v17422_v24 = vld [vmem:[#allocation7 + $0x1388] ss:$24 sps:$4 sm:$0xff]  }
 0xa3a   :  { %6073 = vmatprep.subr.bf16.mxu1 %v17358_v32  ;;  %16357 = vmatprep.mubr.msk.bf16.mxu0 %vm18385_vm0, %v18384_v0 }
 0xa3b   :  { %6103 = vmatprep.mubr.bf16.mxu1 %v18386_v39  ;;  %6453 = vmatprep.subr.bf16.mxu0 %v17379_v27 }
 0xa3d   :  { %6074 = vmatpush1.bf16.msra.mxu1 %v17356_v35 }
 0xa3e   :  { %6075 = vmatprep.subr.bf16.mxu1 %v17361_v33 }
 0xa40   :  { %16358 = vmatmul.mubr.msk.bf16.vlgmr.msra.gmra.mxu0 %vm96_vm2, %v15243_v12 }
 0xa41   :  { %6076 = vmatpush1.bf16.msra.mxu1 %v17359_v36  ;;  %6454 = vmatpush1.bf16.msra.mxu0 %v17377_v34 }
 0xa42   :  { %6077 = vmatprep.subr.bf16.mxu1 %v17364_v13  ;;  %6455 = vmatprep.subr.bf16.mxu0 %v17385_v37 }
 0xa43   :  { %6485 = vmatprep.mubr.bf16.mxu0 %v18386_v39 }
 0xa45   :  { %6078 = vmatpush1.bf16.msra.mxu1 %v17362_v38  ;;  %6456 = vmatpush1.bf16.msra.mxu0 %v17383_v15 }
 0xa46   :  { %6079 = vmatprep.subr.bf16.mxu1 %v17367_v14  ;;  %6457 = vmatprep.subr.bf16.mxu0 %v17391_v44  ;;  %v17425_v44 = vld [vmem:[#allocation7 + $0x14e0] ss:$24 sps:$4 sm:$0xff]  }
 0xa49   :  { %6080 = vmatpush1.bf16.msra.mxu1 %v17365_v23  ;;  %6458 = vmatpush1.bf16.msra.mxu0 %v17389_v19 }
 0xa4a   :  { %6081 = vmatprep.subr.bf16.mxu1 %v17370_v22  ;;  %6459 = vmatprep.subr.bf16.mxu0 %v17397_v49  ;;  %v17451_v22 = vld [vmem:[#allocation7 + $0x1654] ss:$24 sps:$4 sm:$0xff]   ;;  %v17433_v49 = vld [vmem:[#allocation7 + $0x1484] ss:$24 sps:$4 sm:$0xff]  }
 0xa4b   :  { %v5641_v53 = vpop.f32.mrf.mxu0 }
 0xa4c   :  { %v18863_v48 = vadd.f32 %v5641_v53, %v18828_v40  ;;  %v17380_v40 = vld [vmem:[#allocation7 + $0x14d8] ss:$24 sps:$4 sm:$0xff]  }
 0xa4d   :  { %v5643_v30 = vpop.f32.mrf.mxu0  ;;  %6082 = vmatpush1.bf16.msra.mxu1 %v17368_v25  ;;  %6460 = vmatpush1.bf16.msra.mxu0 %v17395_v50  ;;  %v15293_v25 = vld [vmem:[%s19392_s0 + $0xe] sm:$0x1] }
 0xa4e   :  { %v18866_v59 = vadd.f32 %v5643_v30, %v18831_v16  ;;  %6083 = vmatprep.subr.bf16.mxu1 %v17373_v28  ;;  %6461 = vmatprep.subr.bf16.mxu0 %v17403_v29  ;;  %v17394_v16 = vld [vmem:[#allocation7 + $0x147c] ss:$24 sps:$4 sm:$0xff]   ;;  %v17449_v50 = vld [vmem:[#allocation7 + $0x1650] ss:$24 sps:$4 sm:$0xff]   ;;  %v17455_v30 = vld [vmem:[#allocation7 + $0x1620] ss:$24 sps:$4 sm:$0xff]  }
 0xa4f   :  { %v5645_v63 = vpop.f32.mrf.mxu0  ;;  %v17436_v28 = vld [vmem:[#allocation7 + $0x1454] ss:$24 sps:$4 sm:$0xff]   ;;  %v17457_v29 = vld [vmem:[#allocation7 + $0x1624] ss:$24 sps:$4 sm:$0xff]   ;;  %v17434_v53 = vld [vmem:[#allocation7 + $0x1450] ss:$24 sps:$4 sm:$0xff]  }
 0xa50   :  { %v17461_v63 = vld [vmem:[#allocation7 + $0x15f0] ss:$24 sps:$4 sm:$0xff]  }
 0xa51   :  { %v5646_v6 = vpop.f32.mrf.mxu0  ;;  %6084 = vmatpush1.bf16.msra.mxu1 %v17371_v1  ;;  %6462 = vmatpush1.bf16.msra.mxu0 %v17401_v56  ;;  %v17439_v1 = vld [vmem:[#allocation7 + $0x1424] ss:$24 sps:$4 sm:$0xff]   ;;  %v17463_v56 = vld [vmem:[#allocation7 + $0x15f4] ss:$24 sps:$4 sm:$0xff]  }
 0xa52   :  { %6085 = vmatprep.subr.bf16.mxu1 %v17376_v60  ;;  %6463 = vmatprep.subr.bf16.mxu0 %v17409_v45  ;;  %v17437_v60 = vld [vmem:[#allocation7 + $0x1420] ss:$24 sps:$4 sm:$0xff]   ;;  %v17442_v6 = vld [vmem:[#allocation7 + $0x13f4] ss:$24 sps:$4 sm:$0xff]  }
 0xa53   :  { %v17448_v45 = vld [vmem:[#allocation7 + $0x1394] ss:$24 sps:$4 sm:$0xff]  }
 0xa55   :  { %6086 = vmatpush1.bf16.msra.mxu1 %v17374_v8  ;;  %6464 = vmatpush1.bf16.msra.mxu0 %v17407_v58  ;;  %v17469_v8 = vld [vmem:[#allocation7 + $0x15c4] ss:$24 sps:$4 sm:$0xff]  }
 0xa56   :  { %6494 = vmatprep.subr.bf16.mxu1 %v17382_v10  ;;  %6465 = vmatprep.subr.bf16.mxu0 %v17415_v21  ;;  %v17440_v10 = vld [vmem:[#allocation7 + $0x13f0] ss:$24 sps:$4 sm:$0xff]   ;;  %v17454_v21 = vld [vmem:[#allocation7 + $0x165c] ss:$24 sps:$4 sm:$0xff]  }
 0xa58   :  { %6104 = vmatmul.mubr.bf16.vlgmr.msra.gmra.mxu1 %v18849_v31  ;;  %v17427_v31 = vld [vmem:[#allocation7 + $0x14e4] ss:$24 sps:$4 sm:$0xff]  }
 0xa59   :  { %6495 = vmatpush1.bf16.msra.mxu1 %v17380_v40  ;;  %6526 = vmatprep.mubr.bf16.mxu1 %v18386_v39  ;;  %v17467_v40 = vld [vmem:[#allocation7 + $0x15c0] ss:$24 sps:$4 sm:$0xff]  }
 0xa5a   :  { %6496 = vmatprep.subr.bf16.mxu1 %v17388_v41  ;;  %6466 = vmatpush1.bf16.msra.mxu0 %v17413_v57  ;;  %v17445_v41 = vld [vmem:[#allocation7 + $0x13c4] ss:$24 sps:$4 sm:$0xff]  }
 0xa5b   :  { %6467 = vmatprep.subr.bf16.mxu0 %v17421_v52  ;;  %v17460_v57 = vld [vmem:[#allocation7 + $0x162c] ss:$24 sps:$4 sm:$0xff]  }
 0xa5c   :  { %v17472_v52 = vld [vmem:[#allocation7 + $0x15cc] ss:$24 sps:$4 sm:$0xff]  }
 0xa5d   :  { %6497 = vmatpush1.bf16.msra.mxu1 %v17386_v11  ;;  %v17475_v11 = vld [vmem:[#allocation7 + $0x1594] ss:$24 sps:$4 sm:$0xff]  }
 0xa5e   :  { %6498 = vmatprep.subr.bf16.mxu1 %v17394_v16  ;;  %6468 = vmatpush1.bf16.msra.mxu0 %v17419_v2  ;;  %v17470_v2 = vld [vmem:[#allocation7 + $0x15c8] ss:$24 sps:$4 sm:$0xff]  }
 0xa5f   :  { %6535 = vmatprep.subr.bf16.mxu0 %v17427_v31  ;;  %v17481_v31 = vld [vmem:[#allocation7 + $0x1564] ss:$24 sps:$4 sm:$0xff]  }
 0xa61   :  { %6499 = vmatpush1.bf16.msra.mxu1 %v17392_v42 }
 0xa62   :  { %6500 = vmatprep.subr.bf16.mxu1 %v17400_v47 }
 0xa65   :  { %6501 = vmatpush1.bf16.msra.mxu1 %v17398_v17  ;;  %v17443_v17 = vld [vmem:[#allocation7 + $0x13c0] ss:$24 sps:$4 sm:$0xff]  }
 0xa66   :  { %6502 = vmatprep.subr.bf16.mxu1 %v17406_v43  ;;  %v17473_v43 = vld [vmem:[#allocation7 + $0x1590] ss:$24 sps:$4 sm:$0xff]  }
 0xa69   :  { %6503 = vmatpush1.bf16.msra.mxu1 %v17404_v51 }
 0xa6a   :  { %6504 = vmatprep.subr.bf16.mxu1 %v17412_v54 }
 0xa6d   :  { %6505 = vmatpush1.bf16.msra.mxu1 %v17410_v20  ;;  %v17446_v20 = vld [vmem:[#allocation7 + $0x1390] ss:$24 sps:$4 sm:$0xff]  }
 0xa6e   :  { %6506 = vmatprep.subr.bf16.mxu1 %v17418_v26  ;;  %v17464_v26 = vld [vmem:[#allocation7 + $0x15f8] ss:$24 sps:$4 sm:$0xff]  }
 0xa71   :  { %6507 = vmatpush1.bf16.msra.mxu1 %v17416_v61  ;;  %v17458_v61 = vld [vmem:[#allocation7 + $0x1628] ss:$24 sps:$4 sm:$0xff]  }
 0xa72   :  { %6508 = vmatprep.subr.bf16.mxu1 %v17424_v9  ;;  %v17478_v9 = vld [vmem:[#allocation7 + $0x159c] ss:$24 sps:$4 sm:$0xff]  }
 0xa75   :  { %6509 = vmatpush1.bf16.msra.mxu1 %v17422_v24  ;;  %v17476_v24 = vld [vmem:[#allocation7 + $0x1598] ss:$24 sps:$4 sm:$0xff]  }
 0xa76   :  { %16361 = vmatprep.subr.bf16.mxu1 %v18384_v0 }
 0xaf8   :  { %v6023_v32 = vpop.f32.mrf.mxu1  ;;  %v6064_v5 = vpop.f32.mrf.mxu0 }
 0xaf9   :  { %v18872_v27 = vadd.f32 %v6023_v32, %v18837_v18  ;;  %v18875_v7 = vadd.f32 %v6064_v5, %v18840_v46  ;;  %v17430_v46 = vld [vmem:[#allocation7 + $0x14b4] ss:$24 sps:$4 sm:$0xff]   ;;  %v17479_v32 = vld [vmem:[#allocation7 + $0x1560] ss:$24 sps:$4 sm:$0xff]  }
 0xafa   :  { %v6025_v35 = vpop.f32.mrf.mxu1  ;;  %v6066_v33 = vpop.f32.mrf.mxu0  ;;  %v17484_v5 = vld [vmem:[#allocation7 + $0x156c] ss:$24 sps:$4 sm:$0xff]  }
 0xafb   :  { %v18878_v36 = vadd.f32 %v6025_v35, %v18843_v3  ;;  %v18881_v12 = vadd.f32 %v6066_v33, %v18846_v62  ;;  %v17428_v62 = vld [vmem:[#allocation7 + $0x14b0] ss:$24 sps:$4 sm:$0xff]   ;;  %v17487_v33 = vld [vmem:[#allocation7 + $0x1534] ss:$24 sps:$4 sm:$0xff]  }
 0xafc   :  { %v6027_v34 = vpop.f32.mrf.mxu1  ;;  %v6068_v13 = vpop.f32.mrf.mxu0  ;;  %v17482_v35 = vld [vmem:[#allocation7 + $0x1568] ss:$24 sps:$4 sm:$0xff]  }
 0xafd   :  { %v17485_v34 = vld [vmem:[#allocation7 + $0x1530] ss:$24 sps:$4 sm:$0xff]  }
 0xafe   :  { %v6028_v37 = vpop.f32.mrf.mxu1  ;;  %v6069_v38 = vpop.f32.mrf.mxu0  ;;  %v17488_v13 = vld [vmem:[#allocation7 + $0x1538] ss:$24 sps:$4 sm:$0xff]  }
 0xaff   :  { %v17490_v37 = vld [vmem:[#allocation7 + $0x153c] ss:$24 sps:$4 sm:$0xff]  }
 0xb00   :  { %v6157_v15 = vpop.f32.mrf.mxu0  ;;  %v17493_v38 = vld [vmem:[#allocation7 + $0x1504] ss:$24 sps:$4 sm:$0xff]  }
 0xb01   :  { %v6158_v14 = vadd.f32 %v18776_v55, %v6157_v15  ;;  %v17431_v55 = vld [vmem:[#allocation7 + $0x1480] ss:$24 sps:$4 sm:$0xff]  }
 0xb02   :  { %v16359_v18 = vpop.f32.mrf.mxu0  ;;  %v17491_v15 = vld [vmem:[#allocation7 + $0x1500] ss:$24 sps:$4 sm:$0xff]  }
 0xb03   :  { %v18884_v23 = vpack.c.bf16 %v6158_v14, %v6158_v14  ;;  %v17496_v14 = vld [vmem:[#allocation7 + $0x150c] ss:$24 sps:$4 sm:$0xff]   ;;  %v17494_v18 = vld [vmem:[#allocation7 + $0x1508] ss:$24 sps:$4 sm:$0xff]  }
 0xb04   :  { %v6160_v19 = vpop.f32.mrf.mxu0 }
 0xb05   :  { %6486 = vmatmul.mubr.bf16.vlgmr.msra.gmra.mxu0 %v18884_v23  ;;  %6527 = vmatmul.mubr.bf16.vlgmr.msra.gmra.mxu1 %v18884_v23 }
 0xb06   :  { %6536 = vmatpush1.bf16.msra.mxu0 %v17425_v44  ;;  %v16360_v3 = vpop.f32.mrf.mxu0  ;;  %16362 = vmatpush3.bf16.msra.mxu1 %v18451_v4  ;;  %v17499_v44 = vld [vmem:[#allocation7 + $0x1664] ss:$24 sps:$4 sm:$0xff]  }
 0xb07   :  { %6537 = vmatprep.subr.bf16.mxu0 %v17430_v46  ;;  %16363 = vmatprep.mubr.msk.bf16.mxu1 %vm18385_vm0, %v18384_v0 }
 0xb08   :  { %6567 = vmatprep.mubr.bf16.mxu0 %v18386_v39  ;;  %6917 = vmatprep.subr.bf16.mxu1 %v17451_v22 }
 0xb0a   :  { %6538 = vmatpush1.bf16.msra.mxu0 %v17428_v62 }
 0xb0b   :  { %6539 = vmatprep.subr.bf16.mxu0 %v17433_v49 }
 0xb0d   :  { %16364 = vmatmul.mubr.msk.bf16.vlgmr.msra.gmra.mxu1 %vm96_vm2, %v15293_v25 }
 0xb0e   :  { %6540 = vmatpush1.bf16.msra.mxu0 %v17431_v55  ;;  %6918 = vmatpush1.bf16.msra.mxu1 %v17449_v50 }
 0xb0f   :  { %6541 = vmatprep.subr.bf16.mxu0 %v17436_v28  ;;  %6919 = vmatprep.subr.bf16.mxu1 %v17457_v29 }
 0xb10   :  { %6949 = vmatprep.mubr.bf16.mxu1 %v18386_v39 }
 0xb12   :  { %6542 = vmatpush1.bf16.msra.mxu0 %v17434_v53  ;;  %6920 = vmatpush1.bf16.msra.mxu1 %v17455_v30  ;;  %v18918_v30 = vld [vmem:[#allocation5] ss:$0 sm:$0xff] }
 0xb13   :  { %6543 = vmatprep.subr.bf16.mxu0 %v17439_v1  ;;  %6921 = vmatprep.subr.bf16.mxu1 %v17463_v56 }
 0xb16   :  { %6544 = vmatpush1.bf16.msra.mxu0 %v17437_v60  ;;  %6922 = vmatpush1.bf16.msra.mxu1 %v17461_v63  ;;  %v17502_v60 = vld [vmem:[#allocation7 + $0x1634] ss:$24 sps:$4 sm:$0xff]  }
 0xb17   :  { %6545 = vmatprep.subr.bf16.mxu0 %v17442_v6  ;;  %6923 = vmatprep.subr.bf16.mxu1 %v17469_v8  ;;  %v17500_v6 = vld [vmem:[#allocation7 + $0x1630] ss:$24 sps:$4 sm:$0xff]   ;;  %v17505_v8 = vld [vmem:[#allocation7 + $0x1604] ss:$24 sps:$4 sm:$0xff]  }
 0xb18   :  { %v6105_v16 = vpop.f32.mrf.mxu1 }
 0xb19   :  { %v18898_v42 = vadd.f32 %v6105_v16, %v18863_v48  ;;  %v17452_v48 = vld [vmem:[#allocation7 + $0x1658] ss:$24 sps:$4 sm:$0xff]   ;;  %v17529_v16 = vld [vmem:[#allocation7 + $0x17a4] ss:$24 sps:$4 sm:$0xff]  }
 0xb1a   :  { %v6107_v47 = vpop.f32.mrf.mxu1  ;;  %6546 = vmatpush1.bf16.msra.mxu0 %v17440_v10  ;;  %6924 = vmatpush1.bf16.msra.mxu1 %v17467_v40  ;;  %v17503_v10 = vld [vmem:[#allocation7 + $0x1600] ss:$24 sps:$4 sm:$0xff]   ;;  %v15343_v40 = vld [vmem:[%s19392_s0 + $0xf] sm:$0x1] }
 0xb1b   :  { %v18901_v51 = vadd.f32 %v6107_v47, %v18866_v59  ;;  %6547 = vmatprep.subr.bf16.mxu0 %v17445_v41  ;;  %6925 = vmatprep.subr.bf16.mxu1 %v17475_v11  ;;  %v17466_v59 = vld [vmem:[#allocation7 + $0x15fc] ss:$24 sps:$4 sm:$0xff]   ;;  %v17521_v41 = vld [vmem:[#allocation7 + $0x17d0] ss:$24 sps:$4 sm:$0xff]  }
 0xb1c   :  { %v6109_v58 = vpop.f32.mrf.mxu1  ;;  %v17508_v11 = vld [vmem:[#allocation7 + $0x15d4] ss:$24 sps:$4 sm:$0xff]   ;;  %v17506_v47 = vld [vmem:[#allocation7 + $0x15d0] ss:$24 sps:$4 sm:$0xff]  }
 0xb1d   :  { %v17509_v58 = vld [vmem:[#allocation7 + $0x15a0] ss:$24 sps:$4 sm:$0xff]  }
 0xb1e   :  { %v6110_v54 = vpop.f32.mrf.mxu1  ;;  %6548 = vmatpush1.bf16.msra.mxu0 %v17443_v17  ;;  %6926 = vmatpush1.bf16.msra.mxu1 %v17473_v43  ;;  %v17527_v17 = vld [vmem:[#allocation7 + $0x17a0] ss:$24 sps:$4 sm:$0xff]   ;;  %v17511_v43 = vld [vmem:[#allocation7 + $0x15a4] ss:$24 sps:$4 sm:$0xff]  }
 0xb1f   :  { %6549 = vmatprep.subr.bf16.mxu0 %v17448_v45  ;;  %6927 = vmatprep.subr.bf16.mxu1 %v17481_v31  ;;  %v17535_v45 = vld [vmem:[#allocation7 + $0x1774] ss:$24 sps:$4 sm:$0xff]   ;;  %v17533_v54 = vld [vmem:[#allocation7 + $0x1770] ss:$24 sps:$4 sm:$0xff]  }
 0xb22   :  { %6550 = vmatpush1.bf16.msra.mxu0 %v17446_v20  ;;  %6928 = vmatpush1.bf16.msra.mxu1 %v17479_v32  ;;  %v17514_v20 = vld [vmem:[#allocation7 + $0x1574] ss:$24 sps:$4 sm:$0xff]  }
 0xb23   :  { %6958 = vmatprep.subr.bf16.mxu0 %v17454_v21  ;;  %6929 = vmatprep.subr.bf16.mxu1 %v17487_v33  ;;  %v17541_v21 = vld [vmem:[#allocation7 + $0x1744] ss:$24 sps:$4 sm:$0xff]   ;;  %v17520_v32 = vld [vmem:[#allocation7 + $0x1514] ss:$24 sps:$4 sm:$0xff]   ;;  %v17518_v33 = vld [vmem:[#allocation7 + $0x1510] ss:$24 sps:$4 sm:$0xff]  }
 0xb25   :  { %6568 = vmatmul.mubr.bf16.vlgmr.msra.gmra.mxu0 %v18884_v23 }
 0xb26   :  { %6959 = vmatpush1.bf16.msra.mxu0 %v17452_v48  ;;  %6990 = vmatprep.mubr.bf16.mxu0 %v18386_v39  ;;  %v17512_v48 = vld [vmem:[#allocation7 + $0x1570] ss:$24 sps:$4 sm:$0xff]  }
 0xb27   :  { %6960 = vmatprep.subr.bf16.mxu0 %v17460_v57  ;;  %6930 = vmatpush1.bf16.msra.mxu1 %v17485_v34  ;;  %v17539_v57 = vld [vmem:[#allocation7 + $0x1740] ss:$24 sps:$4 sm:$0xff]   ;;  %v17526_v34 = vld [vmem:[#allocation7 + $0x17dc] ss:$24 sps:$4 sm:$0xff]  }
 0xb28   :  { %6931 = vmatprep.subr.bf16.mxu1 %v17493_v38  ;;  %v17536_v38 = vld [vmem:[#allocation7 + $0x1778] ss:$24 sps:$4 sm:$0xff]  }
 0xb2a   :  { %6961 = vmatpush1.bf16.msra.mxu0 %v17458_v61  ;;  %v17517_v61 = vld [vmem:[#allocation7 + $0x1544] ss:$24 sps:$4 sm:$0xff]  }
 0xb2b   :  { %6962 = vmatprep.subr.bf16.mxu0 %v17466_v59  ;;  %6932 = vmatpush1.bf16.msra.mxu1 %v17491_v15  ;;  %v17547_v59 = vld [vmem:[#allocation7 + $0x1714] ss:$24 sps:$4 sm:$0xff]  }
 0xb2c   :  { %6999 = vmatprep.subr.bf16.mxu1 %v17499_v44  ;;  %v17544_v15 = vld [vmem:[#allocation7 + $0x174c] ss:$24 sps:$4 sm:$0xff]   ;;  %v17548_v44 = vld [vmem:[#allocation7 + $0x1718] ss:$24 sps:$4 sm:$0xff]  }
 0xb2e   :  { %6963 = vmatpush1.bf16.msra.mxu0 %v17464_v26 }
 0xb2f   :  { %6964 = vmatprep.subr.bf16.mxu0 %v17472_v52 }
 0xb32   :  { %6965 = vmatpush1.bf16.msra.mxu0 %v17470_v2 }
 0xb33   :  { %6966 = vmatprep.subr.bf16.mxu0 %v17478_v9  ;;  %v17515_v9 = vld [vmem:[#allocation7 + $0x1540] ss:$24 sps:$4 sm:$0xff]  }
 0xb36   :  { %6967 = vmatpush1.bf16.msra.mxu0 %v17476_v24  ;;  %v17545_v24 = vld [vmem:[#allocation7 + $0x1710] ss:$24 sps:$4 sm:$0xff]  }
 0xb37   :  { %6968 = vmatprep.subr.bf16.mxu0 %v17484_v5 }
 0xb3a   :  { %6969 = vmatpush1.bf16.msra.mxu0 %v17482_v35 }
 0xb3b   :  { %6970 = vmatprep.subr.bf16.mxu0 %v17490_v37  ;;  %v17530_v37 = vld [vmem:[#allocation7 + $0x17a8] ss:$24 sps:$4 sm:$0xff]  }
 0xb3e   :  { %6971 = vmatpush1.bf16.msra.mxu0 %v17488_v13  ;;  %v17532_v13 = vld [vmem:[#allocation7 + $0x17ac] ss:$24 sps:$4 sm:$0xff]  }
 0xb3f   :  { %6972 = vmatprep.subr.bf16.mxu0 %v17496_v14  ;;  %v17542_v14 = vld [vmem:[#allocation7 + $0x1748] ss:$24 sps:$4 sm:$0xff]  }
 0xb42   :  { %6973 = vmatpush1.bf16.msra.mxu0 %v17494_v18  ;;  %v17550_v18 = vld [vmem:[#allocation7 + $0x171c] ss:$24 sps:$4 sm:$0xff]  }
 0xb43   :  { %16367 = vmatprep.subr.bf16.mxu0 %v18384_v0 }
 0xbc5   :  { %v6487_v23 = vpop.f32.mrf.mxu0  ;;  %v6528_v46 = vpop.f32.mrf.mxu1 }
 0xbc6   :  { %v18907_v19 = vadd.f32 %v6487_v23, %v18872_v27  ;;  %v18910_v22 = vadd.f32 %v6528_v46, %v18875_v7  ;;  %v17497_v7 = vld [vmem:[#allocation7 + $0x1660] ss:$24 sps:$4 sm:$0xff]   ;;  %v17553_v23 = vld [vmem:[#allocation7 + $0x16e4] ss:$24 sps:$4 sm:$0xff]  }
 0xbc7   :  { %v6489_v3 = vpop.f32.mrf.mxu0  ;;  %v6530_v62 = vpop.f32.mrf.mxu1  ;;  %v17551_v46 = vld [vmem:[#allocation7 + $0x16e0] ss:$24 sps:$4 sm:$0xff]  }
 0xbc8   :  { %v18913_v49 = vadd.f32 %v6489_v3, %v18878_v36  ;;  %v18916_v55 = vadd.f32 %v6530_v62, %v18881_v12  ;;  %v17523_v36 = vld [vmem:[#allocation7 + $0x17d4] ss:$24 sps:$4 sm:$0xff]   ;;  %v17554_v62 = vld [vmem:[#allocation7 + $0x16e8] ss:$24 sps:$4 sm:$0xff]  }
 0xbc9   :  { %v6491_v25 = vpop.f32.mrf.mxu0  ;;  %v6532_v50 = vpop.f32.mrf.mxu1  ;;  %v17556_v3 = vld [vmem:[#allocation7 + $0x16ec] ss:$24 sps:$4 sm:$0xff]  }
 0xbca   :  { %v17559_v25 = vld [vmem:[#allocation7 + $0x16b4] ss:$24 sps:$4 sm:$0xff]   ;;  %v17557_v50 = vld [vmem:[#allocation7 + $0x16b0] ss:$24 sps:$4 sm:$0xff]  }
 0xbcb   :  { %v6492_v28 = vpop.f32.mrf.mxu0  ;;  %v6533_v29 = vpop.f32.mrf.mxu1 }
 0xbcc   :  { %v17560_v28 = vld [vmem:[#allocation7 + $0x16b8] ss:$24 sps:$4 sm:$0xff]   ;;  %v17562_v29 = vld [vmem:[#allocation7 + $0x16bc] ss:$24 sps:$4 sm:$0xff]  }
 0xbcd   :  { %v6621_v53 = vpop.f32.mrf.mxu1 }
 0xbce   :  { %v6622_v27 = vadd.f32 %v18918_v30, %v6621_v53  ;;  %v17565_v53 = vld [vmem:[#allocation7 + $0x1684] ss:$24 sps:$4 sm:$0xff]  }
 0xbcf   :  { %v16365_v1 = vpop.f32.mrf.mxu1 }
 0xbd0   :  { %v18921_v56 = vpack.c.bf16 %v6622_v27, %v6622_v27  ;;  %v17563_v27 = vld [vmem:[#allocation7 + $0x1680] ss:$24 sps:$4 sm:$0xff]   ;;  %v17568_v1 = vld [vmem:[#allocation7 + $0x168c] ss:$24 sps:$4 sm:$0xff]  }
 0xbd1   :  { %v6624_v63 = vpop.f32.mrf.mxu1 }
 0xbd2   :  { %6950 = vmatmul.mubr.bf16.vlgmr.msra.gmra.mxu1 %v18921_v56  ;;  %6991 = vmatmul.mubr.bf16.vlgmr.msra.gmra.mxu0 %v18921_v56 }
 0xbd3   :  { %7000 = vmatpush1.bf16.msra.mxu1 %v17497_v7  ;;  %v16366_v12 = vpop.f32.mrf.mxu1  ;;  %16368 = vmatpush3.bf16.msra.mxu0 %v18451_v4  ;;  %v17566_v7 = vld [vmem:[#allocation7 + $0x1688] ss:$24 sps:$4 sm:$0xff]  }
 0xbd4   :  { %7001 = vmatprep.subr.bf16.mxu1 %v17502_v60  ;;  %16369 = vmatprep.mubr.msk.bf16.mxu0 %vm18385_vm0, %v18384_v0 }
 0xbd5   :  { %7031 = vmatprep.mubr.bf16.mxu1 %v18386_v39  ;;  %7381 = vmatprep.subr.bf16.mxu0 %v17523_v36 }
 0xbd7   :  { %7002 = vmatpush1.bf16.msra.mxu1 %v17500_v6 }
 0xbd8   :  { %7003 = vmatprep.subr.bf16.mxu1 %v17505_v8 }
 0xbda   :  { %16370 = vmatmul.mubr.msk.bf16.vlgmr.msra.gmra.mxu0 %vm96_vm2, %v15343_v40 }
 0xbdb   :  { %7004 = vmatpush1.bf16.msra.mxu1 %v17503_v10  ;;  %7382 = vmatpush1.bf16.msra.mxu0 %v17521_v41 }
 0xbdc   :  { %7005 = vmatprep.subr.bf16.mxu1 %v17508_v11  ;;  %7383 = vmatprep.subr.bf16.mxu0 %v17529_v16 }
 0xbdd   :  { %7413 = vmatprep.mubr.bf16.mxu0 %v18386_v39 }
 0xbdf   :  { %7006 = vmatpush1.bf16.msra.mxu1 %v17506_v47  ;;  %7384 = vmatpush1.bf16.msra.mxu0 %v17527_v17 }
 0xbe0   :  { %7007 = vmatprep.subr.bf16.mxu1 %v17511_v43  ;;  %7385 = vmatprep.subr.bf16.mxu0 %v17535_v45  ;;  %v17569_v45 = vld [vmem:[#allocation7 + $0x17e0] ss:$24 sps:$4 sm:$0xff]  }
 0xbe3   :  { %7008 = vmatpush1.bf16.msra.mxu1 %v17509_v58  ;;  %7386 = vmatpush1.bf16.msra.mxu0 %v17533_v54 }
 0xbe4   :  { %7009 = vmatprep.subr.bf16.mxu1 %v17514_v20  ;;  %7387 = vmatprep.subr.bf16.mxu0 %v17541_v21  ;;  %v17595_v20 = vld [vmem:[#allocation7 + $0x1954] ss:$24 sps:$4 sm:$0xff]   ;;  %v17577_v21 = vld [vmem:[#allocation7 + $0x1784] ss:$24 sps:$4 sm:$0xff]  }
 0xbe5   :  { %v6569_v26 = vpop.f32.mrf.mxu0 }
 0xbe6   :  { %v18935_v52 = vadd.f32 %v6569_v26, %v18898_v42  ;;  %v17524_v42 = vld [vmem:[#allocation7 + $0x17d8] ss:$24 sps:$4 sm:$0xff]   ;;  %v17601_v26 = vld [vmem:[#allocation7 + $0x1924] ss:$24 sps:$4 sm:$0xff]  }
 0xbe7   :  { %v6571_v2 = vpop.f32.mrf.mxu0  ;;  %7010 = vmatpush1.bf16.msra.mxu1 %v17512_v48  ;;  %7388 = vmatpush1.bf16.msra.mxu0 %v17539_v57  ;;  %v17575_v48 = vld [vmem:[#allocation7 + $0x1780] ss:$24 sps:$4 sm:$0xff]   ;;  %v15393_v57 = vld [vmem:[%s19392_s0 + $0x10] sm:$0x1] }
 0xbe8   :  { %v18938_v31 = vadd.f32 %v6571_v2, %v18901_v51  ;;  %7011 = vmatprep.subr.bf16.mxu1 %v17517_v61  ;;  %7389 = vmatprep.subr.bf16.mxu0 %v17547_v59  ;;  %v17538_v51 = vld [vmem:[#allocation7 + $0x177c] ss:$24 sps:$4 sm:$0xff]   ;;  %v17593_v61 = vld [vmem:[#allocation7 + $0x1950] ss:$24 sps:$4 sm:$0xff]  }
 0xbe9   :  { %v6573_v5 = vpop.f32.mrf.mxu0  ;;  %v17580_v59 = vld [vmem:[#allocation7 + $0x1754] ss:$24 sps:$4 sm:$0xff]   ;;  %v17578_v2 = vld [vmem:[#allocation7 + $0x1750] ss:$24 sps:$4 sm:$0xff]  }
 0xbea   :  { %v17581_v5 = vld [vmem:[#allocation7 + $0x1720] ss:$24 sps:$4 sm:$0xff]  }
 0xbeb   :  { %v6574_v35 = vpop.f32.mrf.mxu0  ;;  %7012 = vmatpush1.bf16.msra.mxu1 %v17515_v9  ;;  %7390 = vmatpush1.bf16.msra.mxu0 %v17545_v24  ;;  %v17599_v9 = vld [vmem:[#allocation7 + $0x1920] ss:$24 sps:$4 sm:$0xff]   ;;  %v17583_v24 = vld [vmem:[#allocation7 + $0x1724] ss:$24 sps:$4 sm:$0xff]  }
 0xbec   :  { %7013 = vmatprep.subr.bf16.mxu1 %v17520_v32  ;;  %7391 = vmatprep.subr.bf16.mxu0 %v17553_v23  ;;  %v17607_v32 = vld [vmem:[#allocation7 + $0x18f4] ss:$24 sps:$4 sm:$0xff]   ;;  %v17605_v35 = vld [vmem:[#allocation7 + $0x18f0] ss:$24 sps:$4 sm:$0xff]  }
 0xbef   :  { %7014 = vmatpush1.bf16.msra.mxu1 %v17518_v33  ;;  %7392 = vmatpush1.bf16.msra.mxu0 %v17551_v46  ;;  %v17586_v33 = vld [vmem:[#allocation7 + $0x16f4] ss:$24 sps:$4 sm:$0xff]  }
 0xbf0   :  { %7422 = vmatprep.subr.bf16.mxu1 %v17526_v34  ;;  %7393 = vmatprep.subr.bf16.mxu0 %v17559_v25  ;;  %v17613_v34 = vld [vmem:[#allocation7 + $0x18c4] ss:$24 sps:$4 sm:$0xff]   ;;  %v17592_v46 = vld [vmem:[#allocation7 + $0x1694] ss:$24 sps:$4 sm:$0xff]   ;;  %v17590_v25 = vld [vmem:[#allocation7 + $0x1690] ss:$24 sps:$4 sm:$0xff]  }
 0xbf2   :  { %7032 = vmatmul.mubr.bf16.vlgmr.msra.gmra.mxu1 %v18921_v56  ;;  %v17571_v56 = vld [vmem:[#allocation7 + $0x17e4] ss:$24 sps:$4 sm:$0xff]  }
 0xbf3   :  { %7423 = vmatpush1.bf16.msra.mxu1 %v17524_v42  ;;  %7454 = vmatprep.mubr.bf16.mxu1 %v18386_v39  ;;  %v17584_v42 = vld [vmem:[#allocation7 + $0x16f0] ss:$24 sps:$4 sm:$0xff]  }
 0xbf4   :  { %7424 = vmatprep.subr.bf16.mxu1 %v17532_v13  ;;  %7394 = vmatpush1.bf16.msra.mxu0 %v17557_v50  ;;  %v17611_v13 = vld [vmem:[#allocation7 + $0x18c0] ss:$24 sps:$4 sm:$0xff]   ;;  %v17598_v50 = vld [vmem:[#allocation7 + $0x195c] ss:$24 sps:$4 sm:$0xff]  }
 0xbf5   :  { %7395 = vmatprep.subr.bf16.mxu0 %v17565_v53  ;;  %v17608_v53 = vld [vmem:[#allocation7 + $0x18f8] ss:$24 sps:$4 sm:$0xff]  }
 0xbf7   :  { %7425 = vmatpush1.bf16.msra.mxu1 %v17530_v37  ;;  %v17589_v37 = vld [vmem:[#allocation7 + $0x16c4] ss:$24 sps:$4 sm:$0xff]  }
 0xbf8   :  { %7426 = vmatprep.subr.bf16.mxu1 %v17538_v51  ;;  %7396 = vmatpush1.bf16.msra.mxu0 %v17563_v27  ;;  %v17619_v51 = vld [vmem:[#allocation7 + $0x1894] ss:$24 sps:$4 sm:$0xff]  }
 0xbf9   :  { %7463 = vmatprep.subr.bf16.mxu0 %v17571_v56  ;;  %v17616_v27 = vld [vmem:[#allocation7 + $0x18cc] ss:$24 sps:$4 sm:$0xff]   ;;  %v17620_v56 = vld [vmem:[#allocation7 + $0x1898] ss:$24 sps:$4 sm:$0xff]  }
 0xbfb   :  { %7427 = vmatpush1.bf16.msra.mxu1 %v17536_v38 }
 0xbfc   :  { %7428 = vmatprep.subr.bf16.mxu1 %v17544_v15 }
 0xbff   :  { %7429 = vmatpush1.bf16.msra.mxu1 %v17542_v14 }
 0xc00   :  { %7430 = vmatprep.subr.bf16.mxu1 %v17550_v18  ;;  %v17587_v18 = vld [vmem:[#allocation7 + $0x16c0] ss:$24 sps:$4 sm:$0xff]  }
 0xc03   :  { %7431 = vmatpush1.bf16.msra.mxu1 %v17548_v44  ;;  %v17617_v44 = vld [vmem:[#allocation7 + $0x1890] ss:$24 sps:$4 sm:$0xff]  }
 0xc04   :  { %7432 = vmatprep.subr.bf16.mxu1 %v17556_v3 }
 0xc07   :  { %7433 = vmatpush1.bf16.msra.mxu1 %v17554_v62 }
 0xc08   :  { %7434 = vmatprep.subr.bf16.mxu1 %v17562_v29  ;;  %v17602_v29 = vld [vmem:[#allocation7 + $0x1928] ss:$24 sps:$4 sm:$0xff]  }
 0xc0b   :  { %7435 = vmatpush1.bf16.msra.mxu1 %v17560_v28  ;;  %v17604_v28 = vld [vmem:[#allocation7 + $0x192c] ss:$24 sps:$4 sm:$0xff]  }
 0xc0c   :  { %7436 = vmatprep.subr.bf16.mxu1 %v17568_v1  ;;  %v17614_v1 = vld [vmem:[#allocation7 + $0x18c8] ss:$24 sps:$4 sm:$0xff]  }
 0xc0f   :  { %7437 = vmatpush1.bf16.msra.mxu1 %v17566_v7  ;;  %v17622_v7 = vld [vmem:[#allocation7 + $0x189c] ss:$24 sps:$4 sm:$0xff]  }
 0xc10   :  { %16373 = vmatprep.subr.bf16.mxu1 %v18384_v0 }
 0xc92   :  { %v6951_v60 = vpop.f32.mrf.mxu1  ;;  %v6992_v63 = vpop.f32.mrf.mxu0 }
 0xc93   :  { %v18944_v36 = vadd.f32 %v6951_v60, %v18907_v19  ;;  %v18947_v12 = vadd.f32 %v6992_v63, %v18910_v22  ;;  %v17574_v22 = vld [vmem:[#allocation7 + $0x17b4] ss:$24 sps:$4 sm:$0xff]   ;;  %v17625_v60 = vld [vmem:[#allocation7 + $0x1864] ss:$24 sps:$4 sm:$0xff]   ;;  %v17623_v63 = vld [vmem:[#allocation7 + $0x1860] ss:$24 sps:$4 sm:$0xff]  }
 0xc94   :  { %v6953_v6 = vpop.f32.mrf.mxu1  ;;  %v6994_v8 = vpop.f32.mrf.mxu0 }
 0xc95   :  { %v18950_v10 = vadd.f32 %v6953_v6, %v18913_v49  ;;  %v18953_v40 = vadd.f32 %v6994_v8, %v18916_v55  ;;  %v17572_v55 = vld [vmem:[#allocation7 + $0x17b0] ss:$24 sps:$4 sm:$0xff]   ;;  %v17628_v6 = vld [vmem:[#allocation7 + $0x186c] ss:$24 sps:$4 sm:$0xff]  }
 0xc96   :  { %v6955_v41 = vpop.f32.mrf.mxu1  ;;  %v6996_v11 = vpop.f32.mrf.mxu0  ;;  %v17626_v8 = vld [vmem:[#allocation7 + $0x1868] ss:$24 sps:$4 sm:$0xff]  }
 0xc97   :  { %v17631_v41 = vld [vmem:[#allocation7 + $0x1834] ss:$24 sps:$4 sm:$0xff]   ;;  %v17629_v11 = vld [vmem:[#allocation7 + $0x1830] ss:$24 sps:$4 sm:$0xff]  }
 0xc98   :  { %v6956_v16 = vpop.f32.mrf.mxu1  ;;  %v6997_v47 = vpop.f32.mrf.mxu0 }
 0xc99   :  { %v17632_v16 = vld [vmem:[#allocation7 + $0x1838] ss:$24 sps:$4 sm:$0xff]   ;;  %v17634_v47 = vld [vmem:[#allocation7 + $0x183c] ss:$24 sps:$4 sm:$0xff]  }
 0xc9a   :  { %v7085_v17 = vpop.f32.mrf.mxu0 }
 0xc9b   :  { %v7086_v43 = vadd.f32 %v18918_v30, %v7085_v17  ;;  %v17637_v17 = vld [vmem:[#allocation7 + $0x1804] ss:$24 sps:$4 sm:$0xff]  }
 0xc9c   :  { %v16371_v19 = vpop.f32.mrf.mxu0 }
 0xc9d   :  { %v18956_v58 = vpack.c.bf16 %v7086_v43, %v7086_v43  ;;  %v17635_v43 = vld [vmem:[#allocation7 + $0x1800] ss:$24 sps:$4 sm:$0xff]   ;;  %v17640_v19 = vld [vmem:[#allocation7 + $0x180c] ss:$24 sps:$4 sm:$0xff]  }
 0xc9e   :  { %v7088_v54 = vpop.f32.mrf.mxu0 }
 0xc9f   :  { %7414 = vmatmul.mubr.bf16.vlgmr.msra.gmra.mxu0 %v18956_v58  ;;  %7455 = vmatmul.mubr.bf16.vlgmr.msra.gmra.mxu1 %v18956_v58 }
 0xca0   :  { %7464 = vmatpush1.bf16.msra.mxu0 %v17569_v45  ;;  %v16372_v49 = vpop.f32.mrf.mxu0  ;;  %16374 = vmatpush3.bf16.msra.mxu1 %v18451_v4  ;;  %v17638_v45 = vld [vmem:[#allocation7 + $0x1808] ss:$24 sps:$4 sm:$0xff]  }
 0xca1   :  { %7465 = vmatprep.subr.bf16.mxu0 %v17574_v22  ;;  %16375 = vmatprep.mubr.msk.bf16.mxu1 %vm18385_vm0, %v18384_v0 }
 0xca2   :  { %7495 = vmatprep.mubr.bf16.mxu0 %v18386_v39  ;;  %7845 = vmatprep.subr.bf16.mxu1 %v17595_v20 }
 0xca4   :  { %7466 = vmatpush1.bf16.msra.mxu0 %v17572_v55 }
 0xca5   :  { %7467 = vmatprep.subr.bf16.mxu0 %v17577_v21 }
 0xca7   :  { %16376 = vmatmul.mubr.msk.bf16.vlgmr.msra.gmra.mxu1 %vm96_vm2, %v15393_v57 }
 0xca8   :  { %7468 = vmatpush1.bf16.msra.mxu0 %v17575_v48  ;;  %7846 = vmatpush1.bf16.msra.mxu1 %v17593_v61 }
 0xca9   :  { %7469 = vmatprep.subr.bf16.mxu0 %v17580_v59  ;;  %7847 = vmatprep.subr.bf16.mxu1 %v17601_v26 }
 0xcaa   :  { %7877 = vmatprep.mubr.bf16.mxu1 %v18386_v39 }
 0xcac   :  { %7470 = vmatpush1.bf16.msra.mxu0 %v17578_v2  ;;  %7848 = vmatpush1.bf16.msra.mxu1 %v17599_v9 }
 0xcad   :  { %7471 = vmatprep.subr.bf16.mxu0 %v17583_v24  ;;  %7849 = vmatprep.subr.bf16.mxu1 %v17607_v32  ;;  %v17641_v32 = vld [vmem:[#allocation7 + $0x1960] ss:$24 sps:$4 sm:$0xff]  }
 0xcb0   :  { %7472 = vmatpush1.bf16.msra.mxu0 %v17581_v5  ;;  %7850 = vmatpush1.bf16.msra.mxu1 %v17605_v35 }
 0xcb1   :  { %7473 = vmatprep.subr.bf16.mxu0 %v17586_v33  ;;  %7851 = vmatprep.subr.bf16.mxu1 %v17613_v34  ;;  %v17667_v33 = vld [vmem:[#allocation7 + $0x1ad4] ss:$24 sps:$4 sm:$0xff]   ;;  %v17649_v34 = vld [vmem:[#allocation7 + $0x1904] ss:$24 sps:$4 sm:$0xff]  }
 0xcb2   :  { %v7033_v38 = vpop.f32.mrf.mxu1 }
 0xcb3   :  { %v18970_v15 = vadd.f32 %v7033_v38, %v18935_v52  ;;  %v17596_v52 = vld [vmem:[#allocation7 + $0x1958] ss:$24 sps:$4 sm:$0xff]   ;;  %v17673_v38 = vld [vmem:[#allocation7 + $0x1aa4] ss:$24 sps:$4 sm:$0xff]  }
 0xcb4   :  { %v7035_v14 = vpop.f32.mrf.mxu1  ;;  %7474 = vmatpush1.bf16.msra.mxu0 %v17584_v42  ;;  %7852 = vmatpush1.bf16.msra.mxu1 %v17611_v13  ;;  %v17647_v42 = vld [vmem:[#allocation7 + $0x1900] ss:$24 sps:$4 sm:$0xff]   ;;  %v15443_v13 = vld [vmem:[%s19392_s0 + $0x11] sm:$0x1] }
 0xcb5   :  { %v18973_v23 = vadd.f32 %v7035_v14, %v18938_v31  ;;  %7475 = vmatprep.subr.bf16.mxu0 %v17589_v37  ;;  %7853 = vmatprep.subr.bf16.mxu1 %v17619_v51  ;;  %v17610_v31 = vld [vmem:[#allocation7 + $0x18fc] ss:$24 sps:$4 sm:$0xff]   ;;  %v17665_v37 = vld [vmem:[#allocation7 + $0x1ad0] ss:$24 sps:$4 sm:$0xff]  }
 0xcb6   :  { %v7037_v3 = vpop.f32.mrf.mxu1  ;;  %v17652_v51 = vld [vmem:[#allocation7 + $0x18d4] ss:$24 sps:$4 sm:$0xff]   ;;  %v17650_v14 = vld [vmem:[#allocation7 + $0x18d0] ss:$24 sps:$4 sm:$0xff]  }
 0xcb7   :  { %v17653_v3 = vld [vmem:[#allocation7 + $0x18a0] ss:$24 sps:$4 sm:$0xff]  }
 0xcb8   :  { %v7038_v62 = vpop.f32.mrf.mxu1  ;;  %7476 = vmatpush1.bf16.msra.mxu0 %v17587_v18  ;;  %7854 = vmatpush1.bf16.msra.mxu1 %v17617_v44  ;;  %v17671_v18 = vld [vmem:[#allocation7 + $0x1aa0] ss:$24 sps:$4 sm:$0xff]   ;;  %v17655_v44 = vld [vmem:[#allocation7 + $0x18a4] ss:$24 sps:$4 sm:$0xff]  }
 0xcb9   :  { %7477 = vmatprep.subr.bf16.mxu0 %v17592_v46  ;;  %7855 = vmatprep.subr.bf16.mxu1 %v17625_v60  ;;  %v17679_v46 = vld [vmem:[#allocation7 + $0x1a74] ss:$24 sps:$4 sm:$0xff]   ;;  %v17677_v62 = vld [vmem:[#allocation7 + $0x1a70] ss:$24 sps:$4 sm:$0xff]  }
 0xcbc   :  { %7478 = vmatpush1.bf16.msra.mxu0 %v17590_v25  ;;  %7856 = vmatpush1.bf16.msra.mxu1 %v17623_v63  ;;  %v17658_v25 = vld [vmem:[#allocation7 + $0x1874] ss:$24 sps:$4 sm:$0xff]  }
 0xcbd   :  { %7886 = vmatprep.subr.bf16.mxu0 %v17598_v50  ;;  %7857 = vmatprep.subr.bf16.mxu1 %v17631_v41  ;;  %v17685_v50 = vld [vmem:[#allocation7 + $0x1a44] ss:$24 sps:$4 sm:$0xff]   ;;  %v17664_v63 = vld [vmem:[#allocation7 + $0x1814] ss:$24 sps:$4 sm:$0xff]   ;;  %v17662_v41 = vld [vmem:[#allocation7 + $0x1810] ss:$24 sps:$4 sm:$0xff]  }
 0xcbf   :  { %7496 = vmatmul.mubr.bf16.vlgmr.msra.gmra.mxu0 %v18956_v58  ;;  %v17643_v58 = vld [vmem:[#allocation7 + $0x1964] ss:$24 sps:$4 sm:$0xff]  }
 0xcc0   :  { %7887 = vmatpush1.bf16.msra.mxu0 %v17596_v52  ;;  %7918 = vmatprep.mubr.bf16.mxu0 %v18386_v39  ;;  %v17656_v52 = vld [vmem:[#allocation7 + $0x1870] ss:$24 sps:$4 sm:$0xff]  }
 0xcc1   :  { %7888 = vmatprep.subr.bf16.mxu0 %v17604_v28  ;;  %7858 = vmatpush1.bf16.msra.mxu1 %v17629_v11  ;;  %v17683_v28 = vld [vmem:[#allocation7 + $0x1a40] ss:$24 sps:$4 sm:$0xff]   ;;  %v17670_v11 = vld [vmem:[#allocation7 + $0x1adc] ss:$24 sps:$4 sm:$0xff]  }
 0xcc2   :  { %7859 = vmatprep.subr.bf16.mxu1 %v17637_v17  ;;  %v17680_v17 = vld [vmem:[#allocation7 + $0x1a78] ss:$24 sps:$4 sm:$0xff]  }
 0xcc4   :  { %7889 = vmatpush1.bf16.msra.mxu0 %v17602_v29  ;;  %v17661_v29 = vld [vmem:[#allocation7 + $0x1844] ss:$24 sps:$4 sm:$0xff]  }
 0xcc5   :  { %7890 = vmatprep.subr.bf16.mxu0 %v17610_v31  ;;  %7860 = vmatpush1.bf16.msra.mxu1 %v17635_v43  ;;  %v17691_v31 = vld [vmem:[#allocation7 + $0x1a14] ss:$24 sps:$4 sm:$0xff]  }
 0xcc6   :  { %7927 = vmatprep.subr.bf16.mxu1 %v17643_v58  ;;  %v17688_v43 = vld [vmem:[#allocation7 + $0x1a4c] ss:$24 sps:$4 sm:$0xff]   ;;  %v17692_v58 = vld [vmem:[#allocation7 + $0x1a18] ss:$24 sps:$4 sm:$0xff]  }
 0xcc8   :  { %7891 = vmatpush1.bf16.msra.mxu0 %v17608_v53 }
 0xcc9   :  { %7892 = vmatprep.subr.bf16.mxu0 %v17616_v27 }
 0xccc   :  { %7893 = vmatpush1.bf16.msra.mxu0 %v17614_v1 }
 0xccd   :  { %7894 = vmatprep.subr.bf16.mxu0 %v17622_v7  ;;  %v17659_v7 = vld [vmem:[#allocation7 + $0x1840] ss:$24 sps:$4 sm:$0xff]  }
 0xcd0   :  { %7895 = vmatpush1.bf16.msra.mxu0 %v17620_v56  ;;  %v17689_v56 = vld [vmem:[#allocation7 + $0x1a10] ss:$24 sps:$4 sm:$0xff]  }
 0xcd1   :  { %7896 = vmatprep.subr.bf16.mxu0 %v17628_v6 }
 0xcd4   :  { %7897 = vmatpush1.bf16.msra.mxu0 %v17626_v8 }
 0xcd5   :  { %7898 = vmatprep.subr.bf16.mxu0 %v17634_v47  ;;  %v17674_v47 = vld [vmem:[#allocation7 + $0x1aa8] ss:$24 sps:$4 sm:$0xff]  }
 0xcd8   :  { %7899 = vmatpush1.bf16.msra.mxu0 %v17632_v16  ;;  %v17676_v16 = vld [vmem:[#allocation7 + $0x1aac] ss:$24 sps:$4 sm:$0xff]  }
 0xcd9   :  { %7900 = vmatprep.subr.bf16.mxu0 %v17640_v19  ;;  %v17686_v19 = vld [vmem:[#allocation7 + $0x1a48] ss:$24 sps:$4 sm:$0xff]  }
 0xcdc   :  { %7901 = vmatpush1.bf16.msra.mxu0 %v17638_v45  ;;  %v17694_v45 = vld [vmem:[#allocation7 + $0x1a1c] ss:$24 sps:$4 sm:$0xff]  }
 0xcdd   :  { %16379 = vmatprep.subr.bf16.mxu0 %v18384_v0 }
 0xd5f   :  { %v7415_v22 = vpop.f32.mrf.mxu0  ;;  %v7456_v54 = vpop.f32.mrf.mxu1 }
 0xd60   :  { %v18979_v20 = vadd.f32 %v7415_v22, %v18944_v36  ;;  %v18982_v49 = vadd.f32 %v7456_v54, %v18947_v12  ;;  %v17646_v12 = vld [vmem:[#allocation7 + $0x1934] ss:$24 sps:$4 sm:$0xff]   ;;  %v17697_v22 = vld [vmem:[#allocation7 + $0x19e4] ss:$24 sps:$4 sm:$0xff]   ;;  %v17695_v54 = vld [vmem:[#allocation7 + $0x19e0] ss:$24 sps:$4 sm:$0xff]  }
 0xd61   :  { %v7417_v55 = vpop.f32.mrf.mxu0  ;;  %v7458_v21 = vpop.f32.mrf.mxu1 }
 0xd62   :  { %v18985_v48 = vadd.f32 %v7417_v55, %v18950_v10  ;;  %v18988_v57 = vadd.f32 %v7458_v21, %v18953_v40  ;;  %v17644_v40 = vld [vmem:[#allocation7 + $0x1930] ss:$24 sps:$4 sm:$0xff]   ;;  %v17700_v55 = vld [vmem:[#allocation7 + $0x19ec] ss:$24 sps:$4 sm:$0xff]  }
 0xd63   :  { %v7419_v61 = vpop.f32.mrf.mxu0  ;;  %v7460_v59 = vpop.f32.mrf.mxu1  ;;  %v17698_v21 = vld [vmem:[#allocation7 + $0x19e8] ss:$24 sps:$4 sm:$0xff]  }
 0xd64   :  { %v17703_v61 = vld [vmem:[#allocation7 + $0x19b4] ss:$24 sps:$4 sm:$0xff]   ;;  %v17701_v59 = vld [vmem:[#allocation7 + $0x19b0] ss:$24 sps:$4 sm:$0xff]  }
 0xd65   :  { %v7420_v26 = vpop.f32.mrf.mxu0  ;;  %v7461_v2 = vpop.f32.mrf.mxu1 }
 0xd66   :  { %v17704_v26 = vld [vmem:[#allocation7 + $0x19b8] ss:$24 sps:$4 sm:$0xff]   ;;  %v17706_v2 = vld [vmem:[#allocation7 + $0x19bc] ss:$24 sps:$4 sm:$0xff]  }
 0xd67   :  { %v7549_v9 = vpop.f32.mrf.mxu1 }
 0xd68   :  { %v7550_v24 = vadd.f32 %v18918_v30, %v7549_v9  ;;  %v17709_v9 = vld [vmem:[#allocation7 + $0x1984] ss:$24 sps:$4 sm:$0xff]  }
 0xd69   :  { %v16377_v36 = vpop.f32.mrf.mxu1 }
 0xd6a   :  { %v18991_v5 = vpack.c.bf16 %v7550_v24, %v7550_v24  ;;  %v17707_v24 = vld [vmem:[#allocation7 + $0x1980] ss:$24 sps:$4 sm:$0xff]   ;;  %v17712_v36 = vld [vmem:[#allocation7 + $0x198c] ss:$24 sps:$4 sm:$0xff]  }
 0xd6b   :  { %v7552_v35 = vpop.f32.mrf.mxu1 }
 0xd6c   :  { %7878 = vmatmul.mubr.bf16.vlgmr.msra.gmra.mxu1 %v18991_v5  ;;  %7919 = vmatmul.mubr.bf16.vlgmr.msra.gmra.mxu0 %v18991_v5 }
 0xd6d   :  { %7928 = vmatpush1.bf16.msra.mxu1 %v17641_v32  ;;  %v16378_v10 = vpop.f32.mrf.mxu1  ;;  %16380 = vmatpush3.bf16.msra.mxu0 %v18451_v4  ;;  %v17710_v32 = vld [vmem:[#allocation7 + $0x1988] ss:$24 sps:$4 sm:$0xff]  }
 0xd6e   :  { %7929 = vmatprep.subr.bf16.mxu1 %v17646_v12  ;;  %16381 = vmatprep.mubr.msk.bf16.mxu0 %vm18385_vm0, %v18384_v0 }
 0xd6f   :  { %7959 = vmatprep.mubr.bf16.mxu1 %v18386_v39  ;;  %8309 = vmatprep.subr.bf16.mxu0 %v17667_v33 }
 0xd71   :  { %7930 = vmatpush1.bf16.msra.mxu1 %v17644_v40 }
 0xd72   :  { %7931 = vmatprep.subr.bf16.mxu1 %v17649_v34 }
 0xd74   :  { %16382 = vmatmul.mubr.msk.bf16.vlgmr.msra.gmra.mxu0 %vm96_vm2, %v15443_v13 }
 0xd75   :  { %7932 = vmatpush1.bf16.msra.mxu1 %v17647_v42  ;;  %8310 = vmatpush1.bf16.msra.mxu0 %v17665_v37 }
 0xd76   :  { %7933 = vmatprep.subr.bf16.mxu1 %v17652_v51  ;;  %8311 = vmatprep.subr.bf16.mxu0 %v17673_v38 }
 0xd77   :  { %8341 = vmatprep.mubr.bf16.mxu0 %v18386_v39 }
 0xd79   :  { %7934 = vmatpush1.bf16.msra.mxu1 %v17650_v14  ;;  %8312 = vmatpush1.bf16.msra.mxu0 %v17671_v18 }
 0xd7a   :  { %7935 = vmatprep.subr.bf16.mxu1 %v17655_v44  ;;  %8313 = vmatprep.subr.bf16.mxu0 %v17679_v46  ;;  %v17713_v46 = vld [vmem:[#allocation7 + $0x1ae0] ss:$24 sps:$4 sm:$0xff]  }
 0xd7d   :  { %7936 = vmatpush1.bf16.msra.mxu1 %v17653_v3  ;;  %8314 = vmatpush1.bf16.msra.mxu0 %v17677_v62 }
 0xd7e   :  { %7937 = vmatprep.subr.bf16.mxu1 %v17658_v25  ;;  %8315 = vmatprep.subr.bf16.mxu0 %v17685_v50  ;;  %v17739_v25 = vld [vmem:[#allocation7 + $0x1c54] ss:$24 sps:$4 sm:$0xff]   ;;  %v17721_v50 = vld [vmem:[#allocation7 + $0x1a84] ss:$24 sps:$4 sm:$0xff]  }
 0xd7f   :  { %v7497_v53 = vpop.f32.mrf.mxu0 }
 0xd80   :  { %v19005_v27 = vadd.f32 %v7497_v53, %v18970_v15  ;;  %v17668_v15 = vld [vmem:[#allocation7 + $0x1ad8] ss:$24 sps:$4 sm:$0xff]  }
 0xd81   :  { %v7499_v1 = vpop.f32.mrf.mxu0  ;;  %7938 = vmatpush1.bf16.msra.mxu1 %v17656_v52  ;;  %8316 = vmatpush1.bf16.msra.mxu0 %v17683_v28  ;;  %v15493_v52 = vld [vmem:[%s19392_s0 + $0x12] sm:$0x1]  ;;  %v17737_v28 = vld [vmem:[#allocation7 + $0x1c50] ss:$24 sps:$4 sm:$0xff]  }
 0xd82   :  { %v19008_v60 = vadd.f32 %v7499_v1, %v18973_v23  ;;  %7939 = vmatprep.subr.bf16.mxu1 %v17661_v29  ;;  %8317 = vmatprep.subr.bf16.mxu0 %v17691_v31  ;;  %v17682_v23 = vld [vmem:[#allocation7 + $0x1a7c] ss:$24 sps:$4 sm:$0xff]   ;;  %v17722_v53 = vld [vmem:[#allocation7 + $0x1a50] ss:$24 sps:$4 sm:$0xff]   ;;  %v17743_v1 = vld [vmem:[#allocation7 + $0x1c20] ss:$24 sps:$4 sm:$0xff]  }
 0xd83   :  { %v7501_v6 = vpop.f32.mrf.mxu0  ;;  %v17724_v29 = vld [vmem:[#allocation7 + $0x1a54] ss:$24 sps:$4 sm:$0xff]   ;;  %v17745_v31 = vld [vmem:[#allocation7 + $0x1c24] ss:$24 sps:$4 sm:$0xff]  }
 0xd84   :  { %v17749_v6 = vld [vmem:[#allocation7 + $0x1bf0] ss:$24 sps:$4 sm:$0xff]  }
 0xd85   :  { %v7502_v8 = vpop.f32.mrf.mxu0  ;;  %7940 = vmatpush1.bf16.msra.mxu1 %v17659_v7  ;;  %8318 = vmatpush1.bf16.msra.mxu0 %v17689_v56  ;;  %v17727_v7 = vld [vmem:[#allocation7 + $0x1a24] ss:$24 sps:$4 sm:$0xff]   ;;  %v17751_v56 = vld [vmem:[#allocation7 + $0x1bf4] ss:$24 sps:$4 sm:$0xff]  }
 0xd86   :  { %7941 = vmatprep.subr.bf16.mxu1 %v17664_v63  ;;  %8319 = vmatprep.subr.bf16.mxu0 %v17697_v22  ;;  %v17725_v63 = vld [vmem:[#allocation7 + $0x1a20] ss:$24 sps:$4 sm:$0xff]   ;;  %v17730_v8 = vld [vmem:[#allocation7 + $0x19f4] ss:$24 sps:$4 sm:$0xff]  }
 0xd87   :  { %v17736_v22 = vld [vmem:[#allocation7 + $0x1994] ss:$24 sps:$4 sm:$0xff]  }
 0xd89   :  { %7942 = vmatpush1.bf16.msra.mxu1 %v17662_v41  ;;  %8320 = vmatpush1.bf16.msra.mxu0 %v17695_v54  ;;  %v17757_v41 = vld [vmem:[#allocation7 + $0x1bc4] ss:$24 sps:$4 sm:$0xff]  }
 0xd8a   :  { %8350 = vmatprep.subr.bf16.mxu1 %v17670_v11  ;;  %8321 = vmatprep.subr.bf16.mxu0 %v17703_v61  ;;  %v17728_v11 = vld [vmem:[#allocation7 + $0x19f0] ss:$24 sps:$4 sm:$0xff]   ;;  %v17742_v61 = vld [vmem:[#allocation7 + $0x1c5c] ss:$24 sps:$4 sm:$0xff]  }
 0xd8c   :  { %7960 = vmatmul.mubr.bf16.vlgmr.msra.gmra.mxu1 %v18991_v5  ;;  %v17715_v5 = vld [vmem:[#allocation7 + $0x1ae4] ss:$24 sps:$4 sm:$0xff]  }
 0xd8d   :  { %8351 = vmatpush1.bf16.msra.mxu1 %v17668_v15  ;;  %8382 = vmatprep.mubr.bf16.mxu1 %v18386_v39  ;;  %v17755_v15 = vld [vmem:[#allocation7 + $0x1bc0] ss:$24 sps:$4 sm:$0xff]  }
 0xd8e   :  { %8352 = vmatprep.subr.bf16.mxu1 %v17676_v16  ;;  %8322 = vmatpush1.bf16.msra.mxu0 %v17701_v59  ;;  %v17733_v16 = vld [vmem:[#allocation7 + $0x19c4] ss:$24 sps:$4 sm:$0xff]  }
 0xd8f   :  { %8323 = vmatprep.subr.bf16.mxu0 %v17709_v9  ;;  %v17748_v59 = vld [vmem:[#allocation7 + $0x1c2c] ss:$24 sps:$4 sm:$0xff]  }
 0xd90   :  { %v17760_v9 = vld [vmem:[#allocation7 + $0x1bcc] ss:$24 sps:$4 sm:$0xff]  }
 0xd91   :  { %8353 = vmatpush1.bf16.msra.mxu1 %v17674_v47  ;;  %v17763_v47 = vld [vmem:[#allocation7 + $0x1b94] ss:$24 sps:$4 sm:$0xff]  }
 0xd92   :  { %8354 = vmatprep.subr.bf16.mxu1 %v17682_v23  ;;  %8324 = vmatpush1.bf16.msra.mxu0 %v17707_v24  ;;  %v17758_v24 = vld [vmem:[#allocation7 + $0x1bc8] ss:$24 sps:$4 sm:$0xff]  }
 0xd93   :  { %8391 = vmatprep.subr.bf16.mxu0 %v17715_v5  ;;  %v17769_v5 = vld [vmem:[#allocation7 + $0x1b64] ss:$24 sps:$4 sm:$0xff]  }
 0xd95   :  { %8355 = vmatpush1.bf16.msra.mxu1 %v17680_v17 }
 0xd96   :  { %8356 = vmatprep.subr.bf16.mxu1 %v17688_v43 }
 0xd99   :  { %8357 = vmatpush1.bf16.msra.mxu1 %v17686_v19  ;;  %v17731_v19 = vld [vmem:[#allocation7 + $0x19c0] ss:$24 sps:$4 sm:$0xff]  }
 0xd9a   :  { %8358 = vmatprep.subr.bf16.mxu1 %v17694_v45  ;;  %v17761_v45 = vld [vmem:[#allocation7 + $0x1b90] ss:$24 sps:$4 sm:$0xff]  }
 0xd9d   :  { %8359 = vmatpush1.bf16.msra.mxu1 %v17692_v58 }
 0xd9e   :  { %8360 = vmatprep.subr.bf16.mxu1 %v17700_v55 }
 0xda1   :  { %8361 = vmatpush1.bf16.msra.mxu1 %v17698_v21  ;;  %v17734_v21 = vld [vmem:[#allocation7 + $0x1990] ss:$24 sps:$4 sm:$0xff]  }
 0xda2   :  { %8362 = vmatprep.subr.bf16.mxu1 %v17706_v2  ;;  %v17752_v2 = vld [vmem:[#allocation7 + $0x1bf8] ss:$24 sps:$4 sm:$0xff]  }
 0xda5   :  { %8363 = vmatpush1.bf16.msra.mxu1 %v17704_v26  ;;  %v17746_v26 = vld [vmem:[#allocation7 + $0x1c28] ss:$24 sps:$4 sm:$0xff]  }
 0xda6   :  { %8364 = vmatprep.subr.bf16.mxu1 %v17712_v36  ;;  %v17766_v36 = vld [vmem:[#allocation7 + $0x1b9c] ss:$24 sps:$4 sm:$0xff]  }
 0xda9   :  { %8365 = vmatpush1.bf16.msra.mxu1 %v17710_v32  ;;  %v17764_v32 = vld [vmem:[#allocation7 + $0x1b98] ss:$24 sps:$4 sm:$0xff]  }
 0xdaa   :  { %16385 = vmatprep.subr.bf16.mxu1 %v18384_v0 }
 0xe2c   :  { %v7879_v12 = vpop.f32.mrf.mxu1  ;;  %v7920_v35 = vpop.f32.mrf.mxu0 }
 0xe2d   :  { %v19014_v33 = vadd.f32 %v7879_v12, %v18979_v20  ;;  %v19017_v10 = vadd.f32 %v7920_v35, %v18982_v49  ;;  %v17718_v49 = vld [vmem:[#allocation7 + $0x1ab4] ss:$24 sps:$4 sm:$0xff]   ;;  %v17767_v12 = vld [vmem:[#allocation7 + $0x1b60] ss:$24 sps:$4 sm:$0xff]  }
 0xe2e   :  { %v7881_v40 = vpop.f32.mrf.mxu1  ;;  %v7922_v34 = vpop.f32.mrf.mxu0  ;;  %v17772_v35 = vld [vmem:[#allocation7 + $0x1b6c] ss:$24 sps:$4 sm:$0xff]  }
 0xe2f   :  { %v19020_v42 = vadd.f32 %v7881_v40, %v18985_v48  ;;  %v19023_v13 = vadd.f32 %v7922_v34, %v18988_v57  ;;  %v17716_v57 = vld [vmem:[#allocation7 + $0x1ab0] ss:$24 sps:$4 sm:$0xff]   ;;  %v17775_v34 = vld [vmem:[#allocation7 + $0x1b34] ss:$24 sps:$4 sm:$0xff]  }
 0xe30   :  { %v7883_v37 = vpop.f32.mrf.mxu1  ;;  %v7924_v51 = vpop.f32.mrf.mxu0  ;;  %v17770_v40 = vld [vmem:[#allocation7 + $0x1b68] ss:$24 sps:$4 sm:$0xff]  }
 0xe31   :  { %v17773_v37 = vld [vmem:[#allocation7 + $0x1b30] ss:$24 sps:$4 sm:$0xff]  }
 0xe32   :  { %v7884_v38 = vpop.f32.mrf.mxu1  ;;  %v7925_v14 = vpop.f32.mrf.mxu0  ;;  %v17776_v51 = vld [vmem:[#allocation7 + $0x1b38] ss:$24 sps:$4 sm:$0xff]  }
 0xe33   :  { %v17778_v38 = vld [vmem:[#allocation7 + $0x1b3c] ss:$24 sps:$4 sm:$0xff]  }
 0xe34   :  { %v8013_v18 = vpop.f32.mrf.mxu0  ;;  %v17781_v14 = vld [vmem:[#allocation7 + $0x1b04] ss:$24 sps:$4 sm:$0xff]  }
 0xe35   :  { %v8014_v44 = vadd.f32 %v18918_v30, %v8013_v18  ;;  %v17719_v30 = vld [vmem:[#allocation7 + $0x1a80] ss:$24 sps:$4 sm:$0xff]  }
 0xe36   :  { %v16383_v20 = vpop.f32.mrf.mxu0  ;;  %v17779_v18 = vld [vmem:[#allocation7 + $0x1b00] ss:$24 sps:$4 sm:$0xff]  }
 0xe37   :  { %v19026_v3 = vpack.c.bf16 %v8014_v44, %v8014_v44  ;;  %v17784_v44 = vld [vmem:[#allocation7 + $0x1b0c] ss:$24 sps:$4 sm:$0xff]   ;;  %v17782_v20 = vld [vmem:[#allocation7 + $0x1b08] ss:$24 sps:$4 sm:$0xff]  }
 0xe38   :  { %v8016_v62 = vpop.f32.mrf.mxu0 }
 0xe39   :  { %8342 = vmatmul.mubr.bf16.vlgmr.msra.gmra.mxu0 %v19026_v3  ;;  %8383 = vmatmul.mubr.bf16.vlgmr.msra.gmra.mxu1 %v19026_v3 }
 0xe3a   :  { %8392 = vmatpush1.bf16.msra.mxu0 %v17713_v46  ;;  %v16384_v48 = vpop.f32.mrf.mxu0  ;;  %16386 = vmatpush3.bf16.msra.mxu1 %v18451_v4  ;;  %v17787_v46 = vld [vmem:[#allocation7 + $0x1c64] ss:$24 sps:$4 sm:$0xff]  }
 0xe3b   :  { %8393 = vmatprep.subr.bf16.mxu0 %v17718_v49  ;;  %16387 = vmatprep.mubr.msk.bf16.mxu1 %vm18385_vm0, %v18384_v0 }
 0xe3c   :  { %8423 = vmatprep.mubr.bf16.mxu0 %v18386_v39  ;;  %8773 = vmatprep.subr.bf16.mxu1 %v17739_v25 }
 0xe3e   :  { %8394 = vmatpush1.bf16.msra.mxu0 %v17716_v57 }
 0xe3f   :  { %8395 = vmatprep.subr.bf16.mxu0 %v17721_v50 }
 0xe41   :  { %16388 = vmatmul.mubr.msk.bf16.vlgmr.msra.gmra.mxu1 %vm96_vm2, %v15493_v52 }
 0xe42   :  { %8396 = vmatpush1.bf16.msra.mxu0 %v17719_v30  ;;  %8774 = vmatpush1.bf16.msra.mxu1 %v17737_v28 }
 0xe43   :  { %8397 = vmatprep.subr.bf16.mxu0 %v17724_v29  ;;  %8775 = vmatprep.subr.bf16.mxu1 %v17745_v31 }
 0xe44   :  { %8805 = vmatprep.mubr.bf16.mxu1 %v18386_v39 }
 0xe46   :  { %8398 = vmatpush1.bf16.msra.mxu0 %v17722_v53  ;;  %8776 = vmatpush1.bf16.msra.mxu1 %v17743_v1  ;;  %v19060_v1 = vld [vmem:[#allocation5] ss:$0 sm:$0xff] }
 0xe47   :  { %8399 = vmatprep.subr.bf16.mxu0 %v17727_v7  ;;  %8777 = vmatprep.subr.bf16.mxu1 %v17751_v56 }
 0xe4a   :  { %8400 = vmatpush1.bf16.msra.mxu0 %v17725_v63  ;;  %8778 = vmatpush1.bf16.msra.mxu1 %v17749_v6  ;;  %v17790_v63 = vld [vmem:[#allocation7 + $0x1c34] ss:$24 sps:$4 sm:$0xff]  }
 0xe4b   :  { %8401 = vmatprep.subr.bf16.mxu0 %v17730_v8  ;;  %8779 = vmatprep.subr.bf16.mxu1 %v17757_v41  ;;  %v17788_v8 = vld [vmem:[#allocation7 + $0x1c30] ss:$24 sps:$4 sm:$0xff]   ;;  %v17793_v41 = vld [vmem:[#allocation7 + $0x1c04] ss:$24 sps:$4 sm:$0xff]  }
 0xe4c   :  { %v7961_v23 = vpop.f32.mrf.mxu1 }
 0xe4d   :  { %v19040_v17 = vadd.f32 %v7961_v23, %v19005_v27  ;;  %v17740_v27 = vld [vmem:[#allocation7 + $0x1c58] ss:$24 sps:$4 sm:$0xff]   ;;  %v17817_v23 = vld [vmem:[#allocation7 + $0x1da4] ss:$24 sps:$4 sm:$0xff]  }
 0xe4e   :  { %v7963_v43 = vpop.f32.mrf.mxu1  ;;  %8402 = vmatpush1.bf16.msra.mxu0 %v17728_v11  ;;  %8780 = vmatpush1.bf16.msra.mxu1 %v17755_v15  ;;  %v17791_v11 = vld [vmem:[#allocation7 + $0x1c00] ss:$24 sps:$4 sm:$0xff]   ;;  %v15543_v15 = vld [vmem:[%s19392_s0 + $0x13] sm:$0x1] }
 0xe4f   :  { %v19043_v58 = vadd.f32 %v7963_v43, %v19008_v60  ;;  %8403 = vmatprep.subr.bf16.mxu0 %v17733_v16  ;;  %8781 = vmatprep.subr.bf16.mxu1 %v17763_v47  ;;  %v17754_v60 = vld [vmem:[#allocation7 + $0x1bfc] ss:$24 sps:$4 sm:$0xff]   ;;  %v17809_v16 = vld [vmem:[#allocation7 + $0x1dd0] ss:$24 sps:$4 sm:$0xff]  }
 0xe50   :  { %v7965_v54 = vpop.f32.mrf.mxu1  ;;  %v17796_v47 = vld [vmem:[#allocation7 + $0x1bd4] ss:$24 sps:$4 sm:$0xff]   ;;  %v17794_v43 = vld [vmem:[#allocation7 + $0x1bd0] ss:$24 sps:$4 sm:$0xff]  }
 0xe51   :  { %v17797_v54 = vld [vmem:[#allocation7 + $0x1ba0] ss:$24 sps:$4 sm:$0xff]  }
 0xe52   :  { %v7966_v55 = vpop.f32.mrf.mxu1  ;;  %8404 = vmatpush1.bf16.msra.mxu0 %v17731_v19  ;;  %8782 = vmatpush1.bf16.msra.mxu1 %v17761_v45  ;;  %v17815_v19 = vld [vmem:[#allocation7 + $0x1da0] ss:$24 sps:$4 sm:$0xff]   ;;  %v17799_v45 = vld [vmem:[#allocation7 + $0x1ba4] ss:$24 sps:$4 sm:$0xff]  }
 0xe53   :  { %8405 = vmatprep.subr.bf16.mxu0 %v17736_v22  ;;  %8783 = vmatprep.subr.bf16.mxu1 %v17769_v5  ;;  %v17823_v22 = vld [vmem:[#allocation7 + $0x1d74] ss:$24 sps:$4 sm:$0xff]   ;;  %v17821_v55 = vld [vmem:[#allocation7 + $0x1d70] ss:$24 sps:$4 sm:$0xff]  }
 0xe56   :  { %8406 = vmatpush1.bf16.msra.mxu0 %v17734_v21  ;;  %8784 = vmatpush1.bf16.msra.mxu1 %v17767_v12  ;;  %v17802_v21 = vld [vmem:[#allocation7 + $0x1b74] ss:$24 sps:$4 sm:$0xff]  }
 0xe57   :  { %8814 = vmatprep.subr.bf16.mxu0 %v17742_v61  ;;  %8785 = vmatprep.subr.bf16.mxu1 %v17775_v34  ;;  %v17829_v61 = vld [vmem:[#allocation7 + $0x1d44] ss:$24 sps:$4 sm:$0xff]   ;;  %v17808_v12 = vld [vmem:[#allocation7 + $0x1b14] ss:$24 sps:$4 sm:$0xff]   ;;  %v17806_v34 = vld [vmem:[#allocation7 + $0x1b10] ss:$24 sps:$4 sm:$0xff]  }
 0xe59   :  { %8424 = vmatmul.mubr.bf16.vlgmr.msra.gmra.mxu0 %v19026_v3 }
 0xe5a   :  { %8815 = vmatpush1.bf16.msra.mxu0 %v17740_v27  ;;  %8846 = vmatprep.mubr.bf16.mxu0 %v18386_v39  ;;  %v17800_v27 = vld [vmem:[#allocation7 + $0x1b70] ss:$24 sps:$4 sm:$0xff]  }
 0xe5b   :  { %8816 = vmatprep.subr.bf16.mxu0 %v17748_v59  ;;  %8786 = vmatpush1.bf16.msra.mxu1 %v17773_v37  ;;  %v17827_v59 = vld [vmem:[#allocation7 + $0x1d40] ss:$24 sps:$4 sm:$0xff]   ;;  %v17814_v37 = vld [vmem:[#allocation7 + $0x1ddc] ss:$24 sps:$4 sm:$0xff]  }
 0xe5c   :  { %8787 = vmatprep.subr.bf16.mxu1 %v17781_v14  ;;  %v17824_v14 = vld [vmem:[#allocation7 + $0x1d78] ss:$24 sps:$4 sm:$0xff]  }
 0xe5e   :  { %8817 = vmatpush1.bf16.msra.mxu0 %v17746_v26  ;;  %v17805_v26 = vld [vmem:[#allocation7 + $0x1b44] ss:$24 sps:$4 sm:$0xff]  }
 0xe5f   :  { %8818 = vmatprep.subr.bf16.mxu0 %v17754_v60  ;;  %8788 = vmatpush1.bf16.msra.mxu1 %v17779_v18  ;;  %v17835_v60 = vld [vmem:[#allocation7 + $0x1d14] ss:$24 sps:$4 sm:$0xff]  }
 0xe60   :  { %8855 = vmatprep.subr.bf16.mxu1 %v17787_v46  ;;  %v17832_v18 = vld [vmem:[#allocation7 + $0x1d4c] ss:$24 sps:$4 sm:$0xff]   ;;  %v17836_v46 = vld [vmem:[#allocation7 + $0x1d18] ss:$24 sps:$4 sm:$0xff]  }
 0xe62   :  { %8819 = vmatpush1.bf16.msra.mxu0 %v17752_v2 }
 0xe63   :  { %8820 = vmatprep.subr.bf16.mxu0 %v17760_v9 }
 0xe66   :  { %8821 = vmatpush1.bf16.msra.mxu0 %v17758_v24 }
 0xe67   :  { %8822 = vmatprep.subr.bf16.mxu0 %v17766_v36  ;;  %v17803_v36 = vld [vmem:[#allocation7 + $0x1b40] ss:$24 sps:$4 sm:$0xff]  }
 0xe6a   :  { %8823 = vmatpush1.bf16.msra.mxu0 %v17764_v32  ;;  %v17833_v32 = vld [vmem:[#allocation7 + $0x1d10] ss:$24 sps:$4 sm:$0xff]  }
 0xe6b   :  { %8824 = vmatprep.subr.bf16.mxu0 %v17772_v35 }
 0xe6e   :  { %8825 = vmatpush1.bf16.msra.mxu0 %v17770_v40 }
 0xe6f   :  { %8826 = vmatprep.subr.bf16.mxu0 %v17778_v38  ;;  %v17818_v38 = vld [vmem:[#allocation7 + $0x1da8] ss:$24 sps:$4 sm:$0xff]  }
 0xe72   :  { %8827 = vmatpush1.bf16.msra.mxu0 %v17776_v51  ;;  %v17820_v51 = vld [vmem:[#allocation7 + $0x1dac] ss:$24 sps:$4 sm:$0xff]  }
 0xe73   :  { %8828 = vmatprep.subr.bf16.mxu0 %v17784_v44  ;;  %v17830_v44 = vld [vmem:[#allocation7 + $0x1d48] ss:$24 sps:$4 sm:$0xff]  }
 0xe76   :  { %8829 = vmatpush1.bf16.msra.mxu0 %v17782_v20  ;;  %v17838_v20 = vld [vmem:[#allocation7 + $0x1d1c] ss:$24 sps:$4 sm:$0xff]  }
 0xe77   :  { %16391 = vmatprep.subr.bf16.mxu0 %v18384_v0 }
 0xef9   :  { %v8343_v3 = vpop.f32.mrf.mxu0  ;;  %v8384_v49 = vpop.f32.mrf.mxu1 }
 0xefa   :  { %v19049_v62 = vadd.f32 %v8343_v3, %v19014_v33  ;;  %v19052_v25 = vadd.f32 %v8384_v49, %v19017_v10  ;;  %v17785_v10 = vld [vmem:[#allocation7 + $0x1c60] ss:$24 sps:$4 sm:$0xff]   ;;  %v17841_v3 = vld [vmem:[#allocation7 + $0x1ce4] ss:$24 sps:$4 sm:$0xff]  }
 0xefb   :  { %v8345_v48 = vpop.f32.mrf.mxu0  ;;  %v8386_v57 = vpop.f32.mrf.mxu1  ;;  %v17839_v49 = vld [vmem:[#allocation7 + $0x1ce0] ss:$24 sps:$4 sm:$0xff]  }
 0xefc   :  { %v19055_v50 = vadd.f32 %v8345_v48, %v19020_v42  ;;  %v19058_v30 = vadd.f32 %v8386_v57, %v19023_v13  ;;  %v17811_v42 = vld [vmem:[#allocation7 + $0x1dd4] ss:$24 sps:$4 sm:$0xff]   ;;  %v17842_v57 = vld [vmem:[#allocation7 + $0x1ce8] ss:$24 sps:$4 sm:$0xff]  }
 0xefd   :  { %v8347_v52 = vpop.f32.mrf.mxu0  ;;  %v8388_v28 = vpop.f32.mrf.mxu1  ;;  %v17844_v48 = vld [vmem:[#allocation7 + $0x1cec] ss:$24 sps:$4 sm:$0xff]  }
 0xefe   :  { %v17847_v52 = vld [vmem:[#allocation7 + $0x1cb4] ss:$24 sps:$4 sm:$0xff]   ;;  %v17845_v28 = vld [vmem:[#allocation7 + $0x1cb0] ss:$24 sps:$4 sm:$0xff]  }
 0xeff   :  { %v8348_v29 = vpop.f32.mrf.mxu0  ;;  %v8389_v31 = vpop.f32.mrf.mxu1 }
 0xf00   :  { %v17848_v29 = vld [vmem:[#allocation7 + $0x1cb8] ss:$24 sps:$4 sm:$0xff]   ;;  %v17850_v31 = vld [vmem:[#allocation7 + $0x1cbc] ss:$24 sps:$4 sm:$0xff]  }
 0xf01   :  { %v8477_v53 = vpop.f32.mrf.mxu1 }
 0xf02   :  { %v8478_v33 = vadd.f32 %v19060_v1, %v8477_v53  ;;  %v17853_v53 = vld [vmem:[#allocation7 + $0x1c84] ss:$24 sps:$4 sm:$0xff]  }
 0xf03   :  { %v16389_v7 = vpop.f32.mrf.mxu1 }
 0xf04   :  { %v19063_v56 = vpack.c.bf16 %v8478_v33, %v8478_v33  ;;  %v17851_v33 = vld [vmem:[#allocation7 + $0x1c80] ss:$24 sps:$4 sm:$0xff]   ;;  %v17856_v7 = vld [vmem:[#allocation7 + $0x1c8c] ss:$24 sps:$4 sm:$0xff]  }
 0xf05   :  { %v8480_v6 = vpop.f32.mrf.mxu1 }
 0xf06   :  { %8806 = vmatmul.mubr.bf16.vlgmr.msra.gmra.mxu1 %v19063_v56  ;;  %8847 = vmatmul.mubr.bf16.vlgmr.msra.gmra.mxu0 %v19063_v56 }
 0xf07   :  { %8856 = vmatpush1.bf16.msra.mxu1 %v17785_v10  ;;  %v16390_v13 = vpop.f32.mrf.mxu1  ;;  %16392 = vmatpush3.bf16.msra.mxu0 %v18451_v4  ;;  %v17854_v10 = vld [vmem:[#allocation7 + $0x1c88] ss:$24 sps:$4 sm:$0xff]  }
 0xf08   :  { %8857 = vmatprep.subr.bf16.mxu1 %v17790_v63  ;;  %16393 = vmatprep.mubr.msk.bf16.mxu0 %vm18385_vm0, %v18384_v0 }
 0xf09   :  { %8887 = vmatprep.mubr.bf16.mxu1 %v18386_v39  ;;  %9237 = vmatprep.subr.bf16.mxu0 %v17811_v42 }
 0xf0b   :  { %8858 = vmatpush1.bf16.msra.mxu1 %v17788_v8 }
 0xf0c   :  { %8859 = vmatprep.subr.bf16.mxu1 %v17793_v41 }
 0xf0e   :  { %16394 = vmatmul.mubr.msk.bf16.vlgmr.msra.gmra.mxu0 %vm96_vm2, %v15543_v15 }
 0xf0f   :  { %8860 = vmatpush1.bf16.msra.mxu1 %v17791_v11  ;;  %9238 = vmatpush1.bf16.msra.mxu0 %v17809_v16 }
 0xf10   :  { %8861 = vmatprep.subr.bf16.mxu1 %v17796_v47  ;;  %9239 = vmatprep.subr.bf16.mxu0 %v17817_v23 }
 0xf11   :  { %9269 = vmatprep.mubr.bf16.mxu0 %v18386_v39 }
 0xf13   :  { %8862 = vmatpush1.bf16.msra.mxu1 %v17794_v43  ;;  %9240 = vmatpush1.bf16.msra.mxu0 %v17815_v19 }
 0xf14   :  { %8863 = vmatprep.subr.bf16.mxu1 %v17799_v45  ;;  %9241 = vmatprep.subr.bf16.mxu0 %v17823_v22  ;;  %v17857_v22 = vld [vmem:[#allocation7 + $0x1de0] ss:$24 sps:$4 sm:$0xff]  }
 0xf17   :  { %8864 = vmatpush1.bf16.msra.mxu1 %v17797_v54  ;;  %9242 = vmatpush1.bf16.msra.mxu0 %v17821_v55 }
 0xf18   :  { %8865 = vmatprep.subr.bf16.mxu1 %v17802_v21  ;;  %9243 = vmatprep.subr.bf16.mxu0 %v17829_v61  ;;  %v17883_v21 = vld [vmem:[#allocation7 + $0x1f54] ss:$24 sps:$4 sm:$0xff]   ;;  %v17865_v61 = vld [vmem:[#allocation7 + $0x1d84] ss:$24 sps:$4 sm:$0xff]  }
 0xf19   :  { %v8425_v2 = vpop.f32.mrf.mxu0 }
 0xf1a   :  { %v19077_v9 = vadd.f32 %v8425_v2, %v19040_v17  ;;  %v17812_v17 = vld [vmem:[#allocation7 + $0x1dd8] ss:$24 sps:$4 sm:$0xff]   ;;  %v17889_v2 = vld [vmem:[#allocation7 + $0x1f24] ss:$24 sps:$4 sm:$0xff]  }
 0xf1b   :  { %v8427_v24 = vpop.f32.mrf.mxu0  ;;  %8866 = vmatpush1.bf16.msra.mxu1 %v17800_v27  ;;  %9244 = vmatpush1.bf16.msra.mxu0 %v17827_v59  ;;  %v17863_v27 = vld [vmem:[#allocation7 + $0x1d80] ss:$24 sps:$4 sm:$0xff]   ;;  %v15593_v59 = vld [vmem:[%s19392_s0 + $0x14] sm:$0x1] }
 0xf1c   :  { %v19080_v5 = vadd.f32 %v8427_v24, %v19043_v58  ;;  %8867 = vmatprep.subr.bf16.mxu1 %v17805_v26  ;;  %9245 = vmatprep.subr.bf16.mxu0 %v17835_v60  ;;  %v17826_v58 = vld [vmem:[#allocation7 + $0x1d7c] ss:$24 sps:$4 sm:$0xff]   ;;  %v17881_v26 = vld [vmem:[#allocation7 + $0x1f50] ss:$24 sps:$4 sm:$0xff]  }
 0xf1d   :  { %v8429_v35 = vpop.f32.mrf.mxu0  ;;  %v17868_v60 = vld [vmem:[#allocation7 + $0x1d54] ss:$24 sps:$4 sm:$0xff]   ;;  %v17866_v24 = vld [vmem:[#allocation7 + $0x1d50] ss:$24 sps:$4 sm:$0xff]  }
 0xf1e   :  { %v17869_v35 = vld [vmem:[#allocation7 + $0x1d20] ss:$24 sps:$4 sm:$0xff]  }
 0xf1f   :  { %v8430_v40 = vpop.f32.mrf.mxu0  ;;  %8868 = vmatpush1.bf16.msra.mxu1 %v17803_v36  ;;  %9246 = vmatpush1.bf16.msra.mxu0 %v17833_v32  ;;  %v17887_v36 = vld [vmem:[#allocation7 + $0x1f20] ss:$24 sps:$4 sm:$0xff]   ;;  %v17871_v32 = vld [vmem:[#allocation7 + $0x1d24] ss:$24 sps:$4 sm:$0xff]  }
 0xf20   :  { %8869 = vmatprep.subr.bf16.mxu1 %v17808_v12  ;;  %9247 = vmatprep.subr.bf16.mxu0 %v17841_v3  ;;  %v17895_v12 = vld [vmem:[#allocation7 + $0x1ef4] ss:$24 sps:$4 sm:$0xff]   ;;  %v17893_v40 = vld [vmem:[#allocation7 + $0x1ef0] ss:$24 sps:$4 sm:$0xff]  }
 0xf23   :  { %8870 = vmatpush1.bf16.msra.mxu1 %v17806_v34  ;;  %9248 = vmatpush1.bf16.msra.mxu0 %v17839_v49  ;;  %v17874_v34 = vld [vmem:[#allocation7 + $0x1cf4] ss:$24 sps:$4 sm:$0xff]  }
 0xf24   :  { %9278 = vmatprep.subr.bf16.mxu1 %v17814_v37  ;;  %9249 = vmatprep.subr.bf16.mxu0 %v17847_v52  ;;  %v17901_v37 = vld [vmem:[#allocation7 + $0x1ec4] ss:$24 sps:$4 sm:$0xff]   ;;  %v17880_v49 = vld [vmem:[#allocation7 + $0x1c94] ss:$24 sps:$4 sm:$0xff]   ;;  %v17878_v52 = vld [vmem:[#allocation7 + $0x1c90] ss:$24 sps:$4 sm:$0xff]  }
 0xf26   :  { %8888 = vmatmul.mubr.bf16.vlgmr.msra.gmra.mxu1 %v19063_v56  ;;  %v17859_v56 = vld [vmem:[#allocation7 + $0x1de4] ss:$24 sps:$4 sm:$0xff]  }
 0xf27   :  { %9279 = vmatpush1.bf16.msra.mxu1 %v17812_v17  ;;  %9310 = vmatprep.mubr.bf16.mxu1 %v18386_v39  ;;  %v17872_v17 = vld [vmem:[#allocation7 + $0x1cf0] ss:$24 sps:$4 sm:$0xff]  }
 0xf28   :  { %9280 = vmatprep.subr.bf16.mxu1 %v17820_v51  ;;  %9250 = vmatpush1.bf16.msra.mxu0 %v17845_v28  ;;  %v17899_v51 = vld [vmem:[#allocation7 + $0x1ec0] ss:$24 sps:$4 sm:$0xff]   ;;  %v17886_v28 = vld [vmem:[#allocation7 + $0x1f5c] ss:$24 sps:$4 sm:$0xff]  }
 0xf29   :  { %9251 = vmatprep.subr.bf16.mxu0 %v17853_v53  ;;  %v17896_v53 = vld [vmem:[#allocation7 + $0x1ef8] ss:$24 sps:$4 sm:$0xff]  }
 0xf2b   :  { %9281 = vmatpush1.bf16.msra.mxu1 %v17818_v38  ;;  %v17877_v38 = vld [vmem:[#allocation7 + $0x1cc4] ss:$24 sps:$4 sm:$0xff]  }
 0xf2c   :  { %9282 = vmatprep.subr.bf16.mxu1 %v17826_v58  ;;  %9252 = vmatpush1.bf16.msra.mxu0 %v17851_v33  ;;  %v17907_v58 = vld [vmem:[#allocation7 + $0x1e94] ss:$24 sps:$4 sm:$0xff]  }
 0xf2d   :  { %9319 = vmatprep.subr.bf16.mxu0 %v17859_v56  ;;  %v17904_v33 = vld [vmem:[#allocation7 + $0x1ecc] ss:$24 sps:$4 sm:$0xff]   ;;  %v17908_v56 = vld [vmem:[#allocation7 + $0x1e98] ss:$24 sps:$4 sm:$0xff]  }
 0xf2f   :  { %9283 = vmatpush1.bf16.msra.mxu1 %v17824_v14 }
 0xf30   :  { %9284 = vmatprep.subr.bf16.mxu1 %v17832_v18 }
 0xf33   :  { %9285 = vmatpush1.bf16.msra.mxu1 %v17830_v44 }
 0xf34   :  { %9286 = vmatprep.subr.bf16.mxu1 %v17838_v20  ;;  %v17875_v20 = vld [vmem:[#allocation7 + $0x1cc0] ss:$24 sps:$4 sm:$0xff]  }
 0xf37   :  { %9287 = vmatpush1.bf16.msra.mxu1 %v17836_v46  ;;  %v17905_v46 = vld [vmem:[#allocation7 + $0x1e90] ss:$24 sps:$4 sm:$0xff]  }
 0xf38   :  { %9288 = vmatprep.subr.bf16.mxu1 %v17844_v48 }
 0xf3b   :  { %9289 = vmatpush1.bf16.msra.mxu1 %v17842_v57 }
 0xf3c   :  { %9290 = vmatprep.subr.bf16.mxu1 %v17850_v31  ;;  %v17890_v31 = vld [vmem:[#allocation7 + $0x1f28] ss:$24 sps:$4 sm:$0xff]  }
 0xf3f   :  { %9291 = vmatpush1.bf16.msra.mxu1 %v17848_v29  ;;  %v17892_v29 = vld [vmem:[#allocation7 + $0x1f2c] ss:$24 sps:$4 sm:$0xff]  }
 0xf40   :  { %9292 = vmatprep.subr.bf16.mxu1 %v17856_v7  ;;  %v17902_v7 = vld [vmem:[#allocation7 + $0x1ec8] ss:$24 sps:$4 sm:$0xff]  }
 0xf43   :  { %9293 = vmatpush1.bf16.msra.mxu1 %v17854_v10  ;;  %v17910_v10 = vld [vmem:[#allocation7 + $0x1e9c] ss:$24 sps:$4 sm:$0xff]  }
 0xf44   :  { %16397 = vmatprep.subr.bf16.mxu1 %v18384_v0 }
 0xfc6   :  { %v8807_v63 = vpop.f32.mrf.mxu1  ;;  %v8848_v6 = vpop.f32.mrf.mxu0 }
 0xfc7   :  { %v19086_v42 = vadd.f32 %v8807_v63, %v19049_v62  ;;  %v19089_v13 = vadd.f32 %v8848_v6, %v19052_v25  ;;  %v17862_v25 = vld [vmem:[#allocation7 + $0x1db4] ss:$24 sps:$4 sm:$0xff]   ;;  %v17913_v63 = vld [vmem:[#allocation7 + $0x1e64] ss:$24 sps:$4 sm:$0xff]   ;;  %v17911_v6 = vld [vmem:[#allocation7 + $0x1e60] ss:$24 sps:$4 sm:$0xff]  }
 0xfc8   :  { %v8809_v8 = vpop.f32.mrf.mxu1  ;;  %v8850_v41 = vpop.f32.mrf.mxu0 }
 0xfc9   :  { %v19092_v11 = vadd.f32 %v8809_v8, %v19055_v50  ;;  %v19095_v15 = vadd.f32 %v8850_v41, %v19058_v30  ;;  %v17860_v30 = vld [vmem:[#allocation7 + $0x1db0] ss:$24 sps:$4 sm:$0xff]   ;;  %v17916_v8 = vld [vmem:[#allocation7 + $0x1e6c] ss:$24 sps:$4 sm:$0xff]  }
 0xfca   :  { %v8811_v16 = vpop.f32.mrf.mxu1  ;;  %v8852_v47 = vpop.f32.mrf.mxu0  ;;  %v17914_v41 = vld [vmem:[#allocation7 + $0x1e68] ss:$24 sps:$4 sm:$0xff]  }
 0xfcb   :  { %v17919_v16 = vld [vmem:[#allocation7 + $0x1e34] ss:$24 sps:$4 sm:$0xff]   ;;  %v17917_v47 = vld [vmem:[#allocation7 + $0x1e30] ss:$24 sps:$4 sm:$0xff]  }
 0xfcc   :  { %v8812_v23 = vpop.f32.mrf.mxu1  ;;  %v8853_v43 = vpop.f32.mrf.mxu0 }
 0xfcd   :  { %v17920_v23 = vld [vmem:[#allocation7 + $0x1e38] ss:$24 sps:$4 sm:$0xff]   ;;  %v17922_v43 = vld [vmem:[#allocation7 + $0x1e3c] ss:$24 sps:$4 sm:$0xff]  }
 0xfce   :  { %v8941_v19 = vpop.f32.mrf.mxu0 }
 0xfcf   :  { %v8942_v45 = vadd.f32 %v19060_v1, %v8941_v19  ;;  %v17925_v19 = vld [vmem:[#allocation7 + $0x1e04] ss:$24 sps:$4 sm:$0xff]  }
 0xfd0   :  { %v16395_v62 = vpop.f32.mrf.mxu0 }
 0xfd1   :  { %v19098_v54 = vpack.c.bf16 %v8942_v45, %v8942_v45  ;;  %v17923_v45 = vld [vmem:[#allocation7 + $0x1e00] ss:$24 sps:$4 sm:$0xff]   ;;  %v17928_v62 = vld [vmem:[#allocation7 + $0x1e0c] ss:$24 sps:$4 sm:$0xff]  }
 0xfd2   :  { %v8944_v55 = vpop.f32.mrf.mxu0 }
 0xfd3   :  { %9270 = vmatmul.mubr.bf16.vlgmr.msra.gmra.mxu0 %v19098_v54  ;;  %9311 = vmatmul.mubr.bf16.vlgmr.msra.gmra.mxu1 %v19098_v54 }
 0xfd4   :  { %9320 = vmatpush1.bf16.msra.mxu0 %v17857_v22  ;;  %v16396_v50 = vpop.f32.mrf.mxu0  ;;  %16398 = vmatpush3.bf16.msra.mxu1 %v18451_v4  ;;  %v17926_v22 = vld [vmem:[#allocation7 + $0x1e08] ss:$24 sps:$4 sm:$0xff]  }
 0xfd5   :  { %9321 = vmatprep.subr.bf16.mxu0 %v17862_v25  ;;  %16399 = vmatprep.mubr.msk.bf16.mxu1 %vm18385_vm0, %v18384_v0 }
 0xfd6   :  { %9351 = vmatprep.mubr.bf16.mxu0 %v18386_v39  ;;  %9701 = vmatprep.subr.bf16.mxu1 %v17883_v21 }
 0xfd8   :  { %9322 = vmatpush1.bf16.msra.mxu0 %v17860_v30 }
 0xfd9   :  { %9323 = vmatprep.subr.bf16.mxu0 %v17865_v61 }
 0xfdb   :  { %16400 = vmatmul.mubr.msk.bf16.vlgmr.msra.gmra.mxu1 %vm96_vm2, %v15593_v59 }
 0xfdc   :  { %9324 = vmatpush1.bf16.msra.mxu0 %v17863_v27  ;;  %9702 = vmatpush1.bf16.msra.mxu1 %v17881_v26 }
 0xfdd   :  { %9325 = vmatprep.subr.bf16.mxu0 %v17868_v60  ;;  %9703 = vmatprep.subr.bf16.mxu1 %v17889_v2 }
 0xfde   :  { %9733 = vmatprep.mubr.bf16.mxu1 %v18386_v39 }
 0xfe0   :  { %9326 = vmatpush1.bf16.msra.mxu0 %v17866_v24  ;;  %9704 = vmatpush1.bf16.msra.mxu1 %v17887_v36 }
 0xfe1   :  { %9327 = vmatprep.subr.bf16.mxu0 %v17871_v32  ;;  %9705 = vmatprep.subr.bf16.mxu1 %v17895_v12  ;;  %v17929_v12 = vld [vmem:[#allocation7 + $0x1f60] ss:$24 sps:$4 sm:$0xff]  }
 0xfe4   :  { %9328 = vmatpush1.bf16.msra.mxu0 %v17869_v35  ;;  %9706 = vmatpush1.bf16.msra.mxu1 %v17893_v40 }
 0xfe5   :  { %9329 = vmatprep.subr.bf16.mxu0 %v17874_v34  ;;  %9707 = vmatprep.subr.bf16.mxu1 %v17901_v37  ;;  %v17955_v34 = vld [vmem:[#allocation7 + $0x20d4] ss:$24 sps:$4 sm:$0xff]   ;;  %v17937_v37 = vld [vmem:[#allocation7 + $0x1f04] ss:$24 sps:$4 sm:$0xff]  }
 0xfe6   :  { %v8889_v14 = vpop.f32.mrf.mxu1 }
 0xfe7   :  { %v19112_v18 = vadd.f32 %v8889_v14, %v19077_v9  ;;  %v17884_v9 = vld [vmem:[#allocation7 + $0x1f58] ss:$24 sps:$4 sm:$0xff]   ;;  %v17961_v14 = vld [vmem:[#allocation7 + $0x20a4] ss:$24 sps:$4 sm:$0xff]  }
 0xfe8   :  { %v8891_v44 = vpop.f32.mrf.mxu1  ;;  %9330 = vmatpush1.bf16.msra.mxu0 %v17872_v17  ;;  %9708 = vmatpush1.bf16.msra.mxu1 %v17899_v51  ;;  %v17935_v17 = vld [vmem:[#allocation7 + $0x1f00] ss:$24 sps:$4 sm:$0xff]   ;;  %v15643_v51 = vld [vmem:[%s19392_s0 + $0x15] sm:$0x1] }
 0xfe9   :  { %v19115_v3 = vadd.f32 %v8891_v44, %v19080_v5  ;;  %9331 = vmatprep.subr.bf16.mxu0 %v17877_v38  ;;  %9709 = vmatprep.subr.bf16.mxu1 %v17907_v58  ;;  %v17898_v5 = vld [vmem:[#allocation7 + $0x1efc] ss:$24 sps:$4 sm:$0xff]   ;;  %v17953_v38 = vld [vmem:[#allocation7 + $0x20d0] ss:$24 sps:$4 sm:$0xff]  }
 0xfea   :  { %v8893_v48 = vpop.f32.mrf.mxu1  ;;  %v17940_v58 = vld [vmem:[#allocation7 + $0x1ed4] ss:$24 sps:$4 sm:$0xff]   ;;  %v17938_v44 = vld [vmem:[#allocation7 + $0x1ed0] ss:$24 sps:$4 sm:$0xff]  }
 0xfeb   :  { %v17941_v48 = vld [vmem:[#allocation7 + $0x1ea0] ss:$24 sps:$4 sm:$0xff]  }
 0xfec   :  { %v8894_v57 = vpop.f32.mrf.mxu1  ;;  %9332 = vmatpush1.bf16.msra.mxu0 %v17875_v20  ;;  %9710 = vmatpush1.bf16.msra.mxu1 %v17905_v46  ;;  %v17959_v20 = vld [vmem:[#allocation7 + $0x20a0] ss:$24 sps:$4 sm:$0xff]   ;;  %v17943_v46 = vld [vmem:[#allocation7 + $0x1ea4] ss:$24 sps:$4 sm:$0xff]  }
 0xfed   :  { %9333 = vmatprep.subr.bf16.mxu0 %v17880_v49  ;;  %9711 = vmatprep.subr.bf16.mxu1 %v17913_v63  ;;  %v17967_v49 = vld [vmem:[#allocation7 + $0x2074] ss:$24 sps:$4 sm:$0xff]   ;;  %v17965_v57 = vld [vmem:[#allocation7 + $0x2070] ss:$24 sps:$4 sm:$0xff]  }
 0xff0   :  { %9334 = vmatpush1.bf16.msra.mxu0 %v17878_v52  ;;  %9712 = vmatpush1.bf16.msra.mxu1 %v17911_v6  ;;  %v17946_v52 = vld [vmem:[#allocation7 + $0x1e74] ss:$24 sps:$4 sm:$0xff]  }
 0xff1   :  { %9742 = vmatprep.subr.bf16.mxu0 %v17886_v28  ;;  %9713 = vmatprep.subr.bf16.mxu1 %v17919_v16  ;;  %v17973_v28 = vld [vmem:[#allocation7 + $0x2044] ss:$24 sps:$4 sm:$0xff]   ;;  %v17952_v6 = vld [vmem:[#allocation7 + $0x1e14] ss:$24 sps:$4 sm:$0xff]   ;;  %v17950_v16 = vld [vmem:[#allocation7 + $0x1e10] ss:$24 sps:$4 sm:$0xff]  }
 0xff3   :  { %9352 = vmatmul.mubr.bf16.vlgmr.msra.gmra.mxu0 %v19098_v54  ;;  %v17931_v54 = vld [vmem:[#allocation7 + $0x1f64] ss:$24 sps:$4 sm:$0xff]  }
 0xff4   :  { %9743 = vmatpush1.bf16.msra.mxu0 %v17884_v9  ;;  %9774 = vmatprep.mubr.bf16.mxu0 %v18386_v39  ;;  %v17944_v9 = vld [vmem:[#allocation7 + $0x1e70] ss:$24 sps:$4 sm:$0xff]  }
 0xff5   :  { %9744 = vmatprep.subr.bf16.mxu0 %v17892_v29  ;;  %9714 = vmatpush1.bf16.msra.mxu1 %v17917_v47  ;;  %v17971_v29 = vld [vmem:[#allocation7 + $0x2040] ss:$24 sps:$4 sm:$0xff]   ;;  %v17958_v47 = vld [vmem:[#allocation7 + $0x20dc] ss:$24 sps:$4 sm:$0xff]  }
 0xff6   :  { %9715 = vmatprep.subr.bf16.mxu1 %v17925_v19  ;;  %v17968_v19 = vld [vmem:[#allocation7 + $0x2078] ss:$24 sps:$4 sm:$0xff]  }
 0xff8   :  { %9745 = vmatpush1.bf16.msra.mxu0 %v17890_v31  ;;  %v17949_v31 = vld [vmem:[#allocation7 + $0x1e44] ss:$24 sps:$4 sm:$0xff]  }
 0xff9   :  { %9746 = vmatprep.subr.bf16.mxu0 %v17898_v5  ;;  %9716 = vmatpush1.bf16.msra.mxu1 %v17923_v45  ;;  %v17979_v5 = vld [vmem:[#allocation7 + $0x2014] ss:$24 sps:$4 sm:$0xff]  }
 0xffa   :  { %9783 = vmatprep.subr.bf16.mxu1 %v17931_v54  ;;  %v17976_v45 = vld [vmem:[#allocation7 + $0x204c] ss:$24 sps:$4 sm:$0xff]   ;;  %v17980_v54 = vld [vmem:[#allocation7 + $0x2018] ss:$24 sps:$4 sm:$0xff]  }
 0xffc   :  { %9747 = vmatpush1.bf16.msra.mxu0 %v17896_v53 }
 0xffd   :  { %9748 = vmatprep.subr.bf16.mxu0 %v17904_v33 }
0x1000   :  { %9749 = vmatpush1.bf16.msra.mxu0 %v17902_v7 }
0x1001   :  { %9750 = vmatprep.subr.bf16.mxu0 %v17910_v10  ;;  %v17947_v10 = vld [vmem:[#allocation7 + $0x1e40] ss:$24 sps:$4 sm:$0xff]  }
0x1004   :  { %9751 = vmatpush1.bf16.msra.mxu0 %v17908_v56  ;;  %v17977_v56 = vld [vmem:[#allocation7 + $0x2010] ss:$24 sps:$4 sm:$0xff]  }
0x1005   :  { %9752 = vmatprep.subr.bf16.mxu0 %v17916_v8 }
0x1008   :  { %9753 = vmatpush1.bf16.msra.mxu0 %v17914_v41 }
0x1009   :  { %9754 = vmatprep.subr.bf16.mxu0 %v17922_v43  ;;  %v17962_v43 = vld [vmem:[#allocation7 + $0x20a8] ss:$24 sps:$4 sm:$0xff]  }
0x100c   :  { %9755 = vmatpush1.bf16.msra.mxu0 %v17920_v23  ;;  %v17964_v23 = vld [vmem:[#allocation7 + $0x20ac] ss:$24 sps:$4 sm:$0xff]  }
0x100d   :  { %9756 = vmatprep.subr.bf16.mxu0 %v17928_v62  ;;  %v17974_v62 = vld [vmem:[#allocation7 + $0x2048] ss:$24 sps:$4 sm:$0xff]  }
0x1010   :  { %9757 = vmatpush1.bf16.msra.mxu0 %v17926_v22  ;;  %v17982_v22 = vld [vmem:[#allocation7 + $0x201c] ss:$24 sps:$4 sm:$0xff]  }
0x1011   :  { %16403 = vmatprep.subr.bf16.mxu0 %v18384_v0 }
0x1093   :  { %v9271_v25 = vpop.f32.mrf.mxu0  ;;  %v9312_v55 = vpop.f32.mrf.mxu1 }
0x1094   :  { %v19121_v21 = vadd.f32 %v9271_v25, %v19086_v42  ;;  %v19124_v50 = vadd.f32 %v9312_v55, %v19089_v13  ;;  %v17934_v13 = vld [vmem:[#allocation7 + $0x1f34] ss:$24 sps:$4 sm:$0xff]   ;;  %v17985_v25 = vld [vmem:[#allocation7 + $0x1fe4] ss:$24 sps:$4 sm:$0xff]   ;;  %v17983_v55 = vld [vmem:[#allocation7 + $0x1fe0] ss:$24 sps:$4 sm:$0xff]  }
0x1095   :  { %v9273_v30 = vpop.f32.mrf.mxu0  ;;  %v9314_v61 = vpop.f32.mrf.mxu1 }
0x1096   :  { %v19127_v27 = vadd.f32 %v9273_v30, %v19092_v11  ;;  %v19130_v59 = vadd.f32 %v9314_v61, %v19095_v15  ;;  %v17932_v15 = vld [vmem:[#allocation7 + $0x1f30] ss:$24 sps:$4 sm:$0xff]   ;;  %v17988_v30 = vld [vmem:[#allocation7 + $0x1fec] ss:$24 sps:$4 sm:$0xff]  }
0x1097   :  { %v9275_v26 = vpop.f32.mrf.mxu0  ;;  %v9316_v60 = vpop.f32.mrf.mxu1  ;;  %v17986_v61 = vld [vmem:[#allocation7 + $0x1fe8] ss:$24 sps:$4 sm:$0xff]  }
0x1098   :  { %v17991_v26 = vld [vmem:[#allocation7 + $0x1fb4] ss:$24 sps:$4 sm:$0xff]   ;;  %v17989_v60 = vld [vmem:[#allocation7 + $0x1fb0] ss:$24 sps:$4 sm:$0xff]  }
0x1099   :  { %v9276_v2 = vpop.f32.mrf.mxu0  ;;  %v9317_v24 = vpop.f32.mrf.mxu1 }
0x109a   :  { %v17992_v2 = vld [vmem:[#allocation7 + $0x1fb8] ss:$24 sps:$4 sm:$0xff]   ;;  %v17994_v24 = vld [vmem:[#allocation7 + $0x1fbc] ss:$24 sps:$4 sm:$0xff]  }
0x109b   :  { %v9405_v36 = vpop.f32.mrf.mxu1 }
0x109c   :  { %v9406_v32 = vadd.f32 %v19060_v1, %v9405_v36  ;;  %v17997_v36 = vld [vmem:[#allocation7 + $0x1f84] ss:$24 sps:$4 sm:$0xff]  }
0x109d   :  { %v16401_v42 = vpop.f32.mrf.mxu1 }
0x109e   :  { %v19133_v35 = vpack.c.bf16 %v9406_v32, %v9406_v32  ;;  %v17995_v32 = vld [vmem:[#allocation7 + $0x1f80] ss:$24 sps:$4 sm:$0xff]   ;;  %v18000_v42 = vld [vmem:[#allocation7 + $0x1f8c] ss:$24 sps:$4 sm:$0xff]  }
0x109f   :  { %v9408_v40 = vpop.f32.mrf.mxu1 }
0x10a0   :  { %9734 = vmatmul.mubr.bf16.vlgmr.msra.gmra.mxu1 %v19133_v35  ;;  %9775 = vmatmul.mubr.bf16.vlgmr.msra.gmra.mxu0 %v19133_v35 }
0x10a1   :  { %9784 = vmatpush1.bf16.msra.mxu1 %v17929_v12  ;;  %v16402_v11 = vpop.f32.mrf.mxu1  ;;  %16404 = vmatpush3.bf16.msra.mxu0 %v18451_v4  ;;  %v17998_v12 = vld [vmem:[#allocation7 + $0x1f88] ss:$24 sps:$4 sm:$0xff]  }
0x10a2   :  { %9785 = vmatprep.subr.bf16.mxu1 %v17934_v13  ;;  %16405 = vmatprep.mubr.msk.bf16.mxu0 %vm18385_vm0, %v18384_v0 }
0x10a3   :  { %9815 = vmatprep.mubr.bf16.mxu1 %v18386_v39  ;;  %10165 = vmatprep.subr.bf16.mxu0 %v17955_v34 }
0x10a5   :  { %9786 = vmatpush1.bf16.msra.mxu1 %v17932_v15 }
0x10a6   :  { %9787 = vmatprep.subr.bf16.mxu1 %v17937_v37 }
0x10a8   :  { %16406 = vmatmul.mubr.msk.bf16.vlgmr.msra.gmra.mxu0 %vm96_vm2, %v15643_v51 }
0x10a9   :  { %9788 = vmatpush1.bf16.msra.mxu1 %v17935_v17  ;;  %10166 = vmatpush1.bf16.msra.mxu0 %v17953_v38 }
0x10aa   :  { %9789 = vmatprep.subr.bf16.mxu1 %v17940_v58  ;;  %10167 = vmatprep.subr.bf16.mxu0 %v17961_v14 }
0x10ab   :  { %10197 = vmatprep.mubr.bf16.mxu0 %v18386_v39 }
0x10ad   :  { %9790 = vmatpush1.bf16.msra.mxu1 %v17938_v44  ;;  %10168 = vmatpush1.bf16.msra.mxu0 %v17959_v20 }
0x10ae   :  { %9791 = vmatprep.subr.bf16.mxu1 %v17943_v46  ;;  %10169 = vmatprep.subr.bf16.mxu0 %v17967_v49  ;;  %v18001_v49 = vld [vmem:[#allocation7 + $0x20e0] ss:$24 sps:$4 sm:$0xff]  }
0x10b1   :  { %9792 = vmatpush1.bf16.msra.mxu1 %v17941_v48  ;;  %10170 = vmatpush1.bf16.msra.mxu0 %v17965_v57 }
0x10b2   :  { %9793 = vmatprep.subr.bf16.mxu1 %v17946_v52  ;;  %10171 = vmatprep.subr.bf16.mxu0 %v17973_v28  ;;  %v18027_v52 = vld [vmem:[#allocation7 + $0x2254] ss:$24 sps:$4 sm:$0xff]   ;;  %v18009_v28 = vld [vmem:[#allocation7 + $0x2084] ss:$24 sps:$4 sm:$0xff]  }
0x10b3   :  { %v9353_v53 = vpop.f32.mrf.mxu0 }
0x10b4   :  { %v19147_v33 = vadd.f32 %v9353_v53, %v19112_v18  ;;  %v17956_v18 = vld [vmem:[#allocation7 + $0x20d8] ss:$24 sps:$4 sm:$0xff]  }
0x10b5   :  { %v9355_v7 = vpop.f32.mrf.mxu0  ;;  %9794 = vmatpush1.bf16.msra.mxu1 %v17944_v9  ;;  %10172 = vmatpush1.bf16.msra.mxu0 %v17971_v29  ;;  %v15693_v9 = vld [vmem:[%s19392_s0 + $0x16] sm:$0x1] }
0x10b6   :  { %v19150_v63 = vadd.f32 %v9355_v7, %v19115_v3  ;;  %9795 = vmatprep.subr.bf16.mxu1 %v17949_v31  ;;  %10173 = vmatprep.subr.bf16.mxu0 %v17979_v5  ;;  %v17970_v3 = vld [vmem:[#allocation7 + $0x207c] ss:$24 sps:$4 sm:$0xff]   ;;  %v18025_v29 = vld [vmem:[#allocation7 + $0x2250] ss:$24 sps:$4 sm:$0xff]   ;;  %v18031_v7 = vld [vmem:[#allocation7 + $0x2220] ss:$24 sps:$4 sm:$0xff]  }
0x10b7   :  { %v9357_v8 = vpop.f32.mrf.mxu0  ;;  %v18012_v31 = vld [vmem:[#allocation7 + $0x2054] ss:$24 sps:$4 sm:$0xff]   ;;  %v18033_v5 = vld [vmem:[#allocation7 + $0x2224] ss:$24 sps:$4 sm:$0xff]   ;;  %v18010_v53 = vld [vmem:[#allocation7 + $0x2050] ss:$24 sps:$4 sm:$0xff]  }
0x10b8   :  { %v18037_v8 = vld [vmem:[#allocation7 + $0x21f0] ss:$24 sps:$4 sm:$0xff]  }
0x10b9   :  { %v9358_v41 = vpop.f32.mrf.mxu0  ;;  %9796 = vmatpush1.bf16.msra.mxu1 %v17947_v10  ;;  %10174 = vmatpush1.bf16.msra.mxu0 %v17977_v56  ;;  %v18015_v10 = vld [vmem:[#allocation7 + $0x2024] ss:$24 sps:$4 sm:$0xff]   ;;  %v18039_v56 = vld [vmem:[#allocation7 + $0x21f4] ss:$24 sps:$4 sm:$0xff]  }
0x10ba   :  { %9797 = vmatprep.subr.bf16.mxu1 %v17952_v6  ;;  %10175 = vmatprep.subr.bf16.mxu0 %v17985_v25  ;;  %v18013_v6 = vld [vmem:[#allocation7 + $0x2020] ss:$24 sps:$4 sm:$0xff]   ;;  %v18018_v41 = vld [vmem:[#allocation7 + $0x1ff4] ss:$24 sps:$4 sm:$0xff]  }
0x10bb   :  { %v18024_v25 = vld [vmem:[#allocation7 + $0x1f94] ss:$24 sps:$4 sm:$0xff]  }
0x10bd   :  { %9798 = vmatpush1.bf16.msra.mxu1 %v17950_v16  ;;  %10176 = vmatpush1.bf16.msra.mxu0 %v17983_v55  ;;  %v18045_v16 = vld [vmem:[#allocation7 + $0x21c4] ss:$24 sps:$4 sm:$0xff]  }
0x10be   :  { %10206 = vmatprep.subr.bf16.mxu1 %v17958_v47  ;;  %10177 = vmatprep.subr.bf16.mxu0 %v17991_v26  ;;  %v18016_v47 = vld [vmem:[#allocation7 + $0x1ff0] ss:$24 sps:$4 sm:$0xff]   ;;  %v18030_v26 = vld [vmem:[#allocation7 + $0x225c] ss:$24 sps:$4 sm:$0xff]  }
0x10c0   :  { %9816 = vmatmul.mubr.bf16.vlgmr.msra.gmra.mxu1 %v19133_v35  ;;  %v18003_v35 = vld [vmem:[#allocation7 + $0x20e4] ss:$24 sps:$4 sm:$0xff]  }
0x10c1   :  { %10207 = vmatpush1.bf16.msra.mxu1 %v17956_v18  ;;  %10238 = vmatprep.mubr.bf16.mxu1 %v18386_v39  ;;  %v18043_v18 = vld [vmem:[#allocation7 + $0x21c0] ss:$24 sps:$4 sm:$0xff]  }
0x10c2   :  { %10208 = vmatprep.subr.bf16.mxu1 %v17964_v23  ;;  %10178 = vmatpush1.bf16.msra.mxu0 %v17989_v60  ;;  %v18021_v23 = vld [vmem:[#allocation7 + $0x1fc4] ss:$24 sps:$4 sm:$0xff]  }
0x10c3   :  { %10179 = vmatprep.subr.bf16.mxu0 %v17997_v36  ;;  %v18036_v60 = vld [vmem:[#allocation7 + $0x222c] ss:$24 sps:$4 sm:$0xff]  }
0x10c4   :  { %v18048_v36 = vld [vmem:[#allocation7 + $0x21cc] ss:$24 sps:$4 sm:$0xff]  }
0x10c5   :  { %10209 = vmatpush1.bf16.msra.mxu1 %v17962_v43  ;;  %v18051_v43 = vld [vmem:[#allocation7 + $0x2194] ss:$24 sps:$4 sm:$0xff]  }
0x10c6   :  { %10210 = vmatprep.subr.bf16.mxu1 %v17970_v3  ;;  %10180 = vmatpush1.bf16.msra.mxu0 %v17995_v32  ;;  %v18046_v32 = vld [vmem:[#allocation7 + $0x21c8] ss:$24 sps:$4 sm:$0xff]  }
0x10c7   :  { %10247 = vmatprep.subr.bf16.mxu0 %v18003_v35  ;;  %v18057_v35 = vld [vmem:[#allocation7 + $0x2164] ss:$24 sps:$4 sm:$0xff]  }
0x10c9   :  { %10211 = vmatpush1.bf16.msra.mxu1 %v17968_v19 }
0x10ca   :  { %10212 = vmatprep.subr.bf16.mxu1 %v17976_v45 }
0x10cd   :  { %10213 = vmatpush1.bf16.msra.mxu1 %v17974_v62  ;;  %v18019_v62 = vld [vmem:[#allocation7 + $0x1fc0] ss:$24 sps:$4 sm:$0xff]  }
0x10ce   :  { %10214 = vmatprep.subr.bf16.mxu1 %v17982_v22  ;;  %v18049_v22 = vld [vmem:[#allocation7 + $0x2190] ss:$24 sps:$4 sm:$0xff]  }
0x10d1   :  { %10215 = vmatpush1.bf16.msra.mxu1 %v17980_v54 }
0x10d2   :  { %10216 = vmatprep.subr.bf16.mxu1 %v17988_v30 }
0x10d5   :  { %10217 = vmatpush1.bf16.msra.mxu1 %v17986_v61  ;;  %v18022_v61 = vld [vmem:[#allocation7 + $0x1f90] ss:$24 sps:$4 sm:$0xff]  }
0x10d6   :  { %10218 = vmatprep.subr.bf16.mxu1 %v17994_v24  ;;  %v18040_v24 = vld [vmem:[#allocation7 + $0x21f8] ss:$24 sps:$4 sm:$0xff]  }
0x10d9   :  { %10219 = vmatpush1.bf16.msra.mxu1 %v17992_v2  ;;  %v18034_v2 = vld [vmem:[#allocation7 + $0x2228] ss:$24 sps:$4 sm:$0xff]  }
0x10da   :  { %10220 = vmatprep.subr.bf16.mxu1 %v18000_v42  ;;  %v18054_v42 = vld [vmem:[#allocation7 + $0x219c] ss:$24 sps:$4 sm:$0xff]  }
0x10dd   :  { %10221 = vmatpush1.bf16.msra.mxu1 %v17998_v12  ;;  %v18052_v12 = vld [vmem:[#allocation7 + $0x2198] ss:$24 sps:$4 sm:$0xff]  }
0x10de   :  { %16409 = vmatprep.subr.bf16.mxu1 %v18384_v0 }
0x1160   :  { %v9735_v13 = vpop.f32.mrf.mxu1  ;;  %v9776_v40 = vpop.f32.mrf.mxu0 }
0x1161   :  { %v19156_v34 = vadd.f32 %v9735_v13, %v19121_v21  ;;  %v19159_v11 = vadd.f32 %v9776_v40, %v19124_v50  ;;  %v18006_v50 = vld [vmem:[#allocation7 + $0x20b4] ss:$24 sps:$4 sm:$0xff]   ;;  %v18055_v13 = vld [vmem:[#allocation7 + $0x2160] ss:$24 sps:$4 sm:$0xff]  }
0x1162   :  { %v9737_v15 = vpop.f32.mrf.mxu1  ;;  %v9778_v37 = vpop.f32.mrf.mxu0  ;;  %v18060_v40 = vld [vmem:[#allocation7 + $0x216c] ss:$24 sps:$4 sm:$0xff]  }
0x1163   :  { %v19162_v17 = vadd.f32 %v9737_v15, %v19127_v27  ;;  %v19165_v51 = vadd.f32 %v9778_v37, %v19130_v59  ;;  %v18004_v59 = vld [vmem:[#allocation7 + $0x20b0] ss:$24 sps:$4 sm:$0xff]   ;;  %v18063_v37 = vld [vmem:[#allocation7 + $0x2134] ss:$24 sps:$4 sm:$0xff]  }
0x1164   :  { %v9739_v38 = vpop.f32.mrf.mxu1  ;;  %v9780_v58 = vpop.f32.mrf.mxu0  ;;  %v18058_v15 = vld [vmem:[#allocation7 + $0x2168] ss:$24 sps:$4 sm:$0xff]  }
0x1165   :  { %v18061_v38 = vld [vmem:[#allocation7 + $0x2130] ss:$24 sps:$4 sm:$0xff]  }
0x1166   :  { %v9740_v14 = vpop.f32.mrf.mxu1  ;;  %v9781_v44 = vpop.f32.mrf.mxu0  ;;  %v18064_v58 = vld [vmem:[#allocation7 + $0x2138] ss:$24 sps:$4 sm:$0xff]  }
0x1167   :  { %v18066_v14 = vld [vmem:[#allocation7 + $0x213c] ss:$24 sps:$4 sm:$0xff]  }
0x1168   :  { %v9869_v20 = vpop.f32.mrf.mxu0  ;;  %v18069_v44 = vld [vmem:[#allocation7 + $0x2104] ss:$24 sps:$4 sm:$0xff]  }
0x1169   :  { %v9870_v46 = vadd.f32 %v19060_v1, %v9869_v20  ;;  %v18007_v1 = vld [vmem:[#allocation7 + $0x2080] ss:$24 sps:$4 sm:$0xff]  }
0x116a   :  { %v16407_v21 = vpop.f32.mrf.mxu0  ;;  %v18067_v20 = vld [vmem:[#allocation7 + $0x2100] ss:$24 sps:$4 sm:$0xff]  }
0x116b   :  { %v19168_v48 = vpack.c.bf16 %v9870_v46, %v9870_v46  ;;  %v18072_v46 = vld [vmem:[#allocation7 + $0x210c] ss:$24 sps:$4 sm:$0xff]   ;;  %v18070_v21 = vld [vmem:[#allocation7 + $0x2108] ss:$24 sps:$4 sm:$0xff]  }
0x116c   :  { %v9872_v57 = vpop.f32.mrf.mxu0 }
0x116d   :  { %10198 = vmatmul.mubr.bf16.vlgmr.msra.gmra.mxu0 %v19168_v48  ;;  %10239 = vmatmul.mubr.bf16.vlgmr.msra.gmra.mxu1 %v19168_v48 }
0x116e   :  { %10248 = vmatpush1.bf16.msra.mxu0 %v18001_v49  ;;  %v16408_v27 = vpop.f32.mrf.mxu0  ;;  %16410 = vmatpush3.bf16.msra.mxu1 %v18451_v4  ;;  %v18075_v49 = vld [vmem:[#allocation7 + $0x2264] ss:$24 sps:$4 sm:$0xff]  }
0x116f   :  { %10249 = vmatprep.subr.bf16.mxu0 %v18006_v50  ;;  %16411 = vmatprep.mubr.msk.bf16.mxu1 %vm18385_vm0, %v18384_v0 }
0x1170   :  { %10279 = vmatprep.mubr.bf16.mxu0 %v18386_v39  ;;  %10629 = vmatprep.subr.bf16.mxu1 %v18027_v52 }
0x1172   :  { %10250 = vmatpush1.bf16.msra.mxu0 %v18004_v59 }
0x1173   :  { %10251 = vmatprep.subr.bf16.mxu0 %v18009_v28 }
0x1175   :  { %16412 = vmatmul.mubr.msk.bf16.vlgmr.msra.gmra.mxu1 %vm96_vm2, %v15693_v9 }
0x1176   :  { %10252 = vmatpush1.bf16.msra.mxu0 %v18007_v1  ;;  %10630 = vmatpush1.bf16.msra.mxu1 %v18025_v29 }
0x1177   :  { %10253 = vmatprep.subr.bf16.mxu0 %v18012_v31  ;;  %10631 = vmatprep.subr.bf16.mxu1 %v18033_v5 }
0x1178   :  { %10661 = vmatprep.mubr.bf16.mxu1 %v18386_v39 }
0x117a   :  { %10254 = vmatpush1.bf16.msra.mxu0 %v18010_v53  ;;  %10632 = vmatpush1.bf16.msra.mxu1 %v18031_v7  ;;  %v19202_v7 = vld [vmem:[#allocation5] ss:$0 sm:$0xff] }
0x117b   :  { %10255 = vmatprep.subr.bf16.mxu0 %v18015_v10  ;;  %10633 = vmatprep.subr.bf16.mxu1 %v18039_v56 }
0x117e   :  { %10256 = vmatpush1.bf16.msra.mxu0 %v18013_v6  ;;  %10634 = vmatpush1.bf16.msra.mxu1 %v18037_v8  ;;  %v18078_v6 = vld [vmem:[#allocation7 + $0x2234] ss:$24 sps:$4 sm:$0xff]  }
0x117f   :  { %10257 = vmatprep.subr.bf16.mxu0 %v18018_v41  ;;  %10635 = vmatprep.subr.bf16.mxu1 %v18045_v16  ;;  %v18076_v41 = vld [vmem:[#allocation7 + $0x2230] ss:$24 sps:$4 sm:$0xff]   ;;  %v18081_v16 = vld [vmem:[#allocation7 + $0x2204] ss:$24 sps:$4 sm:$0xff]  }
0x1180   :  { %v9817_v3 = vpop.f32.mrf.mxu1 }
0x1181   :  { %v19182_v19 = vadd.f32 %v9817_v3, %v19147_v33  ;;  %v18028_v33 = vld [vmem:[#allocation7 + $0x2258] ss:$24 sps:$4 sm:$0xff]   ;;  %v18105_v3 = vld [vmem:[#allocation7 + $0x23a4] ss:$24 sps:$4 sm:$0xff]  }
0x1182   :  { %v9819_v45 = vpop.f32.mrf.mxu1  ;;  %10258 = vmatpush1.bf16.msra.mxu0 %v18016_v47  ;;  %10636 = vmatpush1.bf16.msra.mxu1 %v18043_v18  ;;  %v18079_v47 = vld [vmem:[#allocation7 + $0x2200] ss:$24 sps:$4 sm:$0xff]   ;;  %v15743_v18 = vld [vmem:[%s19392_s0 + $0x17] sm:$0x1] }
0x1183   :  { %v19185_v54 = vadd.f32 %v9819_v45, %v19150_v63  ;;  %10259 = vmatprep.subr.bf16.mxu0 %v18021_v23  ;;  %10637 = vmatprep.subr.bf16.mxu1 %v18051_v43  ;;  %v18042_v63 = vld [vmem:[#allocation7 + $0x21fc] ss:$24 sps:$4 sm:$0xff]   ;;  %v18097_v23 = vld [vmem:[#allocation7 + $0x23d0] ss:$24 sps:$4 sm:$0xff]  }
0x1184   :  { %v9821_v55 = vpop.f32.mrf.mxu1  ;;  %v18084_v43 = vld [vmem:[#allocation7 + $0x21d4] ss:$24 sps:$4 sm:$0xff]   ;;  %v18082_v45 = vld [vmem:[#allocation7 + $0x21d0] ss:$24 sps:$4 sm:$0xff]  }
0x1185   :  { %v18085_v55 = vld [vmem:[#allocation7 + $0x21a0] ss:$24 sps:$4 sm:$0xff]  }
0x1186   :  { %v9822_v30 = vpop.f32.mrf.mxu1  ;;  %10260 = vmatpush1.bf16.msra.mxu0 %v18019_v62  ;;  %10638 = vmatpush1.bf16.msra.mxu1 %v18049_v22  ;;  %v18103_v62 = vld [vmem:[#allocation7 + $0x23a0] ss:$24 sps:$4 sm:$0xff]   ;;  %v18087_v22 = vld [vmem:[#allocation7 + $0x21a4] ss:$24 sps:$4 sm:$0xff]  }
0x1187   :  { %10261 = vmatprep.subr.bf16.mxu0 %v18024_v25  ;;  %10639 = vmatprep.subr.bf16.mxu1 %v18057_v35  ;;  %v18111_v25 = vld [vmem:[#allocation7 + $0x2374] ss:$24 sps:$4 sm:$0xff]   ;;  %v18109_v30 = vld [vmem:[#allocation7 + $0x2370] ss:$24 sps:$4 sm:$0xff]  }
0x118a   :  { %10262 = vmatpush1.bf16.msra.mxu0 %v18022_v61  ;;  %10640 = vmatpush1.bf16.msra.mxu1 %v18055_v13  ;;  %v18090_v61 = vld [vmem:[#allocation7 + $0x2174] ss:$24 sps:$4 sm:$0xff]  }
0x118b   :  { %10670 = vmatprep.subr.bf16.mxu0 %v18030_v26  ;;  %10641 = vmatprep.subr.bf16.mxu1 %v18063_v37  ;;  %v18117_v26 = vld [vmem:[#allocation7 + $0x2344] ss:$24 sps:$4 sm:$0xff]   ;;  %v18096_v13 = vld [vmem:[#allocation7 + $0x2114] ss:$24 sps:$4 sm:$0xff]   ;;  %v18094_v37 = vld [vmem:[#allocation7 + $0x2110] ss:$24 sps:$4 sm:$0xff]  }
0x118d   :  { %10280 = vmatmul.mubr.bf16.vlgmr.msra.gmra.mxu0 %v19168_v48 }
0x118e   :  { %10671 = vmatpush1.bf16.msra.mxu0 %v18028_v33  ;;  %10702 = vmatprep.mubr.bf16.mxu0 %v18386_v39  ;;  %v18088_v33 = vld [vmem:[#allocation7 + $0x2170] ss:$24 sps:$4 sm:$0xff]  }
0x118f   :  { %10672 = vmatprep.subr.bf16.mxu0 %v18036_v60  ;;  %10642 = vmatpush1.bf16.msra.mxu1 %v18061_v38  ;;  %v18115_v60 = vld [vmem:[#allocation7 + $0x2340] ss:$24 sps:$4 sm:$0xff]   ;;  %v18102_v38 = vld [vmem:[#allocation7 + $0x23dc] ss:$24 sps:$4 sm:$0xff]  }
0x1190   :  { %10643 = vmatprep.subr.bf16.mxu1 %v18069_v44  ;;  %v18112_v44 = vld [vmem:[#allocation7 + $0x2378] ss:$24 sps:$4 sm:$0xff]  }
0x1192   :  { %10673 = vmatpush1.bf16.msra.mxu0 %v18034_v2  ;;  %v18093_v2 = vld [vmem:[#allocation7 + $0x2144] ss:$24 sps:$4 sm:$0xff]  }
0x1193   :  { %10674 = vmatprep.subr.bf16.mxu0 %v18042_v63  ;;  %10644 = vmatpush1.bf16.msra.mxu1 %v18067_v20  ;;  %v18123_v63 = vld [vmem:[#allocation7 + $0x2314] ss:$24 sps:$4 sm:$0xff]  }
0x1194   :  { %10711 = vmatprep.subr.bf16.mxu1 %v18075_v49  ;;  %v18120_v20 = vld [vmem:[#allocation7 + $0x234c] ss:$24 sps:$4 sm:$0xff]   ;;  %v18124_v49 = vld [vmem:[#allocation7 + $0x2318] ss:$24 sps:$4 sm:$0xff]  }
0x1196   :  { %10675 = vmatpush1.bf16.msra.mxu0 %v18040_v24 }
0x1197   :  { %10676 = vmatprep.subr.bf16.mxu0 %v18048_v36 }
0x119a   :  { %10677 = vmatpush1.bf16.msra.mxu0 %v18046_v32 }
0x119b   :  { %10678 = vmatprep.subr.bf16.mxu0 %v18054_v42  ;;  %v18091_v42 = vld [vmem:[#allocation7 + $0x2140] ss:$24 sps:$4 sm:$0xff]  }
0x119e   :  { %10679 = vmatpush1.bf16.msra.mxu0 %v18052_v12  ;;  %v18121_v12 = vld [vmem:[#allocation7 + $0x2310] ss:$24 sps:$4 sm:$0xff]  }
0x119f   :  { %10680 = vmatprep.subr.bf16.mxu0 %v18060_v40 }
0x11a2   :  { %10681 = vmatpush1.bf16.msra.mxu0 %v18058_v15 }
0x11a3   :  { %10682 = vmatprep.subr.bf16.mxu0 %v18066_v14  ;;  %v18106_v14 = vld [vmem:[#allocation7 + $0x23a8] ss:$24 sps:$4 sm:$0xff]  }
0x11a6   :  { %10683 = vmatpush1.bf16.msra.mxu0 %v18064_v58  ;;  %v18108_v58 = vld [vmem:[#allocation7 + $0x23ac] ss:$24 sps:$4 sm:$0xff]  }
0x11a7   :  { %10684 = vmatprep.subr.bf16.mxu0 %v18072_v46  ;;  %v18118_v46 = vld [vmem:[#allocation7 + $0x2348] ss:$24 sps:$4 sm:$0xff]  }
0x11aa   :  { %10685 = vmatpush1.bf16.msra.mxu0 %v18070_v21  ;;  %v18126_v21 = vld [vmem:[#allocation7 + $0x231c] ss:$24 sps:$4 sm:$0xff]  }
0x11ab   :  { %16415 = vmatprep.subr.bf16.mxu0 %v18384_v0 }
0x122d   :  { %v10199_v48 = vpop.f32.mrf.mxu0  ;;  %v10240_v50 = vpop.f32.mrf.mxu1 }
0x122e   :  { %v19191_v57 = vadd.f32 %v10199_v48, %v19156_v34  ;;  %v19194_v52 = vadd.f32 %v10240_v50, %v19159_v11  ;;  %v18073_v11 = vld [vmem:[#allocation7 + $0x2260] ss:$24 sps:$4 sm:$0xff]   ;;  %v18129_v48 = vld [vmem:[#allocation7 + $0x22e4] ss:$24 sps:$4 sm:$0xff]  }
0x122f   :  { %v10201_v27 = vpop.f32.mrf.mxu0  ;;  %v10242_v59 = vpop.f32.mrf.mxu1  ;;  %v18127_v50 = vld [vmem:[#allocation7 + $0x22e0] ss:$24 sps:$4 sm:$0xff]  }
0x1230   :  { %v19197_v28 = vadd.f32 %v10201_v27, %v19162_v17  ;;  %v19200_v1 = vadd.f32 %v10242_v59, %v19165_v51  ;;  %v18099_v17 = vld [vmem:[#allocation7 + $0x23d4] ss:$24 sps:$4 sm:$0xff]   ;;  %v18130_v59 = vld [vmem:[#allocation7 + $0x22e8] ss:$24 sps:$4 sm:$0xff]  }
0x1231   :  { %v10203_v9 = vpop.f32.mrf.mxu0  ;;  %v10244_v29 = vpop.f32.mrf.mxu1  ;;  %v18132_v27 = vld [vmem:[#allocation7 + $0x22ec] ss:$24 sps:$4 sm:$0xff]  }
0x1232   :  { %v18135_v9 = vld [vmem:[#allocation7 + $0x22b4] ss:$24 sps:$4 sm:$0xff]   ;;  %v18133_v29 = vld [vmem:[#allocation7 + $0x22b0] ss:$24 sps:$4 sm:$0xff]  }
0x1233   :  { %v10204_v31 = vpop.f32.mrf.mxu0  ;;  %v10245_v5 = vpop.f32.mrf.mxu1 }
0x1234   :  { %v18136_v31 = vld [vmem:[#allocation7 + $0x22b8] ss:$24 sps:$4 sm:$0xff]   ;;  %v18138_v5 = vld [vmem:[#allocation7 + $0x22bc] ss:$24 sps:$4 sm:$0xff]  }
0x1235   :  { %v10333_v53 = vpop.f32.mrf.mxu1 }
0x1236   :  { %v10334_v34 = vadd.f32 %v19202_v7, %v10333_v53  ;;  %v18141_v53 = vld [vmem:[#allocation7 + $0x2284] ss:$24 sps:$4 sm:$0xff]  }
0x1237   :  { %v16413_v10 = vpop.f32.mrf.mxu1 }
0x1238   :  { %v19205_v56 = vpack.c.bf16 %v10334_v34, %v10334_v34  ;;  %v18139_v34 = vld [vmem:[#allocation7 + $0x2280] ss:$24 sps:$4 sm:$0xff]   ;;  %v18144_v10 = vld [vmem:[#allocation7 + $0x228c] ss:$24 sps:$4 sm:$0xff]  }
0x1239   :  { %v10336_v8 = vpop.f32.mrf.mxu1 }
0x123a   :  { %10662 = vmatmul.mubr.bf16.vlgmr.msra.gmra.mxu1 %v19205_v56  ;;  %10703 = vmatmul.mubr.bf16.vlgmr.msra.gmra.mxu0 %v19205_v56 }
0x123b   :  { %10712 = vmatpush1.bf16.msra.mxu1 %v18073_v11  ;;  %v16414_v51 = vpop.f32.mrf.mxu1  ;;  %16416 = vmatpush3.bf16.msra.mxu0 %v18451_v4  ;;  %v18142_v11 = vld [vmem:[#allocation7 + $0x2288] ss:$24 sps:$4 sm:$0xff]  }
0x123c   :  { %10713 = vmatprep.subr.bf16.mxu1 %v18078_v6  ;;  %16417 = vmatprep.mubr.msk.bf16.mxu0 %vm18385_vm0, %v18384_v0 }
0x123d   :  { %10743 = vmatprep.mubr.bf16.mxu1 %v18386_v39  ;;  %11093 = vmatprep.subr.bf16.mxu0 %v18099_v17 }
0x123f   :  { %10714 = vmatpush1.bf16.msra.mxu1 %v18076_v41 }
0x1240   :  { %10715 = vmatprep.subr.bf16.mxu1 %v18081_v16 }
0x1242   :  { %16418 = vmatmul.mubr.msk.bf16.vlgmr.msra.gmra.mxu0 %vm96_vm2, %v15743_v18 }
0x1243   :  { %10716 = vmatpush1.bf16.msra.mxu1 %v18079_v47  ;;  %11094 = vmatpush1.bf16.msra.mxu0 %v18097_v23 }
0x1244   :  { %10717 = vmatprep.subr.bf16.mxu1 %v18084_v43  ;;  %11095 = vmatprep.subr.bf16.mxu0 %v18105_v3 }
0x1245   :  { %11125 = vmatprep.mubr.bf16.mxu0 %v18386_v39 }
0x1247   :  { %10718 = vmatpush1.bf16.msra.mxu1 %v18082_v45  ;;  %11096 = vmatpush1.bf16.msra.mxu0 %v18103_v62 }
0x1248   :  { %10719 = vmatprep.subr.bf16.mxu1 %v18087_v22  ;;  %11097 = vmatprep.subr.bf16.mxu0 %v18111_v25  ;;  %v18145_v25 = vld [vmem:[#allocation7 + $0x23e0] ss:$24 sps:$4 sm:$0xff]  }
0x124b   :  { %10720 = vmatpush1.bf16.msra.mxu1 %v18085_v55  ;;  %11098 = vmatpush1.bf16.msra.mxu0 %v18109_v30 }
0x124c   :  { %10721 = vmatprep.subr.bf16.mxu1 %v18090_v61  ;;  %11099 = vmatprep.subr.bf16.mxu0 %v18117_v26  ;;  %v18171_v61 = vld [vmem:[#allocation7 + $0x2554] ss:$24 sps:$4 sm:$0xff]   ;;  %v18153_v26 = vld [vmem:[#allocation7 + $0x2384] ss:$24 sps:$4 sm:$0xff]  }
0x124d   :  { %v10281_v24 = vpop.f32.mrf.mxu0 }
0x124e   :  { %v19219_v36 = vadd.f32 %v10281_v24, %v19182_v19  ;;  %v18100_v19 = vld [vmem:[#allocation7 + $0x23d8] ss:$24 sps:$4 sm:$0xff]   ;;  %v18177_v24 = vld [vmem:[#allocation7 + $0x2524] ss:$24 sps:$4 sm:$0xff]  }
0x124f   :  { %v10283_v32 = vpop.f32.mrf.mxu0  ;;  %10722 = vmatpush1.bf16.msra.mxu1 %v18088_v33  ;;  %11100 = vmatpush1.bf16.msra.mxu0 %v18115_v60  ;;  %v18151_v33 = vld [vmem:[#allocation7 + $0x2380] ss:$24 sps:$4 sm:$0xff]   ;;  %v15793_v60 = vld [vmem:[%s19392_s0 + $0x18] sm:$0x1]  ;;  %s18388_s0 = smov [#allocation11]  }
0x1250   :  { %v19222_v35 = vadd.f32 %v10283_v32, %v19185_v54  ;;  %10723 = vmatprep.subr.bf16.mxu1 %v18093_v2  ;;  %11101 = vmatprep.subr.bf16.mxu0 %v18123_v63  ;;  %v18114_v54 = vld [vmem:[#allocation7 + $0x237c] ss:$24 sps:$4 sm:$0xff]   ;;  %v18169_v2 = vld [vmem:[#allocation7 + $0x2550] ss:$24 sps:$4 sm:$0xff]   ;;  %v18175_v32 = vld [vmem:[#allocation7 + $0x2520] ss:$24 sps:$4 sm:$0xff]  }
0x1251   :  { %v10285_v40 = vpop.f32.mrf.mxu0  ;;  %v18156_v63 = vld [vmem:[#allocation7 + $0x2354] ss:$24 sps:$4 sm:$0xff]   ;;  %s14582_s17 = sshll.u32 %s18388_s0, 4  ;;  %s14583_s17 = int_to_ptr.vmem [resolvable:$true] %s14582_s17 }
0x1252   :  { %v18162_v40 = vld [vmem:[#allocation7 + $0x22f4] ss:$24 sps:$4 sm:$0xff]   ;;  %s18347_s18 = scalar_lea.vmem %s14583_s17, 256  ;;  %p18352_p12 = scmp.lt.s32.totalorder %s14583_s17, %s14583_s17 }
0x1253   :  { %v10286_v15 = vpop.f32.mrf.mxu0  ;;  %10724 = vmatpush1.bf16.msra.mxu1 %v18091_v42  ;;  %11102 = vmatpush1.bf16.msra.mxu0 %v18121_v12  ;;  %v18183_v42 = vld [vmem:[#allocation7 + $0x24f4] ss:$24 sps:$4 sm:$0xff]   ;;  %v18157_v12 = vld [vmem:[#allocation7 + $0x2320] ss:$24 sps:$4 sm:$0xff]   ;;  %p18348_p11 = scmp.ne.s32.totalorder %s14583_s17, %s18347_s18  ;;  %p18353_p13 = scmp.lt.s32.totalorder %s18347_s18, %s18347_s18 }
0x1254   :  { %10725 = vmatprep.subr.bf16.mxu1 %v18096_v13  ;;  %11103 = vmatprep.subr.bf16.mxu0 %v18129_v48  ;;  %v18181_v13 = vld [vmem:[#allocation7 + $0x24f0] ss:$24 sps:$4 sm:$0xff]   ;;  %v18189_v15 = vld [vmem:[#allocation7 + $0x24c4] ss:$24 sps:$4 sm:$0xff]  }
0x1255   :  { %p18354_p0 = por %p18353_p13, %p18352_p12 }
0x1257   :  { %10726 = vmatpush1.bf16.msra.mxu1 %v18094_v37  ;;  %11104 = vmatpush1.bf16.msra.mxu0 %v18127_v50  ;;  %v18160_v37 = vld [vmem:[#allocation7 + $0x22f0] ss:$24 sps:$4 sm:$0xff]   ;;  %p18355_p1 = pnand %p18354_p0, %p18348_p11 }
0x1258   :  { %11134 = vmatprep.subr.bf16.mxu1 %v18102_v38  ;;  %11105 = vmatprep.subr.bf16.mxu0 %v18135_v9  ;;  %v18187_v38 = vld [vmem:[#allocation7 + $0x24c0] ss:$24 sps:$4 sm:$0xff]   ;;  %v18180_v9 = vld [vmem:[#allocation7 + $0x252c] ss:$24 sps:$4 sm:$0xff]  }
0x125a   :  { %10744 = vmatmul.mubr.bf16.vlgmr.msra.gmra.mxu1 %v19205_v56  ;;  %v18147_v56 = vld [vmem:[#allocation7 + $0x23e4] ss:$24 sps:$4 sm:$0xff]  }
0x125b   :  { %11135 = vmatpush1.bf16.msra.mxu1 %v18100_v19  ;;  %11166 = vmatprep.mubr.bf16.mxu1 %v18386_v39  ;;  %v18165_v19 = vld [vmem:[#allocation7 + $0x22c4] ss:$24 sps:$4 sm:$0xff]  }
0x125c   :  { %11136 = vmatprep.subr.bf16.mxu1 %v18108_v58  ;;  %11106 = vmatpush1.bf16.msra.mxu0 %v18133_v29  ;;  %v18195_v58 = vld [vmem:[#allocation7 + $0x2494] ss:$24 sps:$4 sm:$0xff]   ;;  %v18178_v29 = vld [vmem:[#allocation7 + $0x2528] ss:$24 sps:$4 sm:$0xff]  }
0x125d   :  { %11107 = vmatprep.subr.bf16.mxu0 %v18141_v53  ;;  %v18190_v53 = vld [vmem:[#allocation7 + $0x24c8] ss:$24 sps:$4 sm:$0xff]  }
0x125f   :  { %11137 = vmatpush1.bf16.msra.mxu1 %v18106_v14 }
0x1260   :  { %11138 = vmatprep.subr.bf16.mxu1 %v18114_v54  ;;  %11108 = vmatpush1.bf16.msra.mxu0 %v18139_v34  ;;  %v18198_v34 = vld [vmem:[#allocation7 + $0x249c] ss:$24 sps:$4 sm:$0xff]  }
0x1261   :  { %11175 = vmatprep.subr.bf16.mxu0 %v18147_v56  ;;  %v18199_v56 = vld [vmem:[#allocation7 + $0x2460] ss:$24 sps:$4 sm:$0xff]  }
0x1263   :  { %11139 = vmatpush1.bf16.msra.mxu1 %v18112_v44 }
0x1264   :  { %11140 = vmatprep.subr.bf16.mxu1 %v18120_v20  ;;  %v18163_v20 = vld [vmem:[#allocation7 + $0x22c0] ss:$24 sps:$4 sm:$0xff]  }
0x1267   :  { %11141 = vmatpush1.bf16.msra.mxu1 %v18118_v46  ;;  %v18193_v46 = vld [vmem:[#allocation7 + $0x2490] ss:$24 sps:$4 sm:$0xff]  }
0x1268   :  { %11142 = vmatprep.subr.bf16.mxu1 %v18126_v21 }
0x126b   :  { %11143 = vmatpush1.bf16.msra.mxu1 %v18124_v49  ;;  %v18168_v49 = vld [vmem:[#allocation7 + $0x2294] ss:$24 sps:$4 sm:$0xff]  }
0x126c   :  { %11144 = vmatprep.subr.bf16.mxu1 %v18132_v27  ;;  %v18166_v27 = vld [vmem:[#allocation7 + $0x2290] ss:$24 sps:$4 sm:$0xff]  }
0x126f   :  { %11145 = vmatpush1.bf16.msra.mxu1 %v18130_v59  ;;  %v18174_v59 = vld [vmem:[#allocation7 + $0x255c] ss:$24 sps:$4 sm:$0xff]  }
0x1270   :  { %11146 = vmatprep.subr.bf16.mxu1 %v18138_v5  ;;  %v18192_v5 = vld [vmem:[#allocation7 + $0x24cc] ss:$24 sps:$4 sm:$0xff]  }
0x1273   :  { %11147 = vmatpush1.bf16.msra.mxu1 %v18136_v31  ;;  %v18184_v31 = vld [vmem:[#allocation7 + $0x24f8] ss:$24 sps:$4 sm:$0xff]  }
0x1274   :  { %11148 = vmatprep.subr.bf16.mxu1 %v18144_v10  ;;  %v18196_v10 = vld [vmem:[#allocation7 + $0x2498] ss:$24 sps:$4 sm:$0xff]  }
0x1277   :  { %11149 = vmatpush1.bf16.msra.mxu1 %v18142_v11  ;;  %v18201_v11 = vld [vmem:[#allocation7 + $0x2464] ss:$24 sps:$4 sm:$0xff]  }
0x1278   :  { %16421 = vmatprep.subr.bf16.mxu1 %v18384_v0 }
0x12fa   :  { %v10663_v6 = vpop.f32.mrf.mxu1  ;;  %v10704_v8 = vpop.f32.mrf.mxu0 }
0x12fb   :  { %v19228_v17 = vadd.f32 %v10663_v6, %v19191_v57  ;;  %v19231_v51 = vadd.f32 %v10704_v8, %v19194_v52  ;;  %v18150_v52 = vld [vmem:[#allocation7 + $0x23b4] ss:$24 sps:$4 sm:$0xff]   ;;  %v18202_v8 = vld [vmem:[#allocation7 + $0x2468] ss:$24 sps:$4 sm:$0xff]  }
0x12fc   :  { %v10665_v41 = vpop.f32.mrf.mxu1  ;;  %v10706_v16 = vpop.f32.mrf.mxu0  ;;  %v18204_v6 = vld [vmem:[#allocation7 + $0x246c] ss:$24 sps:$4 sm:$0xff]  }
0x12fd   :  { %v19234_v47 = vadd.f32 %v10665_v41, %v19197_v28  ;;  %v19237_v18 = vadd.f32 %v10706_v16, %v19200_v1  ;;  %v18148_v1 = vld [vmem:[#allocation7 + $0x23b0] ss:$24 sps:$4 sm:$0xff]   ;;  %v18207_v41 = vld [vmem:[#allocation7 + $0x2434] ss:$24 sps:$4 sm:$0xff]  }
0x12fe   :  { %v10667_v23 = vpop.f32.mrf.mxu1  ;;  %v10708_v43 = vpop.f32.mrf.mxu0  ;;  %v18205_v16 = vld [vmem:[#allocation7 + $0x2430] ss:$24 sps:$4 sm:$0xff]  }
0x12ff   :  { %v18208_v23 = vld [vmem:[#allocation7 + $0x2438] ss:$24 sps:$4 sm:$0xff]   ;;  %v18210_v43 = vld [vmem:[#allocation7 + $0x243c] ss:$24 sps:$4 sm:$0xff]  }
0x1300   :  { %v10668_v3 = vpop.f32.mrf.mxu1  ;;  %v10709_v45 = vpop.f32.mrf.mxu0 }
0x1301   :  { %v18213_v3 = vld [vmem:[#allocation7 + $0x2404] ss:$24 sps:$4 sm:$0xff]   ;;  %v18211_v45 = vld [vmem:[#allocation7 + $0x2400] ss:$24 sps:$4 sm:$0xff]  }
0x1302   :  { %v10797_v62 = vpop.f32.mrf.mxu0 }
0x1303   :  { %v10798_v22 = vadd.f32 %v19202_v7, %v10797_v62  ;;  %v18216_v62 = vld [vmem:[#allocation7 + $0x240c] ss:$24 sps:$4 sm:$0xff]  }
0x1304   :  { %v16419_v57 = vpop.f32.mrf.mxu0 }
0x1305   :  { %v19240_v55 = vpack.c.bf16 %v10798_v22, %v10798_v22  ;;  %v18214_v22 = vld [vmem:[#allocation7 + $0x2408] ss:$24 sps:$4 sm:$0xff]   ;;  %v18219_v57 = vld [vmem:[#allocation7 + $0x2564] ss:$24 sps:$4 sm:$0xff]  }
0x1306   :  { %v10800_v30 = vpop.f32.mrf.mxu0 }
0x1307   :  { %11126 = vmatmul.mubr.bf16.vlgmr.msra.gmra.mxu0 %v19240_v55  ;;  %11167 = vmatmul.mubr.bf16.vlgmr.msra.gmra.mxu1 %v19240_v55 }
0x1308   :  { %11176 = vmatpush1.bf16.msra.mxu0 %v18145_v25  ;;  %v16420_v28 = vpop.f32.mrf.mxu0  ;;  %16422 = vmatpush3.bf16.msra.mxu1 %v18451_v4  ;;  %v18154_v4 = vld [vmem:[#allocation7 + $0x2350] ss:$24 sps:$4 sm:$0xff]   ;;  %v11748_v25 = vld [vmem:[#allocation8 + $0x1c0] sm:$0xff] }
0x1309   :  { %11177 = vmatprep.subr.bf16.mxu0 %v18150_v52  ;;  %16423 = vmatprep.mubr.msk.bf16.mxu1 %vm18385_vm0, %v18384_v0  ;;  %v18159_v0 = vld [vmem:[#allocation7 + $0x2324] ss:$24 sps:$4 sm:$0xff]  }
0x130a   :  { %11207 = vmatprep.mubr.bf16.mxu0 %v18386_v39  ;;  %11557 = vmatprep.subr.bf16.mxu1 %v18171_v61 }
0x130c   :  { %11178 = vmatpush1.bf16.msra.mxu0 %v18148_v1 }
0x130d   :  { %11179 = vmatprep.subr.bf16.mxu0 %v18153_v26 }
0x130f   :  { %16424 = vmatmul.mubr.msk.bf16.vlgmr.msra.gmra.mxu1 %vm96_vm2, %v15793_v60 }
0x1310   :  { %11180 = vmatpush1.bf16.msra.mxu0 %v18151_v33  ;;  %11558 = vmatpush1.bf16.msra.mxu1 %v18169_v2 }
0x1311   :  { %11181 = vmatprep.subr.bf16.mxu0 %v18156_v63  ;;  %11559 = vmatprep.subr.bf16.mxu1 %v18177_v24 }
0x1312   :  { %11589 = vmatprep.mubr.bf16.mxu1 %v18386_v39 }
0x1314   :  { %11182 = vmatpush1.bf16.msra.mxu0 %v18154_v4  ;;  %11560 = vmatpush1.bf16.msra.mxu1 %v18175_v32 }
0x1315   :  { %11183 = vmatprep.subr.bf16.mxu0 %v18159_v0  ;;  %11561 = vmatprep.subr.bf16.mxu1 %v18183_v42 }
0x1318   :  { %11184 = vmatpush1.bf16.msra.mxu0 %v18157_v12  ;;  %11562 = vmatpush1.bf16.msra.mxu1 %v18181_v13  ;;  %v11744_v13 = vld [vmem:[#allocation8 + $0x1a0] sm:$0xff] }
0x1319   :  { %11185 = vmatprep.subr.bf16.mxu0 %v18162_v40  ;;  %11563 = vmatprep.subr.bf16.mxu1 %v18189_v15 }
0x131a   :  { %v10745_v14 = vpop.f32.mrf.mxu1 }
0x131b   :  { %v19254_v54 = vadd.f32 %v10745_v14, %v19219_v36  ;;  %v18172_v36 = vld [vmem:[#allocation7 + $0x2558] ss:$24 sps:$4 sm:$0xff]  }
0x131c   :  { %v10747_v44 = vpop.f32.mrf.mxu1  ;;  %11186 = vmatpush1.bf16.msra.mxu0 %v18160_v37  ;;  %11564 = vmatpush1.bf16.msra.mxu1 %v18187_v38  ;;  %v18222_v37 = vld [vmem:[#allocation7 + $0x2534] ss:$24 sps:$4 sm:$0xff]   ;;  %v18220_v14 = vld [vmem:[#allocation7 + $0x2530] ss:$24 sps:$4 sm:$0xff]  }
0x131d   :  { %v19257_v21 = vadd.f32 %v10747_v44, %v19222_v35  ;;  %11187 = vmatprep.subr.bf16.mxu0 %v18165_v19  ;;  %11565 = vmatprep.subr.bf16.mxu1 %v18195_v58  ;;  %v18186_v35 = vld [vmem:[#allocation7 + $0x24fc] ss:$24 sps:$4 sm:$0xff]   ;;  %v11736_v19 = vld [vmem:[#allocation8 + $0x160] sm:$0xff] }
0x131e   :  { %v10749_v48 = vpop.f32.mrf.mxu1 }
0x131f   :  { %v18223_v48 = vld [vmem:[#allocation7 + $0x2500] ss:$24 sps:$4 sm:$0xff]  }
0x1320   :  { %v10750_v50 = vpop.f32.mrf.mxu1  ;;  %11188 = vmatpush1.bf16.msra.mxu0 %v18163_v20  ;;  %11566 = vmatpush1.bf16.msra.mxu1 %v18193_v46  ;;  %v11724_v46 = vld [vmem:[#allocation8 + $0x100] sm:$0xff] }
0x1321   :  { %11189 = vmatprep.subr.bf16.mxu0 %v18168_v49  ;;  %11567 = vmatprep.subr.bf16.mxu1 %v18201_v11  ;;  %v11728_v49 = vld [vmem:[#allocation8 + $0x120] sm:$0xff]  ;;  %v18228_v50 = vld [vmem:[#allocation7 + $0x24d4] ss:$24 sps:$4 sm:$0xff]  }
0x1324   :  { %11190 = vmatpush1.bf16.msra.mxu0 %v18166_v27  ;;  %11568 = vmatpush1.bf16.msra.mxu1 %v18199_v56 }
0x1325   :  { %11598 = vmatprep.subr.bf16.mxu0 %v18174_v59  ;;  %11569 = vmatprep.subr.bf16.mxu1 %v18207_v41  ;;  %v15876_v59 = vcombine.high %v11724_v46, %v11728_v49  ;;  %v18232_v41 = vld [vmem:[#allocation7 + $0x2470] ss:$24 sps:$4 sm:$0xff]  }
0x1327   :  { %11208 = vmatmul.mubr.bf16.vlgmr.msra.gmra.mxu0 %v19240_v55  ;;  %v11752_v55 = vld [vmem:[#allocation8 + $0x1e0] sm:$0xff] }
0x1328   :  { %11599 = vmatpush1.bf16.msra.mxu0 %v18172_v36  ;;  %11630 = vmatprep.mubr.bf16.mxu0 %v18386_v39  ;;  %v15899_v52 = vcombine.low %v11748_v25, %v11752_v55  ;;  %v15900_v30 = vcombine.high %v11748_v25, %v11752_v55  ;;  %v11716_v36 = vld [vmem:[#allocation8 + $0xc0] sm:$0xff] }
0x1329   :  { %11600 = vmatprep.subr.bf16.mxu0 %v18180_v9  ;;  %11570 = vmatpush1.bf16.msra.mxu1 %v18205_v16  ;;  %v11720_v9 = vld [vmem:[#allocation8 + $0xe0] sm:$0xff] }
0x132a   :  { %11571 = vmatprep.subr.bf16.mxu1 %v18213_v3  ;;  %v15867_v11 = vcombine.low %v11716_v36, %v11720_v9  ;;  %v18237_v16 = vld [vmem:[#allocation7 + $0x2444] ss:$24 sps:$4 sm:$0xff]   ;;  %v18235_v25 = vld [vmem:[#allocation7 + $0x2440] ss:$24 sps:$4 sm:$0xff]  }
0x132c   :  { %11601 = vmatpush1.bf16.msra.mxu0 %v18178_v29  ;;  %v18231_v29 = vld [vmem:[#allocation7 + $0x24a4] ss:$24 sps:$4 sm:$0xff]  }
0x132d   :  { %11602 = vmatprep.subr.bf16.mxu0 %v18186_v35  ;;  %11572 = vmatpush1.bf16.msra.mxu1 %v18211_v45  ;;  %v15875_v35 = vcombine.low %v11724_v46, %v11728_v49  ;;  %v11852_v46 = vld [vmem:[#allocation8 + $0x500] sm:$0xff] }
0x132e   :  { %11639 = vmatprep.subr.bf16.mxu1 %v18219_v57  ;;  %v11856_v49 = vld [vmem:[#allocation8 + $0x520] sm:$0xff] }
0x1330   :  { %11603 = vmatpush1.bf16.msra.mxu0 %v18184_v31  ;;  %v15868_v31 = vcombine.high %v11716_v36, %v11720_v9  ;;  %v16004_v36 = vcombine.high %v11852_v46, %v11856_v49  ;;  %v11844_v9 = vld [vmem:[#allocation8 + $0x4c0] sm:$0xff] }
0x1331   :  { %11604 = vmatprep.subr.bf16.mxu0 %v18192_v5  ;;  %v11708_v5 = vld [vmem:[#allocation8 + $0x80] sm:$0xff] }
0x1334   :  { %11605 = vmatpush1.bf16.msra.mxu0 %v18190_v53  ;;  %v11712_v53 = vld [vmem:[#allocation8 + $0xa0] sm:$0xff] }
0x1335   :  { %11606 = vmatprep.subr.bf16.mxu0 %v18198_v34  ;;  %v18229_v34 = vld [vmem:[#allocation7 + $0x24a0] ss:$24 sps:$4 sm:$0xff]   ;;  %v15860_v56 = vcombine.high %v11708_v5, %v11712_v53 }
0x1338   :  { %11607 = vmatpush1.bf16.msra.mxu0 %v18196_v10  ;;  %v18234_v10 = vld [vmem:[#allocation7 + $0x2474] ss:$24 sps:$4 sm:$0xff]  }
0x1339   :  { %11608 = vmatprep.subr.bf16.mxu0 %v18204_v6  ;;  %v11700_v6 = vld [vmem:[#allocation8 + $0x40] sm:$0xff] }
0x133c   :  { %11609 = vmatpush1.bf16.msra.mxu0 %v18202_v8  ;;  %v11704_v8 = vld [vmem:[#allocation8 + $0x60] sm:$0xff] }
0x133d   :  { %11610 = vmatprep.subr.bf16.mxu0 %v18210_v43  ;;  %v15852_v3 = vcombine.high %v11700_v6, %v11704_v8 }
0x1340   :  { %11611 = vmatpush1.bf16.msra.mxu0 %v18208_v23  ;;  %v15859_v23 = vcombine.low %v11708_v5, %v11712_v53  ;;  %v16003_v5 = vcombine.low %v11852_v46, %v11856_v49  ;;  %v19288_v46 = vld [vmem:[#allocation8 + $0x9e0] sm:$0xff]  ;;  %v19290_v49 = vld [vmem:[#allocation8 + $0x1c8] sm:$0xff] }
0x1341   :  { %11612 = vmatprep.subr.bf16.mxu0 %v18216_v62  ;;  %v11692_v62 = vld [vmem:[#allocation8] sm:$0xff] }
0x1344   :  { %11613 = vmatpush1.bf16.msra.mxu0 %v18214_v22  ;;  %v11696_v22 = vld [vmem:[#allocation8 + $0x20] sm:$0xff] }
0x1345   :  { %14038 = vmatprep.subr.bf16.mxu0 %v15900_v30  ;;  %v15851_v30 = vcombine.low %v11700_v6, %v11704_v8  ;;  %v11772_v6 = vld [vmem:[#allocation8 + $0x280] sm:$0xff] }
0x1346   :  { %v11776_v8 = vld [vmem:[#allocation8 + $0x2a0] sm:$0xff] }
0x13c7   :  { %v11127_v61 = vpop.f32.mrf.mxu0  ;;  %v11168_v28 = vpop.f32.mrf.mxu1 }
0x13c8   :  { %v19262_v1 = vadd.f32 %v11127_v61, %v19228_v17  ;;  %v19265_v26 = vadd.f32 %v11168_v28, %v19231_v51  ;;  %v11740_v17 = vld [vmem:[#allocation8 + $0x180] sm:$0xff] }
0x13c9   :  { %v11129_v33 = vpop.f32.mrf.mxu0  ;;  %v11170_v60 = vpop.f32.mrf.mxu1  ;;  %v18217_v51 = vld [vmem:[#allocation7 + $0x2560] ss:$24 sps:$4 sm:$0xff]   ;;  %v15891_v44 = vcombine.low %v11740_v17, %v11744_v13 }
0x13ca   :  { %v19268_v2 = vadd.f32 %v11129_v33, %v19234_v47  ;;  %v19271_v63 = vadd.f32 %v11170_v60, %v19237_v18  ;;  %v15892_v47 = vcombine.high %v11740_v17, %v11744_v13  ;;  %v11732_v18 = vld [vmem:[#allocation8 + $0x140] sm:$0xff]  ;;  %v15844_v60 = vcombine.high %v11692_v62, %v11696_v22 }
0x13cb   :  { %v11131_v24 = vpop.f32.mrf.mxu0  ;;  %v11172_v4 = vpop.f32.mrf.mxu1  ;;  %v15884_v20 = vcombine.high %v11732_v18, %v11736_v19  ;;  %v15883_v27 = vcombine.low %v11732_v18, %v11736_v19  ;;  %v11876_v28 = vld [vmem:[#allocation8 + $0x5c0] sm:$0xff] }
0x13cc   :  { %v11880_v33 = vld [vmem:[#allocation8 + $0x5e0] sm:$0xff] }
0x13cd   :  { %v11132_v32 = vpop.f32.mrf.mxu0  ;;  %v11173_v0 = vpop.f32.mrf.mxu1  ;;  %v11812_v24 = vld [vmem:[#allocation8 + $0x3c0] sm:$0xff] }
0x13ce   :  { %v18238_v32 = vld [vmem:[#allocation7 + $0x2410] ss:$24 sps:$4 sm:$0xff]   ;;  %v16028_v0 = vcombine.high %v11876_v28, %v11880_v33  ;;  %v11804_v13 = vld [vmem:[#allocation8 + $0x380] sm:$0xff] }
0x13cf   :  { %v11261_v42 = vpop.f32.mrf.mxu1  ;;  %v11864_v18 = vld [vmem:[#allocation8 + $0x560] sm:$0xff] }
0x13d0   :  { %v11262_v12 = vadd.f32 %v19202_v7, %v11261_v42  ;;  %v18225_v7 = vld [vmem:[#allocation7 + $0x2504] ss:$24 sps:$4 sm:$0xff]   ;;  %v15843_v42 = vcombine.low %v11692_v62, %v11696_v22  ;;  %v15924_v62 = vcombine.high %v11772_v6, %v11776_v8 }
0x13d1   :  { %v16425_v40 = vpop.f32.mrf.mxu1  ;;  %v11764_v22 = vld [vmem:[#allocation8 + $0x240] sm:$0xff] }
0x13d2   :  { %v19274_v15 = vpack.c.bf16 %v11262_v12, %v11262_v12  ;;  %v11872_v12 = vld [vmem:[#allocation8 + $0x5a0] sm:$0xff] }
0x13d3   :  { %v11264_v38 = vpop.f32.mrf.mxu1  ;;  %v11808_v40 = vld [vmem:[#allocation8 + $0x3a0] sm:$0xff] }
0x13d4   :  { %11590 = vmatmul.mubr.bf16.vlgmr.msra.gmra.mxu1 %v19274_v15  ;;  %11631 = vmatmul.mubr.bf16.vlgmr.msra.gmra.mxu0 %v19274_v15  ;;  %v15956_v19 = vcombine.high %v11804_v13, %v11808_v40 }
0x13d5   :  { %11640 = vmatpush1.bf16.msra.mxu1 %v18217_v51  ;;  %v16426_v58 = vpop.f32.mrf.mxu1  ;;  %11671 = vmatprep.mubr.bf16.mxu1 %v18386_v39  ;;  %v18226_v39 = vld [vmem:[#allocation7 + $0x24d0] ss:$24 sps:$4 sm:$0xff]   ;;  %v16027_v51 = vcombine.low %v11876_v28, %v11880_v33  ;;  %v11824_v28 = vld [vmem:[#allocation8 + $0x420] sm:$0xff] }
0x13d6   :  { %11641 = vmatprep.subr.bf16.mxu1 %v18222_v37  ;;  %14039 = vmatpush1.bf16.msra.mxu0 %v15899_v52  ;;  %v18240_v52 = vld [vmem:[#allocation7 + $0x2414] ss:$24 sps:$4 sm:$0xff]   ;;  %v11796_v58 = vld [vmem:[#allocation8 + $0x340] sm:$0xff] }
0x13d7   :  { %14040 = vmatprep.subr.bf16.mxu0 %v15892_v47  ;;  %v11860_v47 = vld [vmem:[#allocation8 + $0x540] sm:$0xff] }
0x13d9   :  { %11642 = vmatpush1.bf16.msra.mxu1 %v18220_v14  ;;  %v11800_v14 = vld [vmem:[#allocation8 + $0x360] sm:$0xff] }
0x13da   :  { %11643 = vmatprep.subr.bf16.mxu1 %v18225_v7  ;;  %14041 = vmatpush1.bf16.msra.mxu0 %v15891_v44  ;;  %v16012_v44 = vcombine.high %v11860_v47, %v11864_v18 }
0x13db   :  { %14042 = vmatprep.subr.bf16.mxu0 %v15884_v20  ;;  %v15955_v20 = vcombine.low %v11804_v13, %v11808_v40  ;;  %v11924_v40 = vld [vmem:[#allocation8 + $0x740] sm:$0xff] }
0x13dd   :  { %11644 = vmatpush1.bf16.msra.mxu1 %v18223_v48  ;;  %v15948_v48 = vcombine.high %v11796_v58, %v11800_v14 }
0x13de   :  { %11645 = vmatprep.subr.bf16.mxu1 %v18228_v50  ;;  %14043 = vmatpush1.bf16.msra.mxu0 %v15883_v27  ;;  %v11788_v50 = vld [vmem:[#allocation8 + $0x300] sm:$0xff] }
0x13df   :  { %14044 = vmatprep.subr.bf16.mxu0 %v15876_v59  ;;  %v11792_v27 = vld [vmem:[#allocation8 + $0x320] sm:$0xff]  ;;  %v16011_v59 = vcombine.low %v11860_v47, %v11864_v18 }
0x13e0   :  { %v11760_v47 = vld [vmem:[#allocation8 + $0x220] sm:$0xff] }
0x13e1   :  { %11646 = vmatpush1.bf16.msra.mxu1 %v18226_v39  ;;  %v11848_v39 = vld [vmem:[#allocation8 + $0x4e0] sm:$0xff] }
0x13e2   :  { %11647 = vmatprep.subr.bf16.mxu1 %v18231_v29  ;;  %14045 = vmatpush1.bf16.msra.mxu0 %v15875_v35  ;;  %v15940_v29 = vcombine.high %v11788_v50, %v11792_v27  ;;  %v11780_v35 = vld [vmem:[#allocation8 + $0x2c0] sm:$0xff]  ;;  %v15996_v53 = vcombine.high %v11844_v9, %v11848_v39 }
0x13e3   :  { %14046 = vmatprep.subr.bf16.mxu0 %v15868_v31  ;;  %v11784_v31 = vld [vmem:[#allocation8 + $0x2e0] sm:$0xff] }
0x13e5   :  { %11648 = vmatpush1.bf16.msra.mxu1 %v18229_v34  ;;  %v15939_v34 = vcombine.low %v11788_v50, %v11792_v27  ;;  %v19294_v27 = vld [vmem:[#allocation8 + $0x1e8] sm:$0xff] }
0x13e6   :  { %11649 = vmatprep.subr.bf16.mxu1 %v18234_v10  ;;  %14047 = vmatpush1.bf16.msra.mxu0 %v15867_v11  ;;  %v11836_v10 = vld [vmem:[#allocation8 + $0x480] sm:$0xff] }
0x13e7   :  { %v11209_v43 = vpop.f32.mrf.mxu0  ;;  %14048 = vmatprep.subr.bf16.mxu0 %v15860_v56  ;;  %v11840_v11 = vld [vmem:[#allocation8 + $0x4a0] sm:$0xff]  ;;  %v15932_v56 = vcombine.high %v11780_v35, %v11784_v31 }
0x13e8   :  { %v19280_v45 = vadd.f32 %v11209_v43, %v19254_v54  ;;  %v11816_v54 = vld [vmem:[#allocation8 + $0x3e0] sm:$0xff] }
0x13e9   :  { %v11211_v57 = vpop.f32.mrf.mxu0  ;;  %11650 = vmatpush1.bf16.msra.mxu1 %v18232_v41  ;;  %v15964_v17 = vcombine.high %v11812_v24, %v11816_v54  ;;  %v15963_v38 = vcombine.low %v11812_v24, %v11816_v54  ;;  %v15995_v41 = vcombine.low %v11844_v9, %v11848_v39  ;;  %v11828_v43 = vld [vmem:[#allocation8 + $0x440] sm:$0xff]  ;;  %v15901_v9 = vcombine.low %v19290_v49, %v19294_v27 }
0x13ea   :  { %v19283_v55 = vadd.f32 %v11211_v57, %v19257_v21  ;;  %11651 = vmatprep.subr.bf16.mxu1 %v18237_v16  ;;  %14049 = vmatpush1.bf16.msra.mxu0 %v15859_v23  ;;  %v11868_v21 = vld [vmem:[#allocation8 + $0x580] sm:$0xff]  ;;  %v15988_v16 = vcombine.high %v11836_v10, %v11840_v11  ;;  %v15931_v23 = vcombine.low %v11780_v35, %v11784_v31 }
0x13eb   :  { %v11213_v61 = vpop.f32.mrf.mxu0  ;;  %14050 = vmatprep.subr.bf16.mxu0 %v15852_v3  ;;  %v16020_v37 = vcombine.high %v11868_v21, %v11872_v12  ;;  %v16019_v7 = vcombine.low %v11868_v21, %v11872_v12  ;;  %v11832_v3 = vld [vmem:[#allocation8 + $0x460] sm:$0xff] }
0x13ec   :  { %v11768_v57 = vld [vmem:[#allocation8 + $0x260] sm:$0xff] }
0x13ed   :  { %v11214_v4 = vpop.f32.mrf.mxu0  ;;  %11652 = vmatpush1.bf16.msra.mxu1 %v18235_v25  ;;  %v15987_v25 = vcombine.low %v11836_v10, %v11840_v11  ;;  %v11820_v61 = vld [vmem:[#allocation8 + $0x400] sm:$0xff]  ;;  %v15916_v33 = vcombine.high %v11764_v22, %v11768_v57  ;;  %v15915_v54 = vcombine.low %v11764_v22, %v11768_v57 }
0x13ee   :  { %11653 = vmatprep.subr.bf16.mxu1 %v18240_v52  ;;  %14051 = vmatpush1.bf16.msra.mxu0 %v15851_v30  ;;  %v15980_v52 = vcombine.high %v11828_v43, %v11832_v3  ;;  %v15923_v30 = vcombine.low %v11772_v6, %v11776_v8  ;;  %v15972_v24 = vcombine.high %v11820_v61, %v11824_v28  ;;  %v11940_v4 = vld [vmem:[#allocation8 + $0x7c0] sm:$0xff] }
0x13ef   :  { %14052 = vmatprep.subr.bf16.mxu0 %v15844_v60  ;;  %v15979_v60 = vcombine.low %v11828_v43, %v11832_v3  ;;  %v11932_v21 = vld [vmem:[#allocation8 + $0x780] sm:$0xff]  ;;  %v15902_v43 = vcombine.high %v19290_v49, %v19294_v27  ;;  %v11721_v27 = vld [vmem:[#allocation8 + $0xe8] sm:$0xff] }
0x13f0   :  { %v11936_v12 = vld [vmem:[#allocation8 + $0x7a0] sm:$0xff] }
0x13f1   :  { %11654 = vmatpush1.bf16.msra.mxu1 %v18238_v32  ;;  %v11944_v32 = vld [vmem:[#allocation8 + $0x7e0] sm:$0xff]  ;;  %v16084_v13 = vcombine.high %v11932_v21, %v11936_v12 }
0x13f2   :  { %14079 = vmatprep.subr.bf16.mxu1 %v16028_v0  ;;  %14053 = vmatpush1.bf16.msra.mxu0 %v15843_v42  ;;  %v15971_v0 = vcombine.low %v11820_v61, %v11824_v28  ;;  %v16092_v42 = vcombine.high %v11940_v4, %v11944_v32  ;;  %v11900_v35 = vld [vmem:[#allocation8 + $0x680] sm:$0xff] }
0x13f3   :  { %14054 = vmatprep.subr.bf16.mxu0 %v15964_v17  ;;  %v16091_v17 = vcombine.low %v11940_v4, %v11944_v32  ;;  %v11904_v31 = vld [vmem:[#allocation8 + $0x6a0] sm:$0xff]  ;;  %v11745_v4 = vld [vmem:[#allocation8 + $0x1a8] sm:$0xff] }
0x13f4   :  { %11672 = vmatmul.mubr.bf16.vlgmr.msra.gmra.mxu1 %v19274_v15  ;;  %v15947_v15 = vcombine.low %v11796_v58, %v11800_v14  ;;  %v11916_v58 = vld [vmem:[#allocation8 + $0x700] sm:$0xff]  ;;  %v16051_v11 = vcombine.low %v11900_v35, %v11904_v31 }
0x13f5   :  { %14080 = vmatpush1.bf16.msra.mxu1 %v16027_v51  ;;  %v11928_v51 = vld [vmem:[#allocation8 + $0x760] sm:$0xff] }
0x13f6   :  { %14081 = vmatprep.subr.bf16.mxu1 %v16020_v37  ;;  %14055 = vmatpush2.bf16.msra.mxu0 %v15963_v38  ;;  %v16083_v37 = vcombine.low %v11932_v21, %v11936_v12  ;;  %v11756_v38 = vld [vmem:[#allocation8 + $0x200] sm:$0xff]  ;;  %v16076_v18 = vcombine.high %v11924_v40, %v11928_v51 }
0x13f7   :  { %14056 = vmatprep.subr.bf16.mxu0 %v15956_v19  ;;  %v15908_v19 = vcombine.high %v11756_v38, %v11760_v47  ;;  %v11920_v14 = vld [vmem:[#allocation8 + $0x720] sm:$0xff] }
0x13f8   :  { %v16067_v39 = vcombine.low %v11916_v58, %v11920_v14  ;;  %v11896_v10 = vld [vmem:[#allocation8 + $0x660] sm:$0xff] }
0x13f9   :  { %14082 = vmatpush1.bf16.msra.mxu1 %v16019_v7  ;;  %v15907_v7 = vcombine.low %v11756_v38, %v11760_v47  ;;  %v11884_v6 = vld [vmem:[#allocation8 + $0x600] sm:$0xff] }
0x13fa   :  { %14083 = vmatprep.subr.bf16.mxu1 %v16012_v44  ;;  %14057 = vmatpush2.bf16.msra.mxu0 %v15955_v20  ;;  %v16075_v44 = vcombine.low %v11924_v40, %v11928_v51  ;;  %v19286_v20 = vld [vmem:[#allocation8 + $0x9c0] sm:$0xff]  ;;  %v11737_v40 = vld [vmem:[#allocation8 + $0x168] sm:$0xff] }
0x13fb   :  { %14058 = vmatprep.subr.bf16.mxu0 %v15948_v48  ;;  %v16068_v48 = vcombine.high %v11916_v58, %v11920_v14  ;;  %v16156_v50 = vcombine.high %v19286_v20, %v19288_v46  ;;  %v11888_v8 = vld [vmem:[#allocation8 + $0x620] sm:$0xff]  ;;  %v11725_v58 = vld [vmem:[#allocation8 + $0x108] sm:$0xff] }
0x13fc   :  { %v11996_v28 = vld [vmem:[#allocation8 + $0x980] sm:$0xff]  ;;  %v11729_v14 = vld [vmem:[#allocation8 + $0x128] sm:$0xff] }
0x13fd   :  { %14084 = vmatpush1.bf16.msra.mxu1 %v16011_v59  ;;  %v11908_v59 = vld [vmem:[#allocation8 + $0x6c0] sm:$0xff] }
0x13fe   :  { %14085 = vmatprep.subr.bf16.mxu1 %v16004_v36  ;;  %14059 = vmatpush2.bf16.msra.mxu0 %v15947_v15  ;;  %v11912_v36 = vld [vmem:[#allocation8 + $0x6e0] sm:$0xff]  ;;  %v16155_v15 = vcombine.low %v19286_v20, %v19288_v46  ;;  %v15878_v46 = vcombine.high %v11725_v58, %v11729_v14 }
0x13ff   :  { %14060 = vmatprep.subr.bf16.mxu0 %v15940_v29  ;;  %v16060_v29 = vcombine.high %v11908_v59, %v11912_v36  ;;  %v11972_v49 = vld [vmem:[#allocation8 + $0x8c0] sm:$0xff] }
0x1401   :  { %14086 = vmatpush1.bf16.msra.mxu1 %v16003_v5  ;;  %v16059_v5 = vcombine.low %v11908_v59, %v11912_v36  ;;  %v15877_v36 = vcombine.low %v11725_v58, %v11729_v14 }
0x1402   :  { %14087 = vmatprep.subr.bf16.mxu1 %v15996_v53  ;;  %14061 = vmatpush2.bf16.msra.mxu0 %v15939_v34  ;;  %v16052_v53 = vcombine.high %v11900_v35, %v11904_v31  ;;  %v11892_v34 = vld [vmem:[#allocation8 + $0x640] sm:$0xff]  ;;  %v11709_v35 = vld [vmem:[#allocation8 + $0x88] sm:$0xff] }
0x1403   :  { %14062 = vmatprep.subr.bf16.mxu0 %v15932_v56  ;;  %v16044_v56 = vcombine.high %v11892_v34, %v11896_v10  ;;  %v11713_v31 = vld [vmem:[#allocation8 + $0xa8] sm:$0xff] }
0x1405   :  { %14088 = vmatpush1.bf16.msra.mxu1 %v15995_v41  ;;  %v16043_v41 = vcombine.low %v11892_v34, %v11896_v10  ;;  %v15862_v10 = vcombine.high %v11709_v35, %v11713_v31 }
0x1406   :  { %14089 = vmatprep.subr.bf16.mxu1 %v15988_v16  ;;  %14063 = vmatpush2.bf16.msra.mxu0 %v15931_v23  ;;  %v16036_v16 = vcombine.high %v11884_v6, %v11888_v8  ;;  %v16035_v23 = vcombine.low %v11884_v6, %v11888_v8  ;;  %v11701_v6 = vld [vmem:[#allocation8 + $0x48] sm:$0xff] }
0x1407   :  { %14064 = vmatprep.subr.bf16.mxu0 %v15924_v62  ;;  %v11705_v8 = vld [vmem:[#allocation8 + $0x68] sm:$0xff] }
0x1409   :  { %14090 = vmatpush1.bf16.msra.mxu1 %v15987_v25 }
0x140a   :  { %14091 = vmatprep.subr.bf16.mxu1 %v15980_v52  ;;  %14065 = vmatpush2.bf16.msra.mxu0 %v15923_v30 }
0x140b   :  { %14066 = vmatprep.subr.bf16.mxu0 %v15916_v33  ;;  %v12000_v33 = vld [vmem:[#allocation8 + $0x9a0] sm:$0xff] }
0x140c   :  { %v16148_v12 = vcombine.high %v11996_v28, %v12000_v33  ;;  %v16147_v51 = vcombine.low %v11996_v28, %v12000_v33  ;;  %v12068_v28 = vld [vmem:[#allocation8 + $0xbc0] sm:$0xff] }
0x140d   :  { %14092 = vmatpush1.bf16.msra.mxu1 %v15979_v60  ;;  %v12072_v33 = vld [vmem:[#allocation8 + $0xbe0] sm:$0xff] }
0x140e   :  { %14093 = vmatprep.subr.bf16.mxu1 %v15972_v24  ;;  %14067 = vmatpush2.bf16.msra.mxu0 %v15915_v54  ;;  %v11741_v54 = vld [vmem:[#allocation8 + $0x188] sm:$0xff] }
0x140f   :  { %14068 = vmatprep.subr.bf16.mxu0 %v15908_v19  ;;  %v11984_v19 = vld [vmem:[#allocation8 + $0x920] sm:$0xff] }
0x1411   :  { %14094 = vmatpush1.bf16.msra.mxu1 %v15971_v0 }
0x1412   :  { %14095 = vmatprep.subr.bf16.mxu1 %v16092_v42  ;;  %14069 = vmatpush2.bf16.msra.mxu0 %v15907_v7 }
0x1413   :  { %14120 = vmatprep.subr.bf16.mxu0 %v16156_v50  ;;  %v11717_v50 = vld [vmem:[#allocation8 + $0xc8] sm:$0xff] }
0x1415   :  { %14096 = vmatpush2.bf16.msra.mxu1 %v16091_v17  ;;  %v11992_v17 = vld [vmem:[#allocation8 + $0x960] sm:$0xff] }
0x1416   :  { %14097 = vmatprep.subr.bf16.mxu1 %v16084_v13  ;;  %v11733_v13 = vld [vmem:[#allocation8 + $0x148] sm:$0xff] }
0x1417   :  { %v15886_v47 = vcombine.high %v11733_v13, %v11737_v40 }
0x1419   :  { %14098 = vmatpush2.bf16.msra.mxu1 %v16083_v37  ;;  %v15893_v37 = vcombine.low %v11741_v54, %v11745_v4 }
0x141a   :  { %14099 = vmatprep.subr.bf16.mxu1 %v16076_v18  ;;  %v11980_v18 = vld [vmem:[#allocation8 + $0x900] sm:$0xff] }
0x141b   :  { %v16132_v20 = vcombine.high %v11980_v18, %v11984_v19  ;;  %v16131_v59 = vcombine.low %v11980_v18, %v11984_v19 }
0x141d   :  { %14100 = vmatpush2.bf16.msra.mxu1 %v16075_v44  ;;  %v15885_v44 = vcombine.low %v11733_v13, %v11737_v40  ;;  %v12064_v13 = vld [vmem:[#allocation8 + $0xba0] sm:$0xff]  ;;  %v11805_v40 = vld [vmem:[#allocation8 + $0x388] sm:$0xff] }
0x141e   :  { %14101 = vmatprep.subr.bf16.mxu1 %v16068_v48  ;;  %v11976_v48 = vld [vmem:[#allocation8 + $0x8e0] sm:$0xff] }
0x1421   :  { %14102 = vmatpush2.bf16.msra.mxu1 %v16067_v39  ;;  %v11964_v39 = vld [vmem:[#allocation8 + $0x880] sm:$0xff] }
0x1422   :  { %14103 = vmatprep.subr.bf16.mxu1 %v16060_v29  ;;  %v11968_v29 = vld [vmem:[#allocation8 + $0x8a0] sm:$0xff] }
0x1423   :  { %v16116_v34 = vcombine.high %v11964_v39, %v11968_v29 }
0x1425   :  { %14104 = vmatpush2.bf16.msra.mxu1 %v16059_v5  ;;  %v16123_v5 = vcombine.low %v11972_v49, %v11976_v48 }
0x1426   :  { %14105 = vmatprep.subr.bf16.mxu1 %v16052_v53  ;;  %v15869_v53 = vcombine.low %v11717_v50, %v11721_v27 }
0x1429   :  { %14106 = vmatpush2.bf16.msra.mxu1 %v16051_v11  ;;  %v11956_v11 = vld [vmem:[#allocation8 + $0x840] sm:$0xff] }
0x142a   :  { %14107 = vmatprep.subr.bf16.mxu1 %v16044_v56  ;;  %v11960_v56 = vld [vmem:[#allocation8 + $0x860] sm:$0xff] }
0x142d   :  { %14108 = vmatpush2.bf16.msra.mxu1 %v16043_v41  ;;  %v16115_v41 = vcombine.low %v11964_v39, %v11968_v29 }
0x142e   :  { %14109 = vmatprep.subr.bf16.mxu1 %v16036_v16  ;;  %v15861_v16 = vcombine.low %v11709_v35, %v11713_v31  ;;  %v12036_v31 = vld [vmem:[#allocation8 + $0xac0] sm:$0xff] }
0x1431   :  { %14110 = vmatpush2.bf16.msra.mxu1 %v16035_v23  ;;  %v16108_v23 = vcombine.high %v11956_v11, %v11960_v56 }
0x1432   :  { %14161 = vmatprep.subr.bf16.mxu1 %v15902_v43  ;;  %v15854_v43 = vcombine.high %v11701_v6, %v11705_v8 }
0x1494   :  { %v11591_v3 = vpop.f32.mrf.mxu1  ;;  %v11632_v62 = vpop.f32.mrf.mxu0 }
0x1495   :  { %v11680_v22 = vadd.f32 %v11591_v3, %v19262_v1  ;;  %v11682_v57 = vadd.f32 %v11632_v62, %v19265_v26  ;;  %v11948_v3 = vld [vmem:[#allocation8 + $0x800] sm:$0xff] }
0x1496   :  { %v11593_v25 = vpop.f32.mrf.mxu1  ;;  %v11634_v52 = vpop.f32.mrf.mxu0  ;;  %v11952_v62 = vld [vmem:[#allocation8 + $0x820] sm:$0xff] }
0x1497   :  { %v11681_v30 = vadd.f32 %v11593_v25, %v19268_v2  ;;  %v11683_v61 = vadd.f32 %v11634_v52, %v19271_v63  ;;  %v19310_v42 = vpack.c.bf16 %v11680_v22, %v11680_v22  ;;  %v19312_v1 = vpack.c.bf16 %v11682_v57, %v11682_v57  ;;  %v11988_v2 = vld [vmem:[#allocation8 + $0x940] sm:$0xff]  ;;  %v11693_v22 = vld [vmem:[#allocation8 + $0x8] sm:$0xff] }
0x1498   :  { %v11595_v60 = vpop.f32.mrf.mxu1  ;;  %v11636_v24 = vpop.f32.mrf.mxu0  ;;  %v15894_v63 = vcombine.high %v11741_v54, %v11745_v4  ;;  %v16140_v38 = vcombine.high %v11988_v2, %v11992_v17  ;;  %v16139_v7 = vcombine.low %v11988_v2, %v11992_v17  ;;  %v11697_v57 = vld [vmem:[#allocation8 + $0x28] sm:$0xff]  ;;  %v16107_v25 = vcombine.low %v11956_v11, %v11960_v56 }
0x1499   :  { %v19306_v32 = vpack.c.bf16 %v11681_v30, %v11681_v30  ;;  %v19308_v0 = vpack.c.bf16 %v11683_v61, %v11683_v61  ;;  %v15853_v52 = vcombine.low %v11701_v6, %v11705_v8  ;;  %v16100_v30 = vcombine.high %v11948_v3, %v11952_v62  ;;  %v11813_v60 = vld [vmem:[#allocation8 + $0x3c8] sm:$0xff]  ;;  %v12028_v8 = vld [vmem:[#allocation8 + $0xa80] sm:$0xff] }
0x149a   :  { %v11596_v26 = vpop.f32.mrf.mxu1  ;;  %v11637_v21 = vpop.f32.mrf.mxu0  ;;  %v15846_v61 = vcombine.high %v11693_v22, %v11697_v57  ;;  %v11817_v24 = vld [vmem:[#allocation8 + $0x3e8] sm:$0xff]  ;;  %v16099_v4 = vcombine.low %v11948_v3, %v11952_v62 }
0x149b   :  { %14070 = vmatprep.mubr.bf16.mxu0 %v19306_v32  ;;  %14111 = vmatprep.mubr.bf16.mxu1 %v19308_v0  ;;  %v15845_v26 = vcombine.low %v11693_v22, %v11697_v57  ;;  %v15966_v2 = vcombine.high %v11813_v60, %v11817_v24  ;;  %v15965_v18 = vcombine.low %v11813_v60, %v11817_v24  ;;  %v12020_v57 = vld [vmem:[#allocation8 + $0xa40] sm:$0xff] }
0x149c   :  { %14071 = vmatmul.mubr.bf16.vlgmr.msra.gmra.mxu0 %v19310_v42  ;;  %14112 = vmatmul.mubr.bf16.vlgmr.msra.gmra.mxu1 %v19312_v1  ;;  %v12012_v24 = vld [vmem:[#allocation8 + $0xa00] sm:$0xff] }
0x149d   :  { %14121 = vmatpush1.bf16.msra.mxu0 %v16155_v15  ;;  %14162 = vmatpush1.bf16.msra.mxu1 %v15901_v9  ;;  %v16124_v15 = vcombine.high %v11972_v49, %v11976_v48  ;;  %v15870_v9 = vcombine.high %v11717_v50, %v11721_v27  ;;  %v12044_v27 = vld [vmem:[#allocation8 + $0xb00] sm:$0xff] }
0x149e   :  { %14193 = vmatprep.mubr.bf16.mxu1 %v19306_v32  ;;  %14122 = vmatprep.subr.bf16.mxu0 %v16148_v12  ;;  %v16220_v12 = vcombine.high %v12068_v28, %v12072_v33 }
0x149f   :  { %14163 = vmatprep.subr.bf16.mxu1 %v15894_v63  ;;  %v12060_v63 = vld [vmem:[#allocation8 + $0xb80] sm:$0xff] }
0x14a0   :  { %v16212_v58 = vcombine.high %v12060_v63, %v12064_v13 }
0x14a1   :  { %14123 = vmatpush1.bf16.msra.mxu0 %v16147_v51  ;;  %14164 = vmatpush1.bf16.msra.mxu1 %v15893_v37  ;;  %v11809_v51 = vld [vmem:[#allocation8 + $0x3a8] sm:$0xff] }
0x14a2   :  { %14124 = vmatprep.subr.bf16.mxu0 %v16140_v38  ;;  %14165 = vmatprep.subr.bf16.mxu1 %v15886_v47  ;;  %v16219_v47 = vcombine.low %v12068_v28, %v12072_v33  ;;  %v15958_v14 = vcombine.high %v11805_v40, %v11809_v51  ;;  %v15957_v49 = vcombine.low %v11805_v40, %v11809_v51  ;;  %v11881_v40 = vld [vmem:[#allocation8 + $0x5e8] sm:$0xff] }
0x14a3   :  { %v12005_v51 = vld [vmem:[#allocation8 + $0x9c8] sm:$0xff] }
0x14a5   :  { %14125 = vmatpush1.bf16.msra.mxu0 %v16139_v7  ;;  %14166 = vmatpush1.bf16.msra.mxu1 %v15885_v44  ;;  %v12052_v7 = vld [vmem:[#allocation8 + $0xb40] sm:$0xff] }
0x14a6   :  { %14126 = vmatprep.subr.bf16.mxu0 %v16132_v20  ;;  %14167 = vmatprep.subr.bf16.mxu1 %v15878_v46  ;;  %v12056_v44 = vld [vmem:[#allocation8 + $0xb60] sm:$0xff]  ;;  %v11801_v20 = vld [vmem:[#allocation8 + $0x368] sm:$0xff]  ;;  %v16211_v46 = vcombine.low %v12060_v63, %v12064_v13 }
0x14a7   :  { %v16204_v48 = vcombine.high %v12052_v7, %v12056_v44  ;;  %v11877_v13 = vld [vmem:[#allocation8 + $0x5c8] sm:$0xff] }
0x14a9   :  { %14127 = vmatpush1.bf16.msra.mxu0 %v16131_v59  ;;  %14168 = vmatpush1.bf16.msra.mxu1 %v15877_v36  ;;  %v12048_v59 = vld [vmem:[#allocation8 + $0xb20] sm:$0xff]  ;;  %v11789_v36 = vld [vmem:[#allocation8 + $0x308] sm:$0xff] }
0x14aa   :  { %14128 = vmatprep.subr.bf16.mxu0 %v16124_v15  ;;  %14169 = vmatprep.subr.bf16.mxu1 %v15870_v9  ;;  %v11793_v15 = vld [vmem:[#allocation8 + $0x328] sm:$0xff]  ;;  %v16203_v9 = vcombine.low %v12052_v7, %v12056_v44  ;;  %v16196_v29 = vcombine.high %v12044_v27, %v12048_v59 }
0x14ab   :  { %v15942_v35 = vcombine.high %v11789_v36, %v11793_v15  ;;  %v15941_v11 = vcombine.low %v11789_v36, %v11793_v15  ;;  %v11869_v7 = vld [vmem:[#allocation8 + $0x588] sm:$0xff] }
0x14ac   :  { %v11873_v44 = vld [vmem:[#allocation8 + $0x5a8] sm:$0xff] }
0x14ad   :  { %14129 = vmatpush1.bf16.msra.mxu0 %v16123_v5  ;;  %14170 = vmatpush1.bf16.msra.mxu1 %v15869_v53  ;;  %v12040_v5 = vld [vmem:[#allocation8 + $0xae0] sm:$0xff]  ;;  %v11781_v53 = vld [vmem:[#allocation8 + $0x2c8] sm:$0xff]  ;;  %v16021_v15 = vcombine.low %v11869_v7, %v11873_v44 }
0x14ae   :  { %14130 = vmatprep.subr.bf16.mxu0 %v16116_v34  ;;  %14171 = vmatprep.subr.bf16.mxu1 %v15862_v10  ;;  %v11785_v34 = vld [vmem:[#allocation8 + $0x2e8] sm:$0xff]  ;;  %v16195_v10 = vcombine.low %v12044_v27, %v12048_v59  ;;  %v16188_v56 = vcombine.high %v12036_v31, %v12040_v5 }
0x14af   :  { %v15934_v6 = vcombine.high %v11781_v53, %v11785_v34  ;;  %v15933_v3 = vcombine.low %v11781_v53, %v11785_v34  ;;  %v11861_v59 = vld [vmem:[#allocation8 + $0x548] sm:$0xff] }
0x14b0   :  { %v11993_v36 = vld [vmem:[#allocation8 + $0x968] sm:$0xff] }
0x14b1   :  { %14131 = vmatpush1.bf16.msra.mxu0 %v16115_v41  ;;  %14172 = vmatpush1.bf16.msra.mxu1 %v15861_v16  ;;  %v12032_v41 = vld [vmem:[#allocation8 + $0xaa0] sm:$0xff]  ;;  %v11773_v16 = vld [vmem:[#allocation8 + $0x288] sm:$0xff] }
0x14b2   :  { %14132 = vmatprep.subr.bf16.mxu0 %v16108_v23  ;;  %14173 = vmatprep.subr.bf16.mxu1 %v15854_v43  ;;  %v11777_v23 = vld [vmem:[#allocation8 + $0x2a8] sm:$0xff]  ;;  %v16187_v43 = vcombine.low %v12036_v31, %v12040_v5  ;;  %v16180_v62 = vcombine.high %v12028_v8, %v12032_v41 }
0x14b3   :  { %v15926_v22 = vcombine.high %v11773_v16, %v11777_v23  ;;  %v15925_v28 = vcombine.low %v11773_v16, %v11777_v23  ;;  %v11857_v31 = vld [vmem:[#allocation8 + $0x528] sm:$0xff] }
0x14b4   :  { %v19319_v54 = vpop.f32.mrf.mxu1  ;;  %v11981_v5 = vld [vmem:[#allocation8 + $0x908] sm:$0xff] }
0x14b5   :  { %14133 = vmatpush1.bf16.msra.mxu0 %v16107_v25  ;;  %14174 = vmatpush1.bf16.msra.mxu1 %v15853_v52  ;;  %v12024_v25 = vld [vmem:[#allocation8 + $0xa60] sm:$0xff]  ;;  %v11765_v52 = vld [vmem:[#allocation8 + $0x248] sm:$0xff] }
0x14b6   :  { %v11675_v21 = vpop.f32.mrf.mxu1  ;;  %14134 = vmatprep.subr.bf16.mxu0 %v16100_v30  ;;  %14175 = vmatprep.subr.bf16.mxu1 %v15846_v61  ;;  %v11769_v30 = vld [vmem:[#allocation8 + $0x268] sm:$0xff]  ;;  %v16179_v61 = vcombine.low %v12028_v8, %v12032_v41  ;;  %v16172_v33 = vcombine.high %v12020_v57, %v12024_v25 }
0x14b7   :  { %v11685_v17 = vadd.f32 %v11675_v21, %v19283_v55  ;;  %v11797_v55 = vld [vmem:[#allocation8 + $0x348] sm:$0xff]  ;;  %v15918_v60 = vcombine.high %v11765_v52, %v11769_v30 }
0x14b8   :  { %v11677_v37 = vpop.f32.mrf.mxu1  ;;  %v15950_v50 = vcombine.high %v11797_v55, %v11801_v20  ;;  %v15949_v39 = vcombine.low %v11797_v55, %v11801_v20  ;;  %v11761_v21 = vld [vmem:[#allocation8 + $0x228] sm:$0xff] }
0x14b9   :  { %v19322_v38 = vpack.c.bf16 %v11685_v17, %v11685_v17  ;;  %14135 = vmatpush1.bf16.msra.mxu0 %v16099_v4  ;;  %14176 = vmatpush1.bf16.msra.mxu1 %v15845_v26  ;;  %v12016_v4 = vld [vmem:[#allocation8 + $0xa20] sm:$0xff]  ;;  %v11757_v26 = vld [vmem:[#allocation8 + $0x208] sm:$0xff] }
0x14ba   :  { %v11678_v19 = vpop.f32.mrf.mxu1  ;;  %14136 = vmatprep.subr.bf16.mxu0 %v16220_v12  ;;  %14177 = vmatprep.subr.bf16.mxu1 %v15966_v2  ;;  %v16171_v12 = vcombine.low %v12020_v57, %v12024_v25  ;;  %v15917_v2 = vcombine.low %v11765_v52, %v11769_v30  ;;  %v16164_v63 = vcombine.high %v12012_v24, %v12016_v4  ;;  %v12009_v37 = vld [vmem:[#allocation8 + $0x9e8] sm:$0xff] }
0x14bb   :  { %14152 = vmatprep.mubr.bf16.mxu0 %v19322_v38  ;;  %v15910_v17 = vcombine.high %v11757_v26, %v11761_v21  ;;  %v11684_v19 = vadd.f32 %v19319_v54, %v19280_v45  ;;  %v11997_v55 = vld [vmem:[#allocation8 + $0x988] sm:$0xff] }
0x14bc   :  { %v12001_v20 = vld [vmem:[#allocation8 + $0x9a8] sm:$0xff] }
0x14bd   :  { %14137 = vmatpush2.bf16.msra.mxu0 %v16219_v47  ;;  %14178 = vmatpush2.bf16.msra.mxu1 %v15965_v18  ;;  %v16163_v47 = vcombine.low %v12012_v24, %v12016_v4  ;;  %v15909_v18 = vcombine.low %v11757_v26, %v11761_v21  ;;  %v16150_v27 = vcombine.high %v11997_v55, %v12001_v20  ;;  %v11865_v45 = vld [vmem:[#allocation8 + $0x568] sm:$0xff] }
0x14be   :  { %14138 = vmatprep.subr.bf16.mxu0 %v16212_v58  ;;  %14179 = vmatprep.subr.bf16.mxu1 %v15958_v14  ;;  %v16030_v58 = vcombine.high %v11877_v13, %v11881_v40  ;;  %v16158_v14 = vcombine.high %v12005_v51, %v12009_v37  ;;  %v11989_v54 = vld [vmem:[#allocation8 + $0x948] sm:$0xff]  ;;  %v16013_v34 = vcombine.low %v11861_v59, %v11865_v45 }
0x14bf   :  { %v11985_v53 = vld [vmem:[#allocation8 + $0x928] sm:$0xff] }
0x14c0   :  { %v11849_v8 = vld [vmem:[#allocation8 + $0x4e8] sm:$0xff] }
0x14c1   :  { %14139 = vmatpush2.bf16.msra.mxu0 %v16211_v46  ;;  %14180 = vmatpush2.bf16.msra.mxu1 %v15957_v49  ;;  %v16029_v46 = vcombine.low %v11877_v13, %v11881_v40  ;;  %v19327_v49 = vpack.c.bf16 %v11684_v19, %v11684_v19  ;;  %v11973_v41 = vld [vmem:[#allocation8 + $0x8c8] sm:$0xff] }
0x14c2   :  { %14140 = vmatprep.subr.bf16.mxu0 %v16204_v48  ;;  %14181 = vmatprep.subr.bf16.mxu1 %v15950_v50  ;;  %v16157_v48 = vcombine.low %v12005_v51, %v12009_v37  ;;  %v16022_v50 = vcombine.high %v11869_v7, %v11873_v44  ;;  %v11977_v16 = vld [vmem:[#allocation8 + $0x8e8] sm:$0xff] }
0x14c3   :  { %v11841_v57 = vld [vmem:[#allocation8 + $0x4a8] sm:$0xff] }
0x14c4   :  { %v11965_v25 = vld [vmem:[#allocation8 + $0x888] sm:$0xff] }
0x14c5   :  { %14141 = vmatpush2.bf16.msra.mxu0 %v16203_v9  ;;  %14182 = vmatpush2.bf16.msra.mxu1 %v15949_v39  ;;  %v16149_v9 = vcombine.low %v11997_v55, %v12001_v20  ;;  %v16014_v39 = vcombine.high %v11861_v59, %v11865_v45  ;;  %v11969_v52 = vld [vmem:[#allocation8 + $0x8a8] sm:$0xff] }
0x14c6   :  { %14142 = vmatprep.subr.bf16.mxu0 %v16196_v29  ;;  %14183 = vmatprep.subr.bf16.mxu1 %v15942_v35  ;;  %v16142_v29 = vcombine.high %v11989_v54, %v11993_v36  ;;  %v11853_v35 = vld [vmem:[#allocation8 + $0x508] sm:$0xff] }
0x14c7   :  { %v16005_v23 = vcombine.low %v11853_v35, %v11857_v31  ;;  %v11833_v24 = vld [vmem:[#allocation8 + $0x468] sm:$0xff] }
0x14c8   :  { %v11957_v4 = vld [vmem:[#allocation8 + $0x848] sm:$0xff] }
0x14c9   :  { %14143 = vmatpush2.bf16.msra.mxu0 %v16195_v10  ;;  %14184 = vmatpush2.bf16.msra.mxu1 %v15941_v11  ;;  %v16141_v10 = vcombine.low %v11989_v54, %v11993_v36  ;;  %v16006_v11 = vcombine.high %v11853_v35, %v11857_v31  ;;  %v11961_v26 = vld [vmem:[#allocation8 + $0x868] sm:$0xff] }
0x14ca   :  { %14144 = vmatprep.subr.bf16.mxu0 %v16188_v56  ;;  %14185 = vmatprep.subr.bf16.mxu1 %v15934_v6  ;;  %v16134_v56 = vcombine.high %v11981_v5, %v11985_v53  ;;  %v11845_v6 = vld [vmem:[#allocation8 + $0x4c8] sm:$0xff] }
0x14cb   :  { %v15997_v30 = vcombine.low %v11845_v6, %v11849_v8  ;;  %v11825_v13 = vld [vmem:[#allocation8 + $0x428] sm:$0xff] }
0x14cc   :  { %v11949_v40 = vld [vmem:[#allocation8 + $0x808] sm:$0xff] }
0x14cd   :  { %14145 = vmatpush2.bf16.msra.mxu0 %v16187_v43  ;;  %14186 = vmatpush2.bf16.msra.mxu1 %v15933_v3  ;;  %v16133_v43 = vcombine.low %v11981_v5, %v11985_v53  ;;  %v15998_v3 = vcombine.high %v11845_v6, %v11849_v8  ;;  %v11953_v51 = vld [vmem:[#allocation8 + $0x828] sm:$0xff] }
0x14ce   :  { %14146 = vmatprep.subr.bf16.mxu0 %v16180_v62  ;;  %14187 = vmatprep.subr.bf16.mxu1 %v15926_v22  ;;  %v16126_v62 = vcombine.high %v11973_v41, %v11977_v16  ;;  %v11837_v22 = vld [vmem:[#allocation8 + $0x488] sm:$0xff]  ;;  %v16102_v19 = vcombine.high %v11949_v40, %v11953_v51  ;;  %v16101_v20 = vcombine.low %v11949_v40, %v11953_v51 }
0x14cf   :  { %v15989_v21 = vcombine.low %v11837_v22, %v11841_v57  ;;  %v12069_v7 = vld [vmem:[#allocation8 + $0xbc8] sm:$0xff] }
0x14d0   :  { %v12073_v44 = vld [vmem:[#allocation8 + $0xbe8] sm:$0xff] }
0x14d1   :  { %14147 = vmatpush2.bf16.msra.mxu0 %v16179_v61  ;;  %14188 = vmatpush2.bf16.msra.mxu1 %v15925_v28  ;;  %v16125_v61 = vcombine.low %v11973_v41, %v11977_v16  ;;  %v15990_v28 = vcombine.high %v11837_v22, %v11841_v57  ;;  %v12061_v59 = vld [vmem:[#allocation8 + $0xb88] sm:$0xff]  ;;  %v16221_v36 = vcombine.low %v12069_v7, %v12073_v44 }
0x14d2   :  { %14148 = vmatprep.subr.bf16.mxu0 %v16172_v33  ;;  %14189 = vmatprep.subr.bf16.mxu1 %v15918_v60  ;;  %v16118_v33 = vcombine.high %v11965_v25, %v11969_v52  ;;  %v11829_v60 = vld [vmem:[#allocation8 + $0x448] sm:$0xff] }
0x14d3   :  { %v15981_v37 = vcombine.low %v11829_v60, %v11833_v24  ;;  %v12065_v45 = vld [vmem:[#allocation8 + $0xba8] sm:$0xff] }
0x14d4   :  { %v12053_v35 = vld [vmem:[#allocation8 + $0xb48] sm:$0xff]  ;;  %v16213_v53 = vcombine.low %v12061_v59, %v12065_v45 }
0x14d5   :  { %14149 = vmatpush2.bf16.msra.mxu0 %v16171_v12  ;;  %14190 = vmatpush2.bf16.msra.mxu1 %v15917_v2  ;;  %v16117_v12 = vcombine.low %v11965_v25, %v11969_v52  ;;  %v15982_v2 = vcombine.high %v11829_v60, %v11833_v24  ;;  %v12057_v31 = vld [vmem:[#allocation8 + $0xb68] sm:$0xff] }
0x14d6   :  { %14150 = vmatprep.subr.bf16.mxu0 %v16164_v63  ;;  %14191 = vmatprep.subr.bf16.mxu1 %v15910_v17  ;;  %v16110_v63 = vcombine.high %v11957_v4, %v11961_v26  ;;  %v11821_v17 = vld [vmem:[#allocation8 + $0x408] sm:$0xff]  ;;  %v16205_v16 = vcombine.low %v12053_v35, %v12057_v31 }
0x14d7   :  { %v15973_v55 = vcombine.low %v11821_v17, %v11825_v13  ;;  %v12045_v6 = vld [vmem:[#allocation8 + $0xb08] sm:$0xff] }
0x14d8   :  { %v12049_v8 = vld [vmem:[#allocation8 + $0xb28] sm:$0xff] }
0x14d9   :  { %14151 = vmatpush2.bf16.msra.mxu0 %v16163_v47  ;;  %14192 = vmatpush2.bf16.msra.mxu1 %v15909_v18  ;;  %v16109_v47 = vcombine.low %v11957_v4, %v11961_v26  ;;  %v15974_v18 = vcombine.high %v11821_v17, %v11825_v13  ;;  %v12037_v22 = vld [vmem:[#allocation8 + $0xac8] sm:$0xff]  ;;  %v16197_v52 = vcombine.low %v12045_v6, %v12049_v8 }
0x14da   :  { %14202 = vmatprep.subr.bf16.mxu0 %v16030_v58  ;;  %14243 = vmatprep.subr.bf16.mxu1 %v16158_v14  ;;  %v11941_v58 = vld [vmem:[#allocation8 + $0x7c8] sm:$0xff] }
0x14db   :  { %v11945_v14 = vld [vmem:[#allocation8 + $0x7e8] sm:$0xff] }
0x14dc   :  { %14153 = vmatmul.mubr.bf16.vlgmr.msra.gmra.mxu0 %v19327_v49  ;;  %14194 = vmatmul.mubr.bf16.vlgmr.msra.gmra.mxu1 %v19310_v42  ;;  %v16093_v54 = vcombine.low %v11941_v58, %v11945_v14  ;;  %v12041_v57 = vld [vmem:[#allocation8 + $0xae8] sm:$0xff] }
0x14dd   :  { %14203 = vmatpush1.bf16.msra.mxu0 %v16029_v46  ;;  %14234 = vmatprep.mubr.bf16.mxu0 %v19308_v0  ;;  %v16094_v46 = vcombine.high %v11941_v58, %v11945_v14  ;;  %v12029_v60 = vld [vmem:[#allocation8 + $0xa88] sm:$0xff]  ;;  %v16189_v26 = vcombine.low %v12037_v22, %v12041_v57 }
0x14de   :  { %14244 = vmatpush1.bf16.msra.mxu1 %v16157_v48  ;;  %14275 = vmatprep.mubr.bf16.mxu1 %v19322_v38  ;;  %v16222_v48 = vcombine.high %v12069_v7, %v12073_v44  ;;  %v12033_v24 = vld [vmem:[#allocation8 + $0xaa8] sm:$0xff] }
0x14df   :  { %14204 = vmatprep.subr.bf16.mxu0 %v16022_v50  ;;  %14245 = vmatprep.subr.bf16.mxu1 %v16150_v27  ;;  %v11933_v50 = vld [vmem:[#allocation8 + $0x788] sm:$0xff]  ;;  %v16181_v51 = vcombine.low %v12029_v60, %v12033_v24 }
0x14e0   :  { %v11937_v27 = vld [vmem:[#allocation8 + $0x7a8] sm:$0xff] }
0x14e1   :  { %14205 = vmatpush1.bf16.msra.mxu0 %v16021_v15  ;;  %v16086_v15 = vcombine.high %v11933_v50, %v11937_v27  ;;  %v16085_v5 = vcombine.low %v11933_v50, %v11937_v27  ;;  %v12021_v17 = vld [vmem:[#allocation8 + $0xa48] sm:$0xff]  ;;  %v11878_v50 = vld [vmem:[#allocation8 + $0x5d0] sm:$0xff] }
0x14e2   :  { %14246 = vmatpush1.bf16.msra.mxu1 %v16149_v9  ;;  %14206 = vmatprep.subr.bf16.mxu0 %v16014_v39  ;;  %v16214_v9 = vcombine.high %v12061_v59, %v12065_v45  ;;  %v11925_v39 = vld [vmem:[#allocation8 + $0x748] sm:$0xff]  ;;  %v11882_v27 = vld [vmem:[#allocation8 + $0x5f0] sm:$0xff] }
0x14e3   :  { %14247 = vmatprep.subr.bf16.mxu1 %v16142_v29  ;;  %v11929_v29 = vld [vmem:[#allocation8 + $0x768] sm:$0xff] }
0x14e4   :  { %v16077_v41 = vcombine.low %v11925_v39, %v11929_v29  ;;  %v12025_v13 = vld [vmem:[#allocation8 + $0xa68] sm:$0xff] }
0x14e5   :  { %14207 = vmatpush1.bf16.msra.mxu0 %v16013_v34  ;;  %v16078_v34 = vcombine.high %v11925_v39, %v11929_v29  ;;  %v12013_v58 = vld [vmem:[#allocation8 + $0xa08] sm:$0xff]  ;;  %v16173_v44 = vcombine.low %v12021_v17, %v12025_v13  ;;  %v11870_v29 = vld [vmem:[#allocation8 + $0x590] sm:$0xff] }
0x14e6   :  { %14248 = vmatpush1.bf16.msra.mxu1 %v16141_v10  ;;  %14208 = vmatprep.subr.bf16.mxu0 %v16006_v11  ;;  %v16206_v10 = vcombine.high %v12053_v35, %v12057_v31  ;;  %v11917_v11 = vld [vmem:[#allocation8 + $0x708] sm:$0xff]  ;;  %v11874_v35 = vld [vmem:[#allocation8 + $0x5b0] sm:$0xff]  ;;  %v16031_v31 = vcombine.low %v11878_v50, %v11882_v27 }
0x14e7   :  { %14249 = vmatprep.subr.bf16.mxu1 %v16134_v56  ;;  %v11921_v56 = vld [vmem:[#allocation8 + $0x728] sm:$0xff] }
0x14e8   :  { %v16069_v25 = vcombine.low %v11917_v11, %v11921_v56  ;;  %v12017_v14 = vld [vmem:[#allocation8 + $0xa28] sm:$0xff] }
0x14e9   :  { %14209 = vmatpush1.bf16.msra.mxu0 %v16005_v23  ;;  %v16070_v23 = vcombine.high %v11917_v11, %v11921_v56  ;;  %v16165_v45 = vcombine.low %v12013_v58, %v12017_v14  ;;  %v11862_v11 = vld [vmem:[#allocation8 + $0x550] sm:$0xff] }
0x14ea   :  { %14250 = vmatpush1.bf16.msra.mxu1 %v16133_v43  ;;  %14210 = vmatprep.subr.bf16.mxu0 %v15998_v3  ;;  %v16198_v43 = vcombine.high %v12045_v6, %v12049_v8  ;;  %v11909_v3 = vld [vmem:[#allocation8 + $0x6c8] sm:$0xff]  ;;  %v11866_v56 = vld [vmem:[#allocation8 + $0x570] sm:$0xff]  ;;  %v16023_v8 = vcombine.low %v11870_v29, %v11874_v35 }
0x14eb   :  { %14251 = vmatprep.subr.bf16.mxu1 %v16126_v62  ;;  %v11913_v62 = vld [vmem:[#allocation8 + $0x6e8] sm:$0xff] }
0x14ec   :  { %v16061_v4 = vcombine.low %v11909_v3, %v11913_v62 }
0x14ed   :  { %14211 = vmatpush1.bf16.msra.mxu0 %v15997_v30  ;;  %v16062_v30 = vcombine.high %v11909_v3, %v11913_v62  ;;  %v11854_v3 = vld [vmem:[#allocation8 + $0x510] sm:$0xff] }
0x14ee   :  { %14252 = vmatpush1.bf16.msra.mxu1 %v16125_v61  ;;  %14212 = vmatprep.subr.bf16.mxu0 %v15990_v28  ;;  %v16190_v61 = vcombine.high %v12037_v22, %v12041_v57  ;;  %v11901_v28 = vld [vmem:[#allocation8 + $0x688] sm:$0xff]  ;;  %v11858_v62 = vld [vmem:[#allocation8 + $0x530] sm:$0xff]  ;;  %v16015_v57 = vcombine.low %v11862_v11, %v11866_v56 }
0x14ef   :  { %14253 = vmatprep.subr.bf16.mxu1 %v16118_v33  ;;  %v11905_v33 = vld [vmem:[#allocation8 + $0x6a8] sm:$0xff] }
0x14f0   :  { %v16053_v40 = vcombine.low %v11901_v28, %v11905_v33 }
0x14f1   :  { %14213 = vmatpush1.bf16.msra.mxu0 %v15989_v21  ;;  %v16054_v21 = vcombine.high %v11901_v28, %v11905_v33  ;;  %v11846_v28 = vld [vmem:[#allocation8 + $0x4d0] sm:$0xff] }
0x14f2   :  { %14254 = vmatpush1.bf16.msra.mxu1 %v16117_v12  ;;  %14214 = vmatprep.subr.bf16.mxu0 %v15982_v2  ;;  %v16182_v12 = vcombine.high %v12029_v60, %v12033_v24  ;;  %v11893_v2 = vld [vmem:[#allocation8 + $0x648] sm:$0xff]  ;;  %v11850_v33 = vld [vmem:[#allocation8 + $0x4f0] sm:$0xff]  ;;  %v16007_v24 = vcombine.low %v11854_v3, %v11858_v62 }
0x14f3   :  { %14255 = vmatprep.subr.bf16.mxu1 %v16110_v63  ;;  %v11897_v63 = vld [vmem:[#allocation8 + $0x668] sm:$0xff] }
0x14f4   :  { %v16045_v7 = vcombine.low %v11893_v2, %v11897_v63 }
0x14f5   :  { %14215 = vmatpush1.bf16.msra.mxu0 %v15981_v37  ;;  %v16046_v37 = vcombine.high %v11893_v2, %v11897_v63  ;;  %v11838_v2 = vld [vmem:[#allocation8 + $0x490] sm:$0xff] }
0x14f6   :  { %14256 = vmatpush1.bf16.msra.mxu1 %v16109_v47  ;;  %14216 = vmatprep.subr.bf16.mxu0 %v15974_v18  ;;  %v16174_v47 = vcombine.high %v12021_v17, %v12025_v13  ;;  %v11885_v18 = vld [vmem:[#allocation8 + $0x608] sm:$0xff]  ;;  %v11842_v63 = vld [vmem:[#allocation8 + $0x4b0] sm:$0xff]  ;;  %v15999_v13 = vcombine.low %v11846_v28, %v11850_v33 }
0x14f7   :  { %14257 = vmatprep.subr.bf16.mxu1 %v16102_v19  ;;  %v11889_v19 = vld [vmem:[#allocation8 + $0x628] sm:$0xff] }
0x14f8   :  { %v16037_v59 = vcombine.low %v11885_v18, %v11889_v19 }
0x14f9   :  { %14217 = vmatpush1.bf16.msra.mxu0 %v15973_v55  ;;  %v16038_v55 = vcombine.high %v11885_v18, %v11889_v19  ;;  %v11830_v18 = vld [vmem:[#allocation8 + $0x450] sm:$0xff] }
0x14fa   :  { %14258 = vmatpush1.bf16.msra.mxu1 %v16101_v20  ;;  %14218 = vmatprep.subr.bf16.mxu0 %v16094_v46  ;;  %v16166_v20 = vcombine.high %v12013_v58, %v12017_v14  ;;  %v11750_v46 = vld [vmem:[#allocation8 + $0x1d0] sm:$0xff]  ;;  %v15991_v14 = vcombine.low %v11838_v2, %v11842_v63 }
0x14fb   :  { %14259 = vmatprep.subr.bf16.mxu1 %v16222_v48  ;;  %v11754_v48 = vld [vmem:[#allocation8 + $0x1f0] sm:$0xff] }
0x14fc   :  { %v15903_v39 = vcombine.low %v11750_v46, %v11754_v48  ;;  %v11834_v19 = vld [vmem:[#allocation8 + $0x470] sm:$0xff] }
0x14fd   :  { %14219 = vmatpush2.bf16.msra.mxu0 %v16093_v54  ;;  %v15904_v54 = vcombine.high %v11750_v46, %v11754_v48  ;;  %v11822_v46 = vld [vmem:[#allocation8 + $0x410] sm:$0xff] }
0x14fe   :  { %14260 = vmatpush2.bf16.msra.mxu1 %v16221_v36  ;;  %14220 = vmatprep.subr.bf16.mxu0 %v16086_v15  ;;  %v16032_v36 = vcombine.high %v11878_v50, %v11882_v27  ;;  %v11742_v15 = vld [vmem:[#allocation8 + $0x190] sm:$0xff]  ;;  %v15983_v27 = vcombine.low %v11830_v18, %v11834_v19 }
0x14ff   :  { %14261 = vmatprep.subr.bf16.mxu1 %v16214_v9  ;;  %v11746_v9 = vld [vmem:[#allocation8 + $0x1b0] sm:$0xff] }
0x1500   :  { %v15895_v6 = vcombine.low %v11742_v15, %v11746_v9  ;;  %v11826_v48 = vld [vmem:[#allocation8 + $0x430] sm:$0xff] }
0x1501   :  { %14221 = vmatpush2.bf16.msra.mxu0 %v16085_v5  ;;  %v15896_v5 = vcombine.high %v11742_v15, %v11746_v9  ;;  %v11942_v15 = vld [vmem:[#allocation8 + $0x7d0] sm:$0xff] }
0x1502   :  { %14262 = vmatpush2.bf16.msra.mxu1 %v16213_v53  ;;  %14222 = vmatprep.subr.bf16.mxu0 %v16078_v34  ;;  %v11734_v53 = vld [vmem:[#allocation8 + $0x150] sm:$0xff] }
0x1503   :  { %14263 = vmatprep.subr.bf16.mxu1 %v16206_v10  ;;  %v11738_v34 = vld [vmem:[#allocation8 + $0x170] sm:$0xff]  ;;  %v16024_v10 = vcombine.high %v11870_v29, %v11874_v35  ;;  %v15975_v29 = vcombine.low %v11822_v46, %v11826_v48 }
0x1504   :  { %v15887_v22 = vcombine.low %v11734_v53, %v11738_v34  ;;  %v11946_v9 = vld [vmem:[#allocation8 + $0x7f0] sm:$0xff] }
0x1505   :  { %14223 = vmatpush2.bf16.msra.mxu0 %v16077_v41  ;;  %v15888_v41 = vcombine.high %v11734_v53, %v11738_v34  ;;  %v11810_v53 = vld [vmem:[#allocation8 + $0x3b0] sm:$0xff] }
0x1506   :  { %14264 = vmatpush2.bf16.msra.mxu1 %v16205_v16  ;;  %14224 = vmatprep.subr.bf16.mxu0 %v16070_v23  ;;  %v16016_v16 = vcombine.high %v11862_v11, %v11866_v56  ;;  %v11726_v23 = vld [vmem:[#allocation8 + $0x110] sm:$0xff]  ;;  %v16095_v56 = vcombine.low %v11942_v15, %v11946_v9 }
0x1507   :  { %14265 = vmatprep.subr.bf16.mxu1 %v16198_v43  ;;  %v11730_v43 = vld [vmem:[#allocation8 + $0x130] sm:$0xff] }
0x1508   :  { %v15879_v60 = vcombine.low %v11726_v23, %v11730_v43  ;;  %v11934_v34 = vld [vmem:[#allocation8 + $0x790] sm:$0xff] }
0x1509   :  { %14225 = vmatpush2.bf16.msra.mxu0 %v16069_v25  ;;  %v15880_v25 = vcombine.high %v11726_v23, %v11730_v43  ;;  %v11926_v23 = vld [vmem:[#allocation8 + $0x750] sm:$0xff] }
0x150a   :  { %14266 = vmatpush2.bf16.msra.mxu1 %v16197_v52  ;;  %14226 = vmatprep.subr.bf16.mxu0 %v16062_v30  ;;  %v16008_v52 = vcombine.high %v11854_v3, %v11858_v62  ;;  %v11718_v30 = vld [vmem:[#allocation8 + $0xd0] sm:$0xff] }
0x150b   :  { %14267 = vmatprep.subr.bf16.mxu1 %v16190_v61  ;;  %v11722_v61 = vld [vmem:[#allocation8 + $0xf0] sm:$0xff] }
0x150c   :  { %v15871_v17 = vcombine.low %v11718_v30, %v11722_v61  ;;  %v11930_v43 = vld [vmem:[#allocation8 + $0x770] sm:$0xff] }
0x150d   :  { %14227 = vmatpush2.bf16.msra.mxu0 %v16061_v4  ;;  %v15872_v4 = vcombine.high %v11718_v30, %v11722_v61  ;;  %v11918_v30 = vld [vmem:[#allocation8 + $0x710] sm:$0xff] }
0x150e   :  { %14268 = vmatpush2.bf16.msra.mxu1 %v16189_v26  ;;  %14228 = vmatprep.subr.bf16.mxu0 %v16054_v21  ;;  %v16000_v26 = vcombine.high %v11846_v28, %v11850_v33  ;;  %v11710_v21 = vld [vmem:[#allocation8 + $0x90] sm:$0xff]  ;;  %v16079_v33 = vcombine.low %v11926_v23, %v11930_v43 }
0x150f   :  { %14269 = vmatprep.subr.bf16.mxu1 %v16182_v12  ;;  %v11714_v12 = vld [vmem:[#allocation8 + $0xb0] sm:$0xff] }
0x1510   :  { %v15863_v58 = vcombine.low %v11710_v21, %v11714_v12  ;;  %v11922_v61 = vld [vmem:[#allocation8 + $0x730] sm:$0xff] }
0x1511   :  { %14229 = vmatpush2.bf16.msra.mxu0 %v16053_v40  ;;  %v15864_v40 = vcombine.high %v11710_v21, %v11714_v12  ;;  %v11910_v21 = vld [vmem:[#allocation8 + $0x6d0] sm:$0xff] }
0x1512   :  { %14270 = vmatpush2.bf16.msra.mxu1 %v16181_v51  ;;  %14230 = vmatprep.subr.bf16.mxu0 %v16046_v37  ;;  %v15992_v51 = vcombine.high %v11838_v2, %v11842_v63  ;;  %v11702_v37 = vld [vmem:[#allocation8 + $0x50] sm:$0xff]  ;;  %v16071_v63 = vcombine.low %v11918_v30, %v11922_v61 }
0x1513   :  { %14271 = vmatprep.subr.bf16.mxu1 %v16174_v47  ;;  %v11706_v47 = vld [vmem:[#allocation8 + $0x70] sm:$0xff] }
0x1514   :  { %v15855_v50 = vcombine.low %v11702_v37, %v11706_v47  ;;  %v11914_v12 = vld [vmem:[#allocation8 + $0x6f0] sm:$0xff] }
0x1515   :  { %14231 = vmatpush2.bf16.msra.mxu0 %v16045_v7  ;;  %v15856_v7 = vcombine.high %v11702_v37, %v11706_v47  ;;  %v11902_v37 = vld [vmem:[#allocation8 + $0x690] sm:$0xff] }
0x1516   :  { %14272 = vmatpush2.bf16.msra.mxu1 %v16173_v44  ;;  %14232 = vmatprep.subr.bf16.mxu0 %v16038_v55  ;;  %v15984_v44 = vcombine.high %v11830_v18, %v11834_v19  ;;  %v11694_v55 = vld [vmem:[#allocation8 + $0x10] sm:$0xff]  ;;  %v16063_v19 = vcombine.low %v11910_v21, %v11914_v12 }
0x1517   :  { %14273 = vmatprep.subr.bf16.mxu1 %v16166_v20  ;;  %v11698_v20 = vld [vmem:[#allocation8 + $0x30] sm:$0xff] }
0x1518   :  { %v11906_v47 = vld [vmem:[#allocation8 + $0x6b0] sm:$0xff] }
0x1519   :  { %14233 = vmatpush2.bf16.msra.mxu0 %v16037_v59  ;;  %v15848_v59 = vcombine.high %v11694_v55, %v11698_v20 }
0x151a   :  { %14274 = vmatpush2.bf16.msra.mxu1 %v16165_v45  ;;  %14284 = vmatprep.subr.bf16.mxu0 %v15904_v54  ;;  %v15976_v45 = vcombine.high %v11822_v46, %v11826_v48  ;;  %v11814_v54 = vld [vmem:[#allocation8 + $0x3d0] sm:$0xff]  ;;  %v12078_v48 = vlaneseq }
0x151b   :  { %14325 = vmatprep.subr.bf16.mxu1 %v16032_v36  ;;  %v11818_v36 = vld [vmem:[#allocation8 + $0x3f0] sm:$0xff] }
0x151c   :  { %14235 = vmatmul.mubr.bf16.vlgmr.msra.gmra.mxu0 %v19312_v1  ;;  %v15968_v35 = vcombine.high %v11814_v54, %v11818_v36  ;;  %v15967_v11 = vcombine.low %v11814_v54, %v11818_v36  ;;  %v11762_v54 = vld [vmem:[#allocation8 + $0x230] sm:$0xff] }
0x151d   :  { %14276 = vmatmul.mubr.bf16.vlgmr.msra.gmra.mxu1 %v19327_v49  ;;  %14285 = vmatpush1.bf16.msra.mxu0 %v15903_v39  ;;  %v15847_v39 = vcombine.low %v11694_v55, %v11698_v20  ;;  %v11894_v55 = vld [vmem:[#allocation8 + $0x650] sm:$0xff] }
0x151e   :  { %14316 = vmatprep.mubr.bf16.mxu0 %v19306_v32  ;;  %14326 = vmatpush1.bf16.msra.mxu1 %v16031_v31  ;;  %v16096_v31 = vcombine.high %v11942_v15, %v11946_v9  ;;  %v11898_v20 = vld [vmem:[#allocation8 + $0x670] sm:$0xff] }
0x151f   :  { %14357 = vmatprep.mubr.bf16.mxu1 %v19308_v0  ;;  %14286 = vmatprep.subr.bf16.mxu0 %v15896_v5  ;;  %v11806_v5 = vld [vmem:[#allocation8 + $0x390] sm:$0xff] }
0x1520   :  { %14327 = vmatprep.subr.bf16.mxu1 %v16024_v10  ;;  %v11938_v10 = vld [vmem:[#allocation8 + $0x7b0] sm:$0xff]  ;;  %v15959_v3 = vcombine.low %v11806_v5, %v11810_v53 }
0x1521   :  { %14287 = vmatpush1.bf16.msra.mxu0 %v15895_v6  ;;  %v15960_v6 = vcombine.high %v11806_v5, %v11810_v53  ;;  %v16087_v62 = vcombine.low %v11934_v34, %v11938_v10  ;;  %v11886_v36 = vld [vmem:[#allocation8 + $0x610] sm:$0xff] }
0x1522   :  { %14328 = vmatpush1.bf16.msra.mxu1 %v16023_v8  ;;  %14288 = vmatprep.subr.bf16.mxu0 %v15888_v41  ;;  %v16088_v8 = vcombine.high %v11934_v34, %v11938_v10  ;;  %v11798_v41 = vld [vmem:[#allocation8 + $0x350] sm:$0xff]  ;;  %v11751_v34 = vld [vmem:[#allocation8 + $0x1d8] sm:$0xff] }
0x1523   :  { %14329 = vmatprep.subr.bf16.mxu1 %v16016_v16  ;;  %v11802_v16 = vld [vmem:[#allocation8 + $0x370] sm:$0xff]  ;;  %v11755_v10 = vld [vmem:[#allocation8 + $0x1f8] sm:$0xff] }
0x1524   :  { %v15951_v28 = vcombine.low %v11798_v41, %v11802_v16  ;;  %v11890_v15 = vld [vmem:[#allocation8 + $0x630] sm:$0xff] }
0x1525   :  { %14289 = vmatpush1.bf16.msra.mxu0 %v15887_v22  ;;  %v15952_v22 = vcombine.high %v11798_v41, %v11802_v16  ;;  %v12006_v5 = vld [vmem:[#allocation8 + $0x9d0] sm:$0xff]  ;;  %v19340_v41 = vld [vmem:[#allocation10] sm:$0xff]  ;;  %v15906_v16 = vcombine.high %v11751_v34, %v11755_v10 }
0x1526   :  { %14330 = vmatpush1.bf16.msra.mxu1 %v16015_v57  ;;  %14290 = vmatprep.subr.bf16.mxu0 %v15880_v25  ;;  %v16080_v57 = vcombine.high %v11926_v23, %v11930_v43  ;;  %v11790_v25 = vld [vmem:[#allocation8 + $0x310] sm:$0xff] }
0x1527   :  { %14331 = vmatprep.subr.bf16.mxu1 %v16008_v52  ;;  %v11794_v52 = vld [vmem:[#allocation8 + $0x330] sm:$0xff] }
0x1528   :  { %v15943_v2 = vcombine.low %v11790_v25, %v11794_v52  ;;  %v12010_v53 = vld [vmem:[#allocation8 + $0x9f0] sm:$0xff] }
0x1529   :  { %14291 = vmatpush1.bf16.msra.mxu0 %v15879_v60  ;;  %v15944_v60 = vcombine.high %v11790_v25, %v11794_v52  ;;  %v11998_v43 = vld [vmem:[#allocation8 + $0x990] sm:$0xff]  ;;  %v11747_v25 = vld [vmem:[#allocation8 + $0x1b8] sm:$0xff]  ;;  %v15905_v52 = vcombine.low %v11751_v34, %v11755_v10 }
0x152a   :  { %14332 = vmatpush1.bf16.msra.mxu1 %v16007_v24  ;;  %14292 = vmatprep.subr.bf16.mxu0 %v15872_v4  ;;  %v16072_v24 = vcombine.high %v11918_v30, %v11922_v61  ;;  %v11782_v4 = vld [vmem:[#allocation8 + $0x2d0] sm:$0xff]  ;;  %v11715_v34 = vld [vmem:[#allocation8 + $0xb8] sm:$0xff] }
0x152b   :  { %14333 = vmatprep.subr.bf16.mxu1 %v16000_v26  ;;  %v11786_v26 = vld [vmem:[#allocation8 + $0x2f0] sm:$0xff] }
0x152c   :  { %v15935_v18 = vcombine.low %v11782_v4, %v11786_v26 }
0x152d   :  { %14293 = vmatpush1.bf16.msra.mxu0 %v15871_v17  ;;  %v15936_v17 = vcombine.high %v11782_v4, %v11786_v26  ;;  %v11735_v26 = vld [vmem:[#allocation8 + $0x158] sm:$0xff] }
0x152e   :  { %14334 = vmatpush1.bf16.msra.mxu1 %v15999_v13  ;;  %14294 = vmatprep.subr.bf16.mxu0 %v15864_v40  ;;  %v16064_v13 = vcombine.high %v11910_v21, %v11914_v12  ;;  %v11774_v40 = vld [vmem:[#allocation8 + $0x290] sm:$0xff]  ;;  %v11739_v21 = vld [vmem:[#allocation8 + $0x178] sm:$0xff] }
0x152f   :  { %14335 = vmatprep.subr.bf16.mxu1 %v15992_v51  ;;  %v11778_v51 = vld [vmem:[#allocation8 + $0x2b0] sm:$0xff] }
0x1530   :  { %v15927_v46 = vcombine.low %v11774_v40, %v11778_v51 }
0x1531   :  { %14295 = vmatpush1.bf16.msra.mxu0 %v15863_v58  ;;  %v15928_v58 = vcombine.high %v11774_v40, %v11778_v51 }
0x1532   :  { %14336 = vmatpush1.bf16.msra.mxu1 %v15991_v14  ;;  %14296 = vmatprep.subr.bf16.mxu0 %v15856_v7  ;;  %v16056_v14 = vcombine.high %v11902_v37, %v11906_v47  ;;  %v11766_v7 = vld [vmem:[#allocation8 + $0x250] sm:$0xff] }
0x1533   :  { %14337 = vmatprep.subr.bf16.mxu1 %v15984_v44  ;;  %v11770_v44 = vld [vmem:[#allocation8 + $0x270] sm:$0xff] }
0x1534   :  { %v15919_v9 = vcombine.low %v11766_v7, %v11770_v44 }
0x1535   :  { %14297 = vmatpush1.bf16.msra.mxu0 %v15855_v50  ;;  %v16055_v50 = vcombine.low %v11902_v37, %v11906_v47  ;;  %v15890_v47 = vcombine.high %v11735_v26, %v11739_v21 }
0x1536   :  { %14338 = vmatpush1.bf16.msra.mxu1 %v15983_v27  ;;  %14298 = vmatprep.subr.bf16.mxu0 %v15848_v59  ;;  %v15920_v27 = vcombine.high %v11766_v7, %v11770_v44  ;;  %v16048_v59 = vcombine.high %v11894_v55, %v11898_v20  ;;  %v11727_v7 = vld [vmem:[#allocation8 + $0x118] sm:$0xff] }
0x1537   :  { %14339 = vmatprep.subr.bf16.mxu1 %v15976_v45  ;;  %v11758_v45 = vld [vmem:[#allocation8 + $0x210] sm:$0xff]  ;;  %v11731_v44 = vld [vmem:[#allocation8 + $0x138] sm:$0xff] }
0x1539   :  { %14299 = vmatpush1.bf16.msra.mxu0 %v15847_v39  ;;  %v19337_v39 = vshrl.u32 %v12078_v48, 7 }
0x153a   :  { %14340 = vmatpush1.bf16.msra.mxu1 %v15975_v29  ;;  %14300 = vmatprep.subr.bf16.mxu0 %v15968_v35  ;;  %v16047_v29 = vcombine.low %v11894_v55, %v11898_v20  ;;  %v15912_v35 = vcombine.high %v11758_v45, %v11762_v54 }
0x153b   :  { %14341 = vmatprep.subr.bf16.mxu1 %v16096_v31  ;;  %v16040_v31 = vcombine.high %v11886_v36, %v11890_v15  ;;  %v12084_v23 = vsub.s32 1, %v19337_v39 }
0x153d   :  { %14301 = vmatpush2.bf16.msra.mxu0 %v15967_v11  ;;  %v15911_v11 = vcombine.low %v11758_v45, %v11762_v54  ;;  %v12085_v30 = vrot.slane %v19340_v41, %v12084_v23  ;;  %v11978_v45 = vld [vmem:[#allocation8 + $0x8f0] sm:$0xff]  ;;  %v11719_v54 = vld [vmem:[#allocation8 + $0xd8] sm:$0xff] }
0x153e   :  { %14342 = vmatpush2.bf16.msra.mxu1 %v16095_v56  ;;  %14302 = vmatprep.subr.bf16.mxu0 %v15960_v6  ;;  %v12080_v56 = vsub.s32 0, %v19337_v39  ;;  %v16039_v6 = vcombine.low %v11886_v36, %v11890_v15  ;;  %v11723_v36 = vld [vmem:[#allocation8 + $0xf8] sm:$0xff] }
0x153f   :  { %14343 = vmatprep.subr.bf16.mxu1 %v16088_v8  ;;  %v16160_v8 = vcombine.high %v12006_v5, %v12010_v53  ;;  %v11703_v23 = vld [vmem:[#allocation8 + $0x58] sm:$0xff] }
0x1541   :  { %14303 = vmatpush2.bf16.msra.mxu0 %v15959_v3  ;;  %v12002_v3 = vld [vmem:[#allocation8 + $0x9b0] sm:$0xff] }
0x1542   :  { %14344 = vmatpush2.bf16.msra.mxu1 %v16087_v62  ;;  %14304 = vmatprep.subr.bf16.mxu0 %v15952_v22  ;;  %v16159_v62 = vcombine.low %v12006_v5, %v12010_v53  ;;  %v12081_v22 = vrot.slane %v19340_v41, %v12080_v56  ;;  %v16152_v61 = vcombine.high %v11998_v43, %v12002_v3  ;;  %v11970_v5 = vld [vmem:[#allocation8 + $0x8b0] sm:$0xff]  ;;  %v11711_v53 = vld [vmem:[#allocation8 + $0x98] sm:$0xff] }
0x1543   :  { %14345 = vmatprep.subr.bf16.mxu1 %v16080_v57  ;;  %v11743_v57 = vld [vmem:[#allocation8 + $0x198] sm:$0xff] }
0x1544   :  { %v15898_v4 = vcombine.high %v11743_v57, %v11747_v25 }
0x1545   :  { %14305 = vmatpush2.bf16.msra.mxu0 %v15951_v28  ;;  %v11990_v28 = vld [vmem:[#allocation8 + $0x950] sm:$0xff] }
0x1546   :  { %14346 = vmatpush2.bf16.msra.mxu1 %v16079_v33  ;;  %14306 = vmatprep.subr.bf16.mxu0 %v15944_v60  ;;  %v11994_v33 = vld [vmem:[#allocation8 + $0x970] sm:$0xff] }
0x1547   :  { %14347 = vmatprep.subr.bf16.mxu1 %v16072_v24  ;;  %v16144_v40 = vcombine.high %v11990_v28, %v11994_v33  ;;  %v16143_v20 = vcombine.low %v11990_v28, %v11994_v33 }
0x1549   :  { %14307 = vmatpush2.bf16.msra.mxu0 %v15943_v2  ;;  %v16151_v2 = vcombine.low %v11998_v43, %v12002_v3  ;;  %v11707_v43 = vld [vmem:[#allocation8 + $0x78] sm:$0xff] }
0x154a   :  { %14348 = vmatpush2.bf16.msra.mxu1 %v16071_v63  ;;  %14308 = vmatprep.subr.bf16.mxu0 %v15936_v17  ;;  %v15857_v33 = vcombine.low %v11703_v23, %v11707_v43 }
0x154b   :  { %14349 = vmatprep.subr.bf16.mxu1 %v16064_v13  ;;  %v15897_v13 = vcombine.low %v11743_v57, %v11747_v25  ;;  %v15858_v57 = vcombine.high %v11703_v23, %v11707_v43  ;;  %v11950_v25 = vld [vmem:[#allocation8 + $0x810] sm:$0xff]  ;;  %v11775_v43 = vld [vmem:[#allocation8 + $0x298] sm:$0xff] }
0x154c   :  { %v12034_v23 = vld [vmem:[#allocation8 + $0xab0] sm:$0xff] }
0x154d   :  { %14309 = vmatpush2.bf16.msra.mxu0 %v15935_v18  ;;  %v11982_v18 = vld [vmem:[#allocation8 + $0x910] sm:$0xff] }
0x154e   :  { %14350 = vmatpush2.bf16.msra.mxu1 %v16063_v19  ;;  %14310 = vmatprep.subr.bf16.mxu0 %v15928_v58  ;;  %v11986_v19 = vld [vmem:[#allocation8 + $0x930] sm:$0xff] }
0x154f   :  { %14351 = vmatprep.subr.bf16.mxu1 %v16056_v14  ;;  %v16135_v15 = vcombine.low %v11982_v18, %v11986_v19 }
0x1551   :  { %14311 = vmatpush2.bf16.msra.mxu0 %v15927_v46 }
0x1552   :  { %14352 = vmatpush2.bf16.msra.mxu1 %v16055_v50  ;;  %14312 = vmatprep.subr.bf16.mxu0 %v15920_v27  ;;  %v15889_v50 = vcombine.low %v11735_v26, %v11739_v21  ;;  %v15882_v27 = vcombine.high %v11727_v7, %v11731_v44  ;;  %v12074_v26 = vld [vmem:[#allocation8 + $0xbf0] sm:$0xff]  ;;  %v11815_v21 = vld [vmem:[#allocation8 + $0x3d8] sm:$0xff] }
0x1553   :  { %14353 = vmatprep.subr.bf16.mxu1 %v16048_v59  ;;  %v11974_v59 = vld [vmem:[#allocation8 + $0x8d0] sm:$0xff] }
0x1554   :  { %v16127_v10 = vcombine.low %v11974_v59, %v11978_v45 }
0x1555   :  { %14313 = vmatpush2.bf16.msra.mxu0 %v15919_v9  ;;  %v15881_v9 = vcombine.low %v11727_v7, %v11731_v44  ;;  %v12054_v44 = vld [vmem:[#allocation8 + $0xb50] sm:$0xff] }
0x1556   :  { %14354 = vmatpush2.bf16.msra.mxu1 %v16047_v29  ;;  %14314 = vmatprep.subr.bf16.mxu0 %v15912_v35  ;;  %v16128_v29 = vcombine.high %v11974_v59, %v11978_v45  ;;  %v15874_v35 = vcombine.high %v11719_v54, %v11723_v36  ;;  %v12046_v45 = vld [vmem:[#allocation8 + $0xb10] sm:$0xff] }
0x1557   :  { %14355 = vmatprep.subr.bf16.mxu1 %v16040_v31  ;;  %v11966_v31 = vld [vmem:[#allocation8 + $0x890] sm:$0xff] }
0x1558   :  { %v16120_v56 = vcombine.high %v11966_v31, %v11970_v5  ;;  %v16119_v3 = vcombine.low %v11966_v31, %v11970_v5  ;;  %v12038_v5 = vld [vmem:[#allocation8 + $0xad0] sm:$0xff] }
0x1559   :  { %14315 = vmatpush2.bf16.msra.mxu0 %v15911_v11  ;;  %v15873_v11 = vcombine.low %v11719_v54, %v11723_v36  ;;  %v12050_v54 = vld [vmem:[#allocation8 + $0xb30] sm:$0xff]  ;;  %v11791_v36 = vld [vmem:[#allocation8 + $0x318] sm:$0xff] }
0x155a   :  { %14356 = vmatpush2.bf16.msra.mxu1 %v16039_v6  ;;  %14366 = vmatprep.subr.bf16.mxu0 %v16160_v8  ;;  %v15866_v6 = vcombine.high %v11711_v53, %v11715_v34  ;;  %v11958_v8 = vld [vmem:[#allocation8 + $0x850] sm:$0xff] }
0x155b   :  { %14407 = vmatprep.subr.bf16.mxu1 %v15906_v16  ;;  %v11962_v16 = vld [vmem:[#allocation8 + $0x870] sm:$0xff] }
0x155c   :  { %14317 = vmatmul.mubr.bf16.vlgmr.msra.gmra.mxu0 %v19310_v42  ;;  %v14072_v60 = vpop.f32.mrf.mxu0  ;;  %v14113_v24 = vpop.f32.mrf.mxu1  ;;  %v16111_v28 = vcombine.low %v11958_v8, %v11962_v16 }
0x155d   :  { %14358 = vmatmul.mubr.bf16.vlgmr.msra.gmra.mxu1 %v19312_v1  ;;  %v14073_v12 = vadd.f32 %v14072_v60, %v12081_v22  ;;  %14367 = vmatpush1.bf16.msra.mxu0 %v16159_v62  ;;  %v15865_v62 = vcombine.low %v11711_v53, %v11715_v34  ;;  %v16112_v22 = vcombine.high %v11958_v8, %v11962_v16  ;;  %v12042_v53 = vld [vmem:[#allocation8 + $0xaf0] sm:$0xff]  ;;  %v11783_v34 = vld [vmem:[#allocation8 + $0x2d8] sm:$0xff] }
0x155e   :  { %14398 = vmatprep.mubr.bf16.mxu0 %v19322_v38  ;;  %14408 = vmatpush1.bf16.msra.mxu1 %v15905_v52  ;;  %v14074_v63 = vpop.f32.mrf.mxu0  ;;  %v14115_v17 = vpop.f32.mrf.mxu1  ;;  %v11954_v52 = vld [vmem:[#allocation8 + $0x830] sm:$0xff] }
0x155f   :  { %v19348_v51 = vadd.f32 %v14113_v24, %v14073_v12  ;;  %14439 = vmatprep.mubr.bf16.mxu1 %v19306_v32  ;;  %v14075_v37 = vadd.f32 %v14074_v63, %v12085_v30  ;;  %14368 = vmatprep.subr.bf16.mxu0 %v16152_v61  ;;  %v16136_v32 = vcombine.high %v11982_v18, %v11986_v19  ;;  %v11695_v30 = vld [vmem:[#allocation8 + $0x18] sm:$0xff]  ;;  %v12030_v16 = vld [vmem:[#allocation8 + $0xa90] sm:$0xff] }
0x1560   :  { %14409 = vmatprep.subr.bf16.mxu1 %v15898_v4  ;;  %v14076_v58 = vpop.f32.mrf.mxu0  ;;  %v14117_v14 = vpop.f32.mrf.mxu1  ;;  %v11699_v61 = vld [vmem:[#allocation8 + $0x38] sm:$0xff]  ;;  %v16104_v60 = vcombine.high %v11950_v25, %v11954_v52  ;;  %v12070_v4 = vld [vmem:[#allocation8 + $0xbd0] sm:$0xff] }
0x1561   :  { %v19351_v55 = vadd.f32 %v14115_v17, %v14075_v37  ;;  %14369 = vmatpush1.bf16.msra.mxu0 %v16151_v2  ;;  %v15850_v24 = vcombine.high %v11695_v30, %v11699_v61  ;;  %v11819_v12 = vld [vmem:[#allocation8 + $0x3f8] sm:$0xff]  ;;  %v16103_v2 = vcombine.low %v11950_v25, %v11954_v52  ;;  %v15849_v63 = vcombine.low %v11695_v30, %v11699_v61  ;;  %v12066_v37 = vld [vmem:[#allocation8 + $0xbb0] sm:$0xff] }
0x1562   :  { %14410 = vmatpush1.bf16.msra.mxu1 %v15897_v13  ;;  %v14077_v46 = vpop.f32.mrf.mxu0  ;;  %v14118_v48 = vpop.f32.mrf.mxu1  ;;  %14370 = vmatprep.subr.bf16.mxu0 %v16144_v40  ;;  %v16224_v17 = vcombine.high %v12070_v4, %v12074_v26  ;;  %v15970_v13 = vcombine.high %v11815_v21, %v11819_v12  ;;  %v12062_v40 = vld [vmem:[#allocation8 + $0xb90] sm:$0xff]  ;;  %v11811_v18 = vld [vmem:[#allocation8 + $0x3b8] sm:$0xff]  ;;  %v16223_v19 = vcombine.low %v12070_v4, %v12074_v26 }
0x1563   :  { %14411 = vmatprep.subr.bf16.mxu1 %v15890_v47  ;;  %v11807_v47 = vld [vmem:[#allocation8 + $0x398] sm:$0xff]  ;;  %v15969_v58 = vcombine.low %v11815_v21, %v11819_v12  ;;  %v16216_v14 = vcombine.high %v12062_v40, %v12066_v37  ;;  %v12022_v52 = vld [vmem:[#allocation8 + $0xa50] sm:$0xff] }
0x1564   :  { %v15962_v7 = vcombine.high %v11807_v47, %v11811_v18  ;;  %v11799_v46 = vld [vmem:[#allocation8 + $0x358] sm:$0xff]  ;;  %v12026_v30 = vld [vmem:[#allocation8 + $0xa70] sm:$0xff] }
0x1565   :  { %14371 = vmatpush1.bf16.msra.mxu0 %v16143_v20  ;;  %v12058_v20 = vld [vmem:[#allocation8 + $0xb70] sm:$0xff]  ;;  %v11803_v48 = vld [vmem:[#allocation8 + $0x378] sm:$0xff] }
0x1566   :  { %14412 = vmatpush1.bf16.msra.mxu1 %v15889_v50  ;;  %14372 = vmatprep.subr.bf16.mxu0 %v16136_v32  ;;  %v16215_v50 = vcombine.low %v12062_v40, %v12066_v37  ;;  %v15961_v32 = vcombine.low %v11807_v47, %v11811_v18  ;;  %v15954_v59 = vcombine.high %v11799_v46, %v11803_v48  ;;  %v11767_v61 = vld [vmem:[#allocation8 + $0x258] sm:$0xff]  ;;  %v12014_v26 = vld [vmem:[#allocation8 + $0xa10] sm:$0xff] }
0x1567   :  { %14413 = vmatprep.subr.bf16.mxu1 %v15882_v27  ;;  %v16208_v27 = vcombine.high %v12054_v44, %v12058_v20  ;;  %v12018_v21 = vld [vmem:[#allocation8 + $0xa30] sm:$0xff]  ;;  %v11759_v12 = vld [vmem:[#allocation8 + $0x218] sm:$0xff] }
0x1568   :  { %v11879_v37 = vld [vmem:[#allocation8 + $0x5d8] sm:$0xff] }
0x1569   :  { %14373 = vmatpush1.bf16.msra.mxu0 %v16135_v15  ;;  %v11795_v15 = vld [vmem:[#allocation8 + $0x338] sm:$0xff] }
0x156a   :  { %14414 = vmatpush1.bf16.msra.mxu1 %v15881_v9  ;;  %14374 = vmatprep.subr.bf16.mxu0 %v16128_v29  ;;  %v16207_v9 = vcombine.low %v12054_v44, %v12058_v20  ;;  %v15953_v29 = vcombine.low %v11799_v46, %v11803_v48  ;;  %v15946_v31 = vcombine.high %v11791_v36, %v11795_v15  ;;  %v11883_v47 = vld [vmem:[#allocation8 + $0x5f8] sm:$0xff] }
0x156b   :  { %14415 = vmatprep.subr.bf16.mxu1 %v15874_v35  ;;  %v16200_v35 = vcombine.high %v12046_v45, %v12050_v54  ;;  %v12007_v18 = vld [vmem:[#allocation8 + $0x9d8] sm:$0xff]  ;;  %v16033_v48 = vcombine.low %v11879_v37, %v11883_v47 }
0x156c   :  { %v11871_v20 = vld [vmem:[#allocation8 + $0x598] sm:$0xff] }
0x156d   :  { %14375 = vmatpush1.bf16.msra.mxu0 %v16127_v10  ;;  %v11787_v10 = vld [vmem:[#allocation8 + $0x2f8] sm:$0xff] }
0x156e   :  { %14416 = vmatpush1.bf16.msra.mxu1 %v15873_v11  ;;  %14376 = vmatprep.subr.bf16.mxu0 %v16120_v56  ;;  %v16199_v11 = vcombine.low %v12046_v45, %v12050_v54  ;;  %v15945_v56 = vcombine.low %v11791_v36, %v11795_v15  ;;  %v15938_v8 = vcombine.high %v11783_v34, %v11787_v10  ;;  %v11875_v46 = vld [vmem:[#allocation8 + $0x5b8] sm:$0xff] }
0x156f   :  { %14417 = vmatprep.subr.bf16.mxu1 %v15866_v6  ;;  %v16192_v6 = vcombine.high %v12038_v5, %v12042_v53  ;;  %v11863_v45 = vld [vmem:[#allocation8 + $0x558] sm:$0xff] }
0x1570   :  { %v11867_v54 = vld [vmem:[#allocation8 + $0x578] sm:$0xff] }
0x1571   :  { %14377 = vmatpush1.bf16.msra.mxu0 %v16119_v3  ;;  %v11779_v3 = vld [vmem:[#allocation8 + $0x2b8] sm:$0xff] }
0x1572   :  { %14418 = vmatpush1.bf16.msra.mxu1 %v15865_v62  ;;  %14378 = vmatprep.subr.bf16.mxu0 %v16112_v22  ;;  %v16191_v62 = vcombine.low %v12038_v5, %v12042_v53  ;;  %v15937_v22 = vcombine.low %v11783_v34, %v11787_v10  ;;  %v15930_v25 = vcombine.high %v11775_v43, %v11779_v3 }
0x1573   :  { %14419 = vmatprep.subr.bf16.mxu1 %v15858_v57  ;;  %v16184_v57 = vcombine.high %v12030_v16, %v12034_v23  ;;  %v16025_v5 = vcombine.low %v11871_v20, %v11875_v46 }
0x1575   :  { %14379 = vmatpush1.bf16.msra.mxu0 %v16111_v28  ;;  %v11771_v28 = vld [vmem:[#allocation8 + $0x278] sm:$0xff] }
0x1576   :  { %14420 = vmatpush1.bf16.msra.mxu1 %v15857_v33  ;;  %14380 = vmatprep.subr.bf16.mxu0 %v16104_v60  ;;  %v16183_v33 = vcombine.low %v12030_v16, %v12034_v23  ;;  %v15929_v60 = vcombine.low %v11775_v43, %v11779_v3  ;;  %v15922_v4 = vcombine.high %v11767_v61, %v11771_v28  ;;  %v11983_v23 = vld [vmem:[#allocation8 + $0x918] sm:$0xff] }
0x1577   :  { %14421 = vmatprep.subr.bf16.mxu1 %v15850_v24  ;;  %v16176_v24 = vcombine.high %v12022_v52, %v12026_v30  ;;  %v16017_v3 = vcombine.low %v11863_v45, %v11867_v54 }
0x1579   :  { %14381 = vmatpush1.bf16.msra.mxu0 %v16103_v2  ;;  %v11763_v2 = vld [vmem:[#allocation8 + $0x238] sm:$0xff] }
0x157a   :  { %14422 = vmatpush1.bf16.msra.mxu1 %v15849_v63  ;;  %14382 = vmatprep.subr.bf16.mxu0 %v16224_v17  ;;  %v16175_v63 = vcombine.low %v12022_v52, %v12026_v30  ;;  %v15921_v17 = vcombine.low %v11767_v61, %v11771_v28  ;;  %v15914_v40 = vcombine.high %v11759_v12, %v11763_v2  ;;  %v11851_v52 = vld [vmem:[#allocation8 + $0x4f8] sm:$0xff] }
0x157b   :  { %14423 = vmatprep.subr.bf16.mxu1 %v15970_v13  ;;  %v16168_v13 = vcombine.high %v12014_v26, %v12018_v21  ;;  %v11975_v30 = vld [vmem:[#allocation8 + $0x8d8] sm:$0xff] }
0x157c   :  { %v11979_v61 = vld [vmem:[#allocation8 + $0x8f8] sm:$0xff] }
0x157d   :  { %14383 = vmatpush2.bf16.msra.mxu0 %v16223_v19  ;;  %v12011_v19 = vld [vmem:[#allocation8 + $0x9f8] sm:$0xff] }
0x157e   :  { %14424 = vmatpush2.bf16.msra.mxu1 %v15969_v58  ;;  %14384 = vmatprep.subr.bf16.mxu0 %v16216_v14  ;;  %v16167_v58 = vcombine.low %v12014_v26, %v12018_v21  ;;  %v15913_v14 = vcombine.low %v11759_v12, %v11763_v2  ;;  %v16162_v44 = vcombine.high %v12007_v18, %v12011_v19  ;;  %v11843_v26 = vld [vmem:[#allocation8 + $0x4b8] sm:$0xff] }
0x157f   :  { %14425 = vmatprep.subr.bf16.mxu1 %v15962_v7  ;;  %v16034_v7 = vcombine.high %v11879_v37, %v11883_v47  ;;  %v11967_v21 = vld [vmem:[#allocation8 + $0x898] sm:$0xff] }
0x1580   :  { %v11971_v12 = vld [vmem:[#allocation8 + $0x8b8] sm:$0xff] }
0x1581   :  { %14385 = vmatpush2.bf16.msra.mxu0 %v16215_v50  ;;  %v11999_v50 = vld [vmem:[#allocation8 + $0x998] sm:$0xff] }
0x1582   :  { %14426 = vmatpush2.bf16.msra.mxu1 %v15961_v32  ;;  %14386 = vmatprep.subr.bf16.mxu0 %v16208_v27  ;;  %v12003_v32 = vld [vmem:[#allocation8 + $0x9b8] sm:$0xff]  ;;  %v16161_v27 = vcombine.low %v12007_v18, %v12011_v19 }
0x1583   :  { %14427 = vmatprep.subr.bf16.mxu1 %v15954_v59  ;;  %v16026_v59 = vcombine.high %v11871_v20, %v11875_v46  ;;  %v16153_v10 = vcombine.low %v11999_v50, %v12003_v32  ;;  %v11835_v37 = vld [vmem:[#allocation8 + $0x478] sm:$0xff] }
0x1584   :  { %v11959_v47 = vld [vmem:[#allocation8 + $0x858] sm:$0xff] }
0x1585   :  { %14387 = vmatpush2.bf16.msra.mxu0 %v16207_v9  ;;  %v16154_v9 = vcombine.high %v11999_v50, %v12003_v32  ;;  %v11963_v18 = vld [vmem:[#allocation8 + $0x878] sm:$0xff] }
0x1586   :  { %14428 = vmatpush2.bf16.msra.mxu1 %v15953_v29  ;;  %14388 = vmatprep.subr.bf16.mxu0 %v16200_v35  ;;  %v11991_v29 = vld [vmem:[#allocation8 + $0x958] sm:$0xff]  ;;  %v16113_v32 = vcombine.low %v11959_v47, %v11963_v18 }
0x1587   :  { %14429 = vmatprep.subr.bf16.mxu1 %v15946_v31  ;;  %v11995_v35 = vld [vmem:[#allocation8 + $0x978] sm:$0xff] }
0x1588   :  { %v11827_v20 = vld [vmem:[#allocation8 + $0x438] sm:$0xff] }
0x1589   :  { %14389 = vmatpush2.bf16.msra.mxu0 %v16199_v11  ;;  %v16018_v11 = vcombine.high %v11863_v45, %v11867_v54  ;;  %v11951_v46 = vld [vmem:[#allocation8 + $0x818] sm:$0xff] }
0x158a   :  { %14430 = vmatpush2.bf16.msra.mxu1 %v15945_v56  ;;  %14390 = vmatprep.subr.bf16.mxu0 %v16192_v6  ;;  %v11855_v6 = vld [vmem:[#allocation8 + $0x518] sm:$0xff] }
0x158b   :  { %14431 = vmatprep.subr.bf16.mxu1 %v15938_v8  ;;  %v11859_v8 = vld [vmem:[#allocation8 + $0x538] sm:$0xff] }
0x158c   :  { %v16009_v28 = vcombine.low %v11855_v6, %v11859_v8  ;;  %v11943_v45 = vld [vmem:[#allocation8 + $0x7d8] sm:$0xff] }
0x158d   :  { %14391 = vmatpush2.bf16.msra.mxu0 %v16191_v62  ;;  %v11947_v54 = vld [vmem:[#allocation8 + $0x7f8] sm:$0xff] }
0x158e   :  { %14432 = vmatpush2.bf16.msra.mxu1 %v15937_v22  ;;  %14392 = vmatprep.subr.bf16.mxu0 %v16184_v57  ;;  %v16010_v22 = vcombine.high %v11855_v6, %v11859_v8  ;;  %v12067_v6 = vld [vmem:[#allocation8 + $0xbb8] sm:$0xff]  ;;  %v16097_v8 = vcombine.low %v11943_v45, %v11947_v54 }
0x158f   :  { %14433 = vmatprep.subr.bf16.mxu1 %v15930_v25  ;;  %v11847_v25 = vld [vmem:[#allocation8 + $0x4d8] sm:$0xff] }
0x1590   :  { %v16001_v2 = vcombine.low %v11847_v25, %v11851_v52 }
0x1591   :  { %14393 = vmatpush2.bf16.msra.mxu0 %v16183_v33 }
0x1592   :  { %14434 = vmatpush2.bf16.msra.mxu1 %v15929_v60  ;;  %14394 = vmatprep.subr.bf16.mxu0 %v16176_v24  ;;  %v16002_v60 = vcombine.high %v11847_v25, %v11851_v52  ;;  %v16130_v24 = vcombine.high %v11975_v30, %v11979_v61  ;;  %v11919_v52 = vld [vmem:[#allocation8 + $0x718] sm:$0xff] }
0x1593   :  { %14435 = vmatprep.subr.bf16.mxu1 %v15922_v4  ;;  %v11839_v4 = vld [vmem:[#allocation8 + $0x498] sm:$0xff] }
0x1594   :  { %v15993_v19 = vcombine.low %v11839_v4, %v11843_v26 }
0x1595   :  { %14395 = vmatpush2.bf16.msra.mxu0 %v16175_v63  ;;  %v16129_v63 = vcombine.low %v11975_v30, %v11979_v61  ;;  %v11923_v30 = vld [vmem:[#allocation8 + $0x738] sm:$0xff] }
0x1596   :  { %14436 = vmatpush2.bf16.msra.mxu1 %v15921_v17  ;;  %14396 = vmatprep.subr.bf16.mxu0 %v16168_v13  ;;  %v15994_v17 = vcombine.high %v11839_v4, %v11843_v26  ;;  %v16122_v13 = vcombine.high %v11967_v21, %v11971_v12  ;;  %v12047_v61 = vld [vmem:[#allocation8 + $0xb18] sm:$0xff] }
0x1597   :  { %14437 = vmatprep.subr.bf16.mxu1 %v15914_v40  ;;  %v11831_v40 = vld [vmem:[#allocation8 + $0x458] sm:$0xff] }
0x1598   :  { %v15985_v50 = vcombine.low %v11831_v40, %v11835_v37  ;;  %v11911_v26 = vld [vmem:[#allocation8 + $0x6d8] sm:$0xff] }
0x1599   :  { %14397 = vmatpush2.bf16.msra.mxu0 %v16167_v58  ;;  %v16121_v58 = vcombine.low %v11967_v21, %v11971_v12  ;;  %v11915_v21 = vld [vmem:[#allocation8 + $0x6f8] sm:$0xff] }
0x159a   :  { %14438 = vmatpush2.bf16.msra.mxu1 %v15913_v14  ;;  %14448 = vmatprep.subr.bf16.mxu0 %v16034_v7  ;;  %v15986_v14 = vcombine.high %v11831_v40, %v11835_v37  ;;  %v16114_v7 = vcombine.high %v11959_v47, %v11963_v18  ;;  %v12039_v12 = vld [vmem:[#allocation8 + $0xad8] sm:$0xff] }
0x159b   :  { %14489 = vmatprep.subr.bf16.mxu1 %v16162_v44  ;;  %v11823_v44 = vld [vmem:[#allocation8 + $0x418] sm:$0xff] }
0x159c   :  { %v14154_v36 = vpop.f32.mrf.mxu0  ;;  %v19353_v15 = vpop.f32.mrf.mxu1  ;;  %14399 = vmatmul.mubr.bf16.vlgmr.msra.gmra.mxu0 %v19327_v49  ;;  %v11903_v37 = vld [vmem:[#allocation8 + $0x698] sm:$0xff] }
0x159d   :  { %v19357_v31 = vadd.f32 %v14154_v36, %v19348_v51  ;;  %14440 = vmatmul.mubr.bf16.vlgmr.msra.gmra.mxu1 %v19310_v42  ;;  %14449 = vmatpush1.bf16.msra.mxu0 %v16033_v48  ;;  %v16146_v51 = vcombine.high %v11991_v29, %v11995_v35  ;;  %v11955_v48 = vld [vmem:[#allocation8 + $0x838] sm:$0xff] }
0x159e   :  { %14480 = vmatprep.mubr.bf16.mxu0 %v19308_v0  ;;  %14490 = vmatpush1.bf16.msra.mxu1 %v16161_v27  ;;  %v14156_v53 = vpop.f32.mrf.mxu0  ;;  %v19361_v34 = vpop.f32.mrf.mxu1  ;;  %v11987_v0 = vld [vmem:[#allocation8 + $0x938] sm:$0xff]  ;;  %v15978_v27 = vcombine.high %v11823_v44, %v11827_v20 }
0x159f   :  { %14521 = vmatprep.mubr.bf16.mxu1 %v19322_v38  ;;  %v19365_v56 = vadd.f32 %v14156_v53, %v19351_v55  ;;  %14450 = vmatprep.subr.bf16.mxu0 %v16026_v59  ;;  %v16145_v55 = vcombine.low %v11991_v29, %v11995_v35  ;;  %v16138_v57 = vcombine.high %v11983_v23, %v11987_v0  ;;  %v12071_v36 = vld [vmem:[#allocation8 + $0xbd8] sm:$0xff] }
0x15a0   :  { %v14158_v42 = vpop.f32.mrf.mxu0  ;;  %v14199_v16 = vpop.f32.mrf.mxu1  ;;  %14491 = vmatprep.subr.bf16.mxu1 %v16154_v9  ;;  %v16137_v33 = vcombine.low %v11983_v23, %v11987_v0  ;;  %v16106_v59 = vcombine.high %v11951_v46, %v11955_v48  ;;  %v12075_v9 = vld [vmem:[#allocation8 + $0xbf8] sm:$0xff]  ;;  %v15977_v29 = vcombine.low %v11823_v44, %v11827_v20  ;;  %v16105_v35 = vcombine.low %v11951_v46, %v11955_v48 }
0x15a1   :  { %v14538_v43 = vcombine.low %v19357_v31, %v19365_v56  ;;  %14451 = vmatpush1.bf16.msra.mxu0 %v16025_v5  ;;  %v16098_v5 = vcombine.high %v11943_v45, %v11947_v54  ;;  %v16226_v53 = vcombine.high %v12071_v36, %v12075_v9  ;;  %v16225_v42 = vcombine.low %v12071_v36, %v12075_v9  ;;  %v11927_v0 = vld [vmem:[#allocation8 + $0x758] sm:$0xff] }
0x15a2   :  { %14492 = vmatpush1.bf16.msra.mxu1 %v16153_v10  ;;  %v14159_v62 = vpop.f32.mrf.mxu0  ;;  %v14200_v38 = vpop.f32.mrf.mxu1  ;;  %14452 = vmatprep.subr.bf16.mxu0 %v16018_v11  ;;  %v11935_v10 = vld [vmem:[#allocation8 + $0x798] sm:$0xff] }
0x15a3   :  { %14493 = vmatprep.subr.bf16.mxu1 %v16146_v51  ;;  %v11939_v11 = vld [vmem:[#allocation8 + $0x7b8] sm:$0xff] }
0x15a4   :  { %v12063_v51 = vld [vmem:[#allocation8 + $0xb98] sm:$0xff]  ;;  %v16090_v16 = vcombine.high %v11935_v10, %v11939_v11 }
0x15a5   :  { %14453 = vmatpush1.bf16.msra.mxu0 %v16017_v3  ;;  %v16218_v23 = vcombine.high %v12063_v51, %v12067_v6  ;;  %v11931_v3 = vld [vmem:[#allocation8 + $0x778] sm:$0xff] }
0x15a6   :  { %14494 = vmatpush1.bf16.msra.mxu1 %v16145_v55  ;;  %14454 = vmatprep.subr.bf16.mxu0 %v16010_v22  ;;  %v12055_v62 = vld [vmem:[#allocation8 + $0xb58] sm:$0xff]  ;;  %v16089_v55 = vcombine.low %v11935_v10, %v11939_v11  ;;  %v16217_v22 = vcombine.low %v12063_v51, %v12067_v6  ;;  %v12088_v10 = vsub.s32 2, %v19337_v39  ;;  %v12092_v51 = vsub.s32 3, %v19337_v39 }
0x15a7   :  { %14495 = vmatprep.subr.bf16.mxu1 %v16138_v57  ;;  %v12059_v38 = vld [vmem:[#allocation8 + $0xb78] sm:$0xff]  ;;  %v16082_v57 = vcombine.high %v11927_v0, %v11931_v3 }
0x15a8   :  { %v16210_v25 = vcombine.high %v12055_v62, %v12059_v38  ;;  %v11907_v47 = vld [vmem:[#allocation8 + $0x6b8] sm:$0xff] }
0x15a9   :  { %14455 = vmatpush1.bf16.msra.mxu0 %v16009_v28  ;;  %v12051_v28 = vld [vmem:[#allocation8 + $0xb38] sm:$0xff] }
0x15aa   :  { %14496 = vmatpush1.bf16.msra.mxu1 %v16137_v33  ;;  %14456 = vmatprep.subr.bf16.mxu0 %v16002_v60  ;;  %v16081_v33 = vcombine.low %v11927_v0, %v11931_v3  ;;  %v16209_v60 = vcombine.low %v12055_v62, %v12059_v38  ;;  %v16202_v4 = vcombine.high %v12047_v61, %v12051_v28  ;;  %v12031_v18 = vld [vmem:[#allocation8 + $0xa98] sm:$0xff] }
0x15ab   :  { %14497 = vmatprep.subr.bf16.mxu1 %v16130_v24  ;;  %v16074_v24 = vcombine.high %v11919_v52, %v11923_v30  ;;  %v11895_v20 = vld [vmem:[#allocation8 + $0x658] sm:$0xff]  ;;  %v12093_v0 = vrot.slane %v19340_v41, %v12092_v51 }
0x15ac   :  { %v11899_v46 = vld [vmem:[#allocation8 + $0x678] sm:$0xff] }
0x15ad   :  { %14457 = vmatpush1.bf16.msra.mxu0 %v16001_v2  ;;  %v12043_v2 = vld [vmem:[#allocation8 + $0xaf8] sm:$0xff] }
0x15ae   :  { %14498 = vmatpush1.bf16.msra.mxu1 %v16129_v63  ;;  %14458 = vmatprep.subr.bf16.mxu0 %v15994_v17  ;;  %v16073_v63 = vcombine.low %v11919_v52, %v11923_v30  ;;  %v16201_v17 = vcombine.low %v12047_v61, %v12051_v28  ;;  %v16194_v40 = vcombine.high %v12039_v12, %v12043_v2  ;;  %v12023_v48 = vld [vmem:[#allocation8 + $0xa58] sm:$0xff] }
0x15af   :  { %14499 = vmatprep.subr.bf16.mxu1 %v16122_v13  ;;  %v16066_v13 = vcombine.high %v11911_v26, %v11915_v21  ;;  %v11887_v54 = vld [vmem:[#allocation8 + $0x618] sm:$0xff] }
0x15b0   :  { %v11891_v36 = vld [vmem:[#allocation8 + $0x638] sm:$0xff] }
0x15b1   :  { %14459 = vmatpush1.bf16.msra.mxu0 %v15993_v19  ;;  %v12035_v19 = vld [vmem:[#allocation8 + $0xab8] sm:$0xff]  ;;  %v16041_v6 = vcombine.low %v11887_v54, %v11891_v36 }
0x15b2   :  { %14500 = vmatpush1.bf16.msra.mxu1 %v16121_v58  ;;  %14460 = vmatprep.subr.bf16.mxu0 %v15986_v14  ;;  %v16065_v58 = vcombine.low %v11911_v26, %v11915_v21  ;;  %v16193_v14 = vcombine.low %v12039_v12, %v12043_v2  ;;  %v16186_v44 = vcombine.high %v12031_v18, %v12035_v19  ;;  %v12015_v9 = vld [vmem:[#allocation8 + $0xa18] sm:$0xff]  ;;  %v12100_v12 = vsub.s32 5, %v19337_v39 }
0x15b3   :  { %14501 = vmatprep.subr.bf16.mxu1 %v16114_v7  ;;  %v16058_v7 = vcombine.high %v11903_v37, %v11907_v47 }
0x15b5   :  { %14461 = vmatpush1.bf16.msra.mxu0 %v15985_v50  ;;  %v12027_v50 = vld [vmem:[#allocation8 + $0xa78] sm:$0xff] }
0x15b6   :  { %14502 = vmatpush1.bf16.msra.mxu1 %v16113_v32  ;;  %14462 = vmatprep.subr.bf16.mxu0 %v15978_v27  ;;  %v16057_v32 = vcombine.low %v11903_v37, %v11907_v47  ;;  %v16185_v27 = vcombine.low %v12031_v18, %v12035_v19  ;;  %v16178_v45 = vcombine.high %v12023_v48, %v12027_v50 }
0x15b7   :  { %14503 = vmatprep.subr.bf16.mxu1 %v16106_v59  ;;  %v16050_v59 = vcombine.high %v11895_v20, %v11899_v46 }
0x15b9   :  { %14463 = vmatpush1.bf16.msra.mxu0 %v15977_v29  ;;  %v12019_v29 = vld [vmem:[#allocation8 + $0xa38] sm:$0xff] }
0x15ba   :  { %14504 = vmatpush1.bf16.msra.mxu1 %v16105_v35  ;;  %14464 = vmatprep.subr.bf16.mxu0 %v16098_v5  ;;  %v16049_v35 = vcombine.low %v11895_v20, %v11899_v46  ;;  %v16177_v5 = vcombine.low %v12023_v48, %v12027_v50  ;;  %v16170_v11 = vcombine.high %v12015_v9, %v12019_v29 }
0x15bb   :  { %14505 = vmatprep.subr.bf16.mxu1 %v16226_v53  ;;  %v16042_v53 = vcombine.high %v11887_v54, %v11891_v36  ;;  %v12104_v36 = vsub.s32 6, %v19337_v39 }
0x15bd   :  { %14465 = vmatpush2.bf16.msra.mxu0 %v16097_v8  ;;  %v16169_v8 = vcombine.low %v12015_v9, %v12019_v29  ;;  %v12108_v9 = vsub.s32 7, %v19337_v39  ;;  %v12105_v29 = vrot.slane %v19340_v41, %v12104_v36 }
0x15be   :  { %14506 = vmatpush2.bf16.msra.mxu1 %v16225_v42  ;;  %14466 = vmatprep.subr.bf16.mxu0 %v16090_v16  ;;  %v12089_v42 = vrot.slane %v19340_v41, %v12088_v10  ;;  %v18387_v16 = vmov 1983009808  }
0x15bf   :  { %14507 = vmatprep.subr.bf16.mxu1 %v16218_v23  ;;  %v14541_v23 = vunpack.c.l.s4 %v18387_v16 }
0x15c0   :  { %v14196_v3 = vadd.f32 %v19353_v15, %v12089_v42 }
0x15c1   :  { %14467 = vmatpush2.bf16.msra.mxu0 %v16089_v55  ;;  %v14542_v38 = vunpack.c.0.s8 %v14541_v23  ;;  %v14198_v55 = vadd.f32 %v19361_v34, %v12093_v0 }
0x15c2   :  { %14508 = vmatpush2.bf16.msra.mxu1 %v16217_v22  ;;  %14468 = vmatprep.subr.bf16.mxu0 %v16082_v57 }
0x15c3   :  { %14509 = vmatprep.subr.bf16.mxu1 %v16210_v25  ;;  %v14545_v28 = vsub.s32 %v14542_v38, %v19337_v39 }
0x15c5   :  { %14469 = vmatpush2.bf16.msra.mxu0 %v16081_v33 }
0x15c6   :  { %14510 = vmatpush2.bf16.msra.mxu1 %v16209_v60  ;;  %14470 = vmatprep.subr.bf16.mxu0 %v16074_v24 }
0x15c7   :  { %14511 = vmatprep.subr.bf16.mxu1 %v16202_v4 }
0x15c9   :  { %14471 = vmatpush2.bf16.msra.mxu0 %v16073_v63  ;;  %v12101_v63 = vrot.slane %v19340_v41, %v12100_v12 }
0x15ca   :  { %14512 = vmatpush2.bf16.msra.mxu1 %v16201_v17  ;;  %14472 = vmatprep.subr.bf16.mxu0 %v16066_v13 }
0x15cb   :  { %14513 = vmatprep.subr.bf16.mxu1 %v16194_v40 }
0x15cd   :  { %14473 = vmatpush2.bf16.msra.mxu0 %v16065_v58 }
0x15ce   :  { %14514 = vmatpush2.bf16.msra.mxu1 %v16193_v14  ;;  %14474 = vmatprep.subr.bf16.mxu0 %v16058_v7 }
0x15cf   :  { %14515 = vmatprep.subr.bf16.mxu1 %v16186_v44 }
0x15d1   :  { %14475 = vmatpush2.bf16.msra.mxu0 %v16057_v32 }
0x15d2   :  { %14516 = vmatpush2.bf16.msra.mxu1 %v16185_v27  ;;  %14476 = vmatprep.subr.bf16.mxu0 %v16050_v59 }
0x15d3   :  { %14517 = vmatprep.subr.bf16.mxu1 %v16178_v45 }
0x15d5   :  { %14477 = vmatpush2.bf16.msra.mxu0 %v16049_v35  ;;  %v12109_v35 = vrot.slane %v19340_v41, %v12108_v9 }
0x15d6   :  { %14518 = vmatpush2.bf16.msra.mxu1 %v16177_v5  ;;  %14478 = vmatprep.subr.bf16.mxu0 %v16042_v53 }
0x15d7   :  { %14519 = vmatprep.subr.bf16.mxu1 %v16170_v11 }
0x15d9   :  { %14479 = vmatpush2.bf16.msra.mxu0 %v16041_v6 }
0x15da   :  { %14520 = vmatpush2.bf16.msra.mxu1 %v16169_v8 }
0x15dc   :  { %v14236_v62 = vpop.f32.mrf.mxu0  ;;  %14481 = vmatmul.mubr.bf16.vlgmr.msra.gmra.mxu0 %v19312_v1  ;;  %v14546_v1 = vrot.slane %v14538_v43, %v14545_v28 }
0x15dd   :  { %v14237_v22 = vadd.f32 %v14236_v62, %v14196_v3  ;;  %v14277_v57 = vpop.f32.mrf.mxu1  ;;  %14522 = vmatmul.mubr.bf16.vlgmr.msra.gmra.mxu1 %v19327_v49  ;;  %v12096_v49 = vsub.s32 4, %v19337_v39 }
0x15de   :  { %v14238_v25 = vpop.f32.mrf.mxu0 }
0x15df   :  { %v14239_v52 = vadd.f32 %v14238_v25, %v14198_v55  ;;  %v14279_v30 = vpop.f32.mrf.mxu1  ;;  %v14278_v33 = vadd.f32 %v14277_v57, %v14237_v22  ;;  %v12097_v2 = vrot.slane %v19340_v41, %v12096_v49 }
0x15e0   :  { %v14240_v61 = vpop.f32.mrf.mxu0 }
0x15e1   :  { %v14280_v60 = vadd.f32 %v14279_v30, %v14239_v52  ;;  %v14281_v24 = vpop.f32.mrf.mxu1 }
0x15e2   :  { %v14241_v15 = vpop.f32.mrf.mxu0 }
0x15e3   :  { %v14539_v4 = vcombine.low %v14278_v33, %v14280_v60  ;;  %v14282_v26 = vpop.f32.mrf.mxu1 }
0x15e5   :  { %v14553_v34 = vrot.slane %v14539_v4, %v14545_v28 }
0x15e7   :  { %v14554_v21 = vcombine.low %v14546_v1, %v14553_v34 }
0x15e9   :  { %14574 = vst [vmem:[#allocation11] sm:$0xff] %v14554_v21 }
0x161c   :  { %v14318_v17 = vpop.f32.mrf.mxu0 }
0x161d   :  { %v14319_v13 = vadd.f32 %v14318_v17, %v12097_v2  ;;  %v14359_v40 = vpop.f32.mrf.mxu1 }
0x161e   :  { %v14320_v37 = vpop.f32.mrf.mxu0 }
0x161f   :  { %v14360_v47 = vadd.f32 %v14359_v40, %v14319_v13  ;;  %v14321_v18 = vadd.f32 %v14320_v37, %v12101_v63  ;;  %v14361_v19 = vpop.f32.mrf.mxu1 }
0x1620   :  { %v14322_v31 = vpop.f32.mrf.mxu0 }
0x1621   :  { %v14362_v56 = vadd.f32 %v14361_v19, %v14321_v18  ;;  %v14363_v43 = vpop.f32.mrf.mxu1 }
0x1622   :  { %v14323_v58 = vpop.f32.mrf.mxu0 }
0x1623   :  { %v14364_v14 = vpop.f32.mrf.mxu1 }
0x165c   :  { %v14400_v7 = vpop.f32.mrf.mxu0 }
0x165d   :  { %v14401_v44 = vadd.f32 %v14400_v7, %v14360_v47  ;;  %v14441_v20 = vpop.f32.mrf.mxu1 }
0x165e   :  { %v14402_v46 = vpop.f32.mrf.mxu0  ;;  %v14442_v5 = vadd.f32 %v14441_v20, %v12105_v29 }
0x165f   :  { %v14403_v48 = vadd.f32 %v14402_v46, %v14362_v56  ;;  %v14443_v50 = vpop.f32.mrf.mxu1 }
0x1660   :  { %v14404_v32 = vpop.f32.mrf.mxu0  ;;  %v14444_v10 = vadd.f32 %v14443_v50, %v12109_v35 }
0x1661   :  { %v14555_v27 = vcombine.low %v14401_v44, %v14403_v48  ;;  %v14445_v59 = vpop.f32.mrf.mxu1 }
0x1662   :  { %v14405_v45 = vpop.f32.mrf.mxu0 }
0x1663   :  { %v14446_v54 = vpop.f32.mrf.mxu1  ;;  %v14563_v39 = vrot.slane %v14555_v27, %v14545_v28 }
0x169c   :  { %v14482_v53 = vpop.f32.mrf.mxu0 }
0x169d   :  { %v14483_v11 = vadd.f32 %v14482_v53, %v14442_v5  ;;  %v14523_v51 = vpop.f32.mrf.mxu1 }
0x169e   :  { %v14484_v6 = vpop.f32.mrf.mxu0 }
0x169f   :  { %v14485_v8 = vadd.f32 %v14484_v6, %v14444_v10  ;;  %v14525_v42 = vpop.f32.mrf.mxu1  ;;  %v14524_v23 = vadd.f32 %v14523_v51, %v14483_v11 }
0x16a0   :  { %v14486_v16 = vpop.f32.mrf.mxu0 }
0x16a1   :  { %v14526_v0 = vadd.f32 %v14525_v42, %v14485_v8  ;;  %v14527_v3 = vpop.f32.mrf.mxu1 }
0x16a2   :  { %v14487_v62 = vpop.f32.mrf.mxu0 }
0x16a3   :  { %v14556_v38 = vcombine.low %v14524_v23, %v14526_v0  ;;  %v14528_v55 = vpop.f32.mrf.mxu1 }
0x16a5   :  { %v14570_v22 = vrot.slane %v14556_v38, %v14545_v28 }
0x16a7   :  { %v14571_v41 = vcombine.low %v14563_v39, %v14570_v22 }
0x16a9   :  { %14575 = vst [vmem:[#allocation11 + $0x8] sm:$0xff] %v14571_v41 }
0x16aa   :  { %18358 = shalt.err (!%p18355_p1)
}
0x16ab   :  { %14585 = dma.vmem_to_hbm [thread:$0]  %s14583_s17, 256, %s19398_s6, [#allocation4]  }
0x16ac   :  { %18373 = dma.done.wait [#allocation4], 256  }
0x16ad   :  { %18374 = vsyncadd [#allocation4], 4294967040 }
0x16ae   :  { %14589 = vsyncpa [#allocation3], 1 }
0x16af   :  { %14590 = vsyncpa [#allocation6], 1 }
0x16b0   :  { %14591 = vsyncpa [#allocation9], 1 }
0x16b1   :  { %14592 = vsyncpa [#allocation4], 1 }

</bundles_post_ra>
